<compile_context>
chip_gen: v7x
topology: tpu7x:2x2x1
jax: 0.10.0
libtpu: 0.0.40
codegen_flags: <defaults>
</compile_context>

<pallas_src>
import functools
import math

import jax
import jax.numpy as jnp
from jax.experimental import pallas as pl
from jax.experimental.pallas import tpu as pltpu


def transformer_block_kernel(
    x_ref,       # (T, C)    f32  full sequence for this batch element
    wk_ref,      # (C, C)    bf16 (pre-scaled by 1/sqrt(head_dim))
    wq_ref,      # (C, C)    bf16
    wv_ref,      # (C, C)    bf16
    w1_ref,      # (C, d_ff) bf16
    w2_ref,      # (d_ff, C) bf16
    rows_ref,    # (8, C)    f32  rows: [g1, be1, bk*scale, bq, bv, g2, be2, b2]
    b1_ref,      # (1, d_ff) f32
    o_ref,       # (TQ, C)   f32
    kb_scr,      # (T, C)    bf16 scratch -- persists across qi steps
    qb_scr,      # (T, C)    bf16 scratch
    vb_scr,      # (T, C)    bf16 scratch
    attn_scr,    # (TQ, C)   f32  scratch -- per-head outputs land here
    *,
    n_heads: int,
    q_tile: int,
):
    eps = 1e-5
    T, C = x_ref.shape
    hd = C // n_heads
    TQ = q_tile
    neg_big = jnp.float32(-1e30)   # finite large-negative; safe (see header)

    qi = pl.program_id(1)
    t0 = pl.multiple_of(qi * TQ, TQ)          # global row offset of this tile

    rows = rows_ref[...]
    g1, be1 = rows[0:1, :], rows[1:2, :]
    bk, bq, bv = rows[2:3, :], rows[3:4, :], rows[4:5, :]
    g2, be2, b2 = rows[5:6, :], rows[6:7, :], rows[7:8, :]
    b1 = b1_ref[...]

    def layer_norm(z, g, b):
        mu = jnp.mean(z, axis=-1, keepdims=True)
        var = jnp.mean((z - mu) ** 2, axis=-1, keepdims=True)
        return (z - mu) * jax.lax.rsqrt(var + eps) * g + b

    # ---- Hoisted: full-sequence LayerNorm-1 + K/Q/V projections, once per b.
    #      (qi axis is "arbitrary" so these scratch slabs persist across qi.)
    @pl.when(qi == 0)
    def _():
        hx = layer_norm(x_ref[...], g1, be1).astype(jnp.bfloat16)   # (T, C)
        kb_scr[...] = (jnp.dot(hx, wk_ref[...],
                               preferred_element_type=jnp.float32) + bk
                       ).astype(jnp.bfloat16)
        qb_scr[...] = (jnp.dot(hx, wq_ref[...],
                               preferred_element_type=jnp.float32) + bq
                       ).astype(jnp.bfloat16)
        vb_scr[...] = (jnp.dot(hx, wv_ref[...],
                               preferred_element_type=jnp.float32) + bv
                       ).astype(jnp.bfloat16)

    # ---- Attention for this row tile.  Rows of the quirky k @ q^T scores are
    #      K positions == output positions; columns are Q positions; causal
    #      mask allows col <= row.  Stream over causal column blocks with an
    #      online softmax; trip count = qi + 1 (blocks past the diagonal are
    #      fully masked and skipped).
    row_ids = t0 + jax.lax.broadcasted_iota(jnp.int32, (TQ, TQ), 0)
    col_base = jax.lax.broadcasted_iota(jnp.int32, (TQ, TQ), 1)
    n_kv = qi + 1

    for h in range(n_heads):
        sl = slice(h * hd, (h + 1) * hd)
        kh = kb_scr[pl.ds(t0, TQ), sl]     # (TQ, hd) bf16, already 1/sqrt(hd)-scaled

        def kv_step(j, carry, sl=sl, kh=kh):
            m, l, acc = carry
            c0 = pl.multiple_of(j * TQ, TQ)
            qh = qb_scr[pl.ds(c0, TQ), sl]                       # (TQ, hd) bf16
            vh = vb_scr[pl.ds(c0, TQ), sl]                       # (TQ, hd) bf16
            s = jax.lax.dot_general(kh, qh, (((1,), (1,)), ((), ())),
                                    preferred_element_type=jnp.float32)  # (TQ, TQ)
            s = jnp.where((col_base + c0) <= row_ids, s, neg_big)
            m_new = jnp.maximum(m, jnp.max(s, axis=-1, keepdims=True))
            alpha = jnp.exp(m - m_new)
            p = jnp.exp(s - m_new)
            l_new = alpha * l + jnp.sum(p, axis=-1, keepdims=True)
            acc_new = alpha * acc + jnp.dot(p.astype(jnp.bfloat16), vh,
                                            preferred_element_type=jnp.float32)
            return m_new, l_new, acc_new

        m0 = jnp.full((TQ, 1), neg_big, jnp.float32)
        l0 = jnp.zeros((TQ, 1), jnp.float32)
        a0 = jnp.zeros((TQ, hd), jnp.float32)
        _, l_fin, acc_fin = jax.lax.fori_loop(0, n_kv, kv_step, (m0, l0, a0))
        # EUP reciprocal instead of VALU divide; write at lane-aligned offsets.
        attn_scr[:, sl] = acc_fin * pl.reciprocal(l_fin, approx=True)

    # ---- Residual 1 + LayerNorm-2 + FFN + residual 2 on the row tile. -------
    x_tile = x_ref[pl.ds(t0, TQ), :]                              # (TQ, C) f32
    x1 = x_tile + attn_scr[...]
    h2 = layer_norm(x1, g2, be2).astype(jnp.bfloat16)
    ff = jnp.dot(h2, w1_ref[...], preferred_element_type=jnp.float32) + b1
    ff = jnp.maximum(ff, 0.0).astype(jnp.bfloat16)
    ff = jnp.dot(ff, w2_ref[...], preferred_element_type=jnp.float32) + b2
    o_ref[...] = x1 + ff


def transformer_block(x, params, n_heads, *, q_tile=128):
    # NOTE: on v6e, q_tile=256 amortizes per-step overhead better; 128 is the
    # safe default (v5e MXU is 128x128, and it keeps the test tiling exercised).
    B, T, C = x.shape
    d_ff = params["w1"].shape[1]
    assert C % n_heads == 0
    hd = C // n_heads
    TQ = min(q_tile, T)
    assert T % TQ == 0
    nq = T // TQ
    scale = 1.0 / math.sqrt(hd)

    # Fused (C, 3C) attention projection split host-side (PyTorch split order:
    # k, q, v); 1/sqrt(head_dim) folded into the K projection; matmul weights
    # cast to bf16 (halves weight DMA / VMEM; accumulation stays f32).
    w_attn, b_attn = params["w_attn"], params["b_attn"]
    wk = (w_attn[:, 0 * C:1 * C] * scale).astype(jnp.bfloat16)
    wq = w_attn[:, 1 * C:2 * C].astype(jnp.bfloat16)
    wv = w_attn[:, 2 * C:3 * C].astype(jnp.bfloat16)
    bk = b_attn[:, 0 * C:1 * C] * scale
    bq = b_attn[:, 1 * C:2 * C]
    bv = b_attn[:, 2 * C:3 * C]
    w1 = params["w1"].astype(jnp.bfloat16)
    w2 = params["w2"].astype(jnp.bfloat16)

    # Pack all (1, C)-shaped parameter rows into one (8, C) operand.
    rows_c = jnp.concatenate(
        [params["g1"], params["be1"], bk, bq, bv,
         params["g2"], params["be2"], params["b2"]], axis=0)          # (8, C)

    kernel = functools.partial(transformer_block_kernel,
                               n_heads=n_heads, q_tile=TQ)

    def const2d(shape):
        # Replicated operand: same block at every grid step (re-DMA'd only
        # when the block index changes, i.e. never).
        return pl.BlockSpec(shape, lambda b, qi: (0, 0))

    # VMEM budget from the actual footprint (double-buffered inputs/outputs +
    # persistent scratch), capped at 64 MiB so it is valid on v7x too.
    est = (2 * T * C * 4                         # x full-seq block
           + 2 * (3 * C * C + 2 * C * d_ff) * 2  # bf16 weights
           + 2 * (8 * C + d_ff) * 4              # packed rows + b1
           + 2 * TQ * C * 4                      # output block
           + 3 * T * C * 2 + TQ * C * 4)         # scratch (k/q/v bf16 + attn)
    vmem_limit = int(min(64 * 2**20, max(32 * 2**20, 2 * est)))

    return pl.pallas_call(
        kernel,
        out_shape=jax.ShapeDtypeStruct((B, T, C), jnp.float32),
        grid_spec=pltpu.PrefetchScalarGridSpec(
            num_scalar_prefetch=0,
            grid=(B, nq),
            in_specs=[
                pl.BlockSpec((None, T, C), lambda b, qi: (b, 0, 0)),  # x (full)
                const2d((C, C)), const2d((C, C)), const2d((C, C)),    # wk,wq,wv
                const2d((C, d_ff)), const2d((d_ff, C)),               # w1, w2
                const2d((8, C)),                                      # param rows
                const2d((1, d_ff)),                                   # b1
            ],
            out_specs=pl.BlockSpec((None, TQ, C), lambda b, qi: (b, qi, 0)),
            scratch_shapes=[
                pltpu.VMEM((T, C), jnp.bfloat16),   # k (pre-scaled), per batch
                pltpu.VMEM((T, C), jnp.bfloat16),   # q
                pltpu.VMEM((T, C), jnp.bfloat16),   # v
                pltpu.VMEM((TQ, C), jnp.float32),   # per-tile attention output
            ],
        ),
        compiler_params=pltpu.CompilerParams(
            # qi must be "arbitrary": the k/q/v scratch computed at qi == 0 is
            # reused by later qi steps.  B stays "parallel" (megacore / v7x).
            dimension_semantics=("parallel", "arbitrary"),
            vmem_limit_bytes=vmem_limit,
        ),
    )(x, wk, wq, wv, w1, w2, rows_c, params["b1"])


def reference_block(x, params, n_heads):
    """Pure-JAX f32 reference matching the PyTorch forward semantics."""
    eps = 1e-5
    B, T, C = x.shape
    hd = C // n_heads

    def ln(z, g, b):
        mu = jnp.mean(z, axis=-1, keepdims=True)
        var = jnp.mean((z - mu) ** 2, axis=-1, keepdims=True)
        return (z - mu) / jnp.sqrt(var + eps) * g + b

    h = ln(x, params["g1"], params["be1"])
    qkv = h @ params["w_attn"] + params["b_attn"]
    k, q, v = jnp.split(qkv, 3, axis=-1)
    k = k.reshape(B, T, n_heads, hd).transpose(0, 2, 1, 3)
    q = q.reshape(B, T, n_heads, hd).transpose(0, 2, 1, 3)
    v = v.reshape(B, T, n_heads, hd).transpose(0, 2, 1, 3)
    s = jnp.einsum("bhid,bhjd->bhij", k, q) / math.sqrt(hd)
    mask = jnp.tril(jnp.ones((T, T), dtype=bool))
    s = jnp.where(mask[None, None], s, -jnp.inf)
    p = jax.nn.softmax(s, axis=-1)
    out = jnp.einsum("bhij,bhjd->bhid", p, v)
    out = out.transpose(0, 2, 1, 3).reshape(B, T, C)
    x1 = x + out
    h2 = ln(x1, params["g2"], params["be2"])
    ff = jnp.maximum(h2 @ params["w1"] + params["b1"], 0.0) @ params["w2"] + params["b2"]
    return x1 + ff


if __name__ == "__main__":
    # Small but TPU-friendly config: C, d_ff, head_dim multiples of 128 and
    # T = 256 with q_tile = 128 so the sequence tiling (grid = (B, 2)) and the
    # causal kv-block streaming are actually exercised against the reference.
    B, T, C, n_heads, d_ff = 2, 256, 256, 2, 512

    key = jax.random.PRNGKey(0)
    ks = jax.random.split(key, 11)

    params = {
        # Linear weights stored pre-transposed as (in, out).
        "w_attn": 0.02 * jax.random.normal(ks[0], (C, 3 * C), jnp.float32),
        "b_attn": 0.02 * jax.random.normal(ks[1], (1, 3 * C), jnp.float32),
        "w1": 0.02 * jax.random.normal(ks[2], (C, d_ff), jnp.float32),
        "b1": 0.02 * jax.random.normal(ks[3], (1, d_ff), jnp.float32),
        "w2": 0.02 * jax.random.normal(ks[4], (d_ff, C), jnp.float32),
        "b2": 0.02 * jax.random.normal(ks[5], (1, C), jnp.float32),
        "g1": 1.0 + 0.1 * jax.random.normal(ks[6], (1, C), jnp.float32),
        "be1": 0.1 * jax.random.normal(ks[7], (1, C), jnp.float32),
        "g2": 1.0 + 0.1 * jax.random.normal(ks[8], (1, C), jnp.float32),
        "be2": 0.1 * jax.random.normal(ks[9], (1, C), jnp.float32),
    }

    x = jax.random.normal(ks[10], (B, T, C), jnp.float32)

    out = transformer_block(x, params, n_heads, q_tile=128)
    out = jax.block_until_ready(out)

    ref = reference_block(x, params, n_heads)
    assert out.shape == (B, T, C)
    max_err = float(jnp.max(jnp.abs(out - ref)))
    # bf16 matmul operands + approx reciprocal => slightly looser tolerance
    # than the pure-f32 reference.
    assert bool(jnp.allclose(out, ref, rtol=2e-2, atol=2e-2)), (
        f"mismatch vs reference (max abs err {max_err})")

    print("KERNEL_OK")
</pallas_src>

<mosaic_0001>
module attributes {stable_mosaic.version = 11 : i64} {
  func.func @transformer_block_kernel(%arg0: i32, %arg1: i32, %arg2: memref<1x256x256xf32, #tpu.memory_space<vmem>>, %arg3: memref<256x256xbf16, #tpu.memory_space<vmem>>, %arg4: memref<256x256xbf16, #tpu.memory_space<vmem>>, %arg5: memref<256x256xbf16, #tpu.memory_space<vmem>>, %arg6: memref<256x512xbf16, #tpu.memory_space<vmem>>, %arg7: memref<512x256xbf16, #tpu.memory_space<vmem>>, %arg8: memref<8x256xf32, #tpu.memory_space<vmem>>, %arg9: memref<1x512xf32, #tpu.memory_space<vmem>>, %arg10: memref<1x128x256xf32, #tpu.memory_space<vmem>>, %arg11: memref<256x256xbf16, #tpu.memory_space<vmem>>, %arg12: memref<256x256xbf16, #tpu.memory_space<vmem>>, %arg13: memref<256x256xbf16, #tpu.memory_space<vmem>>, %arg14: memref<128x256xf32, #tpu.memory_space<vmem>>) attributes {dimension_semantics = [#tpu.dimension_semantics<parallel>, #tpu.dimension_semantics<arbitrary>], iteration_bounds = array<i64: 2, 2>, scalar_prefetch = 0 : i64, scratch_operands = 4 : i64, tpu.core_type = #tpu.core_type<tc>, window_params = [{transform_indices = @transform_0, window_bounds = array<i64: 1, 256, 256>}, {pipeline_mode = #tpu.pipeline_mode<synchronous>, transform_indices = @transform_1, window_bounds = array<i64: 256, 256>}, {pipeline_mode = #tpu.pipeline_mode<synchronous>, transform_indices = @transform_2, window_bounds = array<i64: 256, 256>}, {pipeline_mode = #tpu.pipeline_mode<synchronous>, transform_indices = @transform_3, window_bounds = array<i64: 256, 256>}, {pipeline_mode = #tpu.pipeline_mode<synchronous>, transform_indices = @transform_4, window_bounds = array<i64: 256, 512>}, {pipeline_mode = #tpu.pipeline_mode<synchronous>, transform_indices = @transform_5, window_bounds = array<i64: 512, 256>}, {pipeline_mode = #tpu.pipeline_mode<synchronous>, transform_indices = @transform_6, window_bounds = array<i64: 8, 256>}, {pipeline_mode = #tpu.pipeline_mode<synchronous>, transform_indices = @transform_7, window_bounds = array<i64: 1, 512>}, {transform_indices = @transform_8, window_bounds = array<i64: 1, 128, 256>}]} {
    %c128_i32 = arith.constant 128 : i32
    %0 = arith.muli %arg1, %c128_i32 : i32
    %1 = tpu.assume_multiple %0, 128 : i32
    %c0 = arith.constant 0 : index
    %c0_0 = arith.constant 0 : index
    %2 = vector.load %arg8[%c0, %c0_0] : memref<8x256xf32, #tpu.memory_space<vmem>>, vector<8x256xf32>
    %3 = vector.extract_strided_slice %2 {offsets = [0, 0], sizes = [1, 256], strides = [1, 1]} : vector<8x256xf32> to vector<1x256xf32>
    %4 = vector.extract_strided_slice %2 {offsets = [1, 0], sizes = [1, 256], strides = [1, 1]} : vector<8x256xf32> to vector<1x256xf32>
    %5 = vector.extract_strided_slice %2 {offsets = [2, 0], sizes = [1, 256], strides = [1, 1]} : vector<8x256xf32> to vector<1x256xf32>
    %6 = vector.extract_strided_slice %2 {offsets = [3, 0], sizes = [1, 256], strides = [1, 1]} : vector<8x256xf32> to vector<1x256xf32>
    %7 = vector.extract_strided_slice %2 {offsets = [4, 0], sizes = [1, 256], strides = [1, 1]} : vector<8x256xf32> to vector<1x256xf32>
    %8 = vector.extract_strided_slice %2 {offsets = [5, 0], sizes = [1, 256], strides = [1, 1]} : vector<8x256xf32> to vector<1x256xf32>
    %9 = vector.extract_strided_slice %2 {offsets = [6, 0], sizes = [1, 256], strides = [1, 1]} : vector<8x256xf32> to vector<1x256xf32>
    %10 = vector.extract_strided_slice %2 {offsets = [7, 0], sizes = [1, 256], strides = [1, 1]} : vector<8x256xf32> to vector<1x256xf32>
    %c0_1 = arith.constant 0 : index
    %c0_2 = arith.constant 0 : index
    %11 = vector.load %arg9[%c0_1, %c0_2] : memref<1x512xf32, #tpu.memory_space<vmem>>, vector<1x512xf32>
    %c0_i32 = arith.constant 0 : i32
    %12 = arith.cmpi eq, %arg1, %c0_i32 : i32
    %13 = arith.extui %12 : i1 to i32
    %c0_i32_3 = arith.constant 0 : i32
    %14 = arith.cmpi ne, %13, %c0_i32_3 : i32
    scf.if %14 {
      %c0_39 = arith.constant 0 : index
      %c0_40 = arith.constant 0 : index
      %c0_41 = arith.constant 0 : index
      %87 = vector.load %arg2[%c0_39, %c0_40, %c0_41] : memref<1x256x256xf32, #tpu.memory_space<vmem>>, vector<1x256x256xf32>
      %88 = vector.shape_cast %87 : vector<1x256x256xf32> to vector<256x256xf32>
      %cst_42 = arith.constant dense<0.000000e+00> : vector<256xf32>
      %89 = vector.multi_reduction <add>, %88, %cst_42 [1] : vector<256x256xf32> to vector<256xf32>
      %90 = vector.shape_cast %89 : vector<256xf32> to vector<256x1xf32>
      %cst_43 = arith.constant 2.560000e+02 : f32
      %91 = vector.broadcast %cst_43 : f32 to vector<256x1xf32>
      %92 = arith.divf %90, %91 : vector<256x1xf32>
      %93 = vector.broadcast %92 : vector<256x1xf32> to vector<256x256xf32>
      %94 = arith.subf %88, %93 : vector<256x256xf32>
      %95 = arith.mulf %94, %94 : vector<256x256xf32>
      %cst_44 = arith.constant dense<0.000000e+00> : vector<256xf32>
      %96 = vector.multi_reduction <add>, %95, %cst_44 [1] : vector<256x256xf32> to vector<256xf32>
      %97 = vector.shape_cast %96 : vector<256xf32> to vector<256x1xf32>
      %cst_45 = arith.constant 2.560000e+02 : f32
      %98 = vector.broadcast %cst_45 : f32 to vector<256x1xf32>
      %99 = arith.divf %97, %98 : vector<256x1xf32>
      %100 = vector.broadcast %92 : vector<256x1xf32> to vector<256x256xf32>
      %101 = arith.subf %88, %100 : vector<256x256xf32>
      %cst_46 = arith.constant 9.99999974E-6 : f32
      %102 = vector.broadcast %cst_46 : f32 to vector<256x1xf32>
      %103 = arith.addf %99, %102 : vector<256x1xf32>
      %104 = math.rsqrt %103 : vector<256x1xf32>
      %105 = vector.broadcast %104 : vector<256x1xf32> to vector<256x256xf32>
      %106 = arith.mulf %101, %105 : vector<256x256xf32>
      %107 = vector.broadcast %3 : vector<1x256xf32> to vector<256x256xf32>
      %108 = arith.mulf %106, %107 : vector<256x256xf32>
      %109 = vector.broadcast %4 : vector<1x256xf32> to vector<256x256xf32>
      %110 = arith.addf %108, %109 : vector<256x256xf32>
      %111 = arith.truncf %110 : vector<256x256xf32> to vector<256x256xbf16>
      %c0_47 = arith.constant 0 : index
      %c0_48 = arith.constant 0 : index
      %112 = vector.load %arg3[%c0_47, %c0_48] : memref<256x256xbf16, #tpu.memory_space<vmem>>, vector<256x256xbf16>
      %cst_49 = arith.constant dense<0.000000e+00> : vector<256x256xf32>
      %113 = tpu.matmul %111, %112, %cst_49 {dimension_numbers = #tpu.dot_dimension_numbers<[1], [0], [0], [1], [0, 0, 1, 1], [], []>} : vector<256x256xbf16>, vector<256x256xbf16>, vector<256x256xf32> -> vector<256x256xf32>
      %114 = vector.broadcast %5 : vector<1x256xf32> to vector<256x256xf32>
      %115 = arith.addf %113, %114 : vector<256x256xf32>
      %116 = arith.truncf %115 : vector<256x256xf32> to vector<256x256xbf16>
      %c0_50 = arith.constant 0 : index
      %c0_51 = arith.constant 0 : index
      %117 = vector.load %arg11[%c0_50, %c0_51] : memref<256x256xbf16, #tpu.memory_space<vmem>>, vector<256x256xbf16>
      tpu.vector_store %arg11[%c0_50, %c0_51], %116 {strides = array<i32>} : memref<256x256xbf16, #tpu.memory_space<vmem>>, vector<256x256xbf16>,
      %c0_52 = arith.constant 0 : index
      %c0_53 = arith.constant 0 : index
      %118 = vector.load %arg4[%c0_52, %c0_53] : memref<256x256xbf16, #tpu.memory_space<vmem>>, vector<256x256xbf16>
      %cst_54 = arith.constant dense<0.000000e+00> : vector<256x256xf32>
      %119 = tpu.matmul %111, %118, %cst_54 {dimension_numbers = #tpu.dot_dimension_numbers<[1], [0], [0], [1], [0, 0, 1, 1], [], []>} : vector<256x256xbf16>, vector<256x256xbf16>, vector<256x256xf32> -> vector<256x256xf32>
      %120 = vector.broadcast %6 : vector<1x256xf32> to vector<256x256xf32>
      %121 = arith.addf %119, %120 : vector<256x256xf32>
      %122 = arith.truncf %121 : vector<256x256xf32> to vector<256x256xbf16>
      %c0_55 = arith.constant 0 : index
      %c0_56 = arith.constant 0 : index
      %123 = vector.load %arg12[%c0_55, %c0_56] : memref<256x256xbf16, #tpu.memory_space<vmem>>, vector<256x256xbf16>
      tpu.vector_store %arg12[%c0_55, %c0_56], %122 {strides = array<i32>} : memref<256x256xbf16, #tpu.memory_space<vmem>>, vector<256x256xbf16>,
      %c0_57 = arith.constant 0 : index
      %c0_58 = arith.constant 0 : index
      %124 = vector.load %arg5[%c0_57, %c0_58] : memref<256x256xbf16, #tpu.memory_space<vmem>>, vector<256x256xbf16>
      %cst_59 = arith.constant dense<0.000000e+00> : vector<256x256xf32>
      %125 = tpu.matmul %111, %124, %cst_59 {dimension_numbers = #tpu.dot_dimension_numbers<[1], [0], [0], [1], [0, 0, 1, 1], [], []>} : vector<256x256xbf16>, vector<256x256xbf16>, vector<256x256xf32> -> vector<256x256xf32>
      %126 = vector.broadcast %7 : vector<1x256xf32> to vector<256x256xf32>
      %127 = arith.addf %125, %126 : vector<256x256xf32>
      %128 = arith.truncf %127 : vector<256x256xf32> to vector<256x256xbf16>
      %c0_60 = arith.constant 0 : index
      %c0_61 = arith.constant 0 : index
      %129 = vector.load %arg13[%c0_60, %c0_61] : memref<256x256xbf16, #tpu.memory_space<vmem>>, vector<256x256xbf16>
      tpu.vector_store %arg13[%c0_60, %c0_61], %128 {strides = array<i32>} : memref<256x256xbf16, #tpu.memory_space<vmem>>, vector<256x256xbf16>,
    } else {
    }
    %15 = tpu.iota {dimensions = array<i32: 0>} : vector<128x128xi32>
    %16 = vector.broadcast %1 : i32 to vector<128x128xi32>
    %17 = arith.addi %16, %15 : vector<128x128xi32>
    %18 = tpu.iota {dimensions = array<i32: 1>} : vector<128x128xi32>
    %c1_i32 = arith.constant 1 : i32
    %19 = arith.addi %arg1, %c1_i32 : i32
    %20 = arith.index_cast %1 : i32 to index
    %c0_4 = arith.constant 0 : index
    %21 = vector.load %arg11[%20, %c0_4] : memref<256x256xbf16, #tpu.memory_space<vmem>>, vector<128x128xbf16>
    %cst = arith.constant -1.000000e+30 : f32
    %22 = vector.broadcast %cst : f32 to vector<128x1xf32>
    %cst_5 = arith.constant 0.000000e+00 : f32
    %23 = vector.broadcast %cst_5 : f32 to vector<128x1xf32>
    %cst_6 = arith.constant 0.000000e+00 : f32
    %24 = vector.broadcast %cst_6 : f32 to vector<128x128xf32>
    %cst_7 = arith.constant -1.000000e+30 : f32
    %c0_i32_8 = arith.constant 0 : i32
    %25 = arith.subi %19, %c0_i32_8 : i32
    %26 = arith.addi %c0_i32_8, %25 : i32
    %c1_i32_9 = arith.constant 1 : i32
    %27:3 = scf.for %arg15 = %c0_i32_8 to %26 step %c1_i32_9 iter_args(%arg16 = %22, %arg17 = %23, %arg18 = %24) -> (vector<128x1xf32>, vector<128x1xf32>, vector<128x128xf32>)  : i32 {
      %c128_i32_39 = arith.constant 128 : i32
      %87 = arith.muli %arg15, %c128_i32_39 : i32
      %88 = tpu.assume_multiple %87, 128 : i32
      %89 = arith.index_cast %88 : i32 to index
      %c0_40 = arith.constant 0 : index
      %90 = vector.load %arg12[%89, %c0_40] : memref<256x256xbf16, #tpu.memory_space<vmem>>, vector<128x128xbf16>
      %91 = arith.index_cast %88 : i32 to index
      %c0_41 = arith.constant 0 : index
      %92 = vector.load %arg13[%91, %c0_41] : memref<256x256xbf16, #tpu.memory_space<vmem>>, vector<128x128xbf16>
      %cst_42 = arith.constant dense<0.000000e+00> : vector<128x128xf32>
      %93 = tpu.matmul %21, %90, %cst_42 {dimension_numbers = #tpu.dot_dimension_numbers<[1], [1], [0], [0], [0, 0, 1, 0], [], []>} : vector<128x128xbf16>, vector<128x128xbf16>, vector<128x128xf32> -> vector<128x128xf32>
      %94 = vector.broadcast %88 : i32 to vector<128x128xi32>
      %95 = arith.addi %18, %94 : vector<128x128xi32>
      %96 = arith.cmpi sle, %95, %17 : vector<128x128xi32>
      %97 = vector.broadcast %cst_7 : f32 to vector<128x128xf32>
      %98 = arith.select %96, %93, %97 : vector<128x128xi1>, vector<128x128xf32>
      %cst_43 = arith.constant dense<0xFF800000> : vector<128xf32>
      %99 = vector.multi_reduction <maximumf>, %98, %cst_43 [1] : vector<128x128xf32> to vector<128xf32>
      %100 = vector.shape_cast %99 : vector<128xf32> to vector<128x1xf32>
      %101 = arith.maximumf %arg16, %100 : vector<128x1xf32>
      %102 = arith.subf %arg16, %101 : vector<128x1xf32>
      %103 = math.exp %102 : vector<128x1xf32>
      %104 = vector.broadcast %101 : vector<128x1xf32> to vector<128x128xf32>
      %105 = arith.subf %98, %104 : vector<128x128xf32>
      %106 = math.exp %105 : vector<128x128xf32>
      %107 = arith.mulf %103, %arg17 : vector<128x1xf32>
      %cst_44 = arith.constant dense<0.000000e+00> : vector<128xf32>
      %108 = vector.multi_reduction <add>, %106, %cst_44 [1] : vector<128x128xf32> to vector<128xf32>
      %109 = vector.shape_cast %108 : vector<128xf32> to vector<128x1xf32>
      %110 = arith.addf %107, %109 : vector<128x1xf32>
      %111 = vector.broadcast %103 : vector<128x1xf32> to vector<128x128xf32>
      %112 = arith.mulf %111, %arg18 : vector<128x128xf32>
      %113 = arith.truncf %106 : vector<128x128xf32> to vector<128x128xbf16>
      %cst_45 = arith.constant dense<0.000000e+00> : vector<128x128xf32>
      %114 = tpu.matmul %113, %92, %cst_45 {dimension_numbers = #tpu.dot_dimension_numbers<[1], [0], [0], [1], [0, 0, 1, 1], [], []>} : vector<128x128xbf16>, vector<128x128xbf16>, vector<128x128xf32> -> vector<128x128xf32>
      %115 = arith.addf %112, %114 : vector<128x128xf32>
      scf.yield %101, %110, %115 : vector<128x1xf32>, vector<128x1xf32>, vector<128x128xf32>
    }
    %28 = tpu.reciprocal %27#1 {approx = true} : vector<128x1xf32> -> vector<128x1xf32>
    %29 = vector.broadcast %28 : vector<128x1xf32> to vector<128x128xf32>
    %30 = arith.mulf %27#2, %29 : vector<128x128xf32>
    %c0_10 = arith.constant 0 : index
    %c0_11 = arith.constant 0 : index
    %31 = vector.load %arg14[%c0_10, %c0_11] : memref<128x256xf32, #tpu.memory_space<vmem>>, vector<128x128xf32>
    tpu.vector_store %arg14[%c0_10, %c0_11], %30 {strides = array<i32>} : memref<128x256xf32, #tpu.memory_space<vmem>>, vector<128x128xf32>,
    %32 = arith.index_cast %1 : i32 to index
    %c128 = arith.constant 128 : index
    %33 = vector.load %arg11[%32, %c128] : memref<256x256xbf16, #tpu.memory_space<vmem>>, vector<128x128xbf16>
    %cst_12 = arith.constant -1.000000e+30 : f32
    %34 = vector.broadcast %cst_12 : f32 to vector<128x1xf32>
    %cst_13 = arith.constant 0.000000e+00 : f32
    %35 = vector.broadcast %cst_13 : f32 to vector<128x1xf32>
    %cst_14 = arith.constant 0.000000e+00 : f32
    %36 = vector.broadcast %cst_14 : f32 to vector<128x128xf32>
    %cst_15 = arith.constant -1.000000e+30 : f32
    %c0_i32_16 = arith.constant 0 : i32
    %37 = arith.subi %19, %c0_i32_16 : i32
    %38 = arith.addi %c0_i32_16, %37 : i32
    %c1_i32_17 = arith.constant 1 : i32
    %39:3 = scf.for %arg15 = %c0_i32_16 to %38 step %c1_i32_17 iter_args(%arg16 = %34, %arg17 = %35, %arg18 = %36) -> (vector<128x1xf32>, vector<128x1xf32>, vector<128x128xf32>)  : i32 {
      %c128_i32_39 = arith.constant 128 : i32
      %87 = arith.muli %arg15, %c128_i32_39 : i32
      %88 = tpu.assume_multiple %87, 128 : i32
      %89 = arith.index_cast %88 : i32 to index
      %c128_40 = arith.constant 128 : index
      %90 = vector.load %arg12[%89, %c128_40] : memref<256x256xbf16, #tpu.memory_space<vmem>>, vector<128x128xbf16>
      %91 = arith.index_cast %88 : i32 to index
      %c128_41 = arith.constant 128 : index
      %92 = vector.load %arg13[%91, %c128_41] : memref<256x256xbf16, #tpu.memory_space<vmem>>, vector<128x128xbf16>
      %cst_42 = arith.constant dense<0.000000e+00> : vector<128x128xf32>
      %93 = tpu.matmul %33, %90, %cst_42 {dimension_numbers = #tpu.dot_dimension_numbers<[1], [1], [0], [0], [0, 0, 1, 0], [], []>} : vector<128x128xbf16>, vector<128x128xbf16>, vector<128x128xf32> -> vector<128x128xf32>
      %94 = vector.broadcast %88 : i32 to vector<128x128xi32>
      %95 = arith.addi %18, %94 : vector<128x128xi32>
      %96 = arith.cmpi sle, %95, %17 : vector<128x128xi32>
      %97 = vector.broadcast %cst_15 : f32 to vector<128x128xf32>
      %98 = arith.select %96, %93, %97 : vector<128x128xi1>, vector<128x128xf32>
      %cst_43 = arith.constant dense<0xFF800000> : vector<128xf32>
      %99 = vector.multi_reduction <maximumf>, %98, %cst_43 [1] : vector<128x128xf32> to vector<128xf32>
      %100 = vector.shape_cast %99 : vector<128xf32> to vector<128x1xf32>
      %101 = arith.maximumf %arg16, %100 : vector<128x1xf32>
      %102 = arith.subf %arg16, %101 : vector<128x1xf32>
      %103 = math.exp %102 : vector<128x1xf32>
      %104 = vector.broadcast %101 : vector<128x1xf32> to vector<128x128xf32>
      %105 = arith.subf %98, %104 : vector<128x128xf32>
      %106 = math.exp %105 : vector<128x128xf32>
      %107 = arith.mulf %103, %arg17 : vector<128x1xf32>
      %cst_44 = arith.constant dense<0.000000e+00> : vector<128xf32>
      %108 = vector.multi_reduction <add>, %106, %cst_44 [1] : vector<128x128xf32> to vector<128xf32>
      %109 = vector.shape_cast %108 : vector<128xf32> to vector<128x1xf32>
      %110 = arith.addf %107, %109 : vector<128x1xf32>
      %111 = vector.broadcast %103 : vector<128x1xf32> to vector<128x128xf32>
      %112 = arith.mulf %111, %arg18 : vector<128x128xf32>
      %113 = arith.truncf %106 : vector<128x128xf32> to vector<128x128xbf16>
      %cst_45 = arith.constant dense<0.000000e+00> : vector<128x128xf32>
      %114 = tpu.matmul %113, %92, %cst_45 {dimension_numbers = #tpu.dot_dimension_numbers<[1], [0], [0], [1], [0, 0, 1, 1], [], []>} : vector<128x128xbf16>, vector<128x128xbf16>, vector<128x128xf32> -> vector<128x128xf32>
      %115 = arith.addf %112, %114 : vector<128x128xf32>
      scf.yield %101, %110, %115 : vector<128x1xf32>, vector<128x1xf32>, vector<128x128xf32>
    }
    %40 = tpu.reciprocal %39#1 {approx = true} : vector<128x1xf32> -> vector<128x1xf32>
    %41 = vector.broadcast %40 : vector<128x1xf32> to vector<128x128xf32>
    %42 = arith.mulf %39#2, %41 : vector<128x128xf32>
    %c0_18 = arith.constant 0 : index
    %c128_19 = arith.constant 128 : index
    %43 = vector.load %arg14[%c0_18, %c128_19] : memref<128x256xf32, #tpu.memory_space<vmem>>, vector<128x128xf32>
    tpu.vector_store %arg14[%c0_18, %c128_19], %42 {strides = array<i32>} : memref<128x256xf32, #tpu.memory_space<vmem>>, vector<128x128xf32>,
    %c0_20 = arith.constant 0 : index
    %44 = arith.index_cast %1 : i32 to index
    %c0_21 = arith.constant 0 : index
    %45 = vector.load %arg2[%c0_20, %44, %c0_21] : memref<1x256x256xf32, #tpu.memory_space<vmem>>, vector<1x128x256xf32>
    %46 = vector.shape_cast %45 : vector<1x128x256xf32> to vector<128x256xf32>
    %c0_22 = arith.constant 0 : index
    %c0_23 = arith.constant 0 : index
    %47 = vector.load %arg14[%c0_22, %c0_23] : memref<128x256xf32, #tpu.memory_space<vmem>>, vector<128x256xf32>
    %48 = arith.addf %46, %47 : vector<128x256xf32>
    %cst_24 = arith.constant dense<0.000000e+00> : vector<128xf32>
    %49 = vector.multi_reduction <add>, %48, %cst_24 [1] : vector<128x256xf32> to vector<128xf32>
    %50 = vector.shape_cast %49 : vector<128xf32> to vector<128x1xf32>
    %cst_25 = arith.constant 2.560000e+02 : f32
    %51 = vector.broadcast %cst_25 : f32 to vector<128x1xf32>
    %52 = arith.divf %50, %51 : vector<128x1xf32>
    %53 = vector.broadcast %52 : vector<128x1xf32> to vector<128x256xf32>
    %54 = arith.subf %48, %53 : vector<128x256xf32>
    %55 = arith.mulf %54, %54 : vector<128x256xf32>
    %cst_26 = arith.constant dense<0.000000e+00> : vector<128xf32>
    %56 = vector.multi_reduction <add>, %55, %cst_26 [1] : vector<128x256xf32> to vector<128xf32>
    %57 = vector.shape_cast %56 : vector<128xf32> to vector<128x1xf32>
    %cst_27 = arith.constant 2.560000e+02 : f32
    %58 = vector.broadcast %cst_27 : f32 to vector<128x1xf32>
    %59 = arith.divf %57, %58 : vector<128x1xf32>
    %60 = vector.broadcast %52 : vector<128x1xf32> to vector<128x256xf32>
    %61 = arith.subf %48, %60 : vector<128x256xf32>
    %cst_28 = arith.constant 9.99999974E-6 : f32
    %62 = vector.broadcast %cst_28 : f32 to vector<128x1xf32>
    %63 = arith.addf %59, %62 : vector<128x1xf32>
    %64 = math.rsqrt %63 : vector<128x1xf32>
    %65 = vector.broadcast %64 : vector<128x1xf32> to vector<128x256xf32>
    %66 = arith.mulf %61, %65 : vector<128x256xf32>
    %67 = vector.broadcast %8 : vector<1x256xf32> to vector<128x256xf32>
    %68 = arith.mulf %66, %67 : vector<128x256xf32>
    %69 = vector.broadcast %9 : vector<1x256xf32> to vector<128x256xf32>
    %70 = arith.addf %68, %69 : vector<128x256xf32>
    %71 = arith.truncf %70 : vector<128x256xf32> to vector<128x256xbf16>
    %c0_29 = arith.constant 0 : index
    %c0_30 = arith.constant 0 : index
    %72 = vector.load %arg6[%c0_29, %c0_30] : memref<256x512xbf16, #tpu.memory_space<vmem>>, vector<256x512xbf16>
    %cst_31 = arith.constant dense<0.000000e+00> : vector<128x512xf32>
    %73 = tpu.matmul %71, %72, %cst_31 {dimension_numbers = #tpu.dot_dimension_numbers<[1], [0], [0], [1], [0, 0, 1, 1], [], []>} : vector<128x256xbf16>, vector<256x512xbf16>, vector<128x512xf32> -> vector<128x512xf32>
    %74 = vector.broadcast %11 : vector<1x512xf32> to vector<128x512xf32>
    %75 = arith.addf %73, %74 : vector<128x512xf32>
    %cst_32 = arith.constant 0.000000e+00 : f32
    %76 = vector.broadcast %cst_32 : f32 to vector<128x512xf32>
    %77 = arith.maximumf %75, %76 : vector<128x512xf32>
    %78 = arith.truncf %77 : vector<128x512xf32> to vector<128x512xbf16>
    %c0_33 = arith.constant 0 : index
    %c0_34 = arith.constant 0 : index
    %79 = vector.load %arg7[%c0_33, %c0_34] : memref<512x256xbf16, #tpu.memory_space<vmem>>, vector<512x256xbf16>
    %cst_35 = arith.constant dense<0.000000e+00> : vector<128x256xf32>
    %80 = tpu.matmul %78, %79, %cst_35 {dimension_numbers = #tpu.dot_dimension_numbers<[1], [0], [0], [1], [0, 0, 1, 1], [], []>} : vector<128x512xbf16>, vector<512x256xbf16>, vector<128x256xf32> -> vector<128x256xf32>
    %81 = vector.broadcast %10 : vector<1x256xf32> to vector<128x256xf32>
    %82 = arith.addf %80, %81 : vector<128x256xf32>
    %83 = arith.addf %48, %82 : vector<128x256xf32>
    %c0_36 = arith.constant 0 : index
    %c0_37 = arith.constant 0 : index
    %c0_38 = arith.constant 0 : index
    %84 = vector.load %arg10[%c0_36, %c0_37, %c0_38] : memref<1x128x256xf32, #tpu.memory_space<vmem>>, vector<1x128x256xf32>
    %85 = vector.shape_cast %84 : vector<1x128x256xf32> to vector<128x256xf32>
    %86 = vector.shape_cast %83 : vector<128x256xf32> to vector<1x128x256xf32>
    tpu.vector_store %arg10[%c0_36, %c0_37, %c0_38], %86 {strides = array<i32>} : memref<1x128x256xf32, #tpu.memory_space<vmem>>, vector<1x128x256xf32>,
    return
  }
  func.func @transform_0(%arg0: i32, %arg1: i32) -> (i32, i32, i32) {
    %c0_i32 = arith.constant 0 : i32
    %c0_i32_0 = arith.constant 0 : i32
    %c0_i32_1 = arith.constant 0 : i32
    return %arg0, %c0_i32, %c0_i32_0 : i32, i32, i32
  }
  func.func @transform_1(%arg0: i32, %arg1: i32) -> (i32, i32) {
    %c0_i32 = arith.constant 0 : i32
    %c0_i32_0 = arith.constant 0 : i32
    %c0_i32_1 = arith.constant 0 : i32
    return %c0_i32, %c0_i32_0 : i32, i32
  }
  func.func @transform_2(%arg0: i32, %arg1: i32) -> (i32, i32) {
    %c0_i32 = arith.constant 0 : i32
    %c0_i32_0 = arith.constant 0 : i32
    %c0_i32_1 = arith.constant 0 : i32
    return %c0_i32, %c0_i32_0 : i32, i32
  }
  func.func @transform_3(%arg0: i32, %arg1: i32) -> (i32, i32) {
    %c0_i32 = arith.constant 0 : i32
    %c0_i32_0 = arith.constant 0 : i32
    %c0_i32_1 = arith.constant 0 : i32
    return %c0_i32, %c0_i32_0 : i32, i32
  }
  func.func @transform_4(%arg0: i32, %arg1: i32) -> (i32, i32) {
    %c0_i32 = arith.constant 0 : i32
    %c0_i32_0 = arith.constant 0 : i32
    %c0_i32_1 = arith.constant 0 : i32
    return %c0_i32, %c0_i32_0 : i32, i32
  }
  func.func @transform_5(%arg0: i32, %arg1: i32) -> (i32, i32) {
    %c0_i32 = arith.constant 0 : i32
    %c0_i32_0 = arith.constant 0 : i32
    %c0_i32_1 = arith.constant 0 : i32
    return %c0_i32, %c0_i32_0 : i32, i32
  }
  func.func @transform_6(%arg0: i32, %arg1: i32) -> (i32, i32) {
    %c0_i32 = arith.constant 0 : i32
    %c0_i32_0 = arith.constant 0 : i32
    %c0_i32_1 = arith.constant 0 : i32
    return %c0_i32, %c0_i32_0 : i32, i32
  }
  func.func @transform_7(%arg0: i32, %arg1: i32) -> (i32, i32) {
    %c0_i32 = arith.constant 0 : i32
    %c0_i32_0 = arith.constant 0 : i32
    %c0_i32_1 = arith.constant 0 : i32
    return %c0_i32, %c0_i32_0 : i32, i32
  }
  func.func @transform_8(%arg0: i32, %arg1: i32) -> (i32, i32, i32) {
    %c0_i32 = arith.constant 0 : i32
    %c0_i32_0 = arith.constant 0 : i32
    return %arg0, %arg1, %c0_i32 : i32, i32, i32
  }
}

</mosaic_0001>

<bundles_post_ra>
// kernel: tpu_custom_call.1
= control target key start
LH: loop header
LB: loop body
LE: loop exit
PB: predicated region body
PF: predicated region fallthrough
CT: control target
= control target key end

     0   :  { %s14875_s0 = inlined_call_operand.hbm [shape: f32[2,256,256], index: 0, kind: input, shape index: {}]   ;;  %s14876_s1 = inlined_call_operand.hbm [shape: bf16[256,256], index: 1, kind: input, shape index: {}]   ;;  %s14877_s2 = inlined_call_operand.hbm [shape: bf16[256,256], index: 2, kind: input, shape index: {}]   ;;  %s14878_s3 = inlined_call_operand.hbm [shape: bf16[256,256], index: 3, kind: input, shape index: {}]   ;;  %s14879_s4 = inlined_call_operand.hbm [shape: bf16[256,512], index: 4, kind: input, shape index: {}]   ;;  %s14880_s5 = inlined_call_operand.hbm [shape: bf16[512,256], index: 5, kind: input, shape index: {}]   ;;  %s14881_s6 = inlined_call_operand.vmem [shape: f32[8,256], index: 6, kind: input, shape index: {}]   ;;  %s14882_s7 = inlined_call_operand.vmem [shape: f32[1,512], index: 7, kind: input, shape index: {}]   ;;  %s14883_s8 = inlined_call_operand.hbm [shape: f32[2,256,256], index: 8, kind: output, shape index: {}]  }
   0x1   :  { %15018 = sst [smem:[#allocation178_spill]] %s14875_s0 }
   0x2   :  { %15019 = sst [smem:[#allocation179_spill]] %s14876_s1 }
   0x3   :  { %15020 = sst [smem:[#allocation180_spill]] %s14877_s2 }
   0x4   :  { %15021 = sst [smem:[#allocation181_spill]] %s14878_s3 }
   0x5   :  { %15022 = sst [smem:[#allocation182_spill]] %s14879_s4 }
   0x6   :  { %15023 = sst [smem:[#allocation183_spill]] %s14881_s6 }
   0x7   :  { %15024 = sst [smem:[#allocation184_spill]] %s14882_s7 }
   0x8   :  { %15025 = sst [smem:[#allocation185_spill]] %s14883_s8 }
   0x9   :  { %13 = vsyncpa [#allocation7], 0 }
   0xa   :  { %15 = vsyncpa [#allocation7 + $0x1], 0 }
   0xb   :  { %16 = vsyncpa [#allocation10], 0 }
   0xc   :  { %17 = vsyncpa [#allocation13], 0 }
   0xd   :  { %18 = vsyncpa [#allocation16], 0 }
   0xe   :  { %19 = vsyncpa [#allocation8], 0 }
   0xf   :  { %21 = vsyncpa [#allocation8 + $0x1], 0  ;;  %s10434_s27 = smov 0   ;;  %s10436_s28 = smov 0  }
  0x10   :  { %s10438_s29 = smov 0   ;;  %s10440_s30 = smov 0  }
  0x11   :  { %s10442_s9 = smov 0   ;;  %s10444_s10 = smov 0  }
  0x12   :  { %s10446_s11 = smov 0   ;;  %s10448_s12 = smov 0  }
  0x13   :  { %s10450_s13 = smov 0   ;;  %s10452_s14 = smov 0  }
  0x14   :  { %s10454_s15 = smov 0  }
  0x15 LB: > { %15026 = sst [smem:[#allocation23_spill]] %s9710_s11  ;;  %s6132_s16 = sadd.s32 4294967295, %s9726_s15   ;;  %s9726_s15 = sphi %s10454_s15, %s27_s15   ;;  %s9722_s14 = sphi %s10452_s14, %s15693_s14   ;;  %s9718_s13 = sphi %s10450_s13, %s15692_s13   ;;  %s9714_s12 = sphi %s10448_s12, %s15691_s12   ;;  %s9710_s11 = sphi %s10446_s11, %s15690_s11   ;;  %s9706_s10 = sphi %s10444_s10, %s15689_s10   ;;  %s9702_s9 = sphi %s10442_s9, %s15688_s9   ;;  %s9698_s30 = sphi %s10440_s30, %s15687_s30   ;;  %s9694_s29 = sphi %s10438_s29, %s15686_s29   ;;  %s9690_s28 = sphi %s10436_s28, %s15685_s28   ;;  %s9686_s27 = sphi %s10434_s27, %s15684_s27  }
  0x16   : > { %15027 = sst [smem:[#allocation24_spill]] %s9714_s12  ;;  %p6134_p0 = scmp.ge.s32.totalorder %s9726_s15, 1 }
  0x17   : > { %p10491_p1 = scmp.eq.s32.totalorder %s6132_s16, 0  ;;  %p10495_p2 = scmp.eq.s32.totalorder %s6132_s16, 3 }
  0x18   : > { %p245_p3 = scmp.lt.s32.totalorder %s9726_s15, 5  ;;  %s10376_s20 = smov [#allocation9]  }
  0x19   : > { %s15028_s17 = scalar_select %p10491_p1, 1, 0 }
  0x1a   : > { %s15029_s18 = scalar_select %p10495_p2, 1, 0 }
  0x1b   : > { %p10500_p4 = pnand %p6134_p0, %p245_p3  ;;  %s257_s21 = sshll.u32 %s10376_s20, 4  ;;  %s10504_s21 = int_to_ptr.vmem [resolvable:$true] %s257_s21 }
  0x1c   : > { %15030 = sst [smem:[#allocation25_spill]] %s15029_s18  ;;  %s10377_s23 = smov [#allocation12]  }
  0x1d   : > { %s15031_s19 = scalar_select %p10500_p4, 1, 0 }
  0x1e   : > { %p6719_p5 = pneg %p10500_p4  ;;  %s283_s24 = sshll.u32 %s10377_s23, 4  ;;  %s10514_s24 = int_to_ptr.vmem [resolvable:$true] %s283_s24 }
  0x1f   : > { %15032 = sst [smem:[#allocation26_spill]] %s15031_s19  ;;  %s10378_s25 = smov [#allocation11]  }
  0x20   : > { %p10510_p6 = pnand %p6719_p5, %p10491_p1  ;;  %s270_s26 = sshll.u32 %s10378_s25, 4  ;;  %s10516_s26 = int_to_ptr.vmem [resolvable:$true] %s270_s26 }
  0x21   : > { %s15034_s1 = sld [smem:[#allocation179_spill]] }
  0x22   : > { %p10526_p8 = pneg %p10510_p6 }
  0x27   : > { %s8774_s8 = scalar_lea.hbm %s15034_s1, 4096 }
  0x28   : > { %p8775_p7 = scmp.ne.s32.totalorder %s15034_s1, %s8774_s8  ;;  %p8781_p11 = scmp.lt.u32.totalorder %s8774_s8, %s15034_s1 }
  0x2a   : > { %p8777_p9 = pnand %p10526_p8, %p8775_p7 }
  0x2c   : > { %p8778_p10 = pneg %p8777_p9 }
  0x2e   : > { %p8783_p12 = pnand %p8781_p11, %p8778_p10 }
  0x30   : > { %8786 = shalt.err (!%p8783_p12)
}
  0x31   : > { %s8787_s7 = scalar_lea.vmem %s10504_s21, 4096  ;;  %p8795_p5 = scmp.lt.s32.totalorder %s10504_s21, %s10504_s21 }
  0x32   : > { %p8788_p13 = scmp.ne.s32.totalorder %s10504_s21, %s8787_s7  ;;  %p8796_p4 = scmp.lt.s32.totalorder %s8787_s7, %s8787_s7 }
  0x34   : > { %p8790_p0 = pnand %p8788_p13, %p10526_p8  ;;  %p8797_p7 = por %p8796_p4, %p8795_p5 }
  0x36   : > { %p8791_p3 = pneg %p8790_p0 }
  0x38   : > { %p8798_p9 = pnand %p8797_p7, %p8791_p3 }
  0x3a   : > { %8801 = shalt.err (!%p8798_p9)
}
  0x3b   : > { %s14893_s12 = smov 128   ;;  %s14894_s8 = smov 8  }
  0x3c   : > { %6722 = dma.hbm_to_vmem [thread:$0]  (!%p10510_p6), %s15034_s1, 4096, %s10504_s21, [#allocation10], %s14893_s12, %s14893_s12, %s14894_s8  }
  0x3d   : > { %s15036_s3 = sld [smem:[#allocation181_spill]] }
  0x43   : > { %s8802_s7 = scalar_lea.hbm %s15036_s3, 4096 }
  0x44   : > { %p8803_p4 = scmp.ne.s32.totalorder %s15036_s3, %s8802_s7  ;;  %p8809_p12 = scmp.lt.u32.totalorder %s8802_s7, %s15036_s3 }
  0x46   : > { %p8805_p10 = pnand %p8803_p4, %p10526_p8 }
  0x48   : > { %p8806_p11 = pneg %p8805_p10 }
  0x4a   : > { %p8811_p13 = pnand %p8809_p12, %p8806_p11 }
  0x4c   : > { %8814 = shalt.err (!%p8811_p13)
}
  0x4d   : > { %s8815_s21 = scalar_lea.vmem %s10514_s24, 4096  ;;  %p8823_p7 = scmp.lt.s32.totalorder %s10514_s24, %s10514_s24 }
  0x4e   : > { %p8816_p0 = scmp.ne.s32.totalorder %s10514_s24, %s8815_s21  ;;  %p8824_p9 = scmp.lt.s32.totalorder %s8815_s21, %s8815_s21 }
  0x50   : > { %p8818_p3 = pnand %p8816_p0, %p10526_p8  ;;  %p8825_p4 = por %p8824_p9, %p8823_p7 }
  0x52   : > { %p8819_p5 = pneg %p8818_p3 }
  0x54   : > { %p8826_p10 = pnand %p8825_p4, %p8819_p5 }
  0x56   : > { %8829 = shalt.err (!%p8826_p10)
}
  0x57   : > { %6728 = dma.hbm_to_vmem [thread:$0]  (!%p10510_p6), %s15036_s3, 4096, %s10514_s24, [#allocation13], %s14893_s12, %s14893_s12, %s14894_s8  }
  0x58   : > { %s15037_s2 = sld [smem:[#allocation180_spill]] }
  0x5e   : > { %s8830_s16 = scalar_lea.hbm %s15037_s2, 4096 }
  0x5f   : > { %p8831_p11 = scmp.ne.s32.totalorder %s15037_s2, %s8830_s16  ;;  %p8837_p0 = scmp.lt.u32.totalorder %s8830_s16, %s15037_s2 }
  0x61   : > { %p8833_p12 = pnand %p8831_p11, %p10526_p8 }
  0x63   : > { %p8834_p13 = pneg %p8833_p12 }
  0x65   : > { %p8839_p3 = pnand %p8837_p0, %p8834_p13 }
  0x67   : > { %8842 = shalt.err (!%p8839_p3)
}
  0x68   : > { %s8843_s24 = scalar_lea.vmem %s10516_s26, 4096  ;;  %p8851_p4 = scmp.lt.s32.totalorder %s10516_s26, %s10516_s26 }
  0x69   : > { %p8844_p5 = scmp.ne.s32.totalorder %s10516_s26, %s8843_s24  ;;  %p8852_p10 = scmp.lt.s32.totalorder %s8843_s24, %s8843_s24 }
  0x6b   : > { %p8846_p7 = pnand %p8844_p5, %p10526_p8  ;;  %p8853_p11 = por %p8852_p10, %p8851_p4 }
  0x6d   : > { %p8847_p9 = pneg %p8846_p7 }
  0x6f   : > { %p8854_p12 = pnand %p8853_p11, %p8847_p9 }
  0x71   : > { %8857 = shalt.err (!%p8854_p12)
}
  0x72   : > { %6725 = dma.hbm_to_vmem [thread:$0]  (!%p10510_p6), %s15037_s2, 4096, %s10516_s26, [#allocation10], %s14893_s12, %s14893_s12, %s14894_s8  }
  0x73   : > { %s10381_s11 = smov [#allocation14]   ;;  %s15038_s4 = sld [smem:[#allocation182_spill]] }
  0x74   : > { %s296_s18 = sshll.u32 %s10381_s11, 4  ;;  %s297_s18 = int_to_ptr.vmem [resolvable:$true] %s296_s18 }
  0x79   : > { %s8858_s20 = scalar_lea.hbm %s15038_s4, 8192 }
  0x7a   : > { %p8859_p13 = scmp.ne.s32.totalorder %s15038_s4, %s8858_s20  ;;  %p8865_p5 = scmp.lt.u32.totalorder %s8858_s20, %s15038_s4 }
  0x7c   : > { %p8861_p0 = pnand %p8859_p13, %p10526_p8 }
  0x7e   : > { %p8862_p3 = pneg %p8861_p0 }
  0x80   : > { %p8867_p7 = pnand %p8865_p5, %p8862_p3 }
  0x82   : > { %8870 = shalt.err (!%p8867_p7)
}
  0x83   : > { %s8871_s26 = scalar_lea.vmem %s297_s18, 8192  ;;  %p8879_p11 = scmp.lt.s32.totalorder %s297_s18, %s297_s18 }
  0x84   : > { %p8872_p9 = scmp.ne.s32.totalorder %s297_s18, %s8871_s26  ;;  %p8880_p12 = scmp.lt.s32.totalorder %s8871_s26, %s8871_s26 }
  0x86   : > { %p8874_p4 = pnand %p8872_p9, %p10526_p8  ;;  %p8881_p2 = por %p8880_p12, %p8879_p11 }
  0x88   : > { %p8875_p10 = pneg %p8874_p4 }
  0x8a   : > { %p8882_p1 = pnand %p8881_p2, %p8875_p10 }
  0x8c   : > { %8885 = shalt.err (!%p8882_p1)
}
  0x8d   : > { %s14895_s21 = smov 256   ;;  %s14896_s0 = smov 16  }
  0x8e   : > { %6731 = dma.hbm_to_vmem [thread:$0]  (!%p10510_p6), %s15038_s4, 8192, %s297_s18, [#allocation13], %s14895_s21, %s14895_s21, %s14896_s0  }
  0x8f   : > { %s10384_s16 = smov [#allocation15]   ;;  %s8886_s7 = scalar_lea.hbm %s14880_s5, 8192 }
  0x90   : > { %s309_s20 = sshll.u32 %s10384_s16, 4  ;;  %p8887_p1 = scmp.ne.s32.totalorder %s14880_s5, %s8886_s7  ;;  %s310_s20 = int_to_ptr.vmem [resolvable:$true] %s309_s20 }
  0x91   : > { %p8893_p0 = scmp.lt.u32.totalorder %s8886_s7, %s14880_s5 }
  0x92   : > { %p8889_p2 = pnand %p8887_p1, %p10526_p8 }
  0x94   : > { %p8890_p13 = pneg %p8889_p2 }
  0x96   : > { %p8895_p3 = pnand %p8893_p0, %p8890_p13 }
  0x98   : > { %8898 = shalt.err (!%p8895_p3)
}
  0x99   : > { %s8899_s18 = scalar_lea.vmem %s310_s20, 8192  ;;  %p8907_p4 = scmp.lt.s32.totalorder %s310_s20, %s310_s20 }
  0x9a   : > { %p8900_p5 = scmp.ne.s32.totalorder %s310_s20, %s8899_s18  ;;  %p8908_p10 = scmp.lt.s32.totalorder %s8899_s18, %s8899_s18 }
  0x9c   : > { %p8902_p7 = pnand %p8900_p5, %p10526_p8  ;;  %p8909_p11 = por %p8908_p10, %p8907_p4 }
  0x9e   : > { %p8903_p9 = pneg %p8902_p7 }
  0xa0   : > { %p8910_p12 = pnand %p8909_p11, %p8903_p9 }
  0xa2   : > { %8913 = shalt.err (!%p8910_p12)
}
  0xa3   : > { %s15039_s11 = smov 8   ;;  %s15040_s19 = smov 128  }
  0xa4   : > { %6734 = dma.hbm_to_vmem [thread:$0]  (!%p10510_p6), %s14880_s5, 8192, %s310_s20, [#allocation16], %s15040_s19, %s15040_s19, %s15039_s11  }
  0xa5   : > { %s6133_s6 = sadd.s32 4294967294, %s9726_s15   ;;  %s36_s22 = sadd.s32 1, %s9718_s13 }
  0xa6   : > { %p37_p8 = scmp.ge.s32.totalorder %s36_s22, 2  ;;  %s39_s16 = sadd.s32 1, %s9722_s14 }
  0xa7   : > { %s46_s23 = sadd.s32 1, %s9706_s10  ;;  %p53_p1 = scmp.ne.s32.totalorder %s9706_s10, %s9702_s9 }
  0xa8   : > { %s15695_s22 = smov (%p37_p8, %s36_s22), 0  ;;  %s15041_s25 = sld [smem:[#allocation25_spill]] }
  0xa9   : > { %s15697_s16 = smov (!%p37_p8, %s39_s16), %s9722_s14  ;;  %p54_p2 = scmp.eq.s32.totalorder %s9726_s15, 0 }
  0xaa   : > { %p59_p6 = scmp.ne.s32.totalorder %s9702_s9, %s9698_s30  ;;  %p41_p13 = scmp.ge.s32.totalorder %s15697_s16, 2 }
  0xab   : > { %s217_s20 = ssub.s32 %s9718_s13, %s15695_s22  ;;  %p10658_p0 = por %p54_p2, %p53_p1 }
  0xac   : > { %p15043_p3 = scmp.ne.s32.totalorder %s15028_s17, 0  ;;  %s15699_s16 = smov (%p41_p13, %s15697_s16), 0 }
  0xad   : > { %s221_s26 = sadd.s32 1, %s9694_s29  ;;  %p231_p7 = scmp.ne.s32.totalorder %s9694_s29, %s9690_s28 }
  0xae   : > { %p10664_p5 = por %p15043_p3, %p59_p6  ;;  %s43_s30 = ssub.s32 %s9722_s14, %s15699_s16 }
  0xaf   : > { %p237_p9 = scmp.ne.s32.totalorder %s9690_s28, %s9686_s27  ;;  %p44_p4 = scmp.eq.s32.totalorder %s43_s30, 0 }
  0xb0   : > { %s218_s18 = sor.u32 %s217_s20, %s43_s30  ;;  %p15045_p11 = scmp.ne.s32.totalorder %s15041_s25, 0 }
  0xb1   : > { %p219_p10 = scmp.eq.s32.totalorder %s218_s18, 0  ;;  %p238_p8 = scmp.eq.s32.totalorder %s6133_s6, 3 }
  0xb2   : > { %p10679_p12 = por %p15045_p11, %p231_p7  ;;  %p6748_p1 = scmp.lt.s32.totalorder %s9726_s15, 4 }
  0xb3   : > { %s10684_s19 = scalar_select %p44_p4, %s9706_s10, %s46_s23  }
  0xb4   : > { %s15046_s11 = scalar_select %p10679_p12, 1, 0 }
  0xb5   : > { %s10687_s12 = scalar_select %p219_p10, %s9694_s29, %s221_s26  }
  0xb6   : > { %s329_s8 = sand.u32 1, %s9706_s10   ;;  %s6399_s21 = sshll.u32 %s9722_s14, 13 }
  0xb7   : > { %p10692_p2 = por %p238_p8, %p237_p9  ;;  %s6141_s1 = sshll.u32 %s329_s8, 9 }
  0xb8   : > { %s15048_s25 = sld [smem:[#allocation178_spill]]  ;;  %p10703_p6 = pnand %p6748_p1, %p10658_p0 }
  0xb9   : > { %s15047_s0 = scalar_select %p10692_p2, 1, 0 }
  0xba   : > { %s333_s23 = scalar_lea.vmem [#allocation6], %s6141_s1  ;;  %s10709_s2 = scalar_lea.sflag [#allocation7], %s329_s8 }
  0xbb   : > { %s340_s26 = sshll.u32 %s333_s23, 4  ;;  %p8916_p3 = pneg %p10703_p6  ;;  %s10707_s26 = int_to_ptr.vmem [resolvable:$true] %s340_s26 }
  0xbe   : > { %s10699_s18 = scalar_lea.hbm %s15048_s25, %s6399_s21  ;;  %s8919_s30 = scalar_lea.hbm %s15048_s25, 16384 }
  0xbf   : > { %s8914_s20 = scalar_lea.hbm %s10699_s18, 8192  ;;  %p8920_p0 = scmp.lt.u32.totalorder %s10699_s18, %s15048_s25 }
  0xc0   : > { %p8915_p13 = scmp.ne.s32.totalorder %s10699_s18, %s8914_s20  ;;  %p8921_p4 = scmp.lt.u32.totalorder %s8919_s30, %s8914_s20 }
  0xc1   : > { %p8923_p11 = scmp.lt.u32.totalorder %s8914_s20, %s10699_s18 }
  0xc2   : > { %p8917_p7 = pnand %p8916_p3, %p8915_p13  ;;  %p8922_p10 = por %p8921_p4, %p8920_p0 }
  0xc4   : > { %p8918_p9 = pneg %p8917_p7  ;;  %p8924_p8 = por %p8923_p11, %p8922_p10 }
  0xc6   : > { %p8925_p1 = pnand %p8924_p8, %p8918_p9 }
  0xc8   : > { %8928 = shalt.err (!%p8925_p1)
}
  0xc9   : > { %s8929_s1 = scalar_lea.vmem %s10707_s26, 8192  ;;  %s10385_s8 = smov [#allocation6]  }
  0xca   : > { %p8930_p13 = scmp.ne.s32.totalorder %s10707_s26, %s8929_s1  ;;  %s8934_s23 = sshll.u32 %s10385_s8, 4  ;;  %s8935_s23 = int_to_ptr.vmem [resolvable:$false] %s8934_s23 }
  0xcb   : > { %s8936_s3 = scalar_lea.vmem %s8935_s23, 16384  ;;  %p8937_p12 = scmp.lt.s32.totalorder %s10707_s26, %s8935_s23 }
  0xcc   : > { %p8932_p7 = pnand %p8930_p13, %p8916_p3  ;;  %p8938_p0 = scmp.lt.s32.totalorder %s8936_s3, %s8929_s1 }
  0xce   : > { %p8933_p2 = pneg %p8932_p7  ;;  %p8939_p4 = por %p8938_p0, %p8937_p12 }
  0xd0   : > { %p8940_p10 = pnand %p8939_p4, %p8933_p2 }
  0xd2   : > { %8943 = shalt.err (!%p8940_p10)
}
  0xd3   : > { %s15050_s4 = smov 16   ;;  %s15051_s20 = smov 256  }
  0xd4   : > { %6738 = dma.hbm_to_vmem [thread:$0]  (!%p10703_p6), %s10699_s18, 8192, %s10707_s26, %s10709_s2, %s15051_s20, %s15051_s20, %s15050_s4  }
  0xd5   : > { %s15052_s21 = sld [smem:[#allocation26_spill]] }
  0xdb   : > { %p15053_p3 = scmp.ne.s32.totalorder %s15052_s21, 0 }
  0xdd   : > { %352 = sbr.rel (%p15053_p3) target bundleno = 3371 (0xd2b), region = 52 }
  0xe4   : > { %s354_s7 = sand.u32 1, %s9702_s9  }
  0xe5   : > { %s6145_s30 = sshll.u32 %s354_s7, 9  ;;  %s355_s1 = scalar_lea.sflag [#allocation7], %s354_s7 }
  0xe6   : > { %s10743_s8 = scalar_lea.vmem [#allocation6], %s6145_s30 }
  0xe7   : > { %9665 = dma.done.wait (%p10664_p5), %s355_s1, 8192  }
  0xe8   : > { %9667 = vsyncadd (%p10664_p5), %s355_s1, 4294959104  ;;  %p15054_p12 = scmp.ne.s32.totalorder %s15028_s17, 0 }
  0xea   : > { %9669 = dma.done.wait (%p15054_p12), [#allocation10], 8192  }
  0xeb   : > { %9671 = vsyncadd (%p15054_p12), [#allocation10], 4294959104 }
  0xec   : > { %9673 = dma.done.wait (%p15054_p12), [#allocation13], 12288  }
  0xed   : > { %9675 = vsyncadd (%p15054_p12), [#allocation13], 4294955008 }
  0xee   : > { %9677 = dma.done.wait (%p15054_p12), [#allocation16], 8192  }
  0xef   : > { %9679 = vsyncadd (%p15054_p12), [#allocation16], 4294959104  ;;  %s15055_s2 = sld [smem:[#allocation23_spill]]  ;;  %s408_s24 = sand.u32 1, %s9690_s28  }
  0xf0   : > { %s6151_s6 = sshll.u32 %s408_s24, 8  ;;  %s15056_s3 = sld [smem:[#allocation183_spill]] }
  0xf1   : > { %s15059_s7 = sld [smem:[#allocation184_spill]]  ;;  %s10782_s30 = scalar_lea.vmem [#allocation17], %s6151_s6 }
  0xf5   : > { %s10763_s18 = sshll.u32 %s15055_s2, 7  ;;  %p6153_p5 = scmp.ne.s32.totalorder %s15055_s2, 0 }
  0xf6   : > { %v10770_v0 = vld [vmem:[%s15056_s3] sm:$0xff]  ;;  %v10775_v1 = vld [vmem:[%s15056_s3 + $0x8] sm:$0xff] }
  0xf7   : > { %15057 = vst [vmem:[#allocation27_spill] sm:$0xff] %v10770_v0  ;;  %15058 = vst [vmem:[#allocation28_spill] sm:$0xff] %v10775_v1  ;;  %v10780_v2 = vld [vmem:[%s15059_s7] sm:$0xf]  ;;  %420 = sbr.rel (%p6153_p5) target bundleno = 997 (0x3e5), region = 80 }
  0xf8   : > { %15060 = vst [vmem:[#allocation29_spill] sm:$0xff] %v10780_v2 }
  0xfe   : > { %v10786_v3 = vld [vmem:[%s10743_s8] sm:$0xff]  ;;  %v10789_v4 = vld [vmem:[%s10743_s8 + $0x8] sm:$0xff]  ;;  %v10800_v8 = vld [vmem:[%s10743_s8 + $0x10] sm:$0xff] }
  0xff   : > { %v10792_v5 = vld [vmem:[%s10743_s8 + $0x100] sm:$0xff]  ;;  %v485_v6 = vadd.f32 %v10789_v4, %v10786_v3  ;;  %v10797_v7 = vld [vmem:[%s10743_s8 + $0x108] sm:$0xff]  ;;  %v10803_v9 = vld [vmem:[%s10743_s8 + $0x18] sm:$0xff] }
 0x100   : > { %v533_v10 = vadd.f32 %v10797_v7, %v10792_v5  ;;  %v10808_v11 = vld [vmem:[%s10743_s8 + $0x110] sm:$0xff]  ;;  %v10811_v12 = vld [vmem:[%s10743_s8 + $0x118] sm:$0xff]  ;;  %v488_v13 = vadd.f32 %v10803_v9, %v10800_v8  ;;  %v10818_v15 = vld [vmem:[%s10743_s8 + $0x20] sm:$0xff] }
 0x101   : > { %486 = vadd.xlane.f32.xlu0 %v485_v6  ;;  %v536_v14 = vadd.f32 %v10811_v12, %v10808_v11  ;;  %v10821_v16 = vld [vmem:[%s10743_s8 + $0x28] sm:$0xff]  ;;  %v10824_v17 = vld [vmem:[%s10743_s8 + $0x30] sm:$0xff]  ;;  %v10827_v18 = vld [vmem:[%s10743_s8 + $0x38] sm:$0xff] }
 0x102   : > { %534 = vadd.xlane.f32.xlu1 %v533_v10  ;;  %v491_v19 = vadd.f32 %v10821_v16, %v10818_v15  ;;  %v494_v20 = vadd.f32 %v10827_v18, %v10824_v17  ;;  %v10834_v21 = vld [vmem:[%s10743_s8 + $0x120] sm:$0xff]  ;;  %v10837_v22 = vld [vmem:[%s10743_s8 + $0x128] sm:$0xff]  ;;  %v10840_v23 = vld [vmem:[%s10743_s8 + $0x130] sm:$0xff] }
 0x103   : > { %v10843_v24 = vld [vmem:[%s10743_s8 + $0x138] sm:$0xff]  ;;  %v539_v25 = vadd.f32 %v10837_v22, %v10834_v21  ;;  %v10850_v27 = vld [vmem:[%s10743_s8 + $0x40] sm:$0xff]  ;;  %v10853_v28 = vld [vmem:[%s10743_s8 + $0x48] sm:$0xff] }
 0x104   : > { %v542_v26 = vadd.f32 %v10843_v24, %v10840_v23  ;;  %v10856_v29 = vld [vmem:[%s10743_s8 + $0x50] sm:$0xff]  ;;  %v10859_v30 = vld [vmem:[%s10743_s8 + $0x58] sm:$0xff]  ;;  %v497_v31 = vadd.f32 %v10853_v28, %v10850_v27  ;;  %v10866_v33 = vld [vmem:[%s10743_s8 + $0x140] sm:$0xff] }
 0x105   : > { %489 = vadd.xlane.f32.xlu0 %v488_v13  ;;  %v500_v32 = vadd.f32 %v10859_v30, %v10856_v29  ;;  %v10869_v34 = vld [vmem:[%s10743_s8 + $0x148] sm:$0xff]  ;;  %v10872_v35 = vld [vmem:[%s10743_s8 + $0x150] sm:$0xff]  ;;  %v10875_v36 = vld [vmem:[%s10743_s8 + $0x158] sm:$0xff] }
 0x106   : > { %537 = vadd.xlane.f32.xlu1 %v536_v14  ;;  %v545_v37 = vadd.f32 %v10869_v34, %v10866_v33  ;;  %v548_v38 = vadd.f32 %v10875_v36, %v10872_v35  ;;  %v10882_v39 = vld [vmem:[%s10743_s8 + $0x60] sm:$0xff]  ;;  %v10885_v40 = vld [vmem:[%s10743_s8 + $0x68] sm:$0xff]  ;;  %v10888_v41 = vld [vmem:[%s10743_s8 + $0x70] sm:$0xff] }
 0x107   : > { %v10891_v42 = vld [vmem:[%s10743_s8 + $0x78] sm:$0xff]  ;;  %v10894_v43 = vld [vmem:[%s10743_s8 + $0x160] sm:$0xff]  ;;  %v10897_v44 = vld [vmem:[%s10743_s8 + $0x168] sm:$0xff]  ;;  %v503_v45 = vadd.f32 %v10885_v40, %v10882_v39 }
 0x108   : > { %v10902_v46 = vld [vmem:[%s10743_s8 + $0x170] sm:$0xff]  ;;  %v10905_v47 = vld [vmem:[%s10743_s8 + $0x178] sm:$0xff]  ;;  %v506_v48 = vadd.f32 %v10891_v42, %v10888_v41  ;;  %v10910_v49 = vld [vmem:[%s10743_s8 + $0x80] sm:$0xff]  ;;  %v551_v51 = vadd.f32 %v10897_v44, %v10894_v43 }
 0x109   : > { %492 = vadd.xlane.f32.xlu0 %v491_v19  ;;  %v10913_v50 = vld [vmem:[%s10743_s8 + $0x88] sm:$0xff]  ;;  %v10918_v52 = vld [vmem:[%s10743_s8 + $0x90] sm:$0xff]  ;;  %v10921_v53 = vld [vmem:[%s10743_s8 + $0x98] sm:$0xff]  ;;  %v554_v54 = vadd.f32 %v10905_v47, %v10902_v46 }
 0x10a   : > { %495 = vadd.xlane.f32.xlu1 %v494_v20  ;;  %v10926_v55 = vld [vmem:[%s10743_s8 + $0x180] sm:$0xff]  ;;  %v10929_v56 = vld [vmem:[%s10743_s8 + $0x188] sm:$0xff]  ;;  %v509_v57 = vadd.f32 %v10913_v50, %v10910_v49  ;;  %v10934_v58 = vld [vmem:[%s10743_s8 + $0x190] sm:$0xff]  ;;  %v512_v60 = vadd.f32 %v10921_v53, %v10918_v52 }
 0x10b   : > { %v10937_v59 = vld [vmem:[%s10743_s8 + $0x198] sm:$0xff]  ;;  %v10942_v61 = vld [vmem:[%s10743_s8 + $0xa0] sm:$0xff]  ;;  %v10945_v62 = vld [vmem:[%s10743_s8 + $0xa8] sm:$0xff]  ;;  %v557_v63 = vadd.f32 %v10929_v56, %v10926_v55 }
 0x10c   : > { %v10950_v6 = vld [vmem:[%s10743_s8 + $0xb0] sm:$0xff]  ;;  %v10953_v10 = vld [vmem:[%s10743_s8 + $0xb8] sm:$0xff]  ;;  %v560_v13 = vadd.f32 %v10937_v59, %v10934_v58  ;;  %v10958_v14 = vld [vmem:[%s10743_s8 + $0x1a0] sm:$0xff]  ;;  %v515_v20 = vadd.f32 %v10945_v62, %v10942_v61 }
 0x10d   : > { %540 = vadd.xlane.f32.xlu0 %v539_v25  ;;  %v10961_v19 = vld [vmem:[%s10743_s8 + $0x1a8] sm:$0xff]  ;;  %v10966_v25 = vld [vmem:[%s10743_s8 + $0x1b0] sm:$0xff] }
 0x10e   : > { %543 = vadd.xlane.f32.xlu1 %v542_v26  ;;  %v10969_v26 = vld [vmem:[%s10743_s8 + $0x1b8] sm:$0xff]  ;;  %v11009_v2 = vld [vmem:[%s10743_s8 + $0xe8] sm:$0xff]  ;;  %v11016_v1 = vld [vmem:[%s10743_s8 + $0xf0] sm:$0xff] }
 0x10f   : > { %15066 = vst [vmem:[#allocation35_spill] sm:$0xff] %v11009_v2  ;;  %15067 = vst [vmem:[#allocation36_spill] sm:$0xff] %v11016_v1 }
 0x111   : > { %498 = vadd.xlane.f32.xlu0 %v497_v31  ;;  %v518_v31 = vadd.f32 %v10953_v10, %v10950_v6 }
 0x112   : > { %501 = vadd.xlane.f32.xlu1 %v500_v32  ;;  %v10974_v32 = vld [vmem:[%s10743_s8 + $0xc0] sm:$0xff] }
 0x115   : > { %546 = vadd.xlane.f32.xlu0 %v545_v37  ;;  %v10977_v37 = vld [vmem:[%s10743_s8 + $0xc8] sm:$0xff] }
 0x116   : > { %549 = vadd.xlane.f32.xlu1 %v548_v38  ;;  %15061 = vst [vmem:[#allocation30_spill] sm:$0xff] %v10977_v37  ;;  %v563_v38 = vadd.f32 %v10961_v19, %v10958_v14 }
 0x119   : > { %504 = vadd.xlane.f32.xlu0 %v503_v45  ;;  %v10982_v45 = vld [vmem:[%s10743_s8 + $0xd0] sm:$0xff] }
 0x11a   : > { %507 = vadd.xlane.f32.xlu1 %v506_v48  ;;  %15062 = vst [vmem:[#allocation31_spill] sm:$0xff] %v10982_v45  ;;  %v10985_v48 = vld [vmem:[%s10743_s8 + $0xd8] sm:$0xff] }
 0x11b   : > { %15063 = vst [vmem:[#allocation32_spill] sm:$0xff] %v10985_v48 }
 0x11d   : > { %552 = vadd.xlane.f32.xlu0 %v551_v51  ;;  %v566_v51 = vadd.f32 %v10969_v26, %v10966_v25 }
 0x11e   : > { %555 = vadd.xlane.f32.xlu1 %v554_v54  ;;  %v10990_v54 = vld [vmem:[%s10743_s8 + $0x1c0] sm:$0xff] }
 0x121   : > { %510 = vadd.xlane.f32.xlu0 %v509_v57  ;;  %v10993_v57 = vld [vmem:[%s10743_s8 + $0x1c8] sm:$0xff] }
 0x122   : > { %513 = vadd.xlane.f32.xlu1 %v512_v60  ;;  %15064 = vst [vmem:[#allocation33_spill] sm:$0xff] %v10993_v57  ;;  %v521_v60 = vadd.f32 %v10977_v37, %v10974_v32  ;;  %v11029_v37 = vld [vmem:[%s10743_s8 + $0x1e8] sm:$0xff] }
 0x123   : > { %15070 = vst [vmem:[#allocation39_spill] sm:$0xff] %v11029_v37 }
 0x125   : > { %558 = vadd.xlane.f32.xlu0 %v557_v63  ;;  %v10998_v63 = vld [vmem:[%s10743_s8 + $0x1d0] sm:$0xff] }
 0x126   : > { %561 = vadd.xlane.f32.xlu1 %v560_v13  ;;  %v11001_v13 = vld [vmem:[%s10743_s8 + $0x1d8] sm:$0xff] }
 0x127   : > { %15065 = vst [vmem:[#allocation34_spill] sm:$0xff] %v11001_v13  ;;  %v572_v0 = vadd.f32 %v11001_v13, %v10998_v63 }
 0x129   : > { %516 = vadd.xlane.f32.xlu0 %v515_v20  ;;  %v524_v20 = vadd.f32 %v10985_v48, %v10982_v45 }
 0x12a   : > { %519 = vadd.xlane.f32.xlu1 %v518_v31  ;;  %v11006_v31 = vld [vmem:[%s10743_s8 + $0xe0] sm:$0xff] }
 0x12b   : > { %v527_v48 = vadd.f32 %v11009_v2, %v11006_v31  ;;  %v8155_v2 = vld [vmem:[#allocation9 + $0x10] ss:$8 sps:$4 sm:$0xff]  }
 0x12d   : > { %564 = vadd.xlane.f32.xlu0 %v563_v38  ;;  %v569_v38 = vadd.f32 %v10993_v57, %v10990_v54  ;;  %v11035_v57 = vld [vmem:[%s10743_s8 + $0x1f8] sm:$0xff] }
 0x12e   : > { %567 = vadd.xlane.f32.xlu1 %v566_v51  ;;  %v11019_v51 = vld [vmem:[%s10743_s8 + $0xf8] sm:$0xff]  ;;  %15072 = vst [vmem:[#allocation41_spill] sm:$0xff] %v11035_v57 }
 0x12f   : > { %15068 = vst [vmem:[#allocation37_spill] sm:$0xff] %v11019_v51  ;;  %v530_v45 = vadd.f32 %v11019_v51, %v11016_v1  ;;  %v8152_v51 = vld [vmem:[#allocation9] ss:$8 sps:$4 sm:$0xff]   ;;  %v8153_v1 = vld [vmem:[#allocation9 + $0x14] ss:$8 sps:$4 sm:$0xff]  }
 0x131   : > { %522 = vadd.xlane.f32.xlu0 %v521_v60  ;;  %v11026_v60 = vld [vmem:[%s10743_s8 + $0x1e0] sm:$0xff] }
 0x132   : > { %525 = vadd.xlane.f32.xlu1 %v524_v20  ;;  %15069 = vst [vmem:[#allocation38_spill] sm:$0xff] %v11026_v60  ;;  %v11032_v20 = vld [vmem:[%s10743_s8 + $0x1f0] sm:$0xff]  ;;  %v575_v13 = vadd.f32 %v11029_v37, %v11026_v60  ;;  %v8158_v37 = vld [vmem:[#allocation9 + $0x20] ss:$8 sps:$4 sm:$0xff]  }
 0x133   : > { %15071 = vst [vmem:[#allocation40_spill] sm:$0xff] %v11032_v20 }
 0x135   : > { %570 = vadd.xlane.f32.xlu0 %v569_v38  ;;  %v578_v38 = vadd.f32 %v11035_v57, %v11032_v20 }
 0x136   : > { %573 = vadd.xlane.f32.xlu1 %v572_v0  ;;  %v8150_v0 = vld [vmem:[#allocation9 + $0x4] ss:$8 sps:$4 sm:$0xff]  }
 0x137   : > { %1374 = vmatprep.subr.bf16.mxu0 %v8150_v0  ;;  %6599 = vmatprep.subr.bf16.mxu1 %v8150_v0  ;;  %v8164_v0 = vld [vmem:[#allocation9 + $0x40] ss:$8 sps:$4 sm:$0xff]  }
 0x138   : > { %1375 = vmatpush1.bf16.msra.mxu0 %v8152_v51  ;;  %6615 = vmatpush1.bf16.msra.mxu1 %v8152_v51  ;;  %v8165_v51 = vld [vmem:[#allocation9 + $0x54] ss:$8 sps:$4 sm:$0xff]  }
 0x139   : > { %528 = vadd.xlane.f32.xlu0 %v527_v48  ;;  %1376 = vmatprep.subr.bf16.mxu0 %v8153_v1  ;;  %v8156_v48 = vld [vmem:[#allocation9 + $0x24] ss:$8 sps:$4 sm:$0xff]  }
 0x13a   : > { %531 = vadd.xlane.f32.xlu1 %v530_v45  ;;  %6600 = vmatprep.subr.bf16.mxu1 %v8153_v1  ;;  %v8159_v45 = vld [vmem:[#allocation9 + $0x34] ss:$8 sps:$4 sm:$0xff]   ;;  %v8167_v1 = vld [vmem:[#allocation9 + $0x50] ss:$8 sps:$4 sm:$0xff]  }
 0x13c   : > { %1377 = vmatpush1.bf16.msra.mxu0 %v8155_v2  ;;  %6616 = vmatpush1.bf16.msra.mxu1 %v8155_v2  ;;  %v8168_v2 = vld [vmem:[#allocation9 + $0x64] ss:$8 sps:$4 sm:$0xff]  }
 0x13d   : > { %576 = vadd.xlane.f32.xlu0 %v575_v13  ;;  %1378 = vmatprep.subr.bf16.mxu0 %v8156_v48  ;;  %v8161_v13 = vld [vmem:[#allocation9 + $0x30] ss:$8 sps:$4 sm:$0xff]  }
 0x13e   : > { %579 = vadd.xlane.f32.xlu1 %v578_v38  ;;  %6601 = vmatprep.subr.bf16.mxu1 %v8156_v48  ;;  %v8162_v38 = vld [vmem:[#allocation9 + $0x44] ss:$8 sps:$4 sm:$0xff]   ;;  %v8170_v48 = vld [vmem:[#allocation9 + $0x60] ss:$8 sps:$4 sm:$0xff]  }
 0x140   : > { %1379 = vmatpush1.bf16.msra.mxu0 %v8158_v37  ;;  %6617 = vmatpush1.bf16.msra.mxu1 %v8158_v37  ;;  %v8171_v37 = vld [vmem:[#allocation9 + $0x74] ss:$8 sps:$4 sm:$0xff]  }
 0x141   : > { %1380 = vmatprep.subr.bf16.mxu0 %v8159_v45  ;;  %6602 = vmatprep.subr.bf16.mxu1 %v8159_v45  ;;  %v8173_v45 = vld [vmem:[#allocation9 + $0x70] ss:$8 sps:$4 sm:$0xff]  }
 0x144   : > { %1381 = vmatpush1.bf16.msra.mxu0 %v8161_v13  ;;  %6618 = vmatpush1.bf16.msra.mxu1 %v8161_v13  ;;  %v8174_v13 = vld [vmem:[#allocation9 + $0x84] ss:$8 sps:$4 sm:$0xff]  }
 0x145   : > { %1382 = vmatprep.subr.bf16.mxu0 %v8162_v38  ;;  %6603 = vmatprep.subr.bf16.mxu1 %v8162_v38  ;;  %v8176_v38 = vld [vmem:[#allocation9 + $0x80] ss:$8 sps:$4 sm:$0xff]  }
 0x148   : > { %1383 = vmatpush1.bf16.msra.mxu0 %v8164_v0  ;;  %6619 = vmatpush1.bf16.msra.mxu1 %v8164_v0 }
 0x149   : > { %1384 = vmatprep.subr.bf16.mxu0 %v8165_v51  ;;  %6604 = vmatprep.subr.bf16.mxu1 %v8165_v51 }
 0x14c   : > { %1385 = vmatpush1.bf16.msra.mxu0 %v8167_v1  ;;  %6620 = vmatpush1.bf16.msra.mxu1 %v8167_v1 }
 0x14d   : > { %1386 = vmatprep.subr.bf16.mxu0 %v8168_v2  ;;  %6605 = vmatprep.subr.bf16.mxu1 %v8168_v2 }
 0x150   : > { %1387 = vmatpush1.bf16.msra.mxu0 %v8170_v48  ;;  %6621 = vmatpush1.bf16.msra.mxu1 %v8170_v48 }
 0x151   : > { %1388 = vmatprep.subr.bf16.mxu0 %v8171_v37  ;;  %6606 = vmatprep.subr.bf16.mxu1 %v8171_v37 }
 0x154   : > { %1389 = vmatpush1.bf16.msra.mxu0 %v8173_v45  ;;  %6622 = vmatpush1.bf16.msra.mxu1 %v8173_v45 }
 0x155   : > { %1390 = vmatprep.subr.bf16.mxu0 %v8174_v13  ;;  %6607 = vmatprep.subr.bf16.mxu1 %v8174_v13 }
 0x158   : > { %1391 = vmatpush1.bf16.msra.mxu0 %v8176_v38  ;;  %6623 = vmatpush1.bf16.msra.mxu1 %v8176_v38 }
 0x18e   : > { %v487_v0 = vpop.xlane.xlu0 %486 }
 0x18f   : > { %v582_v51 = vmul.f32 0.00390625, %v487_v0  ;;  %v535_v1 = vpop.xlane.xlu1 %534 }
 0x190   : > { %v598_v57 = vmul.f32 0.00390625, %v535_v1 }
 0x191   : > { %v11042_v2 = vsub.f32 %v10786_v3, %v582_v51  ;;  %v11045_v48 = vsub.f32 %v10789_v4, %v582_v51 }
 0x192   : > { %v11048_v37 = vsub.f32 %v10792_v5, %v598_v57  ;;  %v11051_v45 = vsub.f32 %v10797_v7, %v598_v57  ;;  %v490_v20 = vpop.xlane.xlu0 %489 }
 0x193   : > { %15073 = vst [vmem:[#allocation42_spill] sm:$0xff] %v11042_v2  ;;  %15074 = vst [vmem:[#allocation43_spill] sm:$0xff] %v11045_v48  ;;  %v583_v13 = vmul.f32 0.00390625, %v490_v20  ;;  %v538_v60 = vpop.xlane.xlu1 %537  ;;  %v678_v38 = vmul.f32 %v11042_v2, %v11042_v2  ;;  %v679_v0 = vmul.f32 %v11045_v48, %v11045_v48 }
 0x194   : > { %15075 = vst [vmem:[#allocation44_spill] sm:$0xff] %v11048_v37  ;;  %15076 = vst [vmem:[#allocation45_spill] sm:$0xff] %v11051_v45  ;;  %v599_v3 = vmul.f32 0.00390625, %v538_v60  ;;  %v710_v4 = vmul.f32 %v11048_v37, %v11048_v37  ;;  %v711_v5 = vmul.f32 %v11051_v45, %v11051_v45 }
 0x195   : > { %v11062_v51 = vsub.f32 %v10800_v8, %v583_v13  ;;  %v11065_v7 = vsub.f32 %v10803_v9, %v583_v13  ;;  %v742_v57 = vadd.f32 %v679_v0, %v678_v38 }
 0x196   : > { %v11068_v20 = vsub.f32 %v10808_v11, %v599_v3  ;;  %v11071_v1 = vsub.f32 %v10811_v12, %v599_v3  ;;  %v493_v60 = vpop.xlane.xlu0 %492  ;;  %v790_v48 = vadd.f32 %v711_v5, %v710_v4 }
 0x197   : > { %v584_v2 = vmul.f32 0.00390625, %v493_v60  ;;  %743 = vadd.xlane.f32.xlu0 %v742_v57  ;;  %v496_v37 = vpop.xlane.xlu1 %495  ;;  %v680_v45 = vmul.f32 %v11062_v51, %v11062_v51  ;;  %v681_v8 = vmul.f32 %v11065_v7, %v11065_v7 }
 0x198   : > { %v585_v9 = vmul.f32 0.00390625, %v496_v37  ;;  %v712_v13 = vmul.f32 %v11068_v20, %v11068_v20  ;;  %v713_v11 = vmul.f32 %v11071_v1, %v11071_v1 }
 0x199   : > { %v11082_v12 = vsub.f32 %v10818_v15, %v584_v2  ;;  %v11085_v38 = vsub.f32 %v10821_v16, %v584_v2  ;;  %v745_v0 = vadd.f32 %v681_v8, %v680_v45 }
 0x19a   : > { %v11088_v3 = vsub.f32 %v10824_v17, %v585_v9  ;;  %v11091_v4 = vsub.f32 %v10827_v18, %v585_v9  ;;  %v541_v37 = vpop.xlane.xlu0 %540  ;;  %v793_v60 = vadd.f32 %v713_v11, %v712_v13 }
 0x19b   : > { %v600_v5 = vmul.f32 0.00390625, %v541_v37  ;;  %791 = vadd.xlane.f32.xlu0 %v790_v48  ;;  %746 = vadd.xlane.f32.xlu1 %v745_v0  ;;  %v544_v57 = vpop.xlane.xlu1 %543  ;;  %v682_v15 = vmul.f32 %v11082_v12, %v11082_v12  ;;  %v683_v16 = vmul.f32 %v11085_v38, %v11085_v38 }
 0x19c   : > { %v601_v2 = vmul.f32 0.00390625, %v544_v57  ;;  %v684_v17 = vmul.f32 %v11088_v3, %v11088_v3  ;;  %v685_v18 = vmul.f32 %v11091_v4, %v11091_v4 }
 0x19d   : > { %v11102_v45 = vsub.f32 %v10834_v21, %v600_v5  ;;  %v11105_v48 = vsub.f32 %v10837_v22, %v600_v5  ;;  %v748_v8 = vadd.f32 %v683_v16, %v682_v15 }
 0x19e   : > { %v11108_v9 = vsub.f32 %v10840_v23, %v601_v2  ;;  %v11111_v13 = vsub.f32 %v10843_v24, %v601_v2  ;;  %v499_v11 = vpop.xlane.xlu0 %498  ;;  %v751_v57 = vadd.f32 %v685_v18, %v684_v17 }
 0x19f   : > { %v586_v0 = vmul.f32 0.00390625, %v499_v11  ;;  %794 = vadd.xlane.f32.xlu1 %v793_v60  ;;  %749 = vadd.xlane.f32.xlu0 %v748_v8  ;;  %v502_v37 = vpop.xlane.xlu1 %501  ;;  %v714_v21 = vmul.f32 %v11102_v45, %v11102_v45  ;;  %v715_v22 = vmul.f32 %v11105_v48, %v11105_v48 }
 0x1a0   : > { %v587_v5 = vmul.f32 0.00390625, %v502_v37  ;;  %v716_v23 = vmul.f32 %v11108_v9, %v11108_v9  ;;  %v717_v24 = vmul.f32 %v11111_v13, %v11111_v13 }
 0x1a1   : > { %v11122_v15 = vsub.f32 %v10850_v27, %v586_v0  ;;  %v11125_v60 = vsub.f32 %v10853_v28, %v586_v0  ;;  %v796_v16 = vadd.f32 %v715_v22, %v714_v21  ;;  %v8177_v0 = vld [vmem:[#allocation9 + $0x94] ss:$8 sps:$4 sm:$0xff]   ;;  %v8179_v22 = vld [vmem:[#allocation9 + $0x90] ss:$8 sps:$4 sm:$0xff]  }
 0x1a2   : > { %v11128_v2 = vsub.f32 %v10856_v29, %v587_v5  ;;  %v11131_v17 = vsub.f32 %v10859_v30, %v587_v5  ;;  %v547_v18 = vpop.xlane.xlu0 %546  ;;  %v799_v37 = vadd.f32 %v717_v24, %v716_v23  ;;  %1392 = vmatprep.subr.bf16.mxu0 %v8177_v0  ;;  %6608 = vmatprep.subr.bf16.mxu1 %v8177_v0 }
 0x1a3   : > { %v602_v8 = vmul.f32 0.00390625, %v547_v18  ;;  %752 = vadd.xlane.f32.xlu1 %v751_v57  ;;  %797 = vadd.xlane.f32.xlu0 %v796_v16  ;;  %v550_v11 = vpop.xlane.xlu1 %549  ;;  %v686_v27 = vmul.f32 %v11122_v15, %v11122_v15  ;;  %v687_v28 = vmul.f32 %v11125_v60, %v11125_v60 }
 0x1a4   : > { %15077 = vst [vmem:[#allocation46_spill] sm:$0xff] %v11128_v2  ;;  %v603_v21 = vmul.f32 0.00390625, %v550_v11  ;;  %v688_v29 = vmul.f32 %v11128_v2, %v11128_v2  ;;  %v689_v30 = vmul.f32 %v11131_v17, %v11131_v17  ;;  %1393 = vmatpush1.bf16.msra.mxu0 %v8179_v22  ;;  %6624 = vmatpush1.bf16.msra.mxu1 %v8179_v22 }
 0x1a5   : > { %v11142_v57 = vsub.f32 %v10866_v33, %v602_v8  ;;  %v11145_v5 = vsub.f32 %v10869_v34, %v602_v8  ;;  %v754_v23 = vadd.f32 %v687_v28, %v686_v27  ;;  %v8180_v28 = vld [vmem:[#allocation9 + $0xa4] ss:$8 sps:$4 sm:$0xff]  }
 0x1a6   : > { %v11148_v24 = vsub.f32 %v10872_v35, %v603_v21  ;;  %v11151_v16 = vsub.f32 %v10875_v36, %v603_v21  ;;  %v505_v18 = vpop.xlane.xlu0 %504  ;;  %v757_v2 = vadd.f32 %v689_v30, %v688_v29  ;;  %v8182_v29 = vld [vmem:[#allocation9 + $0xa0] ss:$8 sps:$4 sm:$0xff]   ;;  %1394 = vmatprep.subr.bf16.mxu0 %v8180_v28  ;;  %6609 = vmatprep.subr.bf16.mxu1 %v8180_v28 }
 0x1a7   : > { %v588_v11 = vmul.f32 0.00390625, %v505_v18  ;;  %800 = vadd.xlane.f32.xlu1 %v799_v37  ;;  %755 = vadd.xlane.f32.xlu0 %v754_v23  ;;  %v508_v33 = vpop.xlane.xlu1 %507  ;;  %v718_v34 = vmul.f32 %v11142_v57, %v11142_v57  ;;  %v719_v8 = vmul.f32 %v11145_v5, %v11145_v5 }
 0x1a8   : > { %v589_v27 = vmul.f32 0.00390625, %v508_v33  ;;  %v720_v35 = vmul.f32 %v11148_v24, %v11148_v24  ;;  %v721_v36 = vmul.f32 %v11151_v16, %v11151_v16  ;;  %1395 = vmatpush1.bf16.msra.mxu0 %v8182_v29  ;;  %6625 = vmatpush1.bf16.msra.mxu1 %v8182_v29 }
 0x1a9   : > { %v11162_v0 = vsub.f32 %v10882_v39, %v588_v11  ;;  %v11165_v37 = vsub.f32 %v10885_v40, %v588_v11  ;;  %v802_v21 = vadd.f32 %v719_v8, %v718_v34  ;;  %v8183_v8 = vld [vmem:[#allocation9 + $0xb4] ss:$8 sps:$4 sm:$0xff]  }
 0x1aa   : > { %v11168_v30 = vsub.f32 %v10888_v41, %v589_v27  ;;  %v11171_v22 = vsub.f32 %v10891_v42, %v589_v27  ;;  %v553_v23 = vpop.xlane.xlu0 %552  ;;  %v805_v39 = vadd.f32 %v721_v36, %v720_v35  ;;  %v8185_v36 = vld [vmem:[#allocation9 + $0xb0] ss:$8 sps:$4 sm:$0xff]   ;;  %1396 = vmatprep.subr.bf16.mxu0 %v8183_v8  ;;  %6610 = vmatprep.subr.bf16.mxu1 %v8183_v8 }
 0x1ab   : > { %v604_v18 = vmul.f32 0.00390625, %v553_v23  ;;  %758 = vadd.xlane.f32.xlu1 %v757_v2  ;;  %803 = vadd.xlane.f32.xlu0 %v802_v21  ;;  %v556_v33 = vpop.xlane.xlu1 %555  ;;  %v690_v40 = vmul.f32 %v11162_v0, %v11162_v0  ;;  %v691_v11 = vmul.f32 %v11165_v37, %v11165_v37 }
 0x1ac   : > { %v605_v34 = vmul.f32 0.00390625, %v556_v33  ;;  %v692_v41 = vmul.f32 %v11168_v30, %v11168_v30  ;;  %v693_v42 = vmul.f32 %v11171_v22, %v11171_v22  ;;  %1397 = vmatpush1.bf16.msra.mxu0 %v8185_v36  ;;  %6626 = vmatpush1.bf16.msra.mxu1 %v8185_v36 }
 0x1ad   : > { %v11182_v2 = vsub.f32 %v10894_v43, %v604_v18  ;;  %v11185_v27 = vsub.f32 %v10897_v44, %v604_v18  ;;  %v760_v35 = vadd.f32 %v691_v11, %v690_v40  ;;  %v8186_v11 = vld [vmem:[#allocation9 + $0xc4] ss:$8 sps:$4 sm:$0xff]  }
 0x1ae   : > { %v11188_v28 = vsub.f32 %v10902_v46, %v605_v34  ;;  %v11191_v21 = vsub.f32 %v10905_v47, %v605_v34  ;;  %v511_v23 = vpop.xlane.xlu0 %510  ;;  %v763_v43 = vadd.f32 %v693_v42, %v692_v41  ;;  %v8188_v42 = vld [vmem:[#allocation9 + $0xc0] ss:$8 sps:$4 sm:$0xff]   ;;  %1398 = vmatprep.subr.bf16.mxu0 %v8186_v11  ;;  %6611 = vmatprep.subr.bf16.mxu1 %v8186_v11 }
 0x1af   : > { %v590_v33 = vmul.f32 0.00390625, %v511_v23  ;;  %806 = vadd.xlane.f32.xlu1 %v805_v39  ;;  %761 = vadd.xlane.f32.xlu0 %v760_v35  ;;  %v514_v29 = vpop.xlane.xlu1 %513  ;;  %v722_v44 = vmul.f32 %v11182_v2, %v11182_v2  ;;  %v723_v18 = vmul.f32 %v11185_v27, %v11185_v27 }
 0x1b0   : > { %v591_v40 = vmul.f32 0.00390625, %v514_v29  ;;  %v724_v46 = vmul.f32 %v11188_v28, %v11188_v28  ;;  %v725_v47 = vmul.f32 %v11191_v21, %v11191_v21  ;;  %1399 = vmatpush1.bf16.msra.mxu0 %v8188_v42  ;;  %6627 = vmatpush1.bf16.msra.mxu1 %v8188_v42 }
 0x1b1   : > { %v11202_v39 = vsub.f32 %v10910_v49, %v590_v33  ;;  %v11205_v34 = vsub.f32 %v10913_v50, %v590_v33  ;;  %v808_v41 = vadd.f32 %v723_v18, %v722_v44  ;;  %v8189_v18 = vld [vmem:[#allocation9 + $0xd4] ss:$8 sps:$4 sm:$0xff]  }
 0x1b2   : > { %v11208_v8 = vsub.f32 %v10918_v52, %v591_v40  ;;  %v11211_v35 = vsub.f32 %v10921_v53, %v591_v40  ;;  %v559_v23 = vpop.xlane.xlu0 %558  ;;  %v811_v49 = vadd.f32 %v725_v47, %v724_v46  ;;  %v8191_v47 = vld [vmem:[#allocation9 + $0xd0] ss:$8 sps:$4 sm:$0xff]   ;;  %1400 = vmatprep.subr.bf16.mxu0 %v8189_v18  ;;  %6612 = vmatprep.subr.bf16.mxu1 %v8189_v18 }
 0x1b3   : > { %v606_v29 = vmul.f32 0.00390625, %v559_v23  ;;  %764 = vadd.xlane.f32.xlu1 %v763_v43  ;;  %809 = vadd.xlane.f32.xlu0 %v808_v41  ;;  %v562_v36 = vpop.xlane.xlu1 %561  ;;  %v694_v50 = vmul.f32 %v11202_v39, %v11202_v39  ;;  %v695_v33 = vmul.f32 %v11205_v34, %v11205_v34 }
 0x1b4   : > { %v607_v44 = vmul.f32 0.00390625, %v562_v36  ;;  %v696_v52 = vmul.f32 %v11208_v8, %v11208_v8  ;;  %v697_v53 = vmul.f32 %v11211_v35, %v11211_v35  ;;  %1401 = vmatpush1.bf16.msra.mxu0 %v8191_v47  ;;  %6628 = vmatpush1.bf16.msra.mxu1 %v8191_v47 }
 0x1b5   : > { %v11222_v43 = vsub.f32 %v10926_v55, %v606_v29  ;;  %v11225_v40 = vsub.f32 %v10929_v56, %v606_v29  ;;  %v766_v46 = vadd.f32 %v695_v33, %v694_v50  ;;  %v8192_v33 = vld [vmem:[#allocation9 + $0xe4] ss:$8 sps:$4 sm:$0xff]  }
 0x1b6   : > { %v11228_v11 = vsub.f32 %v10934_v58, %v607_v44  ;;  %v11231_v41 = vsub.f32 %v10937_v59, %v607_v44  ;;  %v517_v23 = vpop.xlane.xlu0 %516  ;;  %v769_v55 = vadd.f32 %v697_v53, %v696_v52  ;;  %v8194_v53 = vld [vmem:[#allocation9 + $0xe0] ss:$8 sps:$4 sm:$0xff]   ;;  %1402 = vmatprep.subr.bf16.mxu0 %v8192_v33  ;;  %6613 = vmatprep.subr.bf16.mxu1 %v8192_v33 }
 0x1b7   : > { %v592_v36 = vmul.f32 0.00390625, %v517_v23  ;;  %812 = vadd.xlane.f32.xlu1 %v811_v49  ;;  %767 = vadd.xlane.f32.xlu0 %v766_v46  ;;  %v520_v42 = vpop.xlane.xlu1 %519  ;;  %v726_v56 = vmul.f32 %v11222_v43, %v11222_v43  ;;  %v727_v29 = vmul.f32 %v11225_v40, %v11225_v40 }
 0x1b8   : > { %v593_v50 = vmul.f32 0.00390625, %v520_v42  ;;  %v728_v58 = vmul.f32 %v11228_v11, %v11228_v11  ;;  %v729_v59 = vmul.f32 %v11231_v41, %v11231_v41  ;;  %1403 = vmatpush1.bf16.msra.mxu0 %v8194_v53  ;;  %6629 = vmatpush1.bf16.msra.mxu1 %v8194_v53 }
 0x1b9   : > { %v11242_v49 = vsub.f32 %v10942_v61, %v592_v36  ;;  %v11245_v44 = vsub.f32 %v10945_v62, %v592_v36  ;;  %v814_v52 = vadd.f32 %v727_v29, %v726_v56  ;;  %v8195_v29 = vld [vmem:[#allocation9 + $0xf4] ss:$8 sps:$4 sm:$0xff]  }
 0x1ba   : > { %v11248_v18 = vsub.f32 %v10950_v6, %v593_v50  ;;  %v11251_v46 = vsub.f32 %v10953_v10, %v593_v50  ;;  %v565_v23 = vpop.xlane.xlu0 %564  ;;  %v817_v61 = vadd.f32 %v729_v59, %v728_v58  ;;  %v8197_v59 = vld [vmem:[#allocation9 + $0xf0] ss:$8 sps:$4 sm:$0xff]   ;;  %1404 = vmatprep.subr.bf16.mxu0 %v8195_v29  ;;  %6614 = vmatprep.subr.bf16.mxu1 %v8195_v29  ;;  %v15086_v29 = vld [vmem:[#allocation31_spill] sm:$0xff] }
 0x1bb   : > { %v608_v42 = vmul.f32 0.00390625, %v565_v23  ;;  %770 = vadd.xlane.f32.xlu1 %v769_v55  ;;  %815 = vadd.xlane.f32.xlu0 %v814_v52  ;;  %v568_v47 = vpop.xlane.xlu1 %567  ;;  %v698_v62 = vmul.f32 %v11242_v49, %v11242_v49  ;;  %v699_v36 = vmul.f32 %v11245_v44, %v11245_v44 }
 0x1bc   : > { %15078 = vst [vmem:[#allocation47_spill] sm:$0xff] %v11248_v18  ;;  %v609_v56 = vmul.f32 0.00390625, %v568_v47  ;;  %v700_v6 = vmul.f32 %v11248_v18, %v11248_v18  ;;  %v701_v10 = vmul.f32 %v11251_v46, %v11251_v46  ;;  %1405 = vmatpush1.bf16.msra.mxu0 %v8197_v59  ;;  %6630 = vmatpush1.bf16.msra.mxu1 %v8197_v59 }
 0x1bd   : > { %v11262_v55 = vsub.f32 %v10958_v14, %v608_v42  ;;  %v11265_v50 = vsub.f32 %v10961_v19, %v608_v42  ;;  %v772_v58 = vadd.f32 %v699_v36, %v698_v62  ;;  %v8200_v36 = vld [vmem:[#allocation12 + $0x4] ss:$8 sps:$4 sm:$0xff]  }
 0x1be   : > { %v11268_v33 = vsub.f32 %v10966_v25, %v609_v56  ;;  %v11271_v52 = vsub.f32 %v10969_v26, %v609_v56  ;;  %v523_v23 = vpop.xlane.xlu0 %522  ;;  %v775_v14 = vadd.f32 %v701_v10, %v700_v6  ;;  %v15084_v56 = vld [vmem:[#allocation30_spill] sm:$0xff]  ;;  %2288 = vmatprep.subr.bf16.mxu0 %v8200_v36 }
 0x1bf   : > { %15079 = vst [vmem:[#allocation48_spill] sm:$0xff] %v11262_v55  ;;  %15080 = vst [vmem:[#allocation49_spill] sm:$0xff] %v11265_v50  ;;  %v594_v47 = vmul.f32 0.00390625, %v523_v23  ;;  %818 = vadd.xlane.f32.xlu1 %v817_v61  ;;  %773 = vadd.xlane.f32.xlu0 %v772_v58  ;;  %v526_v53 = vpop.xlane.xlu1 %525  ;;  %v730_v19 = vmul.f32 %v11262_v55, %v11262_v55  ;;  %v731_v42 = vmul.f32 %v11265_v50, %v11265_v50  ;;  %v15088_v23 = vld [vmem:[#allocation32_spill] sm:$0xff] }
 0x1c0   : > { %15081 = vst [vmem:[#allocation50_spill] sm:$0xff] %v11268_v33  ;;  %15082 = vst [vmem:[#allocation51_spill] sm:$0xff] %v11271_v52  ;;  %v595_v62 = vmul.f32 0.00390625, %v526_v53  ;;  %v732_v25 = vmul.f32 %v11268_v33, %v11268_v33  ;;  %v733_v26 = vmul.f32 %v11271_v52, %v11271_v52 }
 0x1c1   : > { %v11282_v61 = vsub.f32 %v10974_v32, %v594_v47  ;;  %v11285_v6 = vsub.f32 %v15084_v56, %v594_v47  ;;  %v820_v10 = vadd.f32 %v731_v42, %v730_v19  ;;  %v8203_v56 = vld [vmem:[#allocation11 + $0x4] ss:$8 sps:$4 sm:$0xff]  }
 0x1c2   : > { %v11288_v58 = vsub.f32 %v15086_v29, %v595_v62  ;;  %v11291_v53 = vsub.f32 %v15088_v23, %v595_v62  ;;  %v571_v33 = vpop.xlane.xlu0 %570  ;;  %v823_v52 = vadd.f32 %v733_v26, %v732_v25  ;;  %1831 = vmatprep.subr.bf16.mxu1 %v8203_v56 }
 0x1c3   : > { %15083 = vst [vmem:[#allocation52_spill] sm:$0xff] %v11282_v61  ;;  %15085 = vst [vmem:[#allocation30_spill] sm:$0xff] %v11285_v6  ;;  %v610_v55 = vmul.f32 0.00390625, %v571_v33  ;;  %776 = vadd.xlane.f32.xlu1 %v775_v14  ;;  %821 = vadd.xlane.f32.xlu0 %v820_v10  ;;  %v574_v59 = vpop.xlane.xlu1 %573  ;;  %v702_v32 = vmul.f32 %v11282_v61, %v11282_v61  ;;  %v703_v47 = vmul.f32 %v11285_v6, %v11285_v6  ;;  %v15091_v14 = vld [vmem:[#allocation33_spill] sm:$0xff]  ;;  %v15094_v10 = vld [vmem:[#allocation34_spill] sm:$0xff] }
 0x1c4   : > { %15087 = vst [vmem:[#allocation31_spill] sm:$0xff] %v11288_v58  ;;  %15089 = vst [vmem:[#allocation32_spill] sm:$0xff] %v11291_v53  ;;  %v611_v19 = vmul.f32 0.00390625, %v574_v59  ;;  %v704_v42 = vmul.f32 %v11288_v58, %v11288_v58  ;;  %v705_v62 = vmul.f32 %v11291_v53, %v11291_v53 }
 0x1c5   : > { %v11302_v33 = vsub.f32 %v10990_v54, %v610_v55  ;;  %v11305_v36 = vsub.f32 %v15091_v14, %v610_v55  ;;  %v778_v25 = vadd.f32 %v703_v47, %v702_v32 }
 0x1c6   : > { %v11308_v26 = vsub.f32 %v10998_v63, %v611_v19  ;;  %v11311_v29 = vsub.f32 %v15094_v10, %v611_v19  ;;  %v529_v23 = vpop.xlane.xlu0 %528  ;;  %v781_v61 = vadd.f32 %v705_v62, %v704_v42  ;;  %v15099_v62 = vld [vmem:[#allocation36_spill] sm:$0xff] }
 0x1c7   : > { %15090 = vst [vmem:[#allocation53_spill] sm:$0xff] %v11302_v33  ;;  %15092 = vst [vmem:[#allocation33_spill] sm:$0xff] %v11305_v36  ;;  %v596_v59 = vmul.f32 0.00390625, %v529_v23  ;;  %824 = vadd.xlane.f32.xlu1 %v823_v52  ;;  %779 = vadd.xlane.f32.xlu0 %v778_v25  ;;  %v532_v58 = vpop.xlane.xlu1 %531  ;;  %v734_v54 = vmul.f32 %v11302_v33, %v11302_v33  ;;  %v735_v55 = vmul.f32 %v11305_v36, %v11305_v36  ;;  %v15097_v52 = vld [vmem:[#allocation35_spill] sm:$0xff]  ;;  %v15101_v25 = vld [vmem:[#allocation37_spill] sm:$0xff] }
 0x1c8   : > { %15093 = vst [vmem:[#allocation54_spill] sm:$0xff] %v11308_v26  ;;  %15095 = vst [vmem:[#allocation34_spill] sm:$0xff] %v11311_v29  ;;  %v597_v32 = vmul.f32 0.00390625, %v532_v58  ;;  %v736_v63 = vmul.f32 %v11308_v26, %v11308_v26  ;;  %v737_v47 = vmul.f32 %v11311_v29, %v11311_v29 }
 0x1c9   : > { %v11322_v19 = vsub.f32 %v11006_v31, %v596_v59  ;;  %v11325_v56 = vsub.f32 %v15097_v52, %v596_v59  ;;  %v826_v42 = vadd.f32 %v735_v55, %v734_v54 }
 0x1ca   : > { %v11328_v14 = vsub.f32 %v15099_v62, %v597_v32  ;;  %v11331_v10 = vsub.f32 %v15101_v25, %v597_v32  ;;  %v577_v58 = vpop.xlane.xlu0 %576  ;;  %v829_v33 = vadd.f32 %v737_v47, %v736_v63  ;;  %v15103_v32 = vld [vmem:[#allocation38_spill] sm:$0xff]  ;;  %v15107_v47 = vld [vmem:[#allocation40_spill] sm:$0xff] }
 0x1cb   : > { %15096 = vst [vmem:[#allocation55_spill] sm:$0xff] %v11322_v19  ;;  %15098 = vst [vmem:[#allocation35_spill] sm:$0xff] %v11325_v56  ;;  %v612_v23 = vmul.f32 0.00390625, %v577_v58  ;;  %782 = vadd.xlane.f32.xlu1 %v781_v61  ;;  %827 = vadd.xlane.f32.xlu0 %v826_v42  ;;  %v580_v26 = vpop.xlane.xlu1 %579  ;;  %v706_v31 = vmul.f32 %v11322_v19, %v11322_v19  ;;  %v707_v59 = vmul.f32 %v11325_v56, %v11325_v56  ;;  %v15105_v61 = vld [vmem:[#allocation39_spill] sm:$0xff]  ;;  %v15109_v58 = vld [vmem:[#allocation41_spill] sm:$0xff] }
 0x1cc   : > { %15100 = vst [vmem:[#allocation36_spill] sm:$0xff] %v11328_v14  ;;  %15102 = vst [vmem:[#allocation37_spill] sm:$0xff] %v11331_v10  ;;  %v613_v52 = vmul.f32 0.00390625, %v580_v26  ;;  %v708_v54 = vmul.f32 %v11328_v14, %v11328_v14  ;;  %v709_v55 = vmul.f32 %v11331_v10, %v11331_v10 }
 0x1cd   : > { %v11342_v62 = vsub.f32 %v15103_v32, %v612_v23  ;;  %v11345_v42 = vsub.f32 %v15105_v61, %v612_v23  ;;  %v784_v63 = vadd.f32 %v707_v59, %v706_v31 }
 0x1ce   : > { %v11348_v25 = vsub.f32 %v15107_v47, %v613_v52  ;;  %v11351_v19 = vsub.f32 %v15109_v58, %v613_v52  ;;  %v787_v26 = vadd.f32 %v709_v55, %v708_v54  ;;  %v998_v54 = vlaneseq }
 0x1cf   : > { %15104 = vst [vmem:[#allocation38_spill] sm:$0xff] %v11342_v62  ;;  %15106 = vst [vmem:[#allocation39_spill] sm:$0xff] %v11345_v42  ;;  %830 = vadd.xlane.f32.xlu1 %v829_v33  ;;  %785 = vadd.xlane.f32.xlu0 %v784_v63  ;;  %v738_v14 = vmul.f32 %v11342_v62, %v11342_v62  ;;  %v739_v32 = vmul.f32 %v11345_v42, %v11345_v42 }
 0x1d0   : > { %15108 = vst [vmem:[#allocation40_spill] sm:$0xff] %v11348_v25  ;;  %15110 = vst [vmem:[#allocation41_spill] sm:$0xff] %v11351_v19  ;;  %v740_v23 = vmul.f32 %v11348_v25, %v11348_v25  ;;  %v741_v31 = vmul.f32 %v11351_v19, %v11351_v19  ;;  %v11361_v42 = vshrl.u32 %v998_v54, 7 }
 0x1d1   : > { %v832_v59 = vadd.f32 %v739_v32, %v738_v14 }
 0x1d2   : > { %v835_v52 = vadd.f32 %v741_v31, %v740_v23  ;;  %15111 = vst [vmem:[#allocation56_spill] sm:$0xff] %v11361_v42  ;;  %v1000_v32 = vsub.s32 0, %v11361_v42 }
 0x1d3   : > { %788 = vadd.xlane.f32.xlu1 %v787_v26  ;;  %833 = vadd.xlane.f32.xlu0 %v832_v59 }
 0x1d7   : > { %836 = vadd.xlane.f32.xlu1 %v835_v52 }
 0x224   : > { %v744_v33 = vpop.xlane.xlu0 %743 }
 0x225   : > { %v838_v61 = vmul.f32 0.00390625, %v744_v33  ;;  %v1072_v33 = vsub.s32 1, %v11361_v42 }
 0x227   : > { %v870_v55 = vadd.f32 1e-05, %v838_v61 }
 0x228   : > { %v747_v63 = vpop.xlane.xlu1 %746  ;;  %v792_v47 = vpop.xlane.xlu0 %791 }
 0x229   : > { %8294 = vrsqrt.f32 %v870_v55  ;;  %v839_v58 = vmul.f32 0.00390625, %v747_v63  ;;  %v854_v62 = vmul.f32 0.00390625, %v792_v47  ;;  %v15112_v55 = vld [vmem:[#allocation28_spill] sm:$0xff] }
 0x22a   : > { %v11366_v63 = vrot.slane %v15112_v55, %v1000_v32  ;;  %v11373_v29 = vrot.slane %v15112_v55, %v1072_v33 }
 0x22b   : > { %v871_v25 = vadd.f32 1e-05, %v839_v58  ;;  %v886_v10 = vadd.f32 1e-05, %v854_v62  ;;  %v15113_v62 = vld [vmem:[#allocation27_spill] sm:$0xff] }
 0x22c   : > { %v795_v56 = vpop.xlane.xlu1 %794  ;;  %v750_v19 = vpop.xlane.xlu0 %749  ;;  %v11369_v47 = vrot.slane %v15113_v62, %v1000_v32 }
 0x22d   : > { %8296 = vrsqrt.f32 %v871_v25  ;;  %v855_v14 = vmul.f32 0.00390625, %v795_v56  ;;  %v840_v26 = vmul.f32 0.00390625, %v750_v19 }
 0x22e   : > { %8298 = vrsqrt.f32 %v886_v10 }
 0x22f   : > { %v887_v23 = vadd.f32 1e-05, %v855_v14  ;;  %v872_v31 = vadd.f32 1e-05, %v840_v26  ;;  %v15114_v14 = vld [vmem:[#allocation43_spill] sm:$0xff] }
 0x230   : > { %v753_v59 = vpop.xlane.xlu1 %752  ;;  %v798_v52 = vpop.xlane.xlu0 %797 }
 0x231   : > { %8300 = vrsqrt.f32 %v887_v23  ;;  %v841_v61 = vmul.f32 0.00390625, %v753_v59  ;;  %v856_v54 = vmul.f32 0.00390625, %v798_v52  ;;  %v15115_v23 = vld [vmem:[#allocation42_spill] sm:$0xff] }
 0x232   : > { %8302 = vrsqrt.f32 %v872_v31  ;;  %v11379_v31 = vrot.slane %v15113_v62, %v1072_v33 }
 0x233   : > { %v8295_v56 = vpop.eup %8294  ;;  %v873_v19 = vadd.f32 1e-05, %v841_v61  ;;  %v888_v10 = vadd.f32 1e-05, %v856_v54 }
 0x234   : > { %v801_v25 = vpop.xlane.xlu1 %800  ;;  %v756_v58 = vpop.xlane.xlu0 %755  ;;  %v935_v26 = vmul.f32 %v8295_v56, %v15114_v14  ;;  %v934_v59 = vmul.f32 %v8295_v56, %v15115_v23 }
 0x235   : > { %8304 = vrsqrt.f32 %v873_v19  ;;  %v857_v52 = vmul.f32 0.00390625, %v801_v25  ;;  %v842_v42 = vmul.f32 0.00390625, %v756_v58 }
 0x236   : > { %v1007_v36 = vmul.f32 %v11366_v63, %v935_v26  ;;  %v1006_v32 = vmul.f32 %v11369_v47, %v934_v59  ;;  %8306 = vrsqrt.f32 %v888_v10  ;;  %v15116_v26 = vld [vmem:[#allocation45_spill] sm:$0xff] }
 0x237   : > { %v8297_v61 = vpop.eup %8296  ;;  %v889_v54 = vadd.f32 1e-05, %v857_v52  ;;  %v874_v53 = vadd.f32 1e-05, %v842_v42 }
 0x238   : > { %v8299_v14 = vpop.eup %8298  ;;  %v759_v6 = vpop.xlane.xlu1 %758  ;;  %v937_v50 = vmul.f32 %v8297_v61, %v11065_v7  ;;  %v1079_v56 = vadd.f32 %v11373_v29, %v1007_v36  ;;  %v936_v19 = vmul.f32 %v8297_v61, %v11062_v51  ;;  %v1078_v42 = vadd.f32 %v11379_v31, %v1006_v32  ;;  %v15117_v36 = vld [vmem:[#allocation44_spill] sm:$0xff] }
 0x239   : > { %v804_v55 = vpop.xlane.xlu0 %803  ;;  %8308 = vrsqrt.f32 %v889_v54  ;;  %v843_v25 = vmul.f32 0.00390625, %v759_v6  ;;  %v967_v23 = vmul.f32 %v8299_v14, %v15116_v26  ;;  %v966_v18 = vmul.f32 %v8299_v14, %v15117_v36  ;;  %v8198_v26 = vld [vmem:[#allocation12] ss:$8 sps:$4 sm:$0xff]  }
 0x23a   : > { %v858_v58 = vmul.f32 0.00390625, %v804_v55  ;;  %8310 = vrsqrt.f32 %v874_v53  ;;  %v1009_v33 = vmul.f32 %v11366_v63, %v937_v50  ;;  %v1008_v10 = vmul.f32 %v11369_v47, %v936_v19 }
 0x23b   : > { %v8301_v59 = vpop.eup %8300  ;;  %v875_v52 = vadd.f32 1e-05, %v843_v25  ;;  %v1039_v7 = vmul.f32 %v11366_v63, %v967_v23 }
 0x23c   : > { %v890_v62 = vadd.f32 1e-05, %v858_v58  ;;  %v807_v51 = vpop.xlane.xlu1 %806  ;;  %v1081_v6 = vadd.f32 %v11373_v29, %v1009_v33  ;;  %v1080_v55 = vadd.f32 %v11379_v31, %v1008_v10  ;;  %v969_v53 = vmul.f32 %v8301_v59, %v11071_v1  ;;  %v8303_v54 = vpop.eup %8302 }
 0x23d   : > { %v762_v61 = vpop.xlane.xlu0 %761  ;;  %v968_v50 = vmul.f32 %v8301_v59, %v11068_v20  ;;  %8312 = vrsqrt.f32 %v875_v52  ;;  %v859_v32 = vmul.f32 0.00390625, %v807_v51  ;;  %v1111_v25 = vadd.f32 %v11373_v29, %v1039_v7  ;;  %v8206_v59 = vld [vmem:[#allocation12 + $0x14] ss:$8 sps:$4 sm:$0xff]  }
 0x23e   : > { %v844_v19 = vmul.f32 0.00390625, %v762_v61  ;;  %8314 = vrsqrt.f32 %v890_v62  ;;  %v11395_v58 = vpack.c.bf16 %v1081_v6, %v1079_v56  ;;  %v11397_v14 = vpack.c.bf16 %v1080_v55, %v1078_v42 }
 0x23f   : > { %v1041_v23 = vmul.f32 %v11366_v63, %v969_v53  ;;  %v8305_v33 = vpop.eup %8304  ;;  %v891_v10 = vadd.f32 1e-05, %v859_v32  ;;  %v1038_v1 = vmul.f32 %v11369_v47, %v966_v18  ;;  %v1040_v20 = vmul.f32 %v11369_v47, %v968_v50  ;;  %v8204_v32 = vld [vmem:[#allocation12 + $0x10] ss:$8 sps:$4 sm:$0xff]  }
 0x240   : > { %v876_v36 = vadd.f32 1e-05, %v844_v19  ;;  %v765_v52 = vpop.xlane.xlu1 %764  ;;  %1406 = vmatprep.mubr.bf16.mxu0 %v11395_v58  ;;  %v939_v56 = vmul.f32 %v8303_v54, %v11085_v38  ;;  %v941_v42 = vmul.f32 %v8305_v33, %v11091_v4  ;;  %v938_v51 = vmul.f32 %v8303_v54, %v11082_v12  ;;  %v8307_v61 = vpop.eup %8306  ;;  %v8201_v12 = vld [vmem:[#allocation11] ss:$8 sps:$4 sm:$0xff]  }
 0x241   : > { %v810_v7 = vpop.xlane.xlu0 %809  ;;  %v1113_v62 = vadd.f32 %v11373_v29, %v1041_v23  ;;  %8316 = vrsqrt.f32 %v891_v10  ;;  %v845_v6 = vmul.f32 0.00390625, %v765_v52  ;;  %1407 = vmatmul.mubr.bf16.vlgmr.msra.gmra.mrb[0].mxu0 %v11397_v14  ;;  %v1110_v53 = vadd.f32 %v11379_v31, %v1038_v1  ;;  %v8212_v10 = vld [vmem:[#allocation12 + $0x24] ss:$8 sps:$4 sm:$0xff]  }
 0x242   : > { %v860_v55 = vmul.f32 0.00390625, %v810_v7  ;;  %2289 = vmatpush1.bf16.msra.mxu0 %v8198_v26  ;;  %v1112_v50 = vadd.f32 %v11379_v31, %v1040_v20  ;;  %v1011_v38 = vmul.f32 %v11366_v63, %v939_v56  ;;  %8318 = vrsqrt.f32 %v876_v36  ;;  %v8209_v7 = vld [vmem:[#allocation11 + $0x14] ss:$8 sps:$4 sm:$0xff]  }
 0x243   : > { %v11408_v18 = vpack.c.bf16 %v1113_v62, %v1111_v25  ;;  %v8309_v19 = vpop.eup %8308  ;;  %v877_v4 = vadd.f32 1e-05, %v845_v6  ;;  %2290 = vmatprep.subr.bf16.mxu0 %v8206_v59  ;;  %v1013_v54 = vmul.f32 %v11366_v63, %v941_v42  ;;  %v940_v23 = vmul.f32 %v8305_v33, %v11088_v3  ;;  %v8207_v33 = vld [vmem:[#allocation11 + $0x10] ss:$8 sps:$4 sm:$0xff]  }
 0x244   : > { %v11415_v26 = vpop.eup %8310  ;;  %v892_v25 = vadd.f32 1e-05, %v860_v55  ;;  %v813_v52 = vpop.xlane.xlu1 %812  ;;  %v11418_v20 = vpack.c.bf16 %v1112_v50, %v1110_v53  ;;  %v1010_v36 = vmul.f32 %v11369_v47, %v938_v51  ;;  %v971_v62 = vmul.f32 %v8307_v61, %v11105_v48  ;;  %v8210_v53 = vld [vmem:[#allocation12 + $0x20] ss:$8 sps:$4 sm:$0xff]  }
 0x245   : > { %1486 = vmatprep.mubr.bf16.mxu1 %v11408_v18  ;;  %v768_v1 = vpop.xlane.xlu0 %767  ;;  %v861_v59 = vmul.f32 0.00390625, %v813_v52  ;;  %v1083_v42 = vadd.f32 %v11373_v29, %v1011_v38  ;;  %v1085_v3 = vadd.f32 %v11373_v29, %v1013_v54  ;;  %8320 = vrsqrt.f32 %v877_v4  ;;  %v8218_v4 = vld [vmem:[#allocation12 + $0x34] ss:$8 sps:$4 sm:$0xff]  }
 0x246   : > { %15118 = vst [vmem:[#allocation43_spill] sm:$0xff] %v11418_v20  ;;  %v846_v56 = vmul.f32 0.00390625, %v768_v1  ;;  %1487 = vmatmul.mubr.bf16.vlgmr.msra.gmra.mrb[0].mxu1 %v11418_v20  ;;  %2291 = vmatpush1.bf16.msra.mxu0 %v8204_v32  ;;  %v1012_v6 = vmul.f32 %v11369_v47, %v940_v23  ;;  %v1082_v55 = vadd.f32 %v11379_v31, %v1010_v36  ;;  %8322 = vrsqrt.f32 %v892_v25  ;;  %v8224_v25 = vld [vmem:[#allocation12 + $0x44] ss:$8 sps:$4 sm:$0xff]  }
 0x247   : > { %v973_v51 = vmul.f32 %v8309_v19, %v11111_v13  ;;  %v8313_v50 = vpop.eup %8312  ;;  %v893_v48 = vadd.f32 1e-05, %v861_v59  ;;  %1832 = vmatpush1.bf16.msra.mxu1 %v8201_v12  ;;  %v11428_v1 = vpack.c.bf16 %v1085_v3, %v1083_v42  ;;  %2292 = vmatprep.subr.bf16.mxu0 %v8212_v10  ;;  %v1043_v38 = vmul.f32 %v11366_v63, %v971_v62  ;;  %v8215_v13 = vld [vmem:[#allocation11 + $0x24] ss:$8 sps:$4 sm:$0xff]  }
 0x248   : > { %v878_v52 = vadd.f32 1e-05, %v846_v56  ;;  %v11431_v54 = vpop.eup %8314  ;;  %v771_v32 = vpop.xlane.xlu1 %770  ;;  %1833 = vmatprep.subr.bf16.mxu1 %v8209_v7  ;;  %v1084_v36 = vadd.f32 %v11379_v31, %v1012_v6  ;;  %v970_v59 = vmul.f32 %v8307_v61, %v11102_v45  ;;  %v972_v12 = vmul.f32 %v8309_v19, %v11108_v9  ;;  %v8216_v6 = vld [vmem:[#allocation12 + $0x30] ss:$8 sps:$4 sm:$0xff]   ;;  %v8213_v9 = vld [vmem:[#allocation11 + $0x20] ss:$8 sps:$4 sm:$0xff]  }
 0x249   : > { %v816_v23 = vpop.xlane.xlu0 %815  ;;  %v1045_v20 = vmul.f32 %v11366_v63, %v973_v51  ;;  %v847_v56 = vmul.f32 0.00390625, %v771_v32  ;;  %1416 = vmatprep.mubr.bf16.mxu0 %v11428_v1  ;;  %v1115_v7 = vadd.f32 %v11373_v29, %v1043_v38  ;;  %8324 = vrsqrt.f32 %v893_v48 }
 0x24a   : > { %v862_v10 = vmul.f32 0.00390625, %v816_v23  ;;  %v11438_v62 = vpack.c.bf16 %v1084_v36, %v1082_v55  ;;  %2293 = vmatpush1.bf16.msra.mxu0 %v8210_v53  ;;  %v1042_v3 = vmul.f32 %v11369_v47, %v970_v59  ;;  %v1044_v61 = vmul.f32 %v11369_v47, %v972_v12  ;;  %v8219_v59 = vld [vmem:[#allocation11 + $0x30] ss:$8 sps:$4 sm:$0xff]   ;;  %v8222_v12 = vld [vmem:[#allocation12 + $0x40] ss:$8 sps:$4 sm:$0xff]  }
 0x24b   : > { %v1117_v42 = vadd.f32 %v11373_v29, %v1045_v20  ;;  %v11443_v51 = vpop.eup %8316  ;;  %v879_v45 = vadd.f32 1e-05, %v847_v56  ;;  %1834 = vmatpush1.bf16.msra.mxu1 %v8207_v33  ;;  %2294 = vmatprep.subr.bf16.mxu0 %v8218_v4  ;;  %v943_v19 = vmul.f32 %v11415_v26, %v11125_v60  ;;  %8326 = vrsqrt.f32 %v878_v52  ;;  %v8221_v33 = vld [vmem:[#allocation11 + $0x34] ss:$8 sps:$4 sm:$0xff]  }
 0x24c   : > { %v894_v55 = vadd.f32 1e-05, %v862_v10  ;;  %1417 = vmatmul.mubr.bf16.gmra.mrb[4].mxu0 %v11438_v62  ;;  %v819_v20 = vpop.xlane.xlu1 %818  ;;  %1835 = vmatprep.subr.bf16.mxu1 %v8215_v13  ;;  %v945_v48 = vmul.f32 %v8313_v50, %v11131_v17  ;;  %v11452_v32 = vpop.eup %8318  ;;  %v1114_v36 = vadd.f32 %v11379_v31, %v1042_v3  ;;  %v1116_v60 = vadd.f32 %v11379_v31, %v1044_v61 }
 0x24d   : > { %v11449_v53 = vpack.c.bf16 %v1117_v42, %v1115_v7  ;;  %v774_v38 = vpop.xlane.xlu0 %773  ;;  %v863_v23 = vmul.f32 0.00390625, %v819_v20  ;;  %8328 = vrsqrt.f32 %v879_v45  ;;  %v1015_v52 = vmul.f32 %v11366_v63, %v943_v19  ;;  %v15119_v42 = vld [vmem:[#allocation46_spill] sm:$0xff] }
 0x24e   : > { %v848_v4 = vmul.f32 0.00390625, %v774_v38  ;;  %2295 = vmatpush1.bf16.msra.mxu0 %v8216_v6  ;;  %v1017_v13 = vmul.f32 %v11366_v63, %v945_v48  ;;  %v942_v17 = vmul.f32 %v11415_v26, %v11122_v15  ;;  %v11461_v7 = vpack.c.bf16 %v1116_v60, %v1114_v36  ;;  %v8230_v45 = vld [vmem:[#allocation12 + $0x54] ss:$8 sps:$4 sm:$0xff]   ;;  %v8227_v48 = vld [vmem:[#allocation11 + $0x44] ss:$8 sps:$4 sm:$0xff]  }
 0x24f   : > { %1496 = vmatprep.mubr.bf16.mxu1 %v11449_v53  ;;  %v895_v56 = vadd.f32 1e-05, %v863_v23  ;;  %1836 = vmatpush1.bf16.msra.mxu1 %v8213_v9  ;;  %v944_v3 = vmul.f32 %v8313_v50, %v15119_v42  ;;  %v11464_v61 = vpop.eup %8320  ;;  %v1087_v19 = vadd.f32 %v11373_v29, %v1015_v52  ;;  %v975_v26 = vmul.f32 %v11431_v54, %v11145_v5  ;;  %v8228_v36 = vld [vmem:[#allocation12 + $0x50] ss:$8 sps:$4 sm:$0xff]  }
 0x250   : > { %v880_v10 = vadd.f32 1e-05, %v848_v4  ;;  %2296 = vmatprep.subr.bf16.mxu0 %v8224_v25  ;;  %v777_v6 = vpop.xlane.xlu1 %776  ;;  %v1089_v20 = vadd.f32 %v11373_v29, %v1017_v13  ;;  %1837 = vmatprep.subr.bf16.mxu1 %v8221_v33  ;;  %v1014_v15 = vmul.f32 %v11369_v47, %v942_v17  ;;  %8330 = vrsqrt.f32 %v894_v55  ;;  %v11478_v60 = vpop.eup %8322  ;;  %v8225_v17 = vld [vmem:[#allocation11 + $0x40] ss:$8 sps:$4 sm:$0xff]  }
 0x251   : > { %v822_v38 = vpop.xlane.xlu0 %821  ;;  %1497 = vmatmul.mubr.bf16.gmra.mrb[4].mxu1 %v11461_v7  ;;  %v849_v50 = vmul.f32 0.00390625, %v777_v6  ;;  %v1016_v25 = vmul.f32 %v11369_v47, %v944_v3  ;;  %8332 = vrsqrt.f32 %v895_v56  ;;  %v977_v33 = vmul.f32 %v11443_v51, %v11151_v16  ;;  %v8233_v6 = vld [vmem:[#allocation11 + $0x54] ss:$8 sps:$4 sm:$0xff]  }
 0x252   : > { %v864_v9 = vmul.f32 0.00390625, %v822_v38  ;;  %v11473_v23 = vpack.c.bf16 %v1089_v20, %v1087_v19  ;;  %v1086_v4 = vadd.f32 %v11379_v31, %v1014_v15  ;;  %2297 = vmatpush1.bf16.msra.mxu0 %v8222_v12  ;;  %v1047_v13 = vmul.f32 %v11366_v63, %v975_v26 }
 0x253   : > { %v881_v5 = vadd.f32 1e-05, %v849_v50  ;;  %v1088_v52 = vadd.f32 %v11379_v31, %v1016_v25  ;;  %1838 = vmatpush1.bf16.msra.mxu1 %v8219_v59  ;;  %2298 = vmatprep.subr.bf16.mxu0 %v8230_v45  ;;  %8334 = vrsqrt.f32 %v880_v10  ;;  %v1049_v12 = vmul.f32 %v11366_v63, %v977_v33  ;;  %v8236_v59 = vld [vmem:[#allocation12 + $0x64] ss:$8 sps:$4 sm:$0xff]   ;;  %v11488_v19 = vpop.eup %8324  ;;  %v8242_v25 = vld [vmem:[#allocation12 + $0x74] ss:$8 sps:$4 sm:$0xff]  }
 0x254   : > { %v896_v55 = vadd.f32 1e-05, %v864_v9  ;;  %1426 = vmatprep.mubr.bf16.mxu0 %v11473_v23  ;;  %v825_v56 = vpop.xlane.xlu1 %824  ;;  %1839 = vmatprep.subr.bf16.mxu1 %v8227_v48  ;;  %v974_v42 = vmul.f32 %v11431_v54, %v11142_v57  ;;  %v976_v3 = vmul.f32 %v11443_v51, %v11148_v24  ;;  %v1119_v20 = vadd.f32 %v11373_v29, %v1047_v13  ;;  %v8234_v24 = vld [vmem:[#allocation12 + $0x60] ss:$8 sps:$4 sm:$0xff]   ;;  %v8231_v9 = vld [vmem:[#allocation11 + $0x50] ss:$8 sps:$4 sm:$0xff]  }
 0x255   : > { %v780_v16 = vpop.xlane.xlu0 %779  ;;  %8336 = vrsqrt.f32 %v881_v5  ;;  %v11490_v45 = vpack.c.bf16 %v1088_v52, %v1086_v4  ;;  %v865_v10 = vmul.f32 0.00390625, %v825_v56  ;;  %v11493_v38 = vpop.eup %8326  ;;  %v1121_v15 = vadd.f32 %v11373_v29, %v1049_v12 }
 0x256   : > { %8338 = vrsqrt.f32 %v896_v55  ;;  %v850_v26 = vmul.f32 0.00390625, %v780_v16  ;;  %v1046_v57 = vmul.f32 %v11369_v47, %v974_v42  ;;  %2299 = vmatpush1.bf16.msra.mxu0 %v8228_v36  ;;  %v1048_v51 = vmul.f32 %v11369_v47, %v976_v3  ;;  %v8240_v3 = vld [vmem:[#allocation12 + $0x70] ss:$8 sps:$4 sm:$0xff]  }
 0x257   : > { %1427 = vmatmul.mubr.bf16.gmra.mrb[8].mxu0 %v11490_v45  ;;  %v897_v54 = vadd.f32 1e-05, %v865_v10  ;;  %1840 = vmatpush1.bf16.msra.mxu1 %v8225_v17  ;;  %v947_v48 = vmul.f32 %v11452_v32, %v11165_v37  ;;  %v949_v50 = vmul.f32 %v11464_v61, %v11171_v22  ;;  %v11503_v4 = vpop.eup %8328  ;;  %v11505_v33 = vpack.c.bf16 %v1121_v15, %v1119_v20  ;;  %v8239_v37 = vld [vmem:[#allocation11 + $0x64] ss:$8 sps:$4 sm:$0xff]   ;;  %v8237_v20 = vld [vmem:[#allocation11 + $0x60] ss:$8 sps:$4 sm:$0xff]  }
 0x258   : > { %v882_v36 = vadd.f32 1e-05, %v850_v26  ;;  %v1118_v5 = vadd.f32 %v11379_v31, %v1046_v57  ;;  %v783_v55 = vpop.xlane.xlu1 %782  ;;  %1841 = vmatprep.subr.bf16.mxu1 %v8233_v6  ;;  %v946_v13 = vmul.f32 %v11452_v32, %v11162_v0  ;;  %2300 = vmatprep.subr.bf16.mxu0 %v8236_v59  ;;  %v1120_v22 = vadd.f32 %v11379_v31, %v1048_v51  ;;  %v8248_v15 = vld [vmem:[#allocation12 + $0x84] ss:$8 sps:$4 sm:$0xff]  }
 0x259   : > { %v828_v52 = vpop.xlane.xlu0 %827  ;;  %8340 = vrsqrt.f32 %v897_v54  ;;  %v851_v17 = vmul.f32 0.00390625, %v783_v55  ;;  %v1019_v56 = vmul.f32 %v11366_v63, %v947_v48  ;;  %1506 = vmatprep.mubr.bf16.mxu1 %v11505_v33  ;;  %v1021_v12 = vmul.f32 %v11366_v63, %v949_v50 }
 0x25a   : > { %8342 = vrsqrt.f32 %v882_v36  ;;  %v866_v16 = vmul.f32 0.00390625, %v828_v52  ;;  %v948_v42 = vmul.f32 %v11464_v61, %v11168_v30  ;;  %2301 = vmatpush1.bf16.msra.mxu0 %v8234_v24  ;;  %v11516_v0 = vpop.eup %8330  ;;  %v11518_v32 = vpack.c.bf16 %v1120_v22, %v1118_v5  ;;  %v8243_v52 = vld [vmem:[#allocation11 + $0x70] ss:$8 sps:$4 sm:$0xff]  }
 0x25b   : > { %v883_v6 = vadd.f32 1e-05, %v851_v17  ;;  %v1091_v59 = vadd.f32 %v11373_v29, %v1019_v56  ;;  %v1018_v10 = vmul.f32 %v11369_v47, %v946_v13  ;;  %1842 = vmatpush1.bf16.msra.mxu1 %v8231_v9  ;;  %2302 = vmatprep.subr.bf16.mxu0 %v8242_v25  ;;  %v11522_v26 = vpop.eup %8332  ;;  %v1093_v57 = vadd.f32 %v11373_v29, %v1021_v12  ;;  %v8245_v25 = vld [vmem:[#allocation11 + $0x74] ss:$8 sps:$4 sm:$0xff]   ;;  %v8246_v56 = vld [vmem:[#allocation12 + $0x80] ss:$8 sps:$4 sm:$0xff]  }
 0x25c   : > { %v898_v30 = vadd.f32 1e-05, %v866_v16  ;;  %v1020_v61 = vmul.f32 %v11369_v47, %v948_v42  ;;  %v831_v24 = vpop.xlane.xlu1 %830  ;;  %v979_v54 = vmul.f32 %v11478_v60, %v11185_v27  ;;  %1843 = vmatprep.subr.bf16.mxu1 %v8239_v37  ;;  %1507 = vmatmul.mubr.bf16.gmra.mrb[8].mxu1 %v11518_v32  ;;  %v981_v9 = vmul.f32 %v11488_v19, %v11191_v21 }
 0x25d   : > { %v786_v51 = vpop.xlane.xlu0 %785  ;;  %8344 = vrsqrt.f32 %v883_v6  ;;  %v1090_v48 = vadd.f32 %v11379_v31, %v1018_v10  ;;  %v867_v50 = vmul.f32 0.00390625, %v831_v24  ;;  %v11532_v36 = vpop.eup %8334  ;;  %v11534_v5 = vpack.c.bf16 %v1093_v57, %v1091_v59 }
 0x25e   : > { %8346 = vrsqrt.f32 %v898_v30  ;;  %v1092_v55 = vadd.f32 %v11379_v31, %v1020_v61  ;;  %v1051_v27 = vmul.f32 %v11366_v63, %v979_v54  ;;  %2303 = vmatpush1.bf16.msra.mxu0 %v8240_v3  ;;  %v1053_v22 = vmul.f32 %v11366_v63, %v981_v9 }
 0x25f   : > { %v11538_v13 = vpop.eup %8336  ;;  %v899_v37 = vadd.f32 1e-05, %v867_v50  ;;  %v852_v17 = vmul.f32 0.00390625, %v786_v51  ;;  %v978_v21 = vmul.f32 %v11478_v60, %v11182_v2  ;;  %1844 = vmatpush1.bf16.msra.mxu1 %v8237_v20  ;;  %2304 = vmatprep.subr.bf16.mxu0 %v8248_v15  ;;  %v980_v3 = vmul.f32 %v11488_v19, %v11188_v28  ;;  %v8251_v2 = vld [vmem:[#allocation11 + $0x84] ss:$8 sps:$4 sm:$0xff]  }
 0x260   : > { %v11543_v12 = vpop.eup %8338  ;;  %1436 = vmatprep.mubr.bf16.mxu0 %v11534_v5  ;;  %v11546_v16 = vpack.c.bf16 %v1092_v55, %v1090_v48  ;;  %v1123_v42 = vadd.f32 %v11373_v29, %v1051_v27  ;;  %v789_v6 = vpop.xlane.xlu1 %788  ;;  %v951_v59 = vmul.f32 %v11493_v38, %v11205_v34  ;;  %v8254_v60 = vld [vmem:[#allocation12 + $0x94] ss:$8 sps:$4 sm:$0xff]   ;;  %v1125_v20 = vadd.f32 %v11373_v29, %v1053_v22  ;;  %v8249_v48 = vld [vmem:[#allocation11 + $0x80] ss:$8 sps:$4 sm:$0xff]   ;;  %v8252_v50 = vld [vmem:[#allocation12 + $0x90] ss:$8 sps:$4 sm:$0xff]  }
 0x261   : > { %v834_v10 = vpop.xlane.xlu0 %833  ;;  %8348 = vrsqrt.f32 %v899_v37  ;;  %v884_v15 = vadd.f32 1e-05, %v852_v17  ;;  %v1050_v57 = vmul.f32 %v11369_v47, %v978_v21  ;;  %1845 = vmatprep.subr.bf16.mxu1 %v8245_v25  ;;  %v1052_v30 = vmul.f32 %v11369_v47, %v980_v3  ;;  %v8257_v22 = vld [vmem:[#allocation11 + $0x94] ss:$8 sps:$4 sm:$0xff]  }
 0x262   : > { %1437 = vmatmul.mubr.bf16.gmra.mrb[12].mxu0 %v11546_v16  ;;  %v853_v61 = vmul.f32 0.00390625, %v789_v6  ;;  %v953_v28 = vmul.f32 %v11503_v4, %v11211_v35  ;;  %v1023_v34 = vmul.f32 %v11366_v63, %v951_v59  ;;  %v11562_v24 = vpack.c.bf16 %v1125_v20, %v1123_v42  ;;  %v8260_v42 = vld [vmem:[#allocation12 + $0xa4] ss:$8 sps:$4 sm:$0xff]  }
 0x263   : > { %v11560_v19 = vpop.eup %8340  ;;  %8350 = vrsqrt.f32 %v884_v15  ;;  %v1122_v54 = vadd.f32 %v11379_v31, %v1050_v57  ;;  %v868_v51 = vmul.f32 0.00390625, %v834_v10  ;;  %1846 = vmatpush1.bf16.msra.mxu1 %v8243_v52  ;;  %2305 = vmatpush1.bf16.msra.mxu0 %v8246_v56  ;;  %v1124_v25 = vadd.f32 %v11379_v31, %v1052_v30  ;;  %v8258_v15 = vld [vmem:[#allocation12 + $0xa0] ss:$8 sps:$4 sm:$0xff]  }
 0x264   : > { %v11565_v9 = vpop.eup %8342  ;;  %v885_v55 = vadd.f32 1e-05, %v853_v61  ;;  %v1025_v35 = vmul.f32 %v11366_v63, %v953_v28  ;;  %v1095_v27 = vadd.f32 %v11373_v29, %v1023_v34  ;;  %v837_v37 = vpop.xlane.xlu1 %836  ;;  %1847 = vmatprep.subr.bf16.mxu1 %v8251_v2  ;;  %2306 = vmatprep.subr.bf16.mxu0 %v8254_v60  ;;  %v950_v52 = vmul.f32 %v11493_v38, %v11202_v39 }
 0x265   : > { %1516 = vmatprep.mubr.bf16.mxu1 %v11562_v24  ;;  %v900_v17 = vadd.f32 1e-05, %v868_v51  ;;  %v952_v21 = vmul.f32 %v11503_v4, %v11208_v8  ;;  %v869_v56 = vmul.f32 0.00390625, %v837_v37  ;;  %v11575_v3 = vpack.c.bf16 %v1124_v25, %v1122_v54  ;;  %v8255_v8 = vld [vmem:[#allocation11 + $0x90] ss:$8 sps:$4 sm:$0xff]  }
 0x266   : > { %8352 = vrsqrt.f32 %v885_v55  ;;  %v1097_v6 = vadd.f32 %v11373_v29, %v1025_v35  ;;  %v983_v59 = vmul.f32 %v11516_v0, %v11225_v40  ;;  %v1022_v2 = vmul.f32 %v11369_v47, %v950_v52  ;;  %v8261_v25 = vld [vmem:[#allocation11 + $0xa0] ss:$8 sps:$4 sm:$0xff]  }
 0x267   : > { %v11580_v10 = vpop.eup %8344  ;;  %8354 = vrsqrt.f32 %v900_v17  ;;  %v1024_v39 = vmul.f32 %v11369_v47, %v952_v21  ;;  %1848 = vmatpush1.bf16.msra.mxu1 %v8249_v48  ;;  %2307 = vmatpush1.bf16.msra.mxu0 %v8252_v50  ;;  %v985_v60 = vmul.f32 %v11522_v26, %v11231_v41  ;;  %v982_v20 = vmul.f32 %v11516_v0, %v11222_v43  ;;  %v8263_v0 = vld [vmem:[#allocation11 + $0xa4] ss:$8 sps:$4 sm:$0xff]   ;;  %v15121_v17 = vld [vmem:[#allocation49_spill] sm:$0xff] }
 0x268   : > { %v11584_v38 = vpop.eup %8346  ;;  %1517 = vmatmul.mubr.bf16.gmra.mrb[12].mxu1 %v11575_v3  ;;  %v11587_v4 = vpack.c.bf16 %v1097_v6, %v1095_v27  ;;  %v1055_v40 = vmul.f32 %v11366_v63, %v983_v59  ;;  %v1094_v57 = vadd.f32 %v11379_v31, %v1022_v2  ;;  %v901_v61 = vadd.f32 1e-05, %v869_v56  ;;  %1849 = vmatprep.subr.bf16.mxu1 %v8257_v22  ;;  %v15120_v27 = vld [vmem:[#allocation47_spill] sm:$0xff]  ;;  %v8266_v21 = vld [vmem:[#allocation12 + $0xb4] ss:$8 sps:$4 sm:$0xff]  }
 0x269   : > { %v1096_v30 = vadd.f32 %v11379_v31, %v1024_v39  ;;  %v984_v28 = vmul.f32 %v11522_v26, %v11228_v11  ;;  %2308 = vmatprep.subr.bf16.mxu0 %v8260_v42  ;;  %v1057_v41 = vmul.f32 %v11366_v63, %v985_v60  ;;  %v1054_v54 = vmul.f32 %v11369_v47, %v982_v20  ;;  %v15122_v6 = vld [vmem:[#allocation51_spill] sm:$0xff]  ;;  %v8264_v2 = vld [vmem:[#allocation12 + $0xb0] ss:$8 sps:$4 sm:$0xff]   ;;  %v8269_v20 = vld [vmem:[#allocation11 + $0xb4] ss:$8 sps:$4 sm:$0xff]  }
 0x26a   : > { %1446 = vmatprep.mubr.bf16.mxu0 %v11587_v4  ;;  %v1127_v34 = vadd.f32 %v11373_v29, %v1055_v40  ;;  %v955_v43 = vmul.f32 %v11532_v36, %v11245_v44  ;;  %v957_v26 = vmul.f32 %v11538_v13, %v11251_v46  ;;  %v954_v50 = vmul.f32 %v11532_v36, %v11242_v49 }
 0x26b   : > { %v11604_v51 = vpop.eup %8348  ;;  %v11606_v48 = vpack.c.bf16 %v1096_v30, %v1094_v57  ;;  %v1056_v11 = vmul.f32 %v11369_v47, %v984_v28  ;;  %1850 = vmatpush1.bf16.msra.mxu1 %v8255_v8  ;;  %v1129_v55 = vadd.f32 %v11373_v29, %v1057_v41  ;;  %v1126_v35 = vadd.f32 %v11379_v31, %v1054_v54  ;;  %v15123_v28 = vld [vmem:[#allocation48_spill] sm:$0xff] }
 0x26c   : > { %v1027_v44 = vmul.f32 %v11366_v63, %v955_v43  ;;  %v956_v37 = vmul.f32 %v11538_v13, %v15120_v27  ;;  %2309 = vmatpush1.bf16.msra.mxu0 %v8258_v15  ;;  %v1029_v49 = vmul.f32 %v11366_v63, %v957_v26  ;;  %v1026_v36 = vmul.f32 %v11369_v47, %v954_v50  ;;  %v8267_v43 = vld [vmem:[#allocation11 + $0xb0] ss:$8 sps:$4 sm:$0xff]   ;;  %v15126_v27 = vld [vmem:[#allocation32_spill] sm:$0xff] }
 0x26d   : > { %v11618_v22 = vpop.eup %8350  ;;  %1447 = vmatmul.mubr.bf16.gmra.mrb[16].mxu0 %v11606_v48  ;;  %v1128_v46 = vadd.f32 %v11379_v31, %v1056_v11  ;;  %v987_v52 = vmul.f32 %v11543_v12, %v15121_v17  ;;  %v11626_v56 = vpack.c.bf16 %v1129_v55, %v1127_v34  ;;  %v989_v59 = vmul.f32 %v11560_v19, %v15122_v6  ;;  %v15124_v34 = vld [vmem:[#allocation50_spill] sm:$0xff]  ;;  %v8272_v55 = vld [vmem:[#allocation12 + $0xc4] ss:$8 sps:$4 sm:$0xff]  }
 0x26e   : > { %v1099_v42 = vadd.f32 %v11373_v29, %v1027_v44  ;;  %v1028_v13 = vmul.f32 %v11369_v47, %v956_v37  ;;  %1851 = vmatprep.subr.bf16.mxu1 %v8263_v0  ;;  %v1101_v8 = vadd.f32 %v11373_v29, %v1029_v49  ;;  %v1098_v60 = vadd.f32 %v11379_v31, %v1026_v36  ;;  %v15125_v50 = vld [vmem:[#allocation30_spill] sm:$0xff]  ;;  %v15127_v49 = vld [vmem:[#allocation52_spill] sm:$0xff] }
 0x26f   : > { %v11632_v39 = vpack.c.bf16 %v1128_v46, %v1126_v35  ;;  %v1059_v40 = vmul.f32 %v11366_v63, %v987_v52  ;;  %1852 = vmatpush1.bf16.msra.mxu1 %v8261_v25  ;;  %1526 = vmatprep.mubr.bf16.mxu1 %v11626_v56  ;;  %v1061_v30 = vmul.f32 %v11366_v63, %v989_v59  ;;  %8356 = vrsqrt.f32 %v901_v61  ;;  %v8270_v61 = vld [vmem:[#allocation12 + $0xc0] ss:$8 sps:$4 sm:$0xff]   ;;  %v8275_v17 = vld [vmem:[#allocation11 + $0xc4] ss:$8 sps:$4 sm:$0xff]  }
 0x270   : > { %v11637_v15 = vpop.eup %8352  ;;  %v1100_v57 = vadd.f32 %v11379_v31, %v1028_v13  ;;  %v986_v41 = vmul.f32 %v11543_v12, %v15123_v28  ;;  %v988_v54 = vmul.f32 %v11560_v19, %v15124_v34  ;;  %v11649_v11 = vpack.c.bf16 %v1101_v8, %v1099_v42  ;;  %2310 = vmatprep.subr.bf16.mxu0 %v8266_v21  ;;  %v15128_v13 = vld [vmem:[#allocation31_spill] sm:$0xff]  ;;  %v15130_v34 = vld [vmem:[#allocation34_spill] sm:$0xff] }
 0x271   : > { %v11646_v0 = vpop.eup %8354  ;;  %1527 = vmatmul.mubr.bf16.gmra.mrb[16].mxu1 %v11632_v39  ;;  %v1131_v26 = vadd.f32 %v11373_v29, %v1059_v40  ;;  %v959_v25 = vmul.f32 %v11565_v9, %v15125_v50  ;;  %v1133_v12 = vadd.f32 %v11373_v29, %v1061_v30  ;;  %2311 = vmatpush1.bf16.msra.mxu0 %v8264_v2  ;;  %v8273_v59 = vld [vmem:[#allocation11 + $0xc0] ss:$8 sps:$4 sm:$0xff]   ;;  %v8278_v2 = vld [vmem:[#allocation12 + $0xd4] ss:$8 sps:$4 sm:$0xff]   ;;  %v8276_v30 = vld [vmem:[#allocation12 + $0xd0] ss:$8 sps:$4 sm:$0xff]  }
 0x272   : > { %v11654_v35 = vpack.c.bf16 %v1100_v57, %v1098_v60  ;;  %v1058_v19 = vmul.f32 %v11369_v47, %v986_v41  ;;  %v1060_v44 = vmul.f32 %v11369_v47, %v988_v54  ;;  %1456 = vmatprep.mubr.bf16.mxu0 %v11649_v11  ;;  %v961_v37 = vmul.f32 %v11580_v10, %v15126_v27  ;;  %v8281_v50 = vld [vmem:[#allocation11 + $0xd4] ss:$8 sps:$4 sm:$0xff]  }
 0x273   : > { %v1031_v46 = vmul.f32 %v11366_v63, %v959_v25  ;;  %1853 = vmatprep.subr.bf16.mxu1 %v8269_v20  ;;  %v958_v36 = vmul.f32 %v11565_v9, %v15127_v49  ;;  %v11665_v52 = vpack.c.bf16 %v1133_v12, %v1131_v26  ;;  %v960_v6 = vmul.f32 %v11580_v10, %v15128_v13  ;;  %v15129_v10 = vld [vmem:[#allocation33_spill] sm:$0xff]  ;;  %v15132_v12 = vld [vmem:[#allocation54_spill] sm:$0xff]  ;;  %v8284_v49 = vld [vmem:[#allocation12 + $0xe4] ss:$8 sps:$4 sm:$0xff]  }
 0x274   : > { %v1130_v21 = vadd.f32 %v11379_v31, %v1058_v19  ;;  %v1132_v42 = vadd.f32 %v11379_v31, %v1060_v44  ;;  %1854 = vmatpush1.bf16.msra.mxu1 %v8267_v43  ;;  %v1033_v8 = vmul.f32 %v11366_v63, %v961_v37  ;;  %2312 = vmatprep.subr.bf16.mxu0 %v8272_v55  ;;  %v15131_v43 = vld [vmem:[#allocation53_spill] sm:$0xff]  ;;  %v8282_v13 = vld [vmem:[#allocation12 + $0xe0] ss:$8 sps:$4 sm:$0xff]  }
 0x275   : > { %1457 = vmatmul.mubr.bf16.gmra.mrb[20].mxu0 %v11654_v35  ;;  %v1103_v60 = vadd.f32 %v11373_v29, %v1031_v46  ;;  %v1030_v9 = vmul.f32 %v11369_v47, %v958_v36  ;;  %1536 = vmatprep.mubr.bf16.mxu1 %v11665_v52  ;;  %v1032_v20 = vmul.f32 %v11369_v47, %v960_v6  ;;  %v8279_v44 = vld [vmem:[#allocation11 + $0xd0] ss:$8 sps:$4 sm:$0xff]  }
 0x276   : > { %v11676_v40 = vpack.c.bf16 %v1132_v42, %v1130_v21  ;;  %2313 = vmatpush1.bf16.msra.mxu0 %v8270_v61  ;;  %v991_v57 = vmul.f32 %v11584_v38, %v15129_v10  ;;  %v1105_v28 = vadd.f32 %v11373_v29, %v1033_v8  ;;  %v993_v54 = vmul.f32 %v11604_v51, %v15130_v34  ;;  %v15134_v21 = vld [vmem:[#allocation37_spill] sm:$0xff]  ;;  %v15135_v10 = vld [vmem:[#allocation55_spill] sm:$0xff] }
 0x277   : > { %v1102_v41 = vadd.f32 %v11379_v31, %v1030_v9  ;;  %1855 = vmatprep.subr.bf16.mxu1 %v8275_v17  ;;  %v990_v26 = vmul.f32 %v11584_v38, %v15131_v43  ;;  %v1104_v25 = vadd.f32 %v11379_v31, %v1032_v20  ;;  %v992_v19 = vmul.f32 %v11604_v51, %v15132_v12  ;;  %v15133_v38 = vld [vmem:[#allocation35_spill] sm:$0xff]  ;;  %v8288_v12 = vld [vmem:[#allocation12 + $0xf0] ss:$8 sps:$4 sm:$0xff]  }
 0x278   : > { %v1063_v55 = vmul.f32 %v11366_v63, %v991_v57  ;;  %1856 = vmatpush1.bf16.msra.mxu1 %v8273_v59  ;;  %2314 = vmatprep.subr.bf16.mxu0 %v8278_v2  ;;  %v11692_v61 = vpack.c.bf16 %v1105_v28, %v1103_v60  ;;  %v1065_v27 = vmul.f32 %v11366_v63, %v993_v54  ;;  %v8287_v60 = vld [vmem:[#allocation11 + $0xe4] ss:$8 sps:$4 sm:$0xff]  }
 0x279   : > { %1537 = vmatmul.mubr.bf16.gmra.mrb[20].mxu1 %v11676_v40  ;;  %v1062_v37 = vmul.f32 %v11369_v47, %v990_v26  ;;  %v963_v46 = vmul.f32 %v11618_v22, %v15133_v38  ;;  %v11698_v36 = vpack.c.bf16 %v1104_v25, %v1102_v41  ;;  %v1064_v51 = vmul.f32 %v11369_v47, %v992_v19  ;;  %v8357_v6 = vpop.eup %8356  ;;  %v8285_v41 = vld [vmem:[#allocation11 + $0xe0] ss:$8 sps:$4 sm:$0xff]   ;;  %v15138_v19 = vld [vmem:[#allocation41_spill] sm:$0xff] }
 0x27a   : > { %v1135_v17 = vadd.f32 %v11373_v29, %v1063_v55  ;;  %2315 = vmatpush1.bf16.msra.mxu0 %v8276_v30  ;;  %v965_v42 = vmul.f32 %v11637_v15, %v15134_v21  ;;  %1466 = vmatprep.mubr.bf16.mxu0 %v11692_v61  ;;  %v1137_v59 = vadd.f32 %v11373_v29, %v1065_v27  ;;  %v15136_v30 = vld [vmem:[#allocation36_spill] sm:$0xff]  ;;  %v15137_v43 = vld [vmem:[#allocation39_spill] sm:$0xff] }
 0x27b   : > { %v1134_v2 = vadd.f32 %v11379_v31, %v1062_v37  ;;  %v1035_v8 = vmul.f32 %v11366_v63, %v963_v46  ;;  %1857 = vmatprep.subr.bf16.mxu1 %v8281_v50  ;;  %v1136_v9 = vadd.f32 %v11379_v31, %v1064_v51  ;;  %v962_v57 = vmul.f32 %v11618_v22, %v15135_v10  ;;  %v8290_v50 = vld [vmem:[#allocation12 + $0xf4] ss:$8 sps:$4 sm:$0xff]   ;;  %v15140_v21 = vld [vmem:[#allocation40_spill] sm:$0xff] }
 0x27c   : > { %v1037_v20 = vmul.f32 %v11366_v63, %v965_v42  ;;  %v964_v28 = vmul.f32 %v11637_v15, %v15136_v30  ;;  %1858 = vmatpush1.bf16.msra.mxu1 %v8279_v44  ;;  %v11715_v34 = vpack.c.bf16 %v1137_v59, %v1135_v17  ;;  %2316 = vmatprep.subr.bf16.mxu0 %v8284_v49  ;;  %v15139_v37 = vld [vmem:[#allocation38_spill] sm:$0xff] }
 0x27d   : > { %1467 = vmatmul.mubr.bf16.gmra.mrb[24].mxu0 %v11698_v36  ;;  %v1107_v54 = vadd.f32 %v11373_v29, %v1035_v8  ;;  %v995_v26 = vmul.f32 %v11646_v0, %v15137_v43  ;;  %v11720_v25 = vpack.c.bf16 %v1136_v9, %v1134_v2  ;;  %v1034_v55 = vmul.f32 %v11369_v47, %v962_v57  ;;  %v8293_v46 = vld [vmem:[#allocation11 + $0xf4] ss:$8 sps:$4 sm:$0xff]  }
 0x27e   : > { %v1109_v22 = vadd.f32 %v11373_v29, %v1037_v20  ;;  %v1036_v15 = vmul.f32 %v11369_v47, %v964_v28  ;;  %2317 = vmatpush1.bf16.msra.mxu0 %v8282_v13  ;;  %1546 = vmatprep.mubr.bf16.mxu1 %v11715_v34  ;;  %v997_v44 = vmul.f32 %v8357_v6, %v15138_v19  ;;  %v8291_v13 = vld [vmem:[#allocation11 + $0xf0] ss:$8 sps:$4 sm:$0xff]  }
 0x27f   : > { %v1067_v27 = vmul.f32 %v11366_v63, %v995_v26  ;;  %1859 = vmatprep.subr.bf16.mxu1 %v8287_v60  ;;  %v994_v38 = vmul.f32 %v11646_v0, %v15139_v37  ;;  %v1106_v17 = vadd.f32 %v11379_v31, %v1034_v55  ;;  %v996_v42 = vmul.f32 %v8357_v6, %v15140_v21 }
 0x280   : > { %v1157_v49 = vpack.c.bf16 %v1109_v22, %v1107_v54  ;;  %v1108_v51 = vadd.f32 %v11379_v31, %v1036_v15  ;;  %1860 = vmatpush1.bf16.msra.mxu1 %v8285_v41  ;;  %v1069_v59 = vmul.f32 %v11366_v63, %v997_v44  ;;  %2318 = vmatprep.subr.bf16.mxu0 %v8290_v50 }
 0x281   : > { %1547 = vmatmul.mubr.bf16.gmra.mrb[24].mxu1 %v11720_v25  ;;  %v1066_v2 = vmul.f32 %v11369_v47, %v994_v38  ;;  %v1068_v0 = vmul.f32 %v11369_v47, %v996_v42  ;;  %v1139_v60 = vadd.f32 %v11373_v29, %v1067_v27  ;;  %1861 = vmatprep.subr.bf16.mxu1 %v8293_v46  ;;  %v15142_v47 = vld [vmem:[#allocation56_spill] sm:$0xff] }
 0x282   : > { %1476 = vmatprep.mubr.bf16.mxu0 %v1157_v49  ;;  %v1156_v8 = vpack.c.bf16 %v1108_v51, %v1106_v17  ;;  %2319 = vmatpush1.bf16.msra.mxu0 %v8288_v12  ;;  %v1141_v9 = vadd.f32 %v11373_v29, %v1069_v59  ;;  %v15141_v29 = vld [vmem:[#allocation43_spill] sm:$0xff] }
 0x283   : > { %v1138_v6 = vadd.f32 %v11379_v31, %v1066_v2  ;;  %v1140_v20 = vadd.f32 %v11379_v31, %v1068_v0  ;;  %v1208_v31 = vsub.s32 2, %v15142_v47 }
 0x284   : > { %1862 = vmatpush1.bf16.msra.mxu1 %v8291_v13  ;;  %v11741_v63 = vpack.c.bf16 %v1141_v9, %v1139_v60 }
 0x285   : > { %1477 = vmatmul.mubr.bf16.gmra.mrb[28].mxu0 %v1156_v8  ;;  %v11744_v10 = vpack.c.bf16 %v1140_v20, %v1138_v6 }
 0x286   : > { %2320 = vmatprep.mubr.bf16.mxu0 %v11395_v58  ;;  %1556 = vmatprep.mubr.bf16.mxu1 %v11741_v63 }
 0x289   : > { %1557 = vmatmul.mubr.bf16.gmra.mrb[28].mxu1 %v11744_v10 }
 0x28a   : > { %1863 = vmatprep.mubr.bf16.mxu1 %v11395_v58  ;;  %v15143_v58 = vld [vmem:[#allocation27_spill] sm:$0xff] }
 0x28d   : > { %2321 = vmatmul.mubr.bf16.vlgmr.msra.gmra.mrb[32].mxu0 %v11397_v14 }
 0x28e   : > { %2330 = vmatprep.mubr.bf16.mxu0 %v11428_v1 }
 0x291   : > { %1864 = vmatmul.mubr.bf16.vlgmr.msra.gmra.mrb[32].mxu1 %v11397_v14  ;;  %v11809_v14 = vrot.slane %v15143_v58, %v1208_v31 }
 0x292   : > { %1873 = vmatprep.mubr.bf16.mxu1 %v11428_v1  ;;  %v15144_v1 = vld [vmem:[#allocation28_spill] sm:$0xff] }
 0x295   : > { %2331 = vmatmul.mubr.bf16.gmra.mrb[36].mxu0 %v11438_v62 }
 0x296   : > { %2340 = vmatprep.mubr.bf16.mxu0 %v11473_v23 }
 0x299   : > { %1874 = vmatmul.mubr.bf16.gmra.mrb[36].mxu1 %v11438_v62  ;;  %v11812_v62 = vrot.slane %v15144_v1, %v1208_v31 }
 0x29a   : > { %1883 = vmatprep.mubr.bf16.mxu1 %v11473_v23 }
 0x29d   : > { %2341 = vmatmul.mubr.bf16.gmra.mrb[40].mxu0 %v11490_v45 }
 0x29e   : > { %2350 = vmatprep.mubr.bf16.mxu0 %v11534_v5 }
 0x2a1   : > { %1884 = vmatmul.mubr.bf16.gmra.mrb[40].mxu1 %v11490_v45 }
 0x2a2   : > { %1893 = vmatprep.mubr.bf16.mxu1 %v11534_v5 }
 0x2a5   : > { %2351 = vmatmul.mubr.bf16.gmra.mrb[44].mxu0 %v11546_v16 }
 0x2a6   : > { %2360 = vmatprep.mubr.bf16.mxu0 %v11587_v4 }
 0x2a9   : > { %1894 = vmatmul.mubr.bf16.gmra.mrb[44].mxu1 %v11546_v16 }
 0x2aa   : > { %1903 = vmatprep.mubr.bf16.mxu1 %v11587_v4 }
 0x2ad   : > { %2361 = vmatmul.mubr.bf16.gmra.mrb[48].mxu0 %v11606_v48 }
 0x2ae   : > { %2370 = vmatprep.mubr.bf16.mxu0 %v11649_v11 }
 0x2b1   : > { %1904 = vmatmul.mubr.bf16.gmra.mrb[48].mxu1 %v11606_v48 }
 0x2b2   : > { %1913 = vmatprep.mubr.bf16.mxu1 %v11649_v11 }
 0x2b5   : > { %2371 = vmatmul.mubr.bf16.gmra.mrb[52].mxu0 %v11654_v35 }
 0x2b6   : > { %2380 = vmatprep.mubr.bf16.mxu0 %v11692_v61 }
 0x2b9   : > { %1914 = vmatmul.mubr.bf16.gmra.mrb[52].mxu1 %v11654_v35 }
 0x2ba   : > { %1923 = vmatprep.mubr.bf16.mxu1 %v11692_v61 }
 0x2bd   : > { %2381 = vmatmul.mubr.bf16.gmra.mrb[56].mxu0 %v11698_v36 }
 0x2be   : > { %2390 = vmatprep.mubr.bf16.mxu0 %v1157_v49 }
 0x2c1   : > { %1924 = vmatmul.mubr.bf16.gmra.mrb[56].mxu1 %v11698_v36 }
 0x2c2   : > { %1933 = vmatprep.mubr.bf16.mxu1 %v1157_v49 }
 0x2c5   : > { %2391 = vmatmul.mubr.bf16.gmra.mrb[60].mxu0 %v1156_v8 }
 0x2c6   : > { %2400 = vmatprep.mubr.bf16.mxu0 %v11408_v18 }
 0x2c9   : > { %1934 = vmatmul.mubr.bf16.gmra.mrb[60].mxu1 %v1156_v8 }
 0x2ca   : > { %1943 = vmatprep.mubr.bf16.mxu1 %v11408_v18 }
 0x2cd   : > { %2401 = vmatmul.mubr.bf16.gmra.mrb[64].mxu0 %v15141_v29 }
 0x2ce   : > { %2410 = vmatprep.mubr.bf16.mxu0 %v11449_v53 }
 0x2d1   : > { %1944 = vmatmul.mubr.bf16.gmra.mrb[64].mxu1 %v15141_v29 }
 0x2d2   : > { %1953 = vmatprep.mubr.bf16.mxu1 %v11449_v53 }
 0x2d5   : > { %2411 = vmatmul.mubr.bf16.gmra.mrb[68].mxu0 %v11461_v7 }
 0x2d6   : > { %2420 = vmatprep.mubr.bf16.mxu0 %v11505_v33 }
 0x2d9   : > { %1954 = vmatmul.mubr.bf16.gmra.mrb[68].mxu1 %v11461_v7 }
 0x2da   : > { %1963 = vmatprep.mubr.bf16.mxu1 %v11505_v33 }
 0x2dd   : > { %2421 = vmatmul.mubr.bf16.gmra.mrb[72].mxu0 %v11518_v32 }
 0x2de   : > { %2430 = vmatprep.mubr.bf16.mxu0 %v11562_v24 }
 0x2e1   : > { %1964 = vmatmul.mubr.bf16.gmra.mrb[72].mxu1 %v11518_v32 }
 0x2e2   : > { %1973 = vmatprep.mubr.bf16.mxu1 %v11562_v24 }
 0x2e5   : > { %2431 = vmatmul.mubr.bf16.gmra.mrb[76].mxu0 %v11575_v3 }
 0x2e6   : > { %2440 = vmatprep.mubr.bf16.mxu0 %v11626_v56 }
 0x2e9   : > { %1974 = vmatmul.mubr.bf16.gmra.mrb[76].mxu1 %v11575_v3 }
 0x2ea   : > { %1983 = vmatprep.mubr.bf16.mxu1 %v11626_v56 }
 0x2ed   : > { %2441 = vmatmul.mubr.bf16.gmra.mrb[80].mxu0 %v11632_v39 }
 0x2ee   : > { %2450 = vmatprep.mubr.bf16.mxu0 %v11665_v52 }
 0x2f1   : > { %1984 = vmatmul.mubr.bf16.gmra.mrb[80].mxu1 %v11632_v39 }
 0x2f2   : > { %1993 = vmatprep.mubr.bf16.mxu1 %v11665_v52 }
 0x2f5   : > { %2451 = vmatmul.mubr.bf16.gmra.mrb[84].mxu0 %v11676_v40 }
 0x2f6   : > { %2460 = vmatprep.mubr.bf16.mxu0 %v11715_v34 }
 0x2f9   : > { %1994 = vmatmul.mubr.bf16.gmra.mrb[84].mxu1 %v11676_v40 }
 0x2fa   : > { %2003 = vmatprep.mubr.bf16.mxu1 %v11715_v34 }
 0x2fd   : > { %2461 = vmatmul.mubr.bf16.gmra.mrb[88].mxu0 %v11720_v25 }
 0x2fe   : > { %2470 = vmatprep.mubr.bf16.mxu0 %v11741_v63 }
 0x301   : > { %2004 = vmatmul.mubr.bf16.gmra.mrb[88].mxu1 %v11720_v25 }
 0x302   : > { %2013 = vmatprep.mubr.bf16.mxu1 %v11741_v63 }
 0x305   : > { %2471 = vmatmul.mubr.bf16.gmra.mrb[92].mxu0 %v11744_v10 }
 0x309   : > { %2014 = vmatmul.mubr.bf16.gmra.mrb[92].mxu1 %v11744_v10 }
 0x314   : > { %v1408_v18 = vpop.f32.mrb[0].mxu0 }
 0x315   : > { %v1410_v53 = vpop.f32.mrb[1].mxu0  ;;  %v1409_v23 = vadd.f32 %v1408_v18, %v11809_v14 }
 0x316   : > { %v1412_v7 = vpop.f32.mrb[2].mxu0  ;;  %v1411_v32 = vadd.f32 %v1410_v53, %v11812_v62 }
 0x317   : > { %v1413_v45 = vadd.f32 %v1412_v7, %v11809_v14  ;;  %v1414_v33 = vpop.f32.mrb[3].mxu0 }
 0x318   : > { %v1415_v5 = vadd.f32 %v1414_v33, %v11812_v62 }
 0x319   : > { %v1567_v16 = vpack.c.bf16 %v1413_v45, %v1409_v23  ;;  %v1488_v24 = vpop.f32.mrb[0].mxu1 }
 0x31a   : > { %v1568_v3 = vpack.c.bf16 %v1415_v5, %v1411_v32  ;;  %v1490_v4 = vpop.f32.mrb[1].mxu1  ;;  %v1489_v56 = vadd.f32 %v1488_v24, %v11809_v14 }
 0x31b   : > { %1599 = vst [vmem:[#allocation2] sm:$0xff] %v1567_v16  ;;  %v1492_v48 = vpop.f32.mrb[2].mxu1  ;;  %v1491_v35 = vadd.f32 %v1490_v4, %v11812_v62 }
 0x31c   : > { %1600 = vst [vmem:[#allocation2 + $0x8] sm:$0xff] %v1568_v3  ;;  %v1493_v39 = vadd.f32 %v1492_v48, %v11809_v14  ;;  %v1494_v11 = vpop.f32.mrb[3].mxu1 }
 0x31d   : > { %v1495_v52 = vadd.f32 %v1494_v11, %v11812_v62 }
 0x31e   : > { %v1583_v40 = vpack.c.bf16 %v1493_v39, %v1489_v56 }
 0x31f   : > { %v1584_v61 = vpack.c.bf16 %v1495_v52, %v1491_v35  ;;  %v1418_v36 = vpop.f32.mrb[4].mxu0 }
 0x320   : > { %1615 = vst [vmem:[#allocation2 + $0x80] sm:$0xff] %v1583_v40  ;;  %v1420_v57 = vpop.f32.mrb[5].mxu0  ;;  %v1419_v28 = vadd.f32 %v1418_v36, %v11809_v14 }
 0x321   : > { %1616 = vst [vmem:[#allocation2 + $0x88] sm:$0xff] %v1584_v61  ;;  %v1422_v30 = vpop.f32.mrb[6].mxu0  ;;  %v1421_v54 = vadd.f32 %v1420_v57, %v11812_v62 }
 0x322   : > { %v1423_v41 = vadd.f32 %v1422_v30, %v11809_v14  ;;  %v1424_v34 = vpop.f32.mrb[7].mxu0 }
 0x323   : > { %v1425_v43 = vadd.f32 %v1424_v34, %v11812_v62 }
 0x324   : > { %v1569_v26 = vpack.c.bf16 %v1423_v41, %v1419_v28  ;;  %v1498_v50 = vpop.f32.mrb[4].mxu1 }
 0x325   : > { %v1570_v25 = vpack.c.bf16 %v1425_v43, %v1421_v54  ;;  %v1500_v22 = vpop.f32.mrb[5].mxu1  ;;  %v1499_v15 = vadd.f32 %v1498_v50, %v11809_v14 }
 0x326   : > { %1601 = vst [vmem:[#allocation2 + $0x10] sm:$0xff] %v1569_v26  ;;  %v1502_v55 = vpop.f32.mrb[6].mxu1  ;;  %v1501_v44 = vadd.f32 %v1500_v22, %v11812_v62 }
 0x327   : > { %1602 = vst [vmem:[#allocation2 + $0x18] sm:$0xff] %v1570_v25  ;;  %v1503_v12 = vadd.f32 %v1502_v55, %v11809_v14  ;;  %v1504_v19 = vpop.f32.mrb[7].mxu1 }
 0x328   : > { %v1505_v27 = vadd.f32 %v1504_v19, %v11812_v62 }
 0x329   : > { %v1585_v37 = vpack.c.bf16 %v1503_v12, %v1499_v15 }
 0x32a   : > { %v1586_v38 = vpack.c.bf16 %v1505_v27, %v1501_v44  ;;  %v1428_v46 = vpop.f32.mrb[8].mxu0 }
 0x32b   : > { %1617 = vst [vmem:[#allocation2 + $0x90] sm:$0xff] %v1585_v37  ;;  %v1430_v49 = vpop.f32.mrb[9].mxu0  ;;  %v1429_v51 = vadd.f32 %v1428_v46, %v11809_v14 }
 0x32c   : > { %1618 = vst [vmem:[#allocation2 + $0x98] sm:$0xff] %v1586_v38  ;;  %v1432_v17 = vpop.f32.mrb[10].mxu0  ;;  %v1431_v13 = vadd.f32 %v1430_v49, %v11812_v62 }
 0x32d   : > { %v1433_v21 = vadd.f32 %v1432_v17, %v11809_v14  ;;  %v1434_v42 = vpop.f32.mrb[11].mxu0 }
 0x32e   : > { %v1435_v59 = vadd.f32 %v1434_v42, %v11812_v62 }
 0x32f   : > { %v1571_v2 = vpack.c.bf16 %v1433_v21, %v1429_v51  ;;  %v1508_v0 = vpop.f32.mrb[8].mxu1 }
 0x330   : > { %v1572_v8 = vpack.c.bf16 %v1435_v59, %v1431_v13  ;;  %v1510_v60 = vpop.f32.mrb[9].mxu1  ;;  %v1509_v6 = vadd.f32 %v1508_v0, %v11809_v14 }
 0x331   : > { %1603 = vst [vmem:[#allocation2 + $0x20] sm:$0xff] %v1571_v2  ;;  %v1512_v9 = vpop.f32.mrb[10].mxu1  ;;  %v1511_v10 = vadd.f32 %v1510_v60, %v11812_v62 }
 0x332   : > { %1604 = vst [vmem:[#allocation2 + $0x28] sm:$0xff] %v1572_v8  ;;  %v1513_v20 = vadd.f32 %v1512_v9, %v11809_v14  ;;  %v1514_v63 = vpop.f32.mrb[11].mxu1 }
 0x333   : > { %v1515_v29 = vadd.f32 %v1514_v63, %v11812_v62 }
 0x334   : > { %v1587_v31 = vpack.c.bf16 %v1513_v20, %v1509_v6 }
 0x335   : > { %v1438_v18 = vpop.f32.mrb[12].mxu0  ;;  %v1588_v53 = vpack.c.bf16 %v1515_v29, %v1511_v10 }
 0x336   : > { %v1440_v7 = vpop.f32.mrb[13].mxu0  ;;  %1619 = vst [vmem:[#allocation2 + $0xa0] sm:$0xff] %v1587_v31  ;;  %v1439_v45 = vadd.f32 %v1438_v18, %v11809_v14 }
 0x337   : > { %v1442_v23 = vpop.f32.mrb[14].mxu0  ;;  %1620 = vst [vmem:[#allocation2 + $0xa8] sm:$0xff] %v1588_v53  ;;  %v1441_v5 = vadd.f32 %v1440_v7, %v11812_v62 }
 0x338   : > { %v1443_v33 = vadd.f32 %v1442_v23, %v11809_v14  ;;  %v1444_v32 = vpop.f32.mrb[15].mxu0 }
 0x339   : > { %v1445_v16 = vadd.f32 %v1444_v32, %v11812_v62 }
 0x33a   : > { %v1573_v24 = vpack.c.bf16 %v1443_v33, %v1439_v45 }
 0x33b   : > { %v1574_v3 = vpack.c.bf16 %v1445_v16, %v1441_v5  ;;  %v1518_v4 = vpop.f32.mrb[12].mxu1 }
 0x33c   : > { %1605 = vst [vmem:[#allocation2 + $0x30] sm:$0xff] %v1573_v24  ;;  %v1520_v48 = vpop.f32.mrb[13].mxu1  ;;  %v1519_v39 = vadd.f32 %v1518_v4, %v11809_v14 }
 0x33d   : > { %1606 = vst [vmem:[#allocation2 + $0x38] sm:$0xff] %v1574_v3  ;;  %v1522_v56 = vpop.f32.mrb[14].mxu1  ;;  %v1521_v52 = vadd.f32 %v1520_v48, %v11812_v62 }
 0x33e   : > { %v1523_v11 = vadd.f32 %v1522_v56, %v11809_v14  ;;  %v1524_v35 = vpop.f32.mrb[15].mxu1 }
 0x33f   : > { %v1525_v40 = vadd.f32 %v1524_v35, %v11812_v62 }
 0x340   : > { %v1589_v61 = vpack.c.bf16 %v1523_v11, %v1519_v39  ;;  %v1448_v36 = vpop.f32.mrb[16].mxu0 }
 0x341   : > { %v1590_v57 = vpack.c.bf16 %v1525_v40, %v1521_v52  ;;  %v1450_v30 = vpop.f32.mrb[17].mxu0  ;;  %v1449_v41 = vadd.f32 %v1448_v36, %v11809_v14 }
 0x342   : > { %1621 = vst [vmem:[#allocation2 + $0xb0] sm:$0xff] %v1589_v61  ;;  %v1452_v28 = vpop.f32.mrb[18].mxu0  ;;  %v1451_v43 = vadd.f32 %v1450_v30, %v11812_v62 }
 0x343   : > { %1622 = vst [vmem:[#allocation2 + $0xb8] sm:$0xff] %v1590_v57  ;;  %v1453_v34 = vadd.f32 %v1452_v28, %v11809_v14  ;;  %v1454_v54 = vpop.f32.mrb[19].mxu0 }
 0x344   : > { %v1455_v26 = vadd.f32 %v1454_v54, %v11812_v62  ;;  %v1528_v50 = vpop.f32.mrb[16].mxu1 }
 0x345   : > { %v1575_v25 = vpack.c.bf16 %v1453_v34, %v1449_v41  ;;  %v1530_v22 = vpop.f32.mrb[17].mxu1  ;;  %v1529_v12 = vadd.f32 %v1528_v50, %v11809_v14 }
 0x346   : > { %v1576_v55 = vpack.c.bf16 %v1455_v26, %v1451_v43  ;;  %v1532_v15 = vpop.f32.mrb[18].mxu1  ;;  %v1531_v27 = vadd.f32 %v1530_v22, %v11812_v62  ;;  %v2122_v26 = vsub.s32 4, %v15142_v47 }
 0x347   : > { %1607 = vst [vmem:[#allocation2 + $0x40] sm:$0xff] %v1575_v25  ;;  %v1533_v19 = vadd.f32 %v1532_v15, %v11809_v14  ;;  %v1534_v44 = vpop.f32.mrb[19].mxu1 }
 0x348   : > { %1608 = vst [vmem:[#allocation2 + $0x48] sm:$0xff] %v1576_v55  ;;  %v1535_v37 = vadd.f32 %v1534_v44, %v11812_v62  ;;  %v1458_v38 = vpop.f32.mrb[20].mxu0 }
 0x349   : > { %v1591_v46 = vpack.c.bf16 %v1533_v19, %v1529_v12  ;;  %v1460_v49 = vpop.f32.mrb[21].mxu0  ;;  %v1459_v21 = vadd.f32 %v1458_v38, %v11809_v14  ;;  %v11878_v38 = vrot.slane %v15143_v58, %v2122_v26 }
 0x34a   : > { %v1592_v17 = vpack.c.bf16 %v1535_v37, %v1531_v27  ;;  %v1462_v51 = vpop.f32.mrb[22].mxu0  ;;  %v1461_v59 = vadd.f32 %v1460_v49, %v11812_v62 }
 0x34b   : > { %1623 = vst [vmem:[#allocation2 + $0xc0] sm:$0xff] %v1591_v46  ;;  %v1463_v42 = vadd.f32 %v1462_v51, %v11809_v14  ;;  %v1464_v13 = vpop.f32.mrb[23].mxu0  ;;  %v1665_v46 = vsub.s32 3, %v15142_v47 }
 0x34c   : > { %1624 = vst [vmem:[#allocation2 + $0xc8] sm:$0xff] %v1592_v17  ;;  %v1465_v2 = vadd.f32 %v1464_v13, %v11812_v62  ;;  %v1538_v8 = vpop.f32.mrb[20].mxu1 }
 0x34d   : > { %v1577_v0 = vpack.c.bf16 %v1463_v42, %v1459_v21  ;;  %v1540_v60 = vpop.f32.mrb[21].mxu1  ;;  %v1539_v20 = vadd.f32 %v1538_v8, %v11809_v14  ;;  %v11884_v21 = vrot.slane %v15144_v1, %v2122_v26  ;;  %v11889_v47 = vrot.slane %v15143_v58, %v1665_v46 }
 0x34e   : > { %v1578_v9 = vpack.c.bf16 %v1465_v2, %v1461_v59  ;;  %v1542_v6 = vpop.f32.mrb[22].mxu1  ;;  %v1541_v29 = vadd.f32 %v1540_v60, %v11812_v62 }
 0x34f   : > { %1609 = vst [vmem:[#allocation2 + $0x50] sm:$0xff] %v1577_v0  ;;  %v1543_v63 = vadd.f32 %v1542_v6, %v11809_v14  ;;  %v1544_v10 = vpop.f32.mrb[23].mxu1  ;;  %v11894_v6 = vrot.slane %v15144_v1, %v1665_v46 }
 0x350   : > { %1610 = vst [vmem:[#allocation2 + $0x58] sm:$0xff] %v1578_v9  ;;  %v1545_v31 = vadd.f32 %v1544_v10, %v11812_v62  ;;  %v1468_v18 = vpop.f32.mrb[24].mxu0 }
 0x351   : > { %v1593_v53 = vpack.c.bf16 %v1543_v63, %v1539_v20  ;;  %v1470_v7 = vpop.f32.mrb[25].mxu0  ;;  %v1469_v33 = vadd.f32 %v1468_v18, %v11809_v14 }
 0x352   : > { %v1594_v23 = vpack.c.bf16 %v1545_v31, %v1541_v29  ;;  %v1472_v45 = vpop.f32.mrb[26].mxu0  ;;  %v1471_v16 = vadd.f32 %v1470_v7, %v11812_v62 }
 0x353   : > { %1625 = vst [vmem:[#allocation2 + $0xd0] sm:$0xff] %v1593_v53  ;;  %v1473_v32 = vadd.f32 %v1472_v45, %v11809_v14  ;;  %v1474_v5 = vpop.f32.mrb[27].mxu0 }
 0x354   : > { %1626 = vst [vmem:[#allocation2 + $0xd8] sm:$0xff] %v1594_v23  ;;  %v1475_v24 = vadd.f32 %v1474_v5, %v11812_v62  ;;  %v1548_v3 = vpop.f32.mrb[24].mxu1 }
 0x355   : > { %v1579_v4 = vpack.c.bf16 %v1473_v32, %v1469_v33  ;;  %v1550_v48 = vpop.f32.mrb[25].mxu1  ;;  %v1549_v11 = vadd.f32 %v1548_v3, %v11809_v14 }
 0x356   : > { %v1580_v56 = vpack.c.bf16 %v1475_v24, %v1471_v16  ;;  %v1552_v39 = vpop.f32.mrb[26].mxu1  ;;  %v1551_v40 = vadd.f32 %v1550_v48, %v11812_v62 }
 0x357   : > { %1611 = vst [vmem:[#allocation2 + $0x60] sm:$0xff] %v1579_v4  ;;  %v1553_v35 = vadd.f32 %v1552_v39, %v11809_v14  ;;  %v1554_v52 = vpop.f32.mrb[27].mxu1 }
 0x358   : > { %1612 = vst [vmem:[#allocation2 + $0x68] sm:$0xff] %v1580_v56  ;;  %v1555_v61 = vadd.f32 %v1554_v52, %v11812_v62  ;;  %v1478_v36 = vpop.f32.mrb[28].mxu0 }
 0x359   : > { %v1595_v57 = vpack.c.bf16 %v1553_v35, %v1549_v11  ;;  %v1480_v30 = vpop.f32.mrb[29].mxu0  ;;  %v1479_v34 = vadd.f32 %v1478_v36, %v11809_v14 }
 0x35a   : > { %v1596_v28 = vpack.c.bf16 %v1555_v61, %v1551_v40  ;;  %v1482_v41 = vpop.f32.mrb[30].mxu0  ;;  %v1481_v50 = vadd.f32 %v1480_v30, %v11812_v62 }
 0x35b   : > { %1627 = vst [vmem:[#allocation2 + $0xe0] sm:$0xff] %v1595_v57  ;;  %v1483_v54 = vadd.f32 %v1482_v41, %v11809_v14  ;;  %v1484_v43 = vpop.f32.mrb[31].mxu0 }
 0x35c   : > { %1628 = vst [vmem:[#allocation2 + $0xe8] sm:$0xff] %v1596_v28  ;;  %v1485_v25 = vadd.f32 %v1484_v43, %v11812_v62  ;;  %v1558_v22 = vpop.f32.mrb[28].mxu1 }
 0x35d   : > { %v1581_v55 = vpack.c.bf16 %v1483_v54, %v1479_v34  ;;  %v1560_v15 = vpop.f32.mrb[29].mxu1  ;;  %v1559_v44 = vadd.f32 %v1558_v22, %v11809_v14 }
 0x35e   : > { %v1582_v12 = vpack.c.bf16 %v1485_v25, %v1481_v50  ;;  %v1562_v19 = vpop.f32.mrb[30].mxu1  ;;  %v1561_v49 = vadd.f32 %v1560_v15, %v11812_v62 }
 0x35f   : > { %1613 = vst [vmem:[#allocation2 + $0x70] sm:$0xff] %v1581_v55  ;;  %v1563_v27 = vadd.f32 %v1562_v19, %v11809_v14  ;;  %v1564_v37 = vpop.f32.mrb[31].mxu1 }
 0x360   : > { %1614 = vst [vmem:[#allocation2 + $0x78] sm:$0xff] %v1582_v12  ;;  %v1565_v17 = vadd.f32 %v1564_v37, %v11812_v62  ;;  %v2322_v51 = vpop.f32.mrb[32].mxu0 }
 0x361   : > { %v1597_v42 = vpack.c.bf16 %v1563_v27, %v1559_v44  ;;  %v2324_v13 = vpop.f32.mrb[33].mxu0  ;;  %v2323_v14 = vadd.f32 %v2322_v51, %v11878_v38 }
 0x362   : > { %v1598_v59 = vpack.c.bf16 %v1565_v17, %v1561_v49  ;;  %v2326_v2 = vpop.f32.mrb[34].mxu0  ;;  %v2325_v62 = vadd.f32 %v2324_v13, %v11884_v21 }
 0x363   : > { %1629 = vst [vmem:[#allocation2 + $0xf0] sm:$0xff] %v1597_v42  ;;  %v2327_v8 = vadd.f32 %v2326_v2, %v11878_v38  ;;  %v2328_v0 = vpop.f32.mrb[35].mxu0 }
 0x364   : > { %1630 = vst [vmem:[#allocation2 + $0xf8] sm:$0xff] %v1598_v59  ;;  %v2329_v60 = vadd.f32 %v2328_v0, %v11884_v21  ;;  %v1865_v9 = vpop.f32.mrb[32].mxu1 }
 0x365   : > { %v2481_v20 = vpack.c.bf16 %v2327_v8, %v2323_v14  ;;  %v1867_v63 = vpop.f32.mrb[33].mxu1  ;;  %v1866_v31 = vadd.f32 %v1865_v9, %v11889_v47 }
 0x366   : > { %v2482_v10 = vpack.c.bf16 %v2329_v60, %v2325_v62  ;;  %v1869_v29 = vpop.f32.mrb[34].mxu1  ;;  %v1868_v53 = vadd.f32 %v1867_v63, %v11894_v6 }
 0x367   : > { %2513 = vst [vmem:[#allocation4] sm:$0xff] %v2481_v20  ;;  %v1870_v18 = vadd.f32 %v1869_v29, %v11889_v47  ;;  %v1871_v58 = vpop.f32.mrb[35].mxu1 }
 0x368   : > { %2514 = vst [vmem:[#allocation4 + $0x8] sm:$0xff] %v2482_v10  ;;  %v1872_v7 = vadd.f32 %v1871_v58, %v11894_v6  ;;  %v2332_v23 = vpop.f32.mrb[36].mxu0 }
 0x369   : > { %v2024_v45 = vpack.c.bf16 %v1870_v18, %v1866_v31  ;;  %v2334_v33 = vpop.f32.mrb[37].mxu0  ;;  %v2333_v5 = vadd.f32 %v2332_v23, %v11878_v38 }
 0x36a   : > { %v2025_v1 = vpack.c.bf16 %v1872_v7, %v1868_v53  ;;  %v2336_v32 = vpop.f32.mrb[38].mxu0  ;;  %v2335_v3 = vadd.f32 %v2334_v33, %v11884_v21 }
 0x36b   : > { %2056 = vst [vmem:[#allocation3] sm:$0xff] %v2024_v45  ;;  %v2337_v16 = vadd.f32 %v2336_v32, %v11878_v38  ;;  %v2338_v24 = vpop.f32.mrb[39].mxu0 }
 0x36c   : > { %2057 = vst [vmem:[#allocation3 + $0x8] sm:$0xff] %v2025_v1  ;;  %v2339_v4 = vadd.f32 %v2338_v24, %v11884_v21  ;;  %v1875_v48 = vpop.f32.mrb[36].mxu1 }
 0x36d   : > { %v2483_v56 = vpack.c.bf16 %v2337_v16, %v2333_v5  ;;  %v1877_v39 = vpop.f32.mrb[37].mxu1  ;;  %v1876_v52 = vadd.f32 %v1875_v48, %v11889_v47 }
 0x36e   : > { %v2484_v11 = vpack.c.bf16 %v2339_v4, %v2335_v3  ;;  %v1879_v35 = vpop.f32.mrb[38].mxu1  ;;  %v1878_v36 = vadd.f32 %v1877_v39, %v11894_v6 }
 0x36f   : > { %2515 = vst [vmem:[#allocation4 + $0x10] sm:$0xff] %v2483_v56  ;;  %v1880_v40 = vadd.f32 %v1879_v35, %v11889_v47  ;;  %v1881_v61 = vpop.f32.mrb[39].mxu1 }
 0x370   : > { %2516 = vst [vmem:[#allocation4 + $0x18] sm:$0xff] %v2484_v11  ;;  %v1882_v57 = vadd.f32 %v1881_v61, %v11894_v6  ;;  %v2342_v30 = vpop.f32.mrb[40].mxu0 }
 0x371   : > { %v2026_v28 = vpack.c.bf16 %v1880_v40, %v1876_v52  ;;  %v2344_v41 = vpop.f32.mrb[41].mxu0  ;;  %v2343_v43 = vadd.f32 %v2342_v30, %v11878_v38 }
 0x372   : > { %v2027_v34 = vpack.c.bf16 %v1882_v57, %v1878_v36  ;;  %v2346_v54 = vpop.f32.mrb[42].mxu0  ;;  %v2345_v25 = vadd.f32 %v2344_v41, %v11884_v21 }
 0x373   : > { %2058 = vst [vmem:[#allocation3 + $0x10] sm:$0xff] %v2026_v28  ;;  %v2347_v26 = vadd.f32 %v2346_v54, %v11878_v38  ;;  %v2348_v50 = vpop.f32.mrb[43].mxu0 }
 0x374   : > { %2059 = vst [vmem:[#allocation3 + $0x18] sm:$0xff] %v2027_v34  ;;  %v2349_v22 = vadd.f32 %v2348_v50, %v11884_v21  ;;  %v1885_v55 = vpop.f32.mrb[40].mxu1 }
 0x375   : > { %v2485_v15 = vpack.c.bf16 %v2347_v26, %v2343_v43  ;;  %v1887_v12 = vpop.f32.mrb[41].mxu1  ;;  %v1886_v27 = vadd.f32 %v1885_v55, %v11889_v47 }
 0x376   : > { %v2486_v19 = vpack.c.bf16 %v2349_v22, %v2345_v25  ;;  %v1889_v44 = vpop.f32.mrb[42].mxu1  ;;  %v1888_v49 = vadd.f32 %v1887_v12, %v11894_v6 }
 0x377   : > { %2517 = vst [vmem:[#allocation4 + $0x20] sm:$0xff] %v2485_v15  ;;  %v1890_v37 = vadd.f32 %v1889_v44, %v11889_v47  ;;  %v1891_v46 = vpop.f32.mrb[43].mxu1 }
 0x378   : > { %2518 = vst [vmem:[#allocation4 + $0x28] sm:$0xff] %v2486_v19  ;;  %v1892_v17 = vadd.f32 %v1891_v46, %v11894_v6  ;;  %v2352_v51 = vpop.f32.mrb[44].mxu0 }
 0x379   : > { %v2028_v42 = vpack.c.bf16 %v1890_v37, %v1886_v27  ;;  %v2354_v13 = vpop.f32.mrb[45].mxu0  ;;  %v2353_v14 = vadd.f32 %v2352_v51, %v11878_v38 }
 0x37a   : > { %v2029_v59 = vpack.c.bf16 %v1892_v17, %v1888_v49  ;;  %v2356_v2 = vpop.f32.mrb[46].mxu0  ;;  %v2355_v62 = vadd.f32 %v2354_v13, %v11884_v21 }
 0x37b   : > { %2060 = vst [vmem:[#allocation3 + $0x20] sm:$0xff] %v2028_v42  ;;  %v2357_v8 = vadd.f32 %v2356_v2, %v11878_v38  ;;  %v2358_v0 = vpop.f32.mrb[47].mxu0 }
 0x37c   : > { %2061 = vst [vmem:[#allocation3 + $0x28] sm:$0xff] %v2029_v59  ;;  %v2359_v60 = vadd.f32 %v2358_v0, %v11884_v21  ;;  %v1895_v9 = vpop.f32.mrb[44].mxu1 }
 0x37d   : > { %v2487_v20 = vpack.c.bf16 %v2357_v8, %v2353_v14  ;;  %v1897_v63 = vpop.f32.mrb[45].mxu1  ;;  %v1896_v31 = vadd.f32 %v1895_v9, %v11889_v47 }
 0x37e   : > { %v2488_v10 = vpack.c.bf16 %v2359_v60, %v2355_v62  ;;  %v1899_v29 = vpop.f32.mrb[46].mxu1  ;;  %v1898_v53 = vadd.f32 %v1897_v63, %v11894_v6 }
 0x37f   : > { %2519 = vst [vmem:[#allocation4 + $0x30] sm:$0xff] %v2487_v20  ;;  %v1900_v18 = vadd.f32 %v1899_v29, %v11889_v47  ;;  %v1901_v58 = vpop.f32.mrb[47].mxu1 }
 0x380   : > { %2520 = vst [vmem:[#allocation4 + $0x38] sm:$0xff] %v2488_v10  ;;  %v1902_v7 = vadd.f32 %v1901_v58, %v11894_v6  ;;  %v2362_v23 = vpop.f32.mrb[48].mxu0 }
 0x381   : > { %v2030_v45 = vpack.c.bf16 %v1900_v18, %v1896_v31  ;;  %v2364_v33 = vpop.f32.mrb[49].mxu0  ;;  %v2363_v5 = vadd.f32 %v2362_v23, %v11878_v38 }
 0x382   : > { %v2031_v1 = vpack.c.bf16 %v1902_v7, %v1898_v53  ;;  %v2366_v32 = vpop.f32.mrb[50].mxu0  ;;  %v2365_v3 = vadd.f32 %v2364_v33, %v11884_v21 }
 0x383   : > { %2062 = vst [vmem:[#allocation3 + $0x30] sm:$0xff] %v2030_v45  ;;  %v2367_v16 = vadd.f32 %v2366_v32, %v11878_v38  ;;  %v2368_v24 = vpop.f32.mrb[51].mxu0 }
 0x384   : > { %2063 = vst [vmem:[#allocation3 + $0x38] sm:$0xff] %v2031_v1  ;;  %v2369_v4 = vadd.f32 %v2368_v24, %v11884_v21  ;;  %v1905_v48 = vpop.f32.mrb[48].mxu1 }
 0x385   : > { %v2489_v56 = vpack.c.bf16 %v2367_v16, %v2363_v5  ;;  %v1907_v39 = vpop.f32.mrb[49].mxu1  ;;  %v1906_v52 = vadd.f32 %v1905_v48, %v11889_v47 }
 0x386   : > { %v2490_v11 = vpack.c.bf16 %v2369_v4, %v2365_v3  ;;  %v1909_v35 = vpop.f32.mrb[50].mxu1  ;;  %v1908_v36 = vadd.f32 %v1907_v39, %v11894_v6 }
 0x387   : > { %2521 = vst [vmem:[#allocation4 + $0x40] sm:$0xff] %v2489_v56  ;;  %v1910_v40 = vadd.f32 %v1909_v35, %v11889_v47  ;;  %v1911_v61 = vpop.f32.mrb[51].mxu1 }
 0x388   : > { %2522 = vst [vmem:[#allocation4 + $0x48] sm:$0xff] %v2490_v11  ;;  %v1912_v57 = vadd.f32 %v1911_v61, %v11894_v6  ;;  %v2372_v30 = vpop.f32.mrb[52].mxu0 }
 0x389   : > { %v2032_v28 = vpack.c.bf16 %v1910_v40, %v1906_v52  ;;  %v2374_v41 = vpop.f32.mrb[53].mxu0  ;;  %v2373_v43 = vadd.f32 %v2372_v30, %v11878_v38 }
 0x38a   : > { %v2033_v34 = vpack.c.bf16 %v1912_v57, %v1908_v36  ;;  %v2376_v54 = vpop.f32.mrb[54].mxu0  ;;  %v2375_v25 = vadd.f32 %v2374_v41, %v11884_v21 }
 0x38b   : > { %2064 = vst [vmem:[#allocation3 + $0x40] sm:$0xff] %v2032_v28  ;;  %v2377_v26 = vadd.f32 %v2376_v54, %v11878_v38  ;;  %v2378_v50 = vpop.f32.mrb[55].mxu0 }
 0x38c   : > { %2065 = vst [vmem:[#allocation3 + $0x48] sm:$0xff] %v2033_v34  ;;  %v2379_v22 = vadd.f32 %v2378_v50, %v11884_v21  ;;  %v1915_v55 = vpop.f32.mrb[52].mxu1 }
 0x38d   : > { %v2491_v15 = vpack.c.bf16 %v2377_v26, %v2373_v43  ;;  %v1917_v12 = vpop.f32.mrb[53].mxu1  ;;  %v1916_v27 = vadd.f32 %v1915_v55, %v11889_v47 }
 0x38e   : > { %v2492_v19 = vpack.c.bf16 %v2379_v22, %v2375_v25  ;;  %v1919_v44 = vpop.f32.mrb[54].mxu1  ;;  %v1918_v49 = vadd.f32 %v1917_v12, %v11894_v6 }
 0x38f   : > { %2523 = vst [vmem:[#allocation4 + $0x50] sm:$0xff] %v2491_v15  ;;  %v1920_v37 = vadd.f32 %v1919_v44, %v11889_v47  ;;  %v1921_v46 = vpop.f32.mrb[55].mxu1 }
 0x390   : > { %2524 = vst [vmem:[#allocation4 + $0x58] sm:$0xff] %v2492_v19  ;;  %v1922_v17 = vadd.f32 %v1921_v46, %v11894_v6  ;;  %v2382_v51 = vpop.f32.mrb[56].mxu0 }
 0x391   : > { %v2034_v42 = vpack.c.bf16 %v1920_v37, %v1916_v27  ;;  %v2384_v13 = vpop.f32.mrb[57].mxu0  ;;  %v2383_v14 = vadd.f32 %v2382_v51, %v11878_v38 }
 0x392   : > { %v2035_v59 = vpack.c.bf16 %v1922_v17, %v1918_v49  ;;  %v2386_v2 = vpop.f32.mrb[58].mxu0  ;;  %v2385_v62 = vadd.f32 %v2384_v13, %v11884_v21 }
 0x393   : > { %2066 = vst [vmem:[#allocation3 + $0x50] sm:$0xff] %v2034_v42  ;;  %v2387_v8 = vadd.f32 %v2386_v2, %v11878_v38  ;;  %v2388_v0 = vpop.f32.mrb[59].mxu0 }
 0x394   : > { %2067 = vst [vmem:[#allocation3 + $0x58] sm:$0xff] %v2035_v59  ;;  %v2389_v60 = vadd.f32 %v2388_v0, %v11884_v21  ;;  %v1925_v9 = vpop.f32.mrb[56].mxu1 }
 0x395   : > { %v2493_v20 = vpack.c.bf16 %v2387_v8, %v2383_v14  ;;  %v1927_v63 = vpop.f32.mrb[57].mxu1  ;;  %v1926_v31 = vadd.f32 %v1925_v9, %v11889_v47 }
 0x396   : > { %v2494_v10 = vpack.c.bf16 %v2389_v60, %v2385_v62  ;;  %v1929_v29 = vpop.f32.mrb[58].mxu1  ;;  %v1928_v53 = vadd.f32 %v1927_v63, %v11894_v6 }
 0x397   : > { %2525 = vst [vmem:[#allocation4 + $0x60] sm:$0xff] %v2493_v20  ;;  %v1930_v18 = vadd.f32 %v1929_v29, %v11889_v47  ;;  %v1931_v58 = vpop.f32.mrb[59].mxu1 }
 0x398   : > { %2526 = vst [vmem:[#allocation4 + $0x68] sm:$0xff] %v2494_v10  ;;  %v1932_v7 = vadd.f32 %v1931_v58, %v11894_v6  ;;  %v2392_v23 = vpop.f32.mrb[60].mxu0 }
 0x399   : > { %v2036_v45 = vpack.c.bf16 %v1930_v18, %v1926_v31  ;;  %v2394_v33 = vpop.f32.mrb[61].mxu0  ;;  %v2393_v5 = vadd.f32 %v2392_v23, %v11878_v38 }
 0x39a   : > { %v2037_v1 = vpack.c.bf16 %v1932_v7, %v1928_v53  ;;  %v2396_v32 = vpop.f32.mrb[62].mxu0  ;;  %v2395_v3 = vadd.f32 %v2394_v33, %v11884_v21 }
 0x39b   : > { %2068 = vst [vmem:[#allocation3 + $0x60] sm:$0xff] %v2036_v45  ;;  %v2397_v16 = vadd.f32 %v2396_v32, %v11878_v38  ;;  %v2398_v24 = vpop.f32.mrb[63].mxu0 }
 0x39c   : > { %2069 = vst [vmem:[#allocation3 + $0x68] sm:$0xff] %v2037_v1  ;;  %v2399_v4 = vadd.f32 %v2398_v24, %v11884_v21  ;;  %v1935_v48 = vpop.f32.mrb[60].mxu1 }
 0x39d   : > { %v2495_v56 = vpack.c.bf16 %v2397_v16, %v2393_v5  ;;  %v1937_v39 = vpop.f32.mrb[61].mxu1  ;;  %v1936_v52 = vadd.f32 %v1935_v48, %v11889_v47 }
 0x39e   : > { %v2496_v11 = vpack.c.bf16 %v2399_v4, %v2395_v3  ;;  %v1939_v35 = vpop.f32.mrb[62].mxu1  ;;  %v1938_v36 = vadd.f32 %v1937_v39, %v11894_v6 }
 0x39f   : > { %2527 = vst [vmem:[#allocation4 + $0x70] sm:$0xff] %v2495_v56  ;;  %v1940_v40 = vadd.f32 %v1939_v35, %v11889_v47  ;;  %v1941_v61 = vpop.f32.mrb[63].mxu1 }
 0x3a0   : > { %2528 = vst [vmem:[#allocation4 + $0x78] sm:$0xff] %v2496_v11  ;;  %v1942_v57 = vadd.f32 %v1941_v61, %v11894_v6  ;;  %v2402_v30 = vpop.f32.mrb[64].mxu0 }
 0x3a1   : > { %v2038_v28 = vpack.c.bf16 %v1940_v40, %v1936_v52  ;;  %v2404_v41 = vpop.f32.mrb[65].mxu0  ;;  %v2403_v43 = vadd.f32 %v2402_v30, %v11878_v38 }
 0x3a2   : > { %v2039_v34 = vpack.c.bf16 %v1942_v57, %v1938_v36  ;;  %v2406_v54 = vpop.f32.mrb[66].mxu0  ;;  %v2405_v25 = vadd.f32 %v2404_v41, %v11884_v21 }
 0x3a3   : > { %2070 = vst [vmem:[#allocation3 + $0x70] sm:$0xff] %v2038_v28  ;;  %v2407_v26 = vadd.f32 %v2406_v54, %v11878_v38  ;;  %v2408_v50 = vpop.f32.mrb[67].mxu0 }
 0x3a4   : > { %2071 = vst [vmem:[#allocation3 + $0x78] sm:$0xff] %v2039_v34  ;;  %v2409_v22 = vadd.f32 %v2408_v50, %v11884_v21  ;;  %v1945_v55 = vpop.f32.mrb[64].mxu1 }
 0x3a5   : > { %v2497_v15 = vpack.c.bf16 %v2407_v26, %v2403_v43  ;;  %v1947_v12 = vpop.f32.mrb[65].mxu1  ;;  %v1946_v27 = vadd.f32 %v1945_v55, %v11889_v47 }
 0x3a6   : > { %v2498_v19 = vpack.c.bf16 %v2409_v22, %v2405_v25  ;;  %v1949_v44 = vpop.f32.mrb[66].mxu1  ;;  %v1948_v49 = vadd.f32 %v1947_v12, %v11894_v6 }
 0x3a7   : > { %2529 = vst [vmem:[#allocation4 + $0x80] sm:$0xff] %v2497_v15  ;;  %v1950_v37 = vadd.f32 %v1949_v44, %v11889_v47  ;;  %v1951_v46 = vpop.f32.mrb[67].mxu1 }
 0x3a8   : > { %2530 = vst [vmem:[#allocation4 + $0x88] sm:$0xff] %v2498_v19  ;;  %v1952_v17 = vadd.f32 %v1951_v46, %v11894_v6  ;;  %v2412_v51 = vpop.f32.mrb[68].mxu0 }
 0x3a9   : > { %v2040_v42 = vpack.c.bf16 %v1950_v37, %v1946_v27  ;;  %v2414_v13 = vpop.f32.mrb[69].mxu0  ;;  %v2413_v14 = vadd.f32 %v2412_v51, %v11878_v38 }
 0x3aa   : > { %v2041_v59 = vpack.c.bf16 %v1952_v17, %v1948_v49  ;;  %v2416_v2 = vpop.f32.mrb[70].mxu0  ;;  %v2415_v62 = vadd.f32 %v2414_v13, %v11884_v21 }
 0x3ab   : > { %2072 = vst [vmem:[#allocation3 + $0x80] sm:$0xff] %v2040_v42  ;;  %v2417_v8 = vadd.f32 %v2416_v2, %v11878_v38  ;;  %v2418_v0 = vpop.f32.mrb[71].mxu0 }
 0x3ac   : > { %2073 = vst [vmem:[#allocation3 + $0x88] sm:$0xff] %v2041_v59  ;;  %v2419_v60 = vadd.f32 %v2418_v0, %v11884_v21  ;;  %v1955_v9 = vpop.f32.mrb[68].mxu1 }
 0x3ad   : > { %v2499_v20 = vpack.c.bf16 %v2417_v8, %v2413_v14  ;;  %v1957_v63 = vpop.f32.mrb[69].mxu1  ;;  %v1956_v31 = vadd.f32 %v1955_v9, %v11889_v47 }
 0x3ae   : > { %v2500_v10 = vpack.c.bf16 %v2419_v60, %v2415_v62  ;;  %v1959_v29 = vpop.f32.mrb[70].mxu1  ;;  %v1958_v53 = vadd.f32 %v1957_v63, %v11894_v6 }
 0x3af   : > { %2531 = vst [vmem:[#allocation4 + $0x90] sm:$0xff] %v2499_v20  ;;  %v1960_v18 = vadd.f32 %v1959_v29, %v11889_v47  ;;  %v1961_v58 = vpop.f32.mrb[71].mxu1 }
 0x3b0   : > { %2532 = vst [vmem:[#allocation4 + $0x98] sm:$0xff] %v2500_v10  ;;  %v1962_v7 = vadd.f32 %v1961_v58, %v11894_v6  ;;  %v2422_v23 = vpop.f32.mrb[72].mxu0 }
 0x3b1   : > { %v2042_v45 = vpack.c.bf16 %v1960_v18, %v1956_v31  ;;  %v2424_v33 = vpop.f32.mrb[73].mxu0  ;;  %v2423_v5 = vadd.f32 %v2422_v23, %v11878_v38 }
 0x3b2   : > { %v2043_v1 = vpack.c.bf16 %v1962_v7, %v1958_v53  ;;  %v2426_v32 = vpop.f32.mrb[74].mxu0  ;;  %v2425_v3 = vadd.f32 %v2424_v33, %v11884_v21 }
 0x3b3   : > { %2074 = vst [vmem:[#allocation3 + $0x90] sm:$0xff] %v2042_v45  ;;  %v2427_v16 = vadd.f32 %v2426_v32, %v11878_v38  ;;  %v2428_v24 = vpop.f32.mrb[75].mxu0 }
 0x3b4   : > { %2075 = vst [vmem:[#allocation3 + $0x98] sm:$0xff] %v2043_v1  ;;  %v2429_v4 = vadd.f32 %v2428_v24, %v11884_v21  ;;  %v1965_v48 = vpop.f32.mrb[72].mxu1 }
 0x3b5   : > { %v2501_v56 = vpack.c.bf16 %v2427_v16, %v2423_v5  ;;  %v1967_v39 = vpop.f32.mrb[73].mxu1  ;;  %v1966_v52 = vadd.f32 %v1965_v48, %v11889_v47 }
 0x3b6   : > { %v2502_v11 = vpack.c.bf16 %v2429_v4, %v2425_v3  ;;  %v1969_v35 = vpop.f32.mrb[74].mxu1  ;;  %v1968_v36 = vadd.f32 %v1967_v39, %v11894_v6 }
 0x3b7   : > { %2533 = vst [vmem:[#allocation4 + $0xa0] sm:$0xff] %v2501_v56  ;;  %v1970_v40 = vadd.f32 %v1969_v35, %v11889_v47  ;;  %v1971_v61 = vpop.f32.mrb[75].mxu1 }
 0x3b8   : > { %2534 = vst [vmem:[#allocation4 + $0xa8] sm:$0xff] %v2502_v11  ;;  %v1972_v57 = vadd.f32 %v1971_v61, %v11894_v6  ;;  %v2432_v30 = vpop.f32.mrb[76].mxu0 }
 0x3b9   : > { %v2044_v28 = vpack.c.bf16 %v1970_v40, %v1966_v52  ;;  %v2434_v41 = vpop.f32.mrb[77].mxu0  ;;  %v2433_v43 = vadd.f32 %v2432_v30, %v11878_v38 }
 0x3ba   : > { %v2045_v34 = vpack.c.bf16 %v1972_v57, %v1968_v36  ;;  %v2436_v54 = vpop.f32.mrb[78].mxu0  ;;  %v2435_v25 = vadd.f32 %v2434_v41, %v11884_v21 }
 0x3bb   : > { %2076 = vst [vmem:[#allocation3 + $0xa0] sm:$0xff] %v2044_v28  ;;  %v2437_v26 = vadd.f32 %v2436_v54, %v11878_v38  ;;  %v2438_v50 = vpop.f32.mrb[79].mxu0 }
 0x3bc   : > { %2077 = vst [vmem:[#allocation3 + $0xa8] sm:$0xff] %v2045_v34  ;;  %v2439_v22 = vadd.f32 %v2438_v50, %v11884_v21  ;;  %v1975_v55 = vpop.f32.mrb[76].mxu1 }
 0x3bd   : > { %v2503_v15 = vpack.c.bf16 %v2437_v26, %v2433_v43  ;;  %v1977_v12 = vpop.f32.mrb[77].mxu1  ;;  %v1976_v27 = vadd.f32 %v1975_v55, %v11889_v47 }
 0x3be   : > { %v2504_v19 = vpack.c.bf16 %v2439_v22, %v2435_v25  ;;  %v1979_v44 = vpop.f32.mrb[78].mxu1  ;;  %v1978_v49 = vadd.f32 %v1977_v12, %v11894_v6 }
 0x3bf   : > { %2535 = vst [vmem:[#allocation4 + $0xb0] sm:$0xff] %v2503_v15  ;;  %v1980_v37 = vadd.f32 %v1979_v44, %v11889_v47  ;;  %v1981_v46 = vpop.f32.mrb[79].mxu1 }
 0x3c0   : > { %2536 = vst [vmem:[#allocation4 + $0xb8] sm:$0xff] %v2504_v19  ;;  %v1982_v17 = vadd.f32 %v1981_v46, %v11894_v6  ;;  %v2442_v51 = vpop.f32.mrb[80].mxu0 }
 0x3c1   : > { %v2046_v42 = vpack.c.bf16 %v1980_v37, %v1976_v27  ;;  %v2444_v13 = vpop.f32.mrb[81].mxu0  ;;  %v2443_v14 = vadd.f32 %v2442_v51, %v11878_v38 }
 0x3c2   : > { %v2047_v59 = vpack.c.bf16 %v1982_v17, %v1978_v49  ;;  %v2446_v2 = vpop.f32.mrb[82].mxu0  ;;  %v2445_v62 = vadd.f32 %v2444_v13, %v11884_v21 }
 0x3c3   : > { %2078 = vst [vmem:[#allocation3 + $0xb0] sm:$0xff] %v2046_v42  ;;  %v2447_v8 = vadd.f32 %v2446_v2, %v11878_v38  ;;  %v2448_v0 = vpop.f32.mrb[83].mxu0 }
 0x3c4   : > { %2079 = vst [vmem:[#allocation3 + $0xb8] sm:$0xff] %v2047_v59  ;;  %v2449_v60 = vadd.f32 %v2448_v0, %v11884_v21  ;;  %v1985_v9 = vpop.f32.mrb[80].mxu1 }
 0x3c5   : > { %v2505_v20 = vpack.c.bf16 %v2447_v8, %v2443_v14  ;;  %v1987_v63 = vpop.f32.mrb[81].mxu1  ;;  %v1986_v31 = vadd.f32 %v1985_v9, %v11889_v47 }
 0x3c6   : > { %v2506_v10 = vpack.c.bf16 %v2449_v60, %v2445_v62  ;;  %v1989_v29 = vpop.f32.mrb[82].mxu1  ;;  %v1988_v53 = vadd.f32 %v1987_v63, %v11894_v6 }
 0x3c7   : > { %2537 = vst [vmem:[#allocation4 + $0xc0] sm:$0xff] %v2505_v20  ;;  %v1990_v18 = vadd.f32 %v1989_v29, %v11889_v47  ;;  %v1991_v58 = vpop.f32.mrb[83].mxu1 }
 0x3c8   : > { %2538 = vst [vmem:[#allocation4 + $0xc8] sm:$0xff] %v2506_v10  ;;  %v1992_v7 = vadd.f32 %v1991_v58, %v11894_v6  ;;  %v2452_v23 = vpop.f32.mrb[84].mxu0 }
 0x3c9   : > { %v2048_v45 = vpack.c.bf16 %v1990_v18, %v1986_v31  ;;  %v2454_v33 = vpop.f32.mrb[85].mxu0  ;;  %v2453_v5 = vadd.f32 %v2452_v23, %v11878_v38 }
 0x3ca   : > { %v2049_v1 = vpack.c.bf16 %v1992_v7, %v1988_v53  ;;  %v2456_v32 = vpop.f32.mrb[86].mxu0  ;;  %v2455_v3 = vadd.f32 %v2454_v33, %v11884_v21 }
 0x3cb   : > { %2080 = vst [vmem:[#allocation3 + $0xc0] sm:$0xff] %v2048_v45  ;;  %v2457_v16 = vadd.f32 %v2456_v32, %v11878_v38  ;;  %v2458_v24 = vpop.f32.mrb[87].mxu0 }
 0x3cc   : > { %2081 = vst [vmem:[#allocation3 + $0xc8] sm:$0xff] %v2049_v1  ;;  %v2459_v4 = vadd.f32 %v2458_v24, %v11884_v21  ;;  %v1995_v48 = vpop.f32.mrb[84].mxu1 }
 0x3cd   : > { %v2507_v56 = vpack.c.bf16 %v2457_v16, %v2453_v5  ;;  %v1997_v39 = vpop.f32.mrb[85].mxu1  ;;  %v1996_v52 = vadd.f32 %v1995_v48, %v11889_v47 }
 0x3ce   : > { %v2508_v11 = vpack.c.bf16 %v2459_v4, %v2455_v3  ;;  %v1999_v35 = vpop.f32.mrb[86].mxu1  ;;  %v1998_v36 = vadd.f32 %v1997_v39, %v11894_v6 }
 0x3cf   : > { %2539 = vst [vmem:[#allocation4 + $0xd0] sm:$0xff] %v2507_v56  ;;  %v2000_v40 = vadd.f32 %v1999_v35, %v11889_v47  ;;  %v2001_v61 = vpop.f32.mrb[87].mxu1 }
 0x3d0   : > { %2540 = vst [vmem:[#allocation4 + $0xd8] sm:$0xff] %v2508_v11  ;;  %v2002_v57 = vadd.f32 %v2001_v61, %v11894_v6  ;;  %v2462_v30 = vpop.f32.mrb[88].mxu0 }
 0x3d1   : > { %v2050_v28 = vpack.c.bf16 %v2000_v40, %v1996_v52  ;;  %v2464_v41 = vpop.f32.mrb[89].mxu0  ;;  %v2463_v43 = vadd.f32 %v2462_v30, %v11878_v38 }
 0x3d2   : > { %v2051_v34 = vpack.c.bf16 %v2002_v57, %v1998_v36  ;;  %v2466_v54 = vpop.f32.mrb[90].mxu0  ;;  %v2465_v25 = vadd.f32 %v2464_v41, %v11884_v21 }
 0x3d3   : > { %2082 = vst [vmem:[#allocation3 + $0xd0] sm:$0xff] %v2050_v28  ;;  %v2467_v26 = vadd.f32 %v2466_v54, %v11878_v38  ;;  %v2468_v50 = vpop.f32.mrb[91].mxu0 }
 0x3d4   : > { %2083 = vst [vmem:[#allocation3 + $0xd8] sm:$0xff] %v2051_v34  ;;  %v2469_v22 = vadd.f32 %v2468_v50, %v11884_v21  ;;  %v2005_v55 = vpop.f32.mrb[88].mxu1 }
 0x3d5   : > { %v2509_v15 = vpack.c.bf16 %v2467_v26, %v2463_v43  ;;  %v2007_v12 = vpop.f32.mrb[89].mxu1  ;;  %v2006_v27 = vadd.f32 %v2005_v55, %v11889_v47 }
 0x3d6   : > { %v2510_v19 = vpack.c.bf16 %v2469_v22, %v2465_v25  ;;  %v2009_v44 = vpop.f32.mrb[90].mxu1  ;;  %v2008_v49 = vadd.f32 %v2007_v12, %v11894_v6 }
 0x3d7   : > { %2541 = vst [vmem:[#allocation4 + $0xe0] sm:$0xff] %v2509_v15  ;;  %v2010_v37 = vadd.f32 %v2009_v44, %v11889_v47  ;;  %v2011_v46 = vpop.f32.mrb[91].mxu1 }
 0x3d8   : > { %2542 = vst [vmem:[#allocation4 + $0xe8] sm:$0xff] %v2510_v19  ;;  %v2012_v17 = vadd.f32 %v2011_v46, %v11894_v6  ;;  %v2472_v51 = vpop.f32.mrb[92].mxu0 }
 0x3d9   : > { %v2052_v42 = vpack.c.bf16 %v2010_v37, %v2006_v27  ;;  %v2474_v13 = vpop.f32.mrb[93].mxu0  ;;  %v2473_v14 = vadd.f32 %v2472_v51, %v11878_v38 }
 0x3da   : > { %v2053_v59 = vpack.c.bf16 %v2012_v17, %v2008_v49  ;;  %v2476_v2 = vpop.f32.mrb[94].mxu0  ;;  %v2475_v62 = vadd.f32 %v2474_v13, %v11884_v21 }
 0x3db   : > { %2084 = vst [vmem:[#allocation3 + $0xe0] sm:$0xff] %v2052_v42  ;;  %v2477_v8 = vadd.f32 %v2476_v2, %v11878_v38  ;;  %v2478_v0 = vpop.f32.mrb[95].mxu0 }
 0x3dc   : > { %2085 = vst [vmem:[#allocation3 + $0xe8] sm:$0xff] %v2053_v59  ;;  %v2479_v60 = vadd.f32 %v2478_v0, %v11884_v21  ;;  %v2015_v9 = vpop.f32.mrb[92].mxu1 }
 0x3dd   : > { %v2511_v20 = vpack.c.bf16 %v2477_v8, %v2473_v14  ;;  %v2017_v63 = vpop.f32.mrb[93].mxu1  ;;  %v2016_v31 = vadd.f32 %v2015_v9, %v11889_v47 }
 0x3de   : > { %v2512_v10 = vpack.c.bf16 %v2479_v60, %v2475_v62  ;;  %v2019_v29 = vpop.f32.mrb[94].mxu1  ;;  %v2018_v38 = vadd.f32 %v2017_v63, %v11894_v6 }
 0x3df   : > { %2543 = vst [vmem:[#allocation4 + $0xf0] sm:$0xff] %v2511_v20  ;;  %v2020_v18 = vadd.f32 %v2019_v29, %v11889_v47  ;;  %v2021_v58 = vpop.f32.mrb[95].mxu1 }
 0x3e0   : > { %2544 = vst [vmem:[#allocation4 + $0xf8] sm:$0xff] %v2512_v10  ;;  %v2022_v53 = vadd.f32 %v2021_v58, %v11894_v6 }
 0x3e1   : > { %v2054_v7 = vpack.c.bf16 %v2020_v18, %v2016_v31 }
 0x3e2   : > { %v2055_v23 = vpack.c.bf16 %v2022_v53, %v2018_v38 }
 0x3e3   : > { %2086 = vst [vmem:[#allocation3 + $0xf0] sm:$0xff] %v2054_v7 }
 0x3e4   : > { %2087 = vst [vmem:[#allocation3 + $0xf8] sm:$0xff] %v2055_v23 }
 0x3e5 PF: > { %v2545_v21 = vlaneseq  ;;  %s15145_s1 = sld [smem:[#allocation23_spill]]  ;;  %s12024_s6 = scalar_lea.vmem [#allocation2], %s10763_s18  ;;  %v2562_v24 = vstv %s10763_s18  ;;  %v12104_v42 = vmov 0.0   ;;  %v12106_v13 = vmov 0.0  }
 0x3e6   : > { %v12027_v47 = vld [vmem:[%s12024_s6] sm:$0xff]  ;;  %v12030_v6 = vld [vmem:[%s12024_s6 + $0x10] sm:$0xff]  ;;  %v12108_v59 = vmov 0.0   ;;  %v12110_v2 = vmov 0.0   ;;  %v12112_v14 = vmov 0.0   ;;  %v12114_v8 = vmov 0.0  }
 0x3e7   : > { %15146 = vst [vmem:[#allocation57_spill] sm:$0xff] %v12027_v47  ;;  %15147 = vst [vmem:[#allocation58_spill] sm:$0xff] %v12030_v6  ;;  %v12033_v45 = vld [vmem:[%s12024_s6 + $0x20] sm:$0xff]  ;;  %v12035_v33 = vshrl.u32 %v2545_v21, 7  ;;  %v12037_v1 = vand.u32 127, %v2545_v21  ;;  %v12040_v32 = vld [vmem:[%s12024_s6 + $0x30] sm:$0xff] }
 0x3e8   : > { %15148 = vst [vmem:[#allocation59_spill] sm:$0xff] %v12033_v45  ;;  %15151 = vst [vmem:[#allocation62_spill] sm:$0xff] %v12040_v32  ;;  %v12043_v5 = vld [vmem:[%s12024_s6 + $0x40] sm:$0xff]  ;;  %v12046_v16 = vld [vmem:[%s12024_s6 + $0x50] sm:$0xff]  ;;  %v12116_v0 = vmov 0.0   ;;  %v12118_v62 = vmov 0.0  }
 0x3e9   : > { %15149 = vst [vmem:[#allocation60_spill] sm:$0xff] %v12035_v33  ;;  %15150 = vst [vmem:[#allocation61_spill] sm:$0xff] %v12037_v1  ;;  %v12050_v3 = vld [vmem:[%s12024_s6 + $0x60] sm:$0xff]  ;;  %v12053_v4 = vld [vmem:[%s12024_s6 + $0x70] sm:$0xff]  ;;  %v2547_v48 = vadd.s32 8, %v12035_v33  ;;  %v2548_v56 = vadd.s32 16, %v12035_v33  ;;  %v12071_v43 = vadd.s32 %v2562_v24, %v12035_v33 }
 0x3ea   : > { %15152 = vst [vmem:[#allocation63_spill] sm:$0xff] %v12043_v5  ;;  %15153 = vst [vmem:[#allocation64_spill] sm:$0xff] %v12046_v16  ;;  %v2549_v39 = vadd.s32 24, %v12035_v33  ;;  %v2550_v11 = vadd.s32 32, %v12035_v33  ;;  %v2551_v35 = vadd.s32 40, %v12035_v33  ;;  %v2552_v52 = vadd.s32 48, %v12035_v33 }
 0x3eb   : > { %s12021_s2 = sadd.s32 1, %s15145_s1  ;;  %15154 = vst [vmem:[#allocation65_spill] sm:$0xff] %v12050_v3  ;;  %15155 = vst [vmem:[#allocation66_spill] sm:$0xff] %v12053_v4  ;;  %v2553_v40 = vadd.s32 56, %v12035_v33  ;;  %v2554_v61 = vadd.s32 64, %v12035_v33  ;;  %v2555_v36 = vadd.s32 72, %v12035_v33  ;;  %v12073_v26 = vadd.s32 %v2562_v24, %v2547_v48 }
 0x3ec   : > { %v2556_v57 = vadd.s32 80, %v12035_v33  ;;  %v2557_v30 = vadd.s32 88, %v12035_v33  ;;  %v2558_v28 = vadd.s32 96, %v12035_v33  ;;  %v2559_v41 = vadd.s32 104, %v12035_v33  ;;  %15156 = vst [vmem:[#allocation67_spill] sm:$0xff] %v12071_v43  ;;  %p6252_p2 = scmp.le.s32.totalorder %s12021_s2, 0 }
 0x3ed   : > { %v2560_v34 = vadd.s32 112, %v12035_v33  ;;  %v2561_v54 = vadd.s32 120, %v12035_v33  ;;  %15157 = vst [vmem:[#allocation68_spill] sm:$0xff] %v12073_v26  ;;  %v12075_v50 = vadd.s32 %v2562_v24, %v2548_v56  ;;  %v12077_v25 = vadd.s32 %v2562_v24, %v2549_v39 }
 0x3ee   : > { %v12079_v22 = vadd.s32 %v2562_v24, %v2550_v11  ;;  %v12081_v55 = vadd.s32 %v2562_v24, %v2551_v35  ;;  %v12083_v15 = vadd.s32 %v2562_v24, %v2552_v52  ;;  %v12085_v12 = vadd.s32 %v2562_v24, %v2553_v40 }
 0x3ef   : > { %15158 = vst [vmem:[#allocation69_spill] sm:$0xff] %v12075_v50  ;;  %15159 = vst [vmem:[#allocation70_spill] sm:$0xff] %v12077_v25  ;;  %v12087_v19 = vadd.s32 %v2562_v24, %v2554_v61  ;;  %v12089_v44 = vadd.s32 %v2562_v24, %v2555_v36  ;;  %v12091_v27 = vadd.s32 %v2562_v24, %v2556_v57  ;;  %v12120_v60 = vmov 0.0  }
 0x3f0   : > { %15160 = vst [vmem:[#allocation71_spill] sm:$0xff] %v12079_v22  ;;  %15161 = vst [vmem:[#allocation72_spill] sm:$0xff] %v12081_v55  ;;  %v12093_v37 = vadd.s32 %v2562_v24, %v2557_v30  ;;  %v12095_v46 = vadd.s32 %v2562_v24, %v2558_v28  ;;  %v12097_v49 = vadd.s32 %v2562_v24, %v2559_v41  ;;  %v12122_v9 = vmov 0.0   ;;  %5804 = sbr.rel (%p6252_p2) target bundleno = 1722 (0x6ba), region = 135 }
 0x3f1   : > { %15162 = vst [vmem:[#allocation73_spill] sm:$0xff] %v12083_v15  ;;  %15163 = vst [vmem:[#allocation74_spill] sm:$0xff] %v12085_v12  ;;  %v12099_v17 = vadd.s32 %v2562_v24, %v2560_v34  ;;  %v12101_v51 = vadd.s32 %v2562_v24, %v2561_v54  ;;  %v12124_v20 = vmov 0.0   ;;  %v12126_v63 = vmov 0.0  }
 0x3f2   : > { %15164 = vst [vmem:[#allocation75_spill] sm:$0xff] %v12087_v19  ;;  %15165 = vst [vmem:[#allocation76_spill] sm:$0xff] %v12089_v44  ;;  %v12128_v10 = vmov 0.0   ;;  %v12130_v29 = vmov 0.0   ;;  %v12132_v31 = vmov 0.0   ;;  %v12134_v18 = vmov 0.0  }
 0x3f3   : > { %15166 = vst [vmem:[#allocation77_spill] sm:$0xff] %v12091_v27  ;;  %15167 = vst [vmem:[#allocation78_spill] sm:$0xff] %v12093_v37  ;;  %v12136_v58 = vmov 0.0   ;;  %v12138_v38 = vmov 0.0   ;;  %v12140_v53 = vmov 0.0   ;;  %v12142_v7 = vmov 0.0  }
 0x3f4   : > { %15168 = vst [vmem:[#allocation79_spill] sm:$0xff] %v12095_v46  ;;  %15169 = vst [vmem:[#allocation80_spill] sm:$0xff] %v12097_v49  ;;  %v12144_v23 = vmov 0.0   ;;  %v12146_v21 = vmov 0.0   ;;  %v12148_v24 = vmov 0.0   ;;  %v12150_v48 = vmov 0.0  }
 0x3f5   : > { %15170 = vst [vmem:[#allocation81_spill] sm:$0xff] %v12099_v17  ;;  %15171 = vst [vmem:[#allocation82_spill] sm:$0xff] %v12101_v51  ;;  %v12152_v56 = vmov 0.0   ;;  %v12154_v39 = vmov 0.0   ;;  %v12156_v11 = vmov 0.0   ;;  %v12158_v35 = vmov 0.0  }
 0x3f6   : > { %v12160_v52 = vmov 0.0   ;;  %v12162_v40 = vmov 0.0   ;;  %v12164_v61 = vmov 0.0   ;;  %v12166_v36 = vmov 0.0  }
 0x3f7   : > { %v12170_v57 = vmov 0.0   ;;  %v12172_v30 = vmov 0.0   ;;  %v12174_v28 = vmov 0.0   ;;  %v12176_v41 = vmov 0.0   ;;  %s12266_s26 = smov 0  }
 0x3f8   : > { %15172 = vst [vmem:[#allocation83_spill] sm:$0xff] %v12172_v30  ;;  %v12178_v34 = vmov 0.0   ;;  %v12180_v54 = vmov 0.0   ;;  %v12182_v33 = vmov 0.0   ;;  %v12184_v51 = vmov 0.0  }
 0x3f9   : > { %15173 = vst [vmem:[#allocation84_spill] sm:$0xff] %v12184_v51  ;;  %v12186_v17 = vmov 0.0   ;;  %v12188_v49 = vmov 0.0   ;;  %v12190_v42 = vmov 0.0   ;;  %v12192_v13 = vmov 0.0  }
 0x3fa   : > { %15174 = vst [vmem:[#allocation85_spill] sm:$0xff] %v12190_v42  ;;  %v12194_v59 = vmov 0.0   ;;  %v12196_v2 = vmov 0.0   ;;  %v12198_v14 = vmov 0.0   ;;  %v12200_v8 = vmov 0.0  }
 0x3fb   : > { %v12202_v0 = vmov 0.0   ;;  %v12204_v62 = vmov 0.0   ;;  %v12206_v60 = vmov 0.0   ;;  %v12208_v9 = vmov 0.0  }
 0x3fc   : > { %v12210_v20 = vmov 0.0   ;;  %v12212_v63 = vmov 0.0   ;;  %v12214_v10 = vmov 0.0   ;;  %v12216_v29 = vmov 0.0  }
 0x3fd   : > { %v12218_v31 = vmov 0.0   ;;  %v12220_v18 = vmov 0.0   ;;  %v12222_v58 = vmov 0.0   ;;  %v12224_v38 = vmov 0.0  }
 0x3fe   : > { %v12226_v53 = vmov 0.0   ;;  %v12228_v7 = vmov 0.0   ;;  %v12230_v23 = vmov 0.0   ;;  %v12232_v21 = vmov 0.0  }
 0x3ff   : > { %v12234_v24 = vmov -1e+30   ;;  %v12236_v48 = vmov -1e+30   ;;  %v12238_v56 = vmov -1e+30  }
 0x400   : > { %v12240_v39 = vmov -1e+30   ;;  %v12242_v11 = vmov -1e+30   ;;  %v12244_v35 = vmov -1e+30  }
 0x401   : > { %v12246_v52 = vmov -1e+30   ;;  %v12248_v40 = vmov -1e+30   ;;  %v12250_v61 = vmov -1e+30  }
 0x402   : > { %v12252_v36 = vmov -1e+30   ;;  %v12254_v46 = vmov -1e+30   ;;  %v12256_v37 = vmov -1e+30  }
 0x403   : > { %v12258_v27 = vmov -1e+30   ;;  %v12260_v44 = vmov -1e+30   ;;  %v12262_v19 = vmov -1e+30  }
 0x404   : > { %v12264_v12 = vmov -1e+30  }
 0x405 LB: >> { %15178 = vst [vmem:[#allocation86_spill] sm:$0xff] %v9730_v57  ;;  %v15179_v30 = vld [vmem:[#allocation83_spill] sm:$0xff]  ;;  %15181 = vst [vmem:[#allocation87_spill] sm:$0xff] %v9738_v28  ;;  %v15186_v51 = vld [vmem:[#allocation84_spill] sm:$0xff]  ;;  %s12417_s23 = sshll.u32 %s9922_s26, 7  ;;  %s2598_s17 = sadd.s32 1, %s9922_s26   ;;  %s9922_s26 = sphi %s12266_s26, %s15365_s26   ;;  %v9918_v12 = vphi %v12264_v12, %v15364_v12   ;;  %v9914_v19 = vphi %v12262_v19, %v15363_v19   ;;  %v9910_v44 = vphi %v12260_v44, %v15362_v44   ;;  %v9906_v27 = vphi %v12258_v27, %v15361_v27   ;;  %v9902_v37 = vphi %v12256_v37, %v15360_v37   ;;  %v9898_v46 = vphi %v12254_v46, %v15359_v46   ;;  %v9894_v36 = vphi %v12252_v36, %v15358_v36   ;;  %v9890_v61 = vphi %v12250_v61, %v15357_v61   ;;  %v9886_v40 = vphi %v12248_v40, %v15356_v40   ;;  %v9882_v52 = vphi %v12246_v52, %v15355_v52   ;;  %v9878_v35 = vphi %v12244_v35, %v15354_v35   ;;  %v9874_v11 = vphi %v12242_v11, %v15353_v11   ;;  %v9870_v39 = vphi %v12240_v39, %v15352_v39   ;;  %v9866_v56 = vphi %v12238_v56, %v15351_v56   ;;  %v9862_v48 = vphi %v12236_v48, %v15350_v48   ;;  %v9858_v24 = vphi %v12234_v24, %v15349_v24   ;;  %v9854_v21 = vphi %v12232_v21, %v15348_v21   ;;  %v9850_v23 = vphi %v12230_v23, %v15347_v23   ;;  %v9846_v7 = vphi %v12228_v7, %v15346_v7   ;;  %v9842_v53 = vphi %v12226_v53, %v15345_v53   ;;  %v9838_v38 = vphi %v12224_v38, %v15344_v38   ;;  %v9834_v58 = vphi %v12222_v58, %v15343_v58   ;;  %v9830_v18 = vphi %v12220_v18, %v15342_v18   ;;  %v9826_v31 = vphi %v12218_v31, %v15341_v31   ;;  %v9822_v29 = vphi %v12216_v29, %v15340_v29   ;;  %v9818_v10 = vphi %v12214_v10, %v15339_v10   ;;  %v9814_v63 = vphi %v12212_v63, %v15338_v63   ;;  %v9810_v20 = vphi %v12210_v20, %v15337_v20   ;;  %v9806_v9 = vphi %v12208_v9, %v15336_v9   ;;  %v9802_v60 = vphi %v12206_v60, %v15335_v60   ;;  %v9798_v62 = vphi %v12204_v62, %v15334_v62   ;;  %v9794_v0 = vphi %v12202_v0, %v15333_v0   ;;  %v9790_v8 = vphi %v12200_v8, %v15332_v8   ;;  %v9786_v14 = vphi %v12198_v14, %v15331_v14   ;;  %v9782_v2 = vphi %v12196_v2, %v15330_v2   ;;  %v9778_v59 = vphi %v12194_v59, %v15329_v59   ;;  %v9774_v13 = vphi %v12192_v13, %v15328_v13   ;;  %v9766_v49 = vphi %v12188_v49, %v15326_v49   ;;  %v9762_v17 = vphi %v12186_v17, %v15325_v17   ;;  %v9754_v33 = vphi %v12182_v33, %v15323_v33   ;;  %v9750_v54 = vphi %v12180_v54, %v15322_v54   ;;  %v9746_v34 = vphi %v12178_v34, %v15321_v34   ;;  %v9742_v41 = vphi %v12176_v41, %v15320_v41   ;;  %v9738_v28 = vphi %v12174_v28, %v15319_v28   ;;  %v9730_v57 = vphi %v12170_v57, %v15317_v57  }
 0x406   : >> { %15180 = vst [vmem:[#allocation83_spill] sm:$0xff] %v15179_v30  ;;  %15182 = vst [vmem:[#allocation88_spill] sm:$0xff] %v9742_v41  ;;  %v15190_v42 = vld [vmem:[#allocation85_spill] sm:$0xff]  ;;  %v15195_v47 = vld [vmem:[#allocation57_spill] sm:$0xff]  ;;  %s2654_s4 = scalar_lea.vmem [#allocation3], %s12417_s23  ;;  %s12428_s20 = scalar_lea.vmem [#allocation4], %s12417_s23 }
 0x407   : >> { %15183 = vst [vmem:[#allocation89_spill] sm:$0xff] %v9746_v34  ;;  %15184 = vst [vmem:[#allocation90_spill] sm:$0xff] %v9750_v54  ;;  %6487 = vmatprep.mubr.bf16.mxu0 %v15195_v47  ;;  %v2655_v28 = vld [vmem:[%s2654_s4] sm:$0xff]  ;;  %v2656_v57 = vld [vmem:[%s2654_s4 + $0x10] sm:$0xff]  ;;  %p12814_p6 = scmp.ge.s32.totalorder %s2598_s17, %s12021_s2  ;;  %s15365_s26 = smov %s2598_s17 }
 0x408   : >> { %15185 = vst [vmem:[#allocation91_spill] sm:$0xff] %v9754_v33  ;;  %15187 = vst [vmem:[#allocation84_spill] sm:$0xff] %v15186_v51  ;;  %6471 = vmatprep.subr.bf16.mxu0 %v2655_v28  ;;  %v2657_v41 = vld [vmem:[%s2654_s4 + $0x20] sm:$0xff]  ;;  %v2658_v30 = vld [vmem:[%s2654_s4 + $0x30] sm:$0xff] }
 0x409   : >> { %15188 = vst [vmem:[#allocation92_spill] sm:$0xff] %v9762_v17  ;;  %15189 = vst [vmem:[#allocation93_spill] sm:$0xff] %v9766_v49  ;;  %6472 = vmatpush3.bf16.xpose.msra.mxu0 %v2655_v28  ;;  %v2659_v33 = vld [vmem:[%s2654_s4 + $0x40] sm:$0xff]  ;;  %v2660_v34 = vld [vmem:[%s2654_s4 + $0x50] sm:$0xff] }
 0x40a   : >> { %15191 = vst [vmem:[#allocation85_spill] sm:$0xff] %v15190_v42  ;;  %15192 = vst [vmem:[#allocation94_spill] sm:$0xff] %v9774_v13  ;;  %6473 = vmatprep.subr.bf16.mxu0 %v2656_v57  ;;  %v2661_v47 = vld [vmem:[%s2654_s4 + $0x60] sm:$0xff]  ;;  %v2662_v51 = vld [vmem:[%s2654_s4 + $0x70] sm:$0xff] }
 0x40b   : >> { %15193 = vst [vmem:[#allocation95_spill] sm:$0xff] %v9778_v59  ;;  %15194 = vst [vmem:[#allocation96_spill] sm:$0xff] %v9786_v14  ;;  %v15196_v6 = vld [vmem:[#allocation58_spill] sm:$0xff]  ;;  %v15197_v45 = vld [vmem:[#allocation59_spill] sm:$0xff] }
 0x40c   : >> { %v15198_v32 = vld [vmem:[#allocation62_spill] sm:$0xff]  ;;  %v15199_v5 = vld [vmem:[#allocation63_spill] sm:$0xff]  ;;  %v15200_v16 = vld [vmem:[#allocation64_spill] sm:$0xff] }
 0x40d   : >> { %v15201_v3 = vld [vmem:[#allocation65_spill] sm:$0xff]  ;;  %v15202_v4 = vld [vmem:[#allocation66_spill] sm:$0xff]  ;;  %v15205_v43 = vld [vmem:[#allocation67_spill] sm:$0xff] }
 0x40e   : >> { %v15203_v1 = vld [vmem:[#allocation61_spill] sm:$0xff]  ;;  %v15206_v25 = vld [vmem:[#allocation70_spill] sm:$0xff]  ;;  %v15207_v26 = vld [vmem:[#allocation68_spill] sm:$0xff] }
 0x40f   : >> { %v15204_v50 = vld [vmem:[#allocation69_spill] sm:$0xff]  ;;  %v15208_v22 = vld [vmem:[#allocation71_spill] sm:$0xff]  ;;  %v15209_v55 = vld [vmem:[#allocation72_spill] sm:$0xff] }
 0x410   : >> { %v15210_v15 = vld [vmem:[#allocation73_spill] sm:$0xff] }
 0x411   : >> { %6474 = vmatpush3.bf16.xpose.msra.mxu0 %v2656_v57 }
 0x412   : >> { %6475 = vmatprep.subr.bf16.mxu0 %v2657_v41 }
 0x419   : >> { %6476 = vmatpush3.bf16.xpose.msra.mxu0 %v2657_v41 }
 0x41a   : >> { %6477 = vmatprep.subr.bf16.mxu0 %v2658_v30 }
 0x421   : >> { %6478 = vmatpush3.bf16.xpose.msra.mxu0 %v2658_v30 }
 0x422   : >> { %6479 = vmatprep.subr.bf16.mxu0 %v2659_v33 }
 0x429   : >> { %6480 = vmatpush3.bf16.xpose.msra.mxu0 %v2659_v33  ;;  %v2666_v33 = vld [vmem:[%s12428_s20 + $0x10] sm:$0xff] }
 0x42a   : >> { %6481 = vmatprep.subr.bf16.mxu0 %v2660_v34 }
 0x431   : >> { %6482 = vmatpush3.bf16.xpose.msra.mxu0 %v2660_v34 }
 0x432   : >> { %6483 = vmatprep.subr.bf16.mxu0 %v2661_v47 }
 0x439   : >> { %6484 = vmatpush3.bf16.xpose.msra.mxu0 %v2661_v47  ;;  %v2665_v47 = vld [vmem:[%s12428_s20] sm:$0xff] }
 0x43a   : >> { %6485 = vmatprep.subr.bf16.mxu0 %v2662_v51  ;;  %6503 = vmatprep.subr.bf16.mxu1 %v2665_v47 }
 0x43b   : >> { %6504 = vmatpush3.bf16.msra.mxu1 %v2665_v47 }
 0x43c   : >> { %6505 = vmatprep.subr.bf16.mxu1 %v2666_v33 }
 0x43f   : >> { %6506 = vmatpush3.bf16.msra.mxu1 %v2666_v33 }
 0x441   : >> { %6486 = vmatpush3.bf16.xpose.msra.mxu0 %v2662_v51  ;;  %v2770_v51 = vstv %s12417_s23 }
 0x442   : >> { %v12434_v57 = vadd.s32 %v2770_v51, %v15203_v1  ;;  %v15218_v1 = vld [vmem:[#allocation81_spill] sm:$0xff] }
 0x444   : >> { %vm2774_vm0 = vcmp.le.s32.totalorder %v12434_v57, %v15204_v50  ;;  %vm2772_vm1 = vcmp.le.s32.totalorder %v12434_v57, %v15205_v43  ;;  %vm2775_vm2 = vcmp.le.s32.totalorder %v12434_v57, %v15206_v25  ;;  %vm2773_vm3 = vcmp.le.s32.totalorder %v12434_v57, %v15207_v26  ;;  %v15214_v26 = vld [vmem:[#allocation77_spill] sm:$0xff]  ;;  %v15216_v25 = vld [vmem:[#allocation79_spill] sm:$0xff]  ;;  %v2669_v50 = vld [vmem:[%s12428_s20 + $0x40] sm:$0xff] }
 0x445   : >> { %vm2776_vm4 = vcmp.le.s32.totalorder %v12434_v57, %v15208_v22  ;;  %vm2777_vm5 = vcmp.le.s32.totalorder %v12434_v57, %v15209_v55  ;;  %vm2778_vm6 = vcmp.le.s32.totalorder %v12434_v57, %v15210_v15  ;;  %v15213_v15 = vld [vmem:[#allocation76_spill] sm:$0xff]  ;;  %vm2782_vm10 = vcmp.le.s32.totalorder %v12434_v57, %v15214_v26 }
 0x446   : >> { %vm2781_vm9 = vcmp.le.s32.totalorder %v12434_v57, %v15213_v15  ;;  %vm2784_vm12 = vcmp.le.s32.totalorder %v12434_v57, %v15216_v25  ;;  %vm2786_vm14 = vcmp.le.s32.totalorder %v12434_v57, %v15218_v1  ;;  %v2671_v1 = vld [vmem:[%s12428_s20 + $0x60] sm:$0xff] }
 0x448   : >> { %6488 = vmatmul.mubr.bf16.vlgmr.msra.gmra.mrb[0].mxu0 %v15196_v6  ;;  %v15211_v6 = vld [vmem:[#allocation74_spill] sm:$0xff] }
 0x449   : >> { %6491 = vmatprep.mubr.bf16.mxu0 %v15197_v45  ;;  %vm2779_vm7 = vcmp.le.s32.totalorder %v12434_v57, %v15211_v6  ;;  %v2667_v6 = vld [vmem:[%s12428_s20 + $0x20] sm:$0xff] }
 0x44a   : >> { %6507 = vmatprep.subr.bf16.mxu1 %v2667_v6 }
 0x44b   : >> { %6508 = vmatpush3.bf16.msra.mxu1 %v2667_v6 }
 0x450   : >> { %6492 = vmatmul.mubr.bf16.gmra.mrb[4].mxu0 %v15198_v32 }
 0x451   : >> { %6495 = vmatprep.mubr.bf16.mxu0 %v15199_v5 }
 0x458   : >> { %6496 = vmatmul.mubr.bf16.gmra.mrb[8].mxu0 %v15200_v16 }
 0x459   : >> { %6499 = vmatprep.mubr.bf16.mxu0 %v15201_v3 }
 0x460   : >> { %6500 = vmatmul.mubr.bf16.gmra.mrb[12].mxu0 %v15202_v4 }
 0x51b   : >> { %v6489_v30 = vpop.f32.mrb[0].mxu0 }
 0x51c   : >> { %v2707_v28 = vpop.f32.mrb[1].mxu0  ;;  %v12440_v41 = vsel %vm2774_vm0, %v6489_v30, -1e+30 }
 0x51d   : >> { %2808 = vmax.xlane.f32.xlu1 %v12440_v41  ;;  %v6490_v34 = vpop.f32.mrb[2].mxu0  ;;  %v12443_v47 = vsel %vm2772_vm1, %v2707_v28, -1e+30 }
 0x51e   : >> { %2804 = vmax.xlane.f32.xlu0 %v12443_v47  ;;  %v2710_v33 = vpop.f32.mrb[3].mxu0  ;;  %v12450_v51 = vsel %vm2775_vm2, %v6490_v34, -1e+30 }
 0x51f   : >> { %v12453_v30 = vsel %vm2773_vm3, %v2710_v33, -1e+30 }
 0x521   : >> { %2810 = vmax.xlane.f32.xlu1 %v12450_v51 }
 0x522   : >> { %2806 = vmax.xlane.f32.xlu0 %v12453_v30 }
 0x523   : >> { %v6493_v28 = vpop.f32.mrb[4].mxu0 }
 0x524   : >> { %v2723_v3 = vpop.f32.mrb[5].mxu0  ;;  %v12470_v16 = vsel %vm2778_vm6, %v6493_v28, -1e+30 }
 0x525   : >> { %v6494_v4 = vpop.f32.mrb[6].mxu0  ;;  %v12460_v5 = vsel %vm2776_vm4, %v2723_v3, -1e+30  ;;  %v15212_v3 = vld [vmem:[#allocation75_spill] sm:$0xff] }
 0x526   : >> { %2812 = vmax.xlane.f32.xlu0 %v12460_v5  ;;  %v2726_v34 = vpop.f32.mrb[7].mxu0  ;;  %vm2780_vm8 = vcmp.le.s32.totalorder %v12434_v57, %v15212_v3  ;;  %v12475_v45 = vsel %vm2779_vm7, %v6494_v4, -1e+30  ;;  %v15215_v3 = vld [vmem:[#allocation78_spill] sm:$0xff] }
 0x527   : >> { %v12465_v33 = vsel %vm2777_vm5, %v2726_v34, -1e+30  ;;  %vm2783_vm11 = vcmp.le.s32.totalorder %v12434_v57, %v15215_v3 }
 0x528   : >> { %2814 = vmax.xlane.f32.xlu1 %v12465_v33 }
 0x52a   : >> { %2816 = vmax.xlane.f32.xlu0 %v12470_v16 }
 0x52b   : >> { %v6497_v32 = vpop.f32.mrb[8].mxu0 }
 0x52c   : >> { %2818 = vmax.xlane.f32.xlu1 %v12475_v45  ;;  %v2739_v34 = vpop.f32.mrb[9].mxu0  ;;  %v12491_v15 = vsel %vm2782_vm10, %v6497_v32, -1e+30 }
 0x52d   : >> { %v6498_v55 = vpop.f32.mrb[10].mxu0  ;;  %v12480_v22 = vsel %vm2780_vm8, %v2739_v34, -1e+30  ;;  %v2668_v34 = vld [vmem:[%s12428_s20 + $0x30] sm:$0xff] }
 0x52e   : >> { %2820 = vmax.xlane.f32.xlu0 %v12480_v22  ;;  %v2742_v28 = vpop.f32.mrb[11].mxu0  ;;  %6509 = vmatprep.subr.bf16.mxu1 %v2668_v34  ;;  %v12497_v43 = vsel %vm2783_vm11, %v6498_v55, -1e+30 }
 0x52f   : >> { %v12486_v4 = vsel %vm2781_vm9, %v2742_v28, -1e+30  ;;  %6510 = vmatpush3.bf16.msra.mxu1 %v2668_v34  ;;  %v15217_v28 = vld [vmem:[#allocation80_spill] sm:$0xff]  ;;  %v15220_v34 = vld [vmem:[#allocation82_spill] sm:$0xff] }
 0x530   : >> { %2822 = vmax.xlane.f32.xlu1 %v12486_v4  ;;  %vm2785_vm13 = vcmp.le.s32.totalorder %v12434_v57, %v15217_v28  ;;  %6511 = vmatprep.subr.bf16.mxu1 %v2669_v50  ;;  %vm2787_vm15 = vcmp.le.s32.totalorder %v12434_v57, %v15220_v34  ;;  %v2670_v28 = vld [vmem:[%s12428_s20 + $0x50] sm:$0xff] }
 0x532   : >> { %2824 = vmax.xlane.f32.xlu0 %v12491_v15 }
 0x533   : >> { %v6501_v26 = vpop.f32.mrb[12].mxu0  ;;  %6512 = vmatpush3.bf16.msra.mxu1 %v2669_v50  ;;  %v2672_v50 = vld [vmem:[%s12428_s20 + $0x70] sm:$0xff] }
 0x534   : >> { %2826 = vmax.xlane.f32.xlu1 %v12497_v43  ;;  %v2755_v6 = vpop.f32.mrb[13].mxu0  ;;  %6513 = vmatprep.subr.bf16.mxu1 %v2670_v28 }
 0x535   : >> { %v6502_v32 = vpop.f32.mrb[14].mxu0  ;;  %v12502_v3 = vsel %vm2784_vm12, %v2755_v6, -1e+30  ;;  %v12513_v6 = vsel %vm2786_vm14, %v6501_v26, -1e+30 }
 0x536   : >> { %2828 = vmax.xlane.f32.xlu0 %v12502_v3  ;;  %v2758_v25 = vpop.f32.mrb[15].mxu0  ;;  %15221 = vst [vmem:[#allocation98_spill] sm:$0xff] %v12513_v6  ;;  %v12517_v54 = vsel %vm2787_vm15, %v6502_v32, -1e+30 }
 0x537   : >> { %v12508_v55 = vsel %vm2785_vm13, %v2758_v25, -1e+30  ;;  %6514 = vmatpush3.bf16.msra.mxu1 %v2670_v28 }
 0x538   : >> { %15219 = vst [vmem:[#allocation97_spill] sm:$0xff] %v12508_v55  ;;  %2830 = vmax.xlane.f32.xlu1 %v12508_v55  ;;  %6515 = vmatprep.subr.bf16.mxu1 %v2671_v1 }
 0x53a   : >> { %2832 = vmax.xlane.f32.xlu0 %v12513_v6 }
 0x53b   : >> { %6516 = vmatpush3.bf16.msra.mxu1 %v2671_v1 }
 0x53c   : >> { %2834 = vmax.xlane.f32.xlu1 %v12517_v54  ;;  %6517 = vmatprep.subr.bf16.mxu1 %v2672_v50 }
 0x53f   : >> { %6518 = vmatpush3.bf16.msra.mxu1 %v2672_v50 }
 0x5aa   : >> { %v2809_v25 = vpop.xlane.xlu1 %2808 }
 0x5ab   : >> { %v12523_v57 = vmax.f32 %v9910_v44, %v2809_v25   ;;  %v2805_v34 = vpop.xlane.xlu0 %2804 }
 0x5ac   : >> { %v12526_v42 = vmax.f32 %v9918_v12, %v2805_v34  }
 0x5ad   : >> { %15222 = vst [vmem:[#allocation99_spill] sm:$0xff] %v12523_v57  ;;  %v15223_v26 = vmov %v12523_v57 }
 0x5ae   : >> { %15224 = vst [vmem:[#allocation100_spill] sm:$0xff] %v12526_v42  ;;  %v15225_v6 = vmov %v12526_v42  ;;  %v2902_v28 = vsub.f32 %v12440_v41, %v15223_v26  ;;  %v2811_v17 = vpop.xlane.xlu1 %2810 }
 0x5af   : >> { %v2900_v50 = vsub.f32 %v12443_v47, %v15225_v6  ;;  %v12537_v25 = vmax.f32 %v9906_v27, %v2811_v17   ;;  %v2807_v57 = vpop.xlane.xlu0 %2806 }
 0x5b0   : >> { %v2920_v13 = vmul.f32 1.442695, %v2902_v28  ;;  %v12540_v42 = vmax.f32 %v9914_v19, %v2807_v57  }
 0x5b1   : >> { %15226 = vst [vmem:[#allocation101_spill] sm:$0xff] %v12537_v25  ;;  %v2916_v34 = vmul.f32 1.442695, %v2900_v50  ;;  %v2903_v41 = vsub.f32 %v12450_v51, %v12537_v25 }
 0x5b2   : >> { %15227 = vst [vmem:[#allocation102_spill] sm:$0xff] %v12540_v42  ;;  %v15228_v55 = vmov %v12540_v42  ;;  %8358 = vpow2.f32 %v2920_v13 }
 0x5b3   : >> { %v2901_v28 = vsub.f32 %v12453_v30, %v15228_v55  ;;  %v2922_v17 = vmul.f32 1.442695, %v2903_v41  ;;  %v2813_v1 = vpop.xlane.xlu0 %2812  ;;  %8360 = vpow2.f32 %v2916_v34 }
 0x5b4   : >> { %v12551_v57 = vmax.f32 %v9902_v37, %v2813_v1  }
 0x5b5   : >> { %v2918_v49 = vmul.f32 1.442695, %v2901_v28  ;;  %v2815_v50 = vpop.xlane.xlu1 %2814  ;;  %8362 = vpow2.f32 %v2922_v17 }
 0x5b6   : >> { %15229 = vst [vmem:[#allocation103_spill] sm:$0xff] %v12551_v57  ;;  %v15230_v6 = vmov %v12551_v57  ;;  %v12558_v51 = vmax.f32 %v9898_v46, %v2815_v50  }
 0x5b7   : >> { %v2904_v13 = vsub.f32 %v12460_v5, %v15230_v6  ;;  %v2817_v32 = vpop.xlane.xlu0 %2816  ;;  %8364 = vpow2.f32 %v2918_v49 }
 0x5b8   : >> { %15231 = vst [vmem:[#allocation104_spill] sm:$0xff] %v12558_v51  ;;  %v15232_v47 = vmov %v12558_v51  ;;  %v12565_v34 = vmax.f32 %v9894_v36, %v2817_v32  }
 0x5b9   : >> { %v2905_v1 = vsub.f32 %v12465_v33, %v15232_v47  ;;  %v2819_v41 = vpop.xlane.xlu1 %2818  ;;  %v2924_v28 = vmul.f32 1.442695, %v2904_v13 }
 0x5ba   : >> { %15233 = vst [vmem:[#allocation105_spill] sm:$0xff] %v12565_v34  ;;  %v15234_v55 = vmov %v12565_v34  ;;  %v12568_v17 = vmax.f32 %v9890_v61, %v2819_v41  }
 0x5bb   : >> { %v2926_v5 = vmul.f32 1.442695, %v2905_v1  ;;  %v2906_v49 = vsub.f32 %v12470_v16, %v15234_v55  ;;  %v2821_v50 = vpop.xlane.xlu0 %2820 }
 0x5bc   : >> { %15235 = vst [vmem:[#allocation106_spill] sm:$0xff] %v12568_v17  ;;  %v15236_v42 = vmov %v12568_v17  ;;  %v8359_v51 = vpop.eup %8358  ;;  %v12579_v13 = vmax.f32 %v9886_v40, %v2821_v50  }
 0x5bd   : >> { %v2907_v32 = vsub.f32 %v12475_v45, %v15236_v42  ;;  %8366 = vpow2.f32 %v2926_v5  ;;  %v2928_v34 = vmul.f32 1.442695, %v2906_v49  ;;  %2968 = vadd.xlane.f32.xlu0 %v8359_v51  ;;  %v2823_v1 = vpop.xlane.xlu1 %2822  ;;  %v8361_v57 = vpop.eup %8360 }
 0x5be   : >> { %15237 = vst [vmem:[#allocation107_spill] sm:$0xff] %v12579_v13  ;;  %v15238_v30 = vmov %v12579_v13  ;;  %8368 = vpow2.f32 %v2924_v28  ;;  %v12586_v33 = vmax.f32 %v9882_v52, %v2823_v1  }
 0x5bf   : >> { %v2930_v41 = vmul.f32 1.442695, %v2907_v32  ;;  %v2908_v17 = vsub.f32 %v12480_v22, %v15238_v30  ;;  %v2825_v45 = vpop.xlane.xlu0 %2824  ;;  %v8363_v14 = vpop.eup %8362  ;;  %8370 = vpow2.f32 %v2928_v34 }
 0x5c0   : >> { %15239 = vst [vmem:[#allocation108_spill] sm:$0xff] %v12586_v33  ;;  %v15240_v47 = vmov %v12586_v33  ;;  %v12589_v5 = vmax.f32 %v9878_v35, %v2825_v45   ;;  %2970 = vadd.xlane.f32.xlu1 %v8363_v14  ;;  %v3029_v59 = vpack.c.bf16 %v8363_v14, %v8359_v51 }
 0x5c1   : >> { %v2932_v49 = vmul.f32 1.442695, %v2908_v17  ;;  %v2909_v50 = vsub.f32 %v12486_v4, %v15240_v47  ;;  %2964 = vadd.xlane.f32.xlu0 %v8361_v57  ;;  %v2827_v22 = vpop.xlane.xlu1 %2826  ;;  %v8365_v32 = vpop.eup %8364  ;;  %8372 = vpow2.f32 %v2930_v41 }
 0x5c2   : >> { %15241 = vst [vmem:[#allocation109_spill] sm:$0xff] %v12589_v5  ;;  %v2910_v13 = vsub.f32 %v12491_v15, %v12589_v5  ;;  %v12600_v34 = vmax.f32 %v9874_v11, %v2827_v22   ;;  %v3028_v28 = vpack.c.bf16 %v8365_v32, %v8361_v57 }
 0x5c3   : >> { %v2934_v17 = vmul.f32 1.442695, %v2909_v50  ;;  %v2829_v45 = vpop.xlane.xlu0 %2828  ;;  %8374 = vpow2.f32 %v2932_v49 }
 0x5c4   : >> { %15242 = vst [vmem:[#allocation110_spill] sm:$0xff] %v12600_v34  ;;  %v15243_v1 = vmov %v12600_v34  ;;  %v2936_v16 = vmul.f32 1.442695, %v2910_v13  ;;  %v12607_v33 = vmax.f32 %v9870_v39, %v2829_v45   ;;  %6519 = vmatprep.mubr.bf16.mxu1 %v3028_v28  ;;  %2966 = vadd.xlane.f32.xlu1 %v8365_v32  ;;  %v15247_v32 = vld [vmem:[#allocation97_spill] sm:$0xff] }
 0x5c5   : >> { %v2911_v41 = vsub.f32 %v12497_v43, %v15243_v1  ;;  %v2831_v15 = vpop.xlane.xlu1 %2830  ;;  %8376 = vpow2.f32 %v2934_v17  ;;  %6520 = vmatmul.mubr.bf16.vlgmr.msra.gmra.mrb[0].mxu1 %v3029_v59 }
 0x5c6   : >> { %15244 = vst [vmem:[#allocation111_spill] sm:$0xff] %v12607_v33  ;;  %v15245_v47 = vmov %v12607_v33  ;;  %v12610_v50 = vmax.f32 %v9866_v56, %v2831_v15   ;;  %8378 = vpow2.f32 %v2936_v16  ;;  %v15250_v16 = vld [vmem:[#allocation98_spill] sm:$0xff] }
 0x5c7   : >> { %v8367_v57 = vpop.eup %8366  ;;  %v2938_v22 = vmul.f32 1.442695, %v2911_v41  ;;  %v2912_v51 = vsub.f32 %v12502_v3, %v15245_v47  ;;  %v2833_v43 = vpop.xlane.xlu0 %2832 }
 0x5c8   : >> { %15246 = vst [vmem:[#allocation112_spill] sm:$0xff] %v12610_v50  ;;  %v8369_v49 = vpop.eup %8368  ;;  %v2913_v59 = vsub.f32 %v15247_v32, %v12610_v50  ;;  %v12621_v33 = vmax.f32 %v9862_v48, %v2833_v43  }
 0x5c9   : >> { %v2940_v13 = vmul.f32 1.442695, %v2912_v51  ;;  %v2835_v34 = vpop.xlane.xlu1 %2834  ;;  %v3030_v17 = vpack.c.bf16 %v8367_v57, %v8369_v49  ;;  %v8371_v41 = vpop.eup %8370  ;;  %8380 = vpow2.f32 %v2938_v22 }
 0x5ca   : >> { %15248 = vst [vmem:[#allocation113_spill] sm:$0xff] %v12621_v33  ;;  %v15249_v45 = vmov %v12621_v33  ;;  %v2942_v15 = vmul.f32 1.442695, %v2913_v59  ;;  %v12628_v28 = vmax.f32 %v9858_v24, %v2835_v34   ;;  %2976 = vadd.xlane.f32.xlu0 %v8371_v41 }
 0x5cb   : >> { %v2914_v14 = vsub.f32 %v15250_v16, %v15249_v45  ;;  %6523 = vmatprep.mubr.bf16.mxu1 %v3030_v17  ;;  %v8373_v32 = vpop.eup %8372  ;;  %8382 = vpow2.f32 %v2940_v13 }
 0x5cc   : >> { %15251 = vst [vmem:[#allocation114_spill] sm:$0xff] %v12628_v28  ;;  %v15252_v4 = vmov %v12628_v28  ;;  %2978 = vadd.xlane.f32.xlu1 %v8373_v32  ;;  %8384 = vpow2.f32 %v2942_v15  ;;  %v3031_v59 = vpack.c.bf16 %v8373_v32, %v8371_v41 }
 0x5cd   : >> { %v2944_v43 = vmul.f32 1.442695, %v2914_v14  ;;  %v2915_v22 = vsub.f32 %v12517_v54, %v15252_v4  ;;  %v8375_v33 = vpop.eup %8374 }
 0x5ce   : >> { %2972 = vadd.xlane.f32.xlu0 %v8369_v49  ;;  %6524 = vmatmul.mubr.bf16.gmra.mrb[4].mxu1 %v3031_v59 }
 0x5cf   : >> { %v2946_v3 = vmul.f32 1.442695, %v2915_v22  ;;  %v8377_v16 = vpop.eup %8376  ;;  %8386 = vpow2.f32 %v2944_v43  ;;  %v15254_v43 = vld [vmem:[#allocation100_spill] sm:$0xff] }
 0x5d0   : >> { %2974 = vadd.xlane.f32.xlu1 %v8367_v57  ;;  %v3032_v28 = vpack.c.bf16 %v8377_v16, %v8375_v33  ;;  %v8379_v34 = vpop.eup %8378  ;;  %v15255_v22 = vsub.f32 %v9918_v12, %v15254_v43  ;;  %v15260_v12 = vsub.f32 %v9890_v61, %v15236_v42 }
 0x5d1   : >> { %8388 = vpow2.f32 %v2946_v3  ;;  %v15253_v3 = vsub.f32 %v9910_v44, %v15223_v26  ;;  %v15259_v44 = vsub.f32 %v9894_v36, %v15234_v55  ;;  %v15263_v36 = vld [vmem:[#allocation104_spill] sm:$0xff] }
 0x5d2   : >> { %6527 = vmatprep.mubr.bf16.mxu1 %v3032_v28  ;;  %2984 = vadd.xlane.f32.xlu0 %v8379_v34  ;;  %v2868_v59 = vmul.f32 1.442695, %v15255_v22  ;;  %v15257_v28 = vld [vmem:[#allocation102_spill] sm:$0xff]  ;;  %v15264_v22 = vsub.f32 %v9898_v46, %v15263_v36  ;;  %v15268_v46 = vsub.f32 %v9874_v11, %v15243_v1 }
 0x5d3   : >> { %v8381_v14 = vpop.eup %8380  ;;  %v2872_v32 = vmul.f32 1.442695, %v15253_v3 }
 0x5d4   : >> { %2986 = vadd.xlane.f32.xlu1 %v8381_v14  ;;  %v3033_v13 = vpack.c.bf16 %v8381_v14, %v8379_v34  ;;  %v15258_v34 = vsub.f32 %v9914_v19, %v15257_v28  ;;  %v15261_v19 = vsub.f32 %v9902_v37, %v15230_v6  ;;  %v2878_v61 = vmul.f32 1.442695, %v15264_v22 }
 0x5d5   : >> { %v8383_v17 = vpop.eup %8382  ;;  %8390 = vpow2.f32 %v2872_v32  ;;  %v15265_v37 = vsub.f32 %v9878_v35, %v12589_v5 }
 0x5d6   : >> { %2980 = vadd.xlane.f32.xlu0 %v8375_v33  ;;  %v8385_v54 = vpop.eup %8384  ;;  %6528 = vmatmul.mubr.bf16.gmra.mrb[8].mxu1 %v3033_v13  ;;  %v15256_v33 = vsub.f32 %v9906_v27, %v12537_v25  ;;  %8392 = vpow2.f32 %v2868_v59  ;;  %v2870_v14 = vmul.f32 1.442695, %v15258_v34 }
 0x5d7   : >> { %v3034_v41 = vpack.c.bf16 %v8385_v54, %v8383_v17  ;;  %v2888_v28 = vmul.f32 1.442695, %v15265_v37 }
 0x5d8   : >> { %2982 = vadd.xlane.f32.xlu1 %v8377_v16  ;;  %v2874_v16 = vmul.f32 1.442695, %v15256_v33 }
 0x5d9   : >> { %v8387_v15 = vpop.eup %8386  ;;  %6531 = vmatprep.mubr.bf16.mxu1 %v3034_v41 }
 0x5da   : >> { %2988 = vadd.xlane.f32.xlu0 %v8383_v17  ;;  %8394 = vpow2.f32 %v2874_v16  ;;  %v2880_v17 = vmul.f32 1.442695, %v15259_v44 }
 0x5db   : >> { %v8389_v49 = vpop.eup %8388  ;;  %8396 = vpow2.f32 %v2870_v14  ;;  %v2890_v14 = vmul.f32 1.442695, %v15268_v46 }
 0x5dc   : >> { %2990 = vadd.xlane.f32.xlu1 %v8385_v54  ;;  %v3035_v57 = vpack.c.bf16 %v8389_v49, %v8387_v15  ;;  %v2882_v54 = vmul.f32 1.442695, %v15260_v12  ;;  %8398 = vpow2.f32 %v2880_v17  ;;  %v15269_v17 = vsub.f32 %v9886_v40, %v15238_v30 }
 0x5de   : >> { %2992 = vadd.xlane.f32.xlu0 %v8387_v15  ;;  %6532 = vmatmul.mubr.bf16.gmra.mrb[12].mxu1 %v3035_v57  ;;  %8400 = vpow2.f32 %v2882_v54  ;;  %v2884_v12 = vmul.f32 1.442695, %v15269_v17 }
 0x5df   : >> { %v12646_v13 = vpop.eup %8390 }
 0x5e0   : >> { %2994 = vadd.xlane.f32.xlu1 %v8389_v49  ;;  %v12654_v41 = vpop.eup %8392  ;;  %v2950_v27 = vmul.f32 %v9846_v7, %v12646_v13  ;;  %v2876_v49 = vmul.f32 1.442695, %v15261_v19 }
 0x5e1   : >> { %v2948_v59 = vmul.f32 %v9854_v21, %v12654_v41 }
 0x5e2   : >> { %8402 = vpow2.f32 %v2876_v49  ;;  %v15274_v49 = vsub.f32 %v9870_v39, %v15245_v47  ;;  %v15277_v39 = vsub.f32 %v9862_v48, %v15249_v45 }
 0x5e3   : >> { %8404 = vpow2.f32 %v2878_v61 }
 0x5e4   : >> { %v12658_v15 = vpop.eup %8394  ;;  %8406 = vpow2.f32 %v2888_v28  ;;  %v2896_v37 = vmul.f32 1.442695, %v15277_v39 }
 0x5e5   : >> { %v2951_v33 = vmul.f32 %v9842_v53, %v12658_v15  ;;  %v12672_v16 = vpop.eup %8396  ;;  %8408 = vpow2.f32 %v2890_v14 }
 0x5e6   : >> { %v2949_v44 = vmul.f32 %v9850_v23, %v12672_v16  ;;  %v12691_v54 = vpop.eup %8398  ;;  %8410 = vpow2.f32 %v2884_v12 }
 0x5e7   : >> { %v2954_v40 = vmul.f32 %v9830_v18, %v12691_v54 }
 0x5e8   : >> { %v12696_v11 = vpop.eup %8400 }
 0x5ec   : >> { %v12703_v36 = vpop.eup %8402 }
 0x64a   : >> { %v2969_v57 = vpop.xlane.xlu0 %2968 }
 0x64b   : >> { %v12663_v7 = vadd.f32 %v2969_v57, %v2950_v27   ;;  %v2892_v57 = vmul.f32 1.442695, %v15274_v49 }
 0x64d   : >> { %15262 = vst [vmem:[#allocation115_spill] sm:$0xff] %v12663_v7  ;;  %v2971_v7 = vpop.xlane.xlu1 %2970 }
 0x64e   : >> { %v2965_v34 = vpop.xlane.xlu0 %2964  ;;  %v12679_v53 = vadd.f32 %v2971_v7, %v2951_v33   ;;  %v12712_v33 = vpop.eup %8404 }
 0x64f   : >> { %v12677_v21 = vadd.f32 %v2965_v34, %v2948_v59   ;;  %v2955_v59 = vmul.f32 %v9826_v31, %v12696_v11  ;;  %v12721_v34 = vpop.eup %8406  ;;  %v2953_v48 = vmul.f32 %v9834_v58, %v12712_v33 }
 0x650   : >> { %15267 = vst [vmem:[#allocation117_spill] sm:$0xff] %v12679_v53  ;;  %v15271_v53 = vld [vmem:[#allocation108_spill] sm:$0xff]  ;;  %v12730_v14 = vpop.eup %8408 }
 0x651   : >> { %15266 = vst [vmem:[#allocation116_spill] sm:$0xff] %v12677_v21  ;;  %v2967_v35 = vpop.xlane.xlu1 %2966  ;;  %v15272_v27 = vmov %v15271_v53  ;;  %v15273_v21 = vsub.f32 %v9882_v52, %v15271_v53  ;;  %v8411_v17 = vpop.eup %8410 }
 0x652   : >> { %v12689_v23 = vadd.f32 %v2967_v35, %v2949_v44   ;;  %v2958_v44 = vmul.f32 %v9814_v63, %v12721_v34  ;;  %v2956_v53 = vmul.f32 %v9822_v29, %v8411_v17 }
 0x653   : >> { %v2886_v19 = vmul.f32 1.442695, %v15273_v21 }
 0x654   : >> { %15270 = vst [vmem:[#allocation118_spill] sm:$0xff] %v12689_v23  ;;  %v15275_v23 = vsub.f32 %v9866_v56, %v12610_v50  ;;  %v2952_v56 = vmul.f32 %v9838_v38, %v12703_v36 }
 0x655   : >> { %8412 = vpow2.f32 %v2886_v19 }
 0x656   : >> { %v2894_v61 = vmul.f32 1.442695, %v15275_v23  ;;  %8414 = vpow2.f32 %v2892_v57 }
 0x657   : >> { %v2977_v52 = vpop.xlane.xlu0 %2976 }
 0x658   : >> { %v12708_v18 = vadd.f32 %v2977_v52, %v2954_v40   ;;  %8416 = vpow2.f32 %v2894_v61 }
 0x659   : >> { %v2979_v28 = vpop.xlane.xlu1 %2978  ;;  %8418 = vpow2.f32 %v2896_v37  ;;  %v3014_v37 = vmul.f32 %v9782_v2, %v12646_v13 }
 0x65a   : >> { %15276 = vst [vmem:[#allocation119_spill] sm:$0xff] %v12708_v18  ;;  %v12717_v31 = vadd.f32 %v2979_v28, %v2955_v59   ;;  %v15279_v18 = vsub.f32 %v9858_v24, %v15252_v4  ;;  %v3012_v28 = vmul.f32 %v9790_v8, %v12654_v41 }
 0x65b   : >> { %v2973_v46 = vpop.xlane.xlu0 %2972 }
 0x65c   : >> { %15278 = vst [vmem:[#allocation120_spill] sm:$0xff] %v12717_v31  ;;  %v2898_v7 = vmul.f32 1.442695, %v15279_v18  ;;  %v12726_v38 = vadd.f32 %v2973_v46, %v2952_v56   ;;  %v15291_v56 = vld [vmem:[#allocation95_spill] sm:$0xff] }
 0x65d   : >> { %v2975_v31 = vpop.xlane.xlu1 %2974  ;;  %v3015_v18 = vmul.f32 %v15291_v56, %v12658_v15 }
 0x65e   : >> { %15280 = vst [vmem:[#allocation121_spill] sm:$0xff] %v12726_v38  ;;  %v12732_v58 = vadd.f32 %v2975_v31, %v2953_v48   ;;  %8420 = vpow2.f32 %v2898_v7  ;;  %v2959_v38 = vmul.f32 %v9810_v20, %v12730_v14  ;;  %v15293_v7 = vld [vmem:[#allocation96_spill] sm:$0xff]  ;;  %v15296_v48 = vld [vmem:[#allocation93_spill] sm:$0xff] }
 0x65f   : >> { %v2985_v12 = vpop.xlane.xlu0 %2984  ;;  %v8413_v24 = vpop.eup %8412  ;;  %v3013_v46 = vmul.f32 %v15293_v7, %v12672_v16  ;;  %v3018_v41 = vmul.f32 %v15296_v48, %v12691_v54  ;;  %v15304_v54 = vld [vmem:[#allocation90_spill] sm:$0xff]  ;;  %v15350_v48 = vld [vmem:[#allocation113_spill] sm:$0xff] }
 0x660   : >> { %15281 = vst [vmem:[#allocation122_spill] sm:$0xff] %v12732_v58  ;;  %v12736_v63 = vadd.f32 %v2985_v12, %v2958_v44   ;;  %v8415_v21 = vpop.eup %8414  ;;  %v2957_v58 = vmul.f32 %v9818_v10, %v8413_v24  ;;  %v15314_v7 = vld [vmem:[#allocation86_spill] sm:$0xff] }
 0x661   : >> { %v2987_v35 = vpop.xlane.xlu1 %2986 }
 0x662   : >> { %15282 = vst [vmem:[#allocation123_spill] sm:$0xff] %v12736_v63  ;;  %v12740_v20 = vadd.f32 %v2987_v35, %v2959_v38   ;;  %v8417_v49 = vpop.eup %8416  ;;  %v2960_v63 = vmul.f32 %v9806_v9, %v8415_v21 }
 0x663   : >> { %v2981_v19 = vpop.xlane.xlu0 %2980  ;;  %v8419_v40 = vpop.eup %8418 }
 0x664   : >> { %15283 = vst [vmem:[#allocation124_spill] sm:$0xff] %v12740_v20  ;;  %v12743_v29 = vadd.f32 %v2981_v19, %v2956_v53   ;;  %v2961_v20 = vmul.f32 %v9802_v60, %v8417_v49  ;;  %v15301_v19 = vld [vmem:[#allocation85_spill] sm:$0xff] }
 0x665   : >> { %v2983_v57 = vpop.xlane.xlu1 %2982 }
 0x666   : >> { %15284 = vst [vmem:[#allocation125_spill] sm:$0xff] %v12743_v29  ;;  %v12746_v10 = vadd.f32 %v2983_v57, %v2957_v58   ;;  %v2962_v29 = vmul.f32 %v9798_v62, %v8419_v40  ;;  %v3017_v58 = vmul.f32 %v15301_v19, %v12712_v33  ;;  %v15363_v19 = vld [vmem:[#allocation102_spill] sm:$0xff] }
 0x667   : >> { %v2989_v23 = vpop.xlane.xlu0 %2988 }
 0x668   : >> { %15285 = vst [vmem:[#allocation126_spill] sm:$0xff] %v12746_v10  ;;  %v12749_v9 = vadd.f32 %v2989_v23, %v2960_v63   ;;  %v8421_v61 = vpop.eup %8420 }
 0x669   : >> { %v2991_v52 = vpop.xlane.xlu1 %2990  ;;  %v2963_v39 = vmul.f32 %v9794_v0, %v8421_v61 }
 0x66a   : >> { %15286 = vst [vmem:[#allocation127_spill] sm:$0xff] %v12749_v9  ;;  %v12752_v60 = vadd.f32 %v2991_v52, %v2961_v20   ;;  %v15305_v52 = vld [vmem:[#allocation84_spill] sm:$0xff] }
 0x66b   : >> { %v2993_v59 = vpop.xlane.xlu0 %2992 }
 0x66c   : >> { %v15287_v50 = vmov %v12752_v60  ;;  %v12755_v62 = vadd.f32 %v2993_v59, %v2962_v29   ;;  %v3020_v29 = vmul.f32 %v15305_v52, %v8411_v17  ;;  %v15313_v17 = vld [vmem:[#allocation88_spill] sm:$0xff]  ;;  %v15355_v52 = vmov %v15272_v27 }
 0x66d   : >> { %v2995_v10 = vpop.xlane.xlu1 %2994  ;;  %v3024_v56 = vmul.f32 %v15313_v17, %v8415_v21  ;;  %v15348_v21 = vld [vmem:[#allocation116_spill] sm:$0xff]  ;;  %v15361_v27 = vld [vmem:[#allocation101_spill] sm:$0xff]  ;;  %v15388_v48 = vld [vmem:[#allocation125_spill] sm:$0xff] (%p12814_p6) }
 0x66e   : >> { %v15288_v45 = vmov %v12755_v62  ;;  %v12758_v0 = vadd.f32 %v2995_v10, %v2963_v39   ;;  %v15309_v10 = vld [vmem:[#allocation91_spill] sm:$0xff]  ;;  %v15386_v21 = vld [vmem:[#allocation123_spill] sm:$0xff] (%p12814_p6) }
 0x66f   : > { %v15393_v52 = vld [vmem:[#allocation117_spill] sm:$0xff] (%p12814_p6) }
 0x670   : >> { %v15289_v4 = vmov %v12758_v0 }
 0x698   : >> { %v6521_v9 = vpop.f32.mrb[0].mxu1 }
 0x699   : >> { %v12764_v2 = vadd.f32 %v6521_v9, %v3014_v37   ;;  %v3070_v60 = vpop.f32.mrb[1].mxu1  ;;  %v3021_v37 = vmul.f32 %v15309_v10, %v8413_v24  ;;  %v15312_v9 = vld [vmem:[#allocation83_spill] sm:$0xff]  ;;  %v15339_v10 = vld [vmem:[#allocation126_spill] sm:$0xff] }
 0x69a   : >> { %v12768_v8 = vadd.f32 %v3070_v60, %v3012_v28   ;;  %v6522_v62 = vpop.f32.mrb[2].mxu1  ;;  %v3026_v28 = vmul.f32 %v15312_v9, %v8419_v40  ;;  %v15336_v9 = vld [vmem:[#allocation127_spill] sm:$0xff]  ;;  %v15356_v40 = vld [vmem:[#allocation107_spill] sm:$0xff] }
 0x69b   : >> { %v15290_v43 = vmov %v12764_v2  ;;  %v12772_v59 = vadd.f32 %v6522_v62, %v3015_v18   ;;  %v3073_v0 = vpop.f32.mrb[3].mxu1  ;;  %v15297_v2 = vld [vmem:[#allocation94_spill] sm:$0xff]  ;;  %v15394_v40 = vld [vmem:[#allocation115_spill] sm:$0xff] (%p12814_p6) }
 0x69c   : >> { %v15292_v51 = vmov %v12768_v8  ;;  %v12774_v13 = vadd.f32 %v3073_v0, %v3013_v46   ;;  %v3016_v44 = vmul.f32 %v15297_v2, %v12703_v36  ;;  %v15299_v8 = vld [vmem:[#allocation92_spill] sm:$0xff]  ;;  %v3022_v36 = vmul.f32 %v15304_v54, %v12721_v34 }
 0x69d   : >> { %v15294_v3 = vmov %v12772_v59  ;;  %v3019_v35 = vmul.f32 %v15299_v8, %v12696_v11  ;;  %v15307_v59 = vld [vmem:[#allocation89_spill] sm:$0xff]  ;;  %v3027_v46 = vmul.f32 %v15314_v7, %v8421_v61  ;;  %v15330_v2 = vmov %v15290_v43 }
 0x69e   : >> { %v15295_v22 = vmov %v12774_v13  ;;  %v3023_v39 = vmul.f32 %v15307_v59, %v12730_v14  ;;  %v15329_v59 = vmov %v15294_v3  ;;  %v15332_v8 = vmov %v15292_v51  ;;  %v15346_v7 = vld [vmem:[#allocation115_spill] sm:$0xff] }
 0x69f   : >> { %v15357_v61 = vld [vmem:[#allocation106_spill] sm:$0xff]  ;;  %v15377_v10 = vmov (%p12814_p6), %v15294_v3 }
 0x6a0   : > { %v15384_v7 = vld [vmem:[#allocation127_spill] sm:$0xff] (%p12814_p6)  ;;  %v15395_v61 = vld [vmem:[#allocation118_spill] sm:$0xff] (%p12814_p6) }
 0x6a1   : >> { %v6525_v31 = vpop.f32.mrb[4].mxu1 }
 0x6a2   : >> { %v12780_v12 = vadd.f32 %v6525_v31, %v3018_v41   ;;  %v3086_v38 = vpop.f32.mrb[5].mxu1  ;;  %v15341_v31 = vld [vmem:[#allocation120_spill] sm:$0xff] }
 0x6a3   : >> { %v12784_v13 = vadd.f32 %v3086_v38, %v3016_v44   ;;  %v6526_v53 = vpop.f32.mrb[6].mxu1  ;;  %v15344_v38 = vld [vmem:[#allocation121_spill] sm:$0xff]  ;;  %v15362_v44 = vld [vmem:[#allocation99_spill] sm:$0xff]  ;;  %v15379_v31 = vmov (%p12814_p6), %v15295_v22 }
 0x6a4   : >> { %v15298_v15 = vmov %v12780_v12  ;;  %v12788_v57 = vadd.f32 %v6526_v53, %v3019_v35   ;;  %v3089_v63 = vpop.f32.mrb[7].mxu1  ;;  %v15345_v53 = vld [vmem:[#allocation117_spill] sm:$0xff]  ;;  %v15382_v38 = vmov (%p12814_p6), %v15288_v45 }
 0x6a5   : >> { %v15300_v16 = vmov %v12784_v13  ;;  %v12790_v20 = vadd.f32 %v3089_v63, %v3017_v58   ;;  %v15338_v63 = vld [vmem:[#allocation123_spill] sm:$0xff]  ;;  %v15343_v58 = vld [vmem:[#allocation122_spill] sm:$0xff]  ;;  %v15354_v35 = vld [vmem:[#allocation109_spill] sm:$0xff]  ;;  %v15374_v9 = vmov (%p12814_p6), %v15298_v15  ;;  %v15383_v53 = vmov (%p12814_p6), %v15287_v50 }
 0x6a6   : >> { %v15302_v6 = vmov %v12788_v57  ;;  %v15328_v13 = vmov %v15300_v16  ;;  %v15364_v12 = vld [vmem:[#allocation100_spill] sm:$0xff]  ;;  %v15376_v63 = vmov (%p12814_p6), %v15300_v16  ;;  %v15381_v58 = vmov (%p12814_p6), %v15289_v4 }
 0x6a7   : >> { %v15303_v32 = vmov %v12790_v20  ;;  %v15325_v17 = vmov %v15302_v6  ;;  %v15392_v35 = vld [vmem:[#allocation121_spill] sm:$0xff] (%p12814_p6) }
 0x6a8   : >> { %15327 = vst [vmem:[#allocation85_spill] sm:$0xff] %v15303_v32 }
 0x6a9   : >> { %v6529_v23 = vpop.f32.mrb[8].mxu1 }
 0x6aa   : >> { %v12795_v54 = vadd.f32 %v6529_v23, %v3022_v36   ;;  %v3102_v11 = vpop.f32.mrb[9].mxu1  ;;  %v15347_v23 = vld [vmem:[#allocation118_spill] sm:$0xff] }
 0x6ab   : >> { %v12799_v62 = vadd.f32 %v3102_v11, %v3020_v29   ;;  %v6530_v33 = vpop.f32.mrb[10].mxu1  ;;  %v15340_v29 = vld [vmem:[#allocation125_spill] sm:$0xff]  ;;  %v15353_v11 = vld [vmem:[#allocation110_spill] sm:$0xff]  ;;  %v15385_v23 = vld [vmem:[#allocation124_spill] sm:$0xff] (%p12814_p6) }
 0x6ac   : >> { %v15306_v26 = vmov %v12795_v54  ;;  %v12802_v34 = vadd.f32 %v6530_v33, %v3023_v39   ;;  %v3105_v20 = vpop.f32.mrb[11].mxu1  ;;  %v15352_v39 = vld [vmem:[#allocation111_spill] sm:$0xff]  ;;  %v15358_v36 = vld [vmem:[#allocation105_spill] sm:$0xff]  ;;  %v15378_v29 = vmov (%p12814_p6), %v15290_v43 }
 0x6ad   : >> { %v15308_v25 = vmov %v12799_v62  ;;  %v12804_v33 = vadd.f32 %v3105_v20, %v3021_v37   ;;  %v15315_v62 = vld [vmem:[#allocation87_spill] sm:$0xff]  ;;  %v15322_v54 = vmov %v15306_v26  ;;  %v15337_v20 = vld [vmem:[#allocation124_spill] sm:$0xff]  ;;  %v15370_v8 = vmov (%p12814_p6), %v15306_v26  ;;  %v15390_v39 = vld [vmem:[#allocation119_spill] sm:$0xff] (%p12814_p6) }
 0x6ae   : >> { %v15310_v5 = vmov %v12802_v34  ;;  %v3025_v0 = vmul.f32 %v15315_v62, %v8417_v49  ;;  %15324 = vst [vmem:[#allocation84_spill] sm:$0xff] %v15308_v25  ;;  %v15326_v49 = vmov %v15298_v15  ;;  %v15334_v62 = vmov %v15288_v45  ;;  %v15360_v37 = vld [vmem:[#allocation103_spill] sm:$0xff]  ;;  %v15391_v11 = vld [vmem:[#allocation122_spill] sm:$0xff] (%p12814_p6) }
 0x6af   : >> { %v15311_v1 = vmov %v12804_v33  ;;  %v15321_v34 = vmov %v15310_v5  ;;  %v15372_v62 = vmov (%p12814_p6), %v15308_v25  ;;  %v15375_v20 = vmov (%p12814_p6), %v15303_v32  ;;  %v15396_v36 = vld [vmem:[#allocation116_spill] sm:$0xff] (%p12814_p6) }
 0x6b0   : >> { %v15323_v33 = vmov %v15311_v1 }
 0x6b1   : >> { %v6533_v60 = vpop.f32.mrb[12].mxu1 }
 0x6b2   : >> { %v3147_v55 = vadd.f32 %v6533_v60, %v3026_v28   ;;  %v3118_v18 = vpop.f32.mrb[13].mxu1  ;;  %v15335_v60 = vmov %v15287_v50 }
 0x6b3   : >> { %v3145_v30 = vadd.f32 %v3118_v18, %v3024_v56   ;;  %v6534_v14 = vpop.f32.mrb[14].mxu1  ;;  %v15342_v18 = vld [vmem:[#allocation119_spill] sm:$0xff]  ;;  %v15351_v56 = vld [vmem:[#allocation112_spill] sm:$0xff]  ;;  %2600 = sbr.rel (!%p12814_p6) target bundleno = 1029 (0x405), region = 141  ;;  %v15373_v60 = vmov (%p12814_p6), %v15302_v6 }
 0x6b4   : >> { %v3148_v42 = vadd.f32 %v6534_v14, %v3027_v46   ;;  %v3121_v24 = vpop.f32.mrb[15].mxu1  ;;  %15318 = vst [vmem:[#allocation83_spill] sm:$0xff] %v3147_v55  ;;  %v15331_v14 = vmov %v15295_v22  ;;  %v15359_v46 = vld [vmem:[#allocation104_spill] sm:$0xff]  ;;  %v15366_v13 = vmov (%p12814_p6), %v3147_v55  ;;  %v15380_v18 = vmov (%p12814_p6), %v15292_v51  ;;  %v15389_v56 = vld [vmem:[#allocation120_spill] sm:$0xff] (%p12814_p6) }
 0x6b5   : >> { %v3146_v47 = vadd.f32 %v3121_v24, %v3025_v0   ;;  %v15320_v41 = vmov %v3145_v30  ;;  %v15333_v0 = vmov %v15289_v4  ;;  %v15349_v24 = vld [vmem:[#allocation114_spill] sm:$0xff]  ;;  %v15368_v2 = vmov (%p12814_p6), %v3145_v30 }
 0x6b6   : >> { %v15317_v57 = vmov %v3148_v42  ;;  %v15369_v14 = vmov (%p12814_p6), %v15310_v5  ;;  %v15371_v0 = vmov (%p12814_p6), %v15311_v1  ;;  %v15387_v24 = vld [vmem:[#allocation126_spill] sm:$0xff] (%p12814_p6) }
 0x6b7   : >> { %v15319_v28 = vmov %v3146_v47  ;;  %v15367_v59 = vmov (%p12814_p6), %v3146_v47 }
 0x6ba PF: > { %8422 = vrcp.f32 %v10050_v36  ;;  %v13109_v55 = vld [vmem:[%s12024_s6 + $0x8] sm:$0xff]  ;;  %v13112_v6 = vld [vmem:[%s12024_s6 + $0x18] sm:$0xff]  ;;  %v13154_v33 = vmov 0.0   ;;  %v13162_v37 = vmov 0.0   ;;  %v13168_v28 = vmov 0.0   ;;  %v10050_v36 = vphi %v12166_v36, %v15396_v36   ;;  %v10046_v61 = vphi %v12164_v61, %v15395_v61   ;;  %v10042_v40 = vphi %v12162_v40, %v15394_v40   ;;  %v10038_v52 = vphi %v12160_v52, %v15393_v52   ;;  %v10034_v35 = vphi %v12158_v35, %v15392_v35   ;;  %v10030_v11 = vphi %v12156_v11, %v15391_v11   ;;  %v10026_v39 = vphi %v12154_v39, %v15390_v39   ;;  %v10022_v56 = vphi %v12152_v56, %v15389_v56   ;;  %v10018_v48 = vphi %v12150_v48, %v15388_v48   ;;  %v10014_v24 = vphi %v12148_v24, %v15387_v24   ;;  %v10010_v21 = vphi %v12146_v21, %v15386_v21   ;;  %v10006_v23 = vphi %v12144_v23, %v15385_v23   ;;  %v10002_v7 = vphi %v12142_v7, %v15384_v7   ;;  %v9998_v53 = vphi %v12140_v53, %v15383_v53   ;;  %v9994_v38 = vphi %v12138_v38, %v15382_v38   ;;  %v9990_v58 = vphi %v12136_v58, %v15381_v58   ;;  %v9986_v18 = vphi %v12134_v18, %v15380_v18   ;;  %v9982_v31 = vphi %v12132_v31, %v15379_v31   ;;  %v9978_v29 = vphi %v12130_v29, %v15378_v29   ;;  %v9974_v10 = vphi %v12128_v10, %v15377_v10   ;;  %v9970_v63 = vphi %v12126_v63, %v15376_v63   ;;  %v9966_v20 = vphi %v12124_v20, %v15375_v20   ;;  %v9962_v9 = vphi %v12122_v9, %v15374_v9   ;;  %v9958_v60 = vphi %v12120_v60, %v15373_v60   ;;  %v9954_v62 = vphi %v12118_v62, %v15372_v62   ;;  %v9950_v0 = vphi %v12116_v0, %v15371_v0   ;;  %v9946_v8 = vphi %v12114_v8, %v15370_v8   ;;  %v9942_v14 = vphi %v12112_v14, %v15369_v14   ;;  %v9938_v2 = vphi %v12110_v2, %v15368_v2   ;;  %v9934_v59 = vphi %v12108_v59, %v15367_v59   ;;  %v9930_v13 = vphi %v12106_v13, %v15366_v13   ;;  %v9926_v42 = vphi %v12104_v42, %v3148_v42  }
 0x6bb   : > { %15397 = vst [vmem:[#allocation57_spill] sm:$0xff] %v13109_v55  ;;  %15398 = vst [vmem:[#allocation58_spill] sm:$0xff] %v13112_v6  ;;  %v13115_v26 = vld [vmem:[%s12024_s6 + $0x28] sm:$0xff]  ;;  %8424 = vrcp.f32 %v10046_v61  ;;  %v13118_v25 = vld [vmem:[%s12024_s6 + $0x38] sm:$0xff]  ;;  %v13172_v17 = vmov 0.0   ;;  %v13180_v46 = vmov 0.0  }
 0x6bc   : > { %15399 = vst [vmem:[#allocation59_spill] sm:$0xff] %v13115_v26  ;;  %15400 = vst [vmem:[#allocation62_spill] sm:$0xff] %v13118_v25  ;;  %v13121_v47 = vld [vmem:[%s12024_s6 + $0x48] sm:$0xff]  ;;  %v13124_v30 = vld [vmem:[%s12024_s6 + $0x58] sm:$0xff]  ;;  %8426 = vrcp.f32 %v10042_v40 }
 0x6bd   : > { %15401 = vst [vmem:[#allocation63_spill] sm:$0xff] %v13121_v47  ;;  %15402 = vst [vmem:[#allocation64_spill] sm:$0xff] %v13124_v30  ;;  %v13127_v5 = vld [vmem:[%s12024_s6 + $0x68] sm:$0xff]  ;;  %v13130_v1 = vld [vmem:[%s12024_s6 + $0x78] sm:$0xff]  ;;  %8428 = vrcp.f32 %v10038_v52 }
 0x6be   : > { %15403 = vst [vmem:[#allocation65_spill] sm:$0xff] %v13127_v5  ;;  %15404 = vst [vmem:[#allocation66_spill] sm:$0xff] %v13130_v1  ;;  %8430 = vrcp.f32 %v10034_v35 }
 0x6bf   : > { %8432 = vrcp.f32 %v10030_v11  ;;  %v13146_v11 = vmov 0.0  }
 0x6c0   : > { %8434 = vrcp.f32 %v10026_v39  ;;  %v13150_v39 = vmov 0.0  }
 0x6c1   : > { %8436 = vrcp.f32 %v10022_v56  ;;  %v13174_v56 = vmov 0.0  }
 0x6c2   : > { %8438 = vrcp.f32 %v10018_v48 }
 0x6c3   : > { %8440 = vrcp.f32 %v10014_v24  ;;  %v13188_v24 = vmov 0.0  }
 0x6c4   : > { %v8423_v4 = vpop.eup %8422  ;;  %8442 = vrcp.f32 %v10010_v21 }
 0x6c5   : > { %v8425_v50 = vpop.eup %8424  ;;  %v3165_v45 = vmul.f32 %v9986_v18, %v8423_v4  ;;  %8444 = vrcp.f32 %v10006_v23  ;;  %v13176_v18 = vmov 0.0   ;;  %v13190_v4 = vmov 0.0  }
 0x6c6   : > { %v8427_v51 = vpop.eup %8426  ;;  %v3166_v43 = vmul.f32 %v9982_v31, %v8425_v50  ;;  %8446 = vrcp.f32 %v10002_v7  ;;  %v13178_v7 = vmov 0.0   ;;  %v13192_v50 = vmov 0.0  }
 0x6c7   : > { %v8429_v3 = vpop.eup %8428  ;;  %3181 = vst [vmem:[#allocation5] sm:$0xff] %v3165_v45  ;;  %v3167_v32 = vmul.f32 %v9978_v29, %v8427_v51  ;;  %8448 = vrcp.f32 %v9998_v53  ;;  %v13144_v29 = vmov 0.0   ;;  %v13194_v45 = vmov 0.0  }
 0x6c8   : > { %v8431_v22 = vpop.eup %8430  ;;  %3182 = vst [vmem:[#allocation5 + $0x10] sm:$0xff] %v3166_v43  ;;  %v3168_v27 = vmul.f32 %v9974_v10, %v8429_v3  ;;  %8450 = vrcp.f32 %v9994_v38  ;;  %v13158_v10 = vmov 0.0   ;;  %v13196_v51 = vmov 0.0  }
 0x6c9   : > { %v8433_v34 = vpop.eup %8432  ;;  %3183 = vst [vmem:[#allocation5 + $0x20] sm:$0xff] %v3167_v32  ;;  %v3169_v49 = vmul.f32 %v9970_v63, %v8431_v22  ;;  %8452 = vrcp.f32 %v9990_v58  ;;  %v13198_v43 = vmov 0.0   ;;  %v13200_v3 = vmov 0.0  }
 0x6ca   : > { %v8435_v40 = vpop.eup %8434  ;;  %3184 = vst [vmem:[#allocation5 + $0x30] sm:$0xff] %v3168_v27  ;;  %v3170_v21 = vmul.f32 %v9966_v20, %v8433_v34  ;;  %v13164_v20 = vmov 0.0   ;;  %v13202_v32 = vmov 0.0   ;;  %v13204_v22 = vmov 0.0  }
 0x6cb   : > { %v8437_v61 = vpop.eup %8436  ;;  %3185 = vst [vmem:[#allocation5 + $0x40] sm:$0xff] %v3169_v49  ;;  %v3171_v48 = vmul.f32 %v9962_v9, %v8435_v40  ;;  %v13166_v9 = vmov 0.0  }
 0x6cc   : > { %v8439_v41 = vpop.eup %8438  ;;  %3186 = vst [vmem:[#allocation5 + $0x50] sm:$0xff] %v3170_v21  ;;  %v3172_v31 = vmul.f32 %v9958_v60, %v8437_v61  ;;  %v13170_v60 = vmov 0.0  }
 0x6cd   : > { %v8441_v44 = vpop.eup %8440  ;;  %3187 = vst [vmem:[#allocation5 + $0x60] sm:$0xff] %v3171_v48  ;;  %v3173_v12 = vmul.f32 %v9954_v62, %v8439_v41  ;;  %v13184_v62 = vmov 0.0  }
 0x6ce   : > { %v8443_v15 = vpop.eup %8442  ;;  %3188 = vst [vmem:[#allocation5 + $0x70] sm:$0xff] %v3172_v31  ;;  %v3174_v38 = vmul.f32 %v9950_v0, %v8441_v44  ;;  %v13186_v0 = vmov 0.0  }
 0x6cf   : > { %v8445_v35 = vpop.eup %8444  ;;  %3189 = vst [vmem:[#allocation5 + $0x80] sm:$0xff] %v3173_v12  ;;  %v3175_v16 = vmul.f32 %v9946_v8, %v8443_v15  ;;  %v13142_v8 = vmov 0.0  }
 0x6d0   : > { %v8447_v53 = vpop.eup %8446  ;;  %3190 = vst [vmem:[#allocation5 + $0x90] sm:$0xff] %v3174_v38  ;;  %v3176_v19 = vmul.f32 %v9942_v14, %v8445_v35  ;;  %v13182_v14 = vmov 0.0   ;;  %5953 = sbr.rel (%p6252_p2) target bundleno = 2458 (0x99a), region = 146 }
 0x6d1   : > { %v8449_v58 = vpop.eup %8448  ;;  %3191 = vst [vmem:[#allocation5 + $0xa0] sm:$0xff] %v3175_v16  ;;  %v3177_v57 = vmul.f32 %v9938_v2, %v8447_v53  ;;  %v13148_v2 = vmov 0.0  }
 0x6d2   : > { %v8451_v63 = vpop.eup %8450  ;;  %3192 = vst [vmem:[#allocation5 + $0xb0] sm:$0xff] %v3176_v19  ;;  %v3178_v54 = vmul.f32 %v9934_v59, %v8449_v58  ;;  %v13152_v59 = vmov 0.0  }
 0x6d3   : > { %v8453_v36 = vpop.eup %8452  ;;  %3193 = vst [vmem:[#allocation5 + $0xc0] sm:$0xff] %v3177_v57  ;;  %v3179_v23 = vmul.f32 %v9930_v13, %v8451_v63  ;;  %v13156_v13 = vmov 0.0  }
 0x6d4   : > { %3194 = vst [vmem:[#allocation5 + $0xd0] sm:$0xff] %v3178_v54  ;;  %v3180_v52 = vmul.f32 %v9926_v42, %v8453_v36  ;;  %v13160_v42 = vmov 0.0  }
 0x6d5   : > { %3195 = vst [vmem:[#allocation5 + $0xe0] sm:$0xff] %v3179_v23 }
 0x6d6   : > { %3196 = vst [vmem:[#allocation5 + $0xf0] sm:$0xff] %v3180_v52 }
 0x6d7   : > { %v13208_v27 = vmov 0.0   ;;  %v13210_v34 = vmov 0.0   ;;  %v13212_v49 = vmov 0.0   ;;  %v13214_v40 = vmov 0.0   ;;  %s13304_s7 = smov 0  }
 0x6d8   : > { %v13216_v21 = vmov 0.0   ;;  %v13218_v61 = vmov 0.0   ;;  %v13220_v48 = vmov 0.0   ;;  %v13222_v41 = vmov 0.0  }
 0x6d9   : > { %15405 = vst [vmem:[#allocation128_spill] sm:$0xff] %v13222_v41  ;;  %v13224_v31 = vmov 0.0   ;;  %v13226_v44 = vmov 0.0   ;;  %v13228_v12 = vmov 0.0   ;;  %v13230_v15 = vmov 0.0  }
 0x6da   : > { %v13232_v38 = vmov 0.0   ;;  %v13234_v35 = vmov 0.0   ;;  %v13236_v16 = vmov 0.0   ;;  %v13238_v53 = vmov 0.0  }
 0x6db   : > { %v13240_v19 = vmov 0.0   ;;  %v13242_v58 = vmov 0.0   ;;  %v13244_v57 = vmov 0.0   ;;  %v13246_v63 = vmov 0.0  }
 0x6dc   : > { %v13248_v54 = vmov 0.0   ;;  %v13250_v36 = vmov 0.0   ;;  %v13252_v23 = vmov 0.0   ;;  %v13254_v52 = vmov 0.0  }
 0x6dd   : > { %v13256_v8 = vmov 0.0   ;;  %v13258_v29 = vmov 0.0   ;;  %v13260_v11 = vmov 0.0   ;;  %v13262_v2 = vmov 0.0  }
 0x6de   : > { %v13264_v39 = vmov 0.0   ;;  %v13266_v59 = vmov 0.0   ;;  %v13268_v33 = vmov 0.0   ;;  %v13270_v13 = vmov 0.0  }
 0x6df   : > { %v13272_v10 = vmov -1e+30   ;;  %v13274_v42 = vmov -1e+30   ;;  %v13276_v37 = vmov -1e+30  }
 0x6e0   : > { %v13278_v20 = vmov -1e+30   ;;  %v13280_v9 = vmov -1e+30   ;;  %v13282_v28 = vmov -1e+30  }
 0x6e1   : > { %v13284_v60 = vmov -1e+30   ;;  %v13286_v17 = vmov -1e+30   ;;  %v13288_v56 = vmov -1e+30  }
 0x6e2   : > { %v13290_v18 = vmov -1e+30   ;;  %v13292_v7 = vmov -1e+30   ;;  %v13294_v46 = vmov -1e+30  }
 0x6e3   : > { %v13296_v14 = vmov -1e+30   ;;  %v13298_v62 = vmov -1e+30   ;;  %v13300_v0 = vmov -1e+30  }
 0x6e4   : > { %v13302_v24 = vmov -1e+30  }
 0x6e5 LB: >> { %15407 = vst [vmem:[#allocation129_spill] sm:$0xff] %v10054_v27  ;;  %15408 = vst [vmem:[#allocation130_spill] sm:$0xff] %v10058_v34  ;;  %v15414_v41 = vld [vmem:[#allocation128_spill] sm:$0xff]  ;;  %s13455_s1 = sshll.u32 %s10246_s7, 7  ;;  %v15425_v6 = vld [vmem:[#allocation58_spill] sm:$0xff]  ;;  %s3208_s23 = sadd.s32 1, %s10246_s7   ;;  %s10246_s7 = sphi %s13304_s7, %s15588_s7   ;;  %v10242_v24 = vphi %v13302_v24, %v15587_v24   ;;  %v10238_v0 = vphi %v13300_v0, %v15586_v0   ;;  %v10234_v62 = vphi %v13298_v62, %v15585_v62   ;;  %v10230_v14 = vphi %v13296_v14, %v15584_v14   ;;  %v10226_v46 = vphi %v13294_v46, %v15583_v46   ;;  %v10222_v7 = vphi %v13292_v7, %v15582_v7   ;;  %v10218_v18 = vphi %v13290_v18, %v15581_v18   ;;  %v10214_v56 = vphi %v13288_v56, %v15580_v56   ;;  %v10210_v17 = vphi %v13286_v17, %v15579_v17   ;;  %v10206_v60 = vphi %v13284_v60, %v15578_v60   ;;  %v10202_v28 = vphi %v13282_v28, %v15577_v28   ;;  %v10198_v9 = vphi %v13280_v9, %v15576_v9   ;;  %v10194_v20 = vphi %v13278_v20, %v15575_v20   ;;  %v10190_v37 = vphi %v13276_v37, %v15574_v37   ;;  %v10186_v42 = vphi %v13274_v42, %v15573_v42   ;;  %v10182_v10 = vphi %v13272_v10, %v15572_v10   ;;  %v10178_v13 = vphi %v13270_v13, %v15571_v13   ;;  %v10174_v33 = vphi %v13268_v33, %v15570_v33   ;;  %v10170_v59 = vphi %v13266_v59, %v15569_v59   ;;  %v10166_v39 = vphi %v13264_v39, %v15568_v39   ;;  %v10162_v2 = vphi %v13262_v2, %v15567_v2   ;;  %v10158_v11 = vphi %v13260_v11, %v15566_v11   ;;  %v10154_v29 = vphi %v13258_v29, %v15565_v29   ;;  %v10150_v8 = vphi %v13256_v8, %v15564_v8   ;;  %v10146_v52 = vphi %v13254_v52, %v15563_v52   ;;  %v10142_v23 = vphi %v13252_v23, %v15562_v23   ;;  %v10138_v36 = vphi %v13250_v36, %v15561_v36   ;;  %v10134_v54 = vphi %v13248_v54, %v15560_v54   ;;  %v10130_v63 = vphi %v13246_v63, %v15559_v63   ;;  %v10126_v57 = vphi %v13244_v57, %v15558_v57   ;;  %v10122_v58 = vphi %v13242_v58, %v15557_v58   ;;  %v10118_v19 = vphi %v13240_v19, %v15556_v19   ;;  %v10114_v53 = vphi %v13238_v53, %v15555_v53   ;;  %v10110_v16 = vphi %v13236_v16, %v15554_v16   ;;  %v10106_v35 = vphi %v13234_v35, %v15553_v35   ;;  %v10102_v38 = vphi %v13232_v38, %v15552_v38   ;;  %v10098_v15 = vphi %v13230_v15, %v15551_v15   ;;  %v10094_v12 = vphi %v13228_v12, %v15550_v12   ;;  %v10090_v44 = vphi %v13226_v44, %v15549_v44   ;;  %v10086_v31 = vphi %v13224_v31, %v15548_v31   ;;  %v10078_v48 = vphi %v13220_v48, %v15546_v48   ;;  %v10074_v61 = vphi %v13218_v61, %v15545_v61   ;;  %v10070_v21 = vphi %v13216_v21, %v15544_v21   ;;  %v10066_v40 = vphi %v13214_v40, %v15543_v40   ;;  %v10062_v49 = vphi %v13212_v49, %v15542_v49   ;;  %v10058_v34 = vphi %v13210_v34, %v15541_v34   ;;  %v10054_v27 = vphi %v13208_v27, %v15540_v27  }
 0x6e6   : >> { %15409 = vst [vmem:[#allocation131_spill] sm:$0xff] %v10062_v49  ;;  %15410 = vst [vmem:[#allocation132_spill] sm:$0xff] %v10066_v40  ;;  %v15424_v55 = vld [vmem:[#allocation57_spill] sm:$0xff]  ;;  %s3264_s6 = scalar_lea.vmem [#allocation3], %s13455_s1  ;;  %v15426_v26 = vld [vmem:[#allocation59_spill] sm:$0xff]  ;;  %s13466_s26 = scalar_lea.vmem [#allocation4], %s13455_s1 }
 0x6e7   : >> { %15411 = vst [vmem:[#allocation133_spill] sm:$0xff] %v10070_v21  ;;  %15412 = vst [vmem:[#allocation134_spill] sm:$0xff] %v10074_v61  ;;  %6551 = vmatprep.mubr.bf16.mxu0 %v15424_v55  ;;  %v3265_v4 = vld [vmem:[%s3264_s6 + $0x8] sm:$0xff]  ;;  %v3266_v50 = vld [vmem:[%s3264_s6 + $0x18] sm:$0xff]  ;;  %p13852_p9 = scmp.ge.s32.totalorder %s3208_s23, %s12021_s2  ;;  %s15588_s7 = smov %s3208_s23 }
 0x6e8   : >> { %15413 = vst [vmem:[#allocation135_spill] sm:$0xff] %v10078_v48  ;;  %15415 = vst [vmem:[#allocation128_spill] sm:$0xff] %v15414_v41  ;;  %6535 = vmatprep.subr.bf16.mxu0 %v3265_v4  ;;  %v3267_v45 = vld [vmem:[%s3264_s6 + $0x28] sm:$0xff]  ;;  %v3268_v51 = vld [vmem:[%s3264_s6 + $0x38] sm:$0xff] }
 0x6e9   : >> { %15416 = vst [vmem:[#allocation136_spill] sm:$0xff] %v10086_v31  ;;  %15417 = vst [vmem:[#allocation137_spill] sm:$0xff] %v10090_v44  ;;  %6536 = vmatpush3.bf16.xpose.msra.mxu0 %v3265_v4  ;;  %v3269_v43 = vld [vmem:[%s3264_s6 + $0x48] sm:$0xff]  ;;  %v3270_v3 = vld [vmem:[%s3264_s6 + $0x58] sm:$0xff] }
 0x6ea   : >> { %15418 = vst [vmem:[#allocation138_spill] sm:$0xff] %v10094_v12  ;;  %15419 = vst [vmem:[#allocation139_spill] sm:$0xff] %v10098_v15  ;;  %6537 = vmatprep.subr.bf16.mxu0 %v3266_v50  ;;  %v3271_v32 = vld [vmem:[%s3264_s6 + $0x68] sm:$0xff]  ;;  %v3272_v22 = vld [vmem:[%s3264_s6 + $0x78] sm:$0xff] }
 0x6eb   : >> { %15420 = vst [vmem:[#allocation140_spill] sm:$0xff] %v10102_v38  ;;  %15421 = vst [vmem:[#allocation141_spill] sm:$0xff] %v10110_v16  ;;  %v15427_v25 = vld [vmem:[#allocation62_spill] sm:$0xff]  ;;  %v15428_v47 = vld [vmem:[#allocation63_spill] sm:$0xff] }
 0x6ec   : >> { %15422 = vst [vmem:[#allocation142_spill] sm:$0xff] %v10114_v53  ;;  %15423 = vst [vmem:[#allocation143_spill] sm:$0xff] %v10190_v37  ;;  %v15429_v30 = vld [vmem:[#allocation64_spill] sm:$0xff]  ;;  %v15430_v5 = vld [vmem:[#allocation65_spill] sm:$0xff] }
 0x6ed   : >> { %v15431_v1 = vld [vmem:[#allocation66_spill] sm:$0xff]  ;;  %v3275_v4 = vld [vmem:[%s13466_s26 + $0x8] sm:$0xff]  ;;  %v15443_v40 = vld [vmem:[#allocation77_spill] sm:$0xff] }
 0x6ee   : >> { %6567 = vmatprep.subr.bf16.mxu1 %v3275_v4  ;;  %v15445_v34 = vld [vmem:[#allocation79_spill] sm:$0xff]  ;;  %v15448_v41 = vld [vmem:[#allocation81_spill] sm:$0xff] }
 0x6ef   : >> { %6568 = vmatpush3.bf16.msra.mxu1 %v3275_v4  ;;  %v3279_v21 = vld [vmem:[%s13466_s26 + $0x48] sm:$0xff] }
 0x6f1   : >> { %6538 = vmatpush3.bf16.xpose.msra.mxu0 %v3266_v50  ;;  %v3276_v50 = vld [vmem:[%s13466_s26 + $0x18] sm:$0xff] }
 0x6f2   : >> { %6539 = vmatprep.subr.bf16.mxu0 %v3267_v45  ;;  %6569 = vmatprep.subr.bf16.mxu1 %v3276_v50 }
 0x6f3   : >> { %6570 = vmatpush3.bf16.msra.mxu1 %v3276_v50  ;;  %v15435_v50 = vld [vmem:[#allocation70_spill] sm:$0xff] }
 0x6f9   : >> { %6540 = vmatpush3.bf16.xpose.msra.mxu0 %v3267_v45  ;;  %v3380_v45 = vstv %s13455_s1 }
 0x6fa   : >> { %6541 = vmatprep.subr.bf16.mxu0 %v3268_v51 }
 0x701   : >> { %6542 = vmatpush3.bf16.xpose.msra.mxu0 %v3268_v51  ;;  %v15432_v51 = vld [vmem:[#allocation61_spill] sm:$0xff] }
 0x702   : >> { %6543 = vmatprep.subr.bf16.mxu0 %v3269_v43 }
 0x709   : >> { %6544 = vmatpush3.bf16.xpose.msra.mxu0 %v3269_v43  ;;  %v13472_v43 = vadd.s32 %v3380_v45, %v15432_v51  ;;  %v15436_v51 = vld [vmem:[#allocation68_spill] sm:$0xff] }
 0x70a   : >> { %6545 = vmatprep.subr.bf16.mxu0 %v3270_v3 }
 0x70b   : >> { %vm3385_vm2 = vcmp.le.s32.totalorder %v13472_v43, %v15435_v50  ;;  %vm3383_vm3 = vcmp.le.s32.totalorder %v13472_v43, %v15436_v51  ;;  %v15438_v50 = vld [vmem:[#allocation72_spill] sm:$0xff]  ;;  %v15439_v51 = vld [vmem:[#allocation73_spill] sm:$0xff]  ;;  %vm3392_vm10 = vcmp.le.s32.totalorder %v13472_v43, %v15443_v40  ;;  %vm3394_vm12 = vcmp.le.s32.totalorder %v13472_v43, %v15445_v34 }
 0x70c   : >> { %vm3387_vm5 = vcmp.le.s32.totalorder %v13472_v43, %v15438_v50  ;;  %vm3388_vm6 = vcmp.le.s32.totalorder %v13472_v43, %v15439_v51  ;;  %v15442_v51 = vld [vmem:[#allocation76_spill] sm:$0xff]  ;;  %vm3396_vm14 = vcmp.le.s32.totalorder %v13472_v43, %v15448_v41  ;;  %v3281_v41 = vld [vmem:[%s13466_s26 + $0x68] sm:$0xff] }
 0x70d   : >> { %vm3391_vm9 = vcmp.le.s32.totalorder %v13472_v43, %v15442_v51 }
 0x711   : >> { %6546 = vmatpush3.bf16.xpose.msra.mxu0 %v3270_v3  ;;  %v15433_v3 = vld [vmem:[#allocation69_spill] sm:$0xff] }
 0x712   : >> { %6547 = vmatprep.subr.bf16.mxu0 %v3271_v32  ;;  %vm3384_vm0 = vcmp.le.s32.totalorder %v13472_v43, %v15433_v3 }
 0x719   : >> { %6548 = vmatpush3.bf16.xpose.msra.mxu0 %v3271_v32  ;;  %v15434_v32 = vld [vmem:[#allocation67_spill] sm:$0xff] }
 0x71a   : >> { %6549 = vmatprep.subr.bf16.mxu0 %v3272_v22  ;;  %vm3382_vm1 = vcmp.le.s32.totalorder %v13472_v43, %v15434_v32 }
 0x721   : >> { %6550 = vmatpush3.bf16.xpose.msra.mxu0 %v3272_v22 }
 0x728   : >> { %6552 = vmatmul.mubr.bf16.vlgmr.msra.gmra.mrb[0].mxu0 %v15425_v6 }
 0x729   : >> { %6555 = vmatprep.mubr.bf16.mxu0 %v15426_v26 }
 0x730   : >> { %6556 = vmatmul.mubr.bf16.gmra.mrb[4].mxu0 %v15427_v25 }
 0x731   : >> { %6559 = vmatprep.mubr.bf16.mxu0 %v15428_v47 }
 0x738   : >> { %6560 = vmatmul.mubr.bf16.gmra.mrb[8].mxu0 %v15429_v30 }
 0x739   : >> { %6563 = vmatprep.mubr.bf16.mxu0 %v15430_v5 }
 0x740   : >> { %6564 = vmatmul.mubr.bf16.gmra.mrb[12].mxu0 %v15431_v1 }
 0x7fb   : >> { %v6553_v22 = vpop.f32.mrb[0].mxu0 }
 0x7fc   : >> { %v3317_v1 = vpop.f32.mrb[1].mxu0  ;;  %v13478_v5 = vsel %vm3384_vm0, %v6553_v22, -1e+30  ;;  %v15437_v22 = vld [vmem:[#allocation71_spill] sm:$0xff] }
 0x7fd   : >> { %3418 = vmax.xlane.f32.xlu1 %v13478_v5  ;;  %v6554_v6 = vpop.f32.mrb[2].mxu0  ;;  %v13481_v4 = vsel %vm3382_vm1, %v3317_v1, -1e+30  ;;  %vm3386_vm4 = vcmp.le.s32.totalorder %v13472_v43, %v15437_v22  ;;  %v15440_v22 = vld [vmem:[#allocation74_spill] sm:$0xff] }
 0x7fe   : >> { %3414 = vmax.xlane.f32.xlu0 %v13481_v4  ;;  %v3320_v45 = vpop.f32.mrb[3].mxu0  ;;  %v13488_v3 = vsel %vm3385_vm2, %v6554_v6, -1e+30  ;;  %vm3389_vm7 = vcmp.le.s32.totalorder %v13472_v43, %v15440_v22 }
 0x7ff   : >> { %v13491_v32 = vsel %vm3383_vm3, %v3320_v45, -1e+30 }
 0x801   : >> { %3420 = vmax.xlane.f32.xlu1 %v13488_v3 }
 0x802   : >> { %3416 = vmax.xlane.f32.xlu0 %v13491_v32 }
 0x803   : >> { %v6557_v1 = vpop.f32.mrb[4].mxu0 }
 0x804   : >> { %v3333_v25 = vpop.f32.mrb[5].mxu0  ;;  %v13508_v47 = vsel %vm3388_vm6, %v6557_v1, -1e+30  ;;  %v3277_v1 = vld [vmem:[%s13466_s26 + $0x28] sm:$0xff] }
 0x805   : >> { %v6558_v26 = vpop.f32.mrb[6].mxu0  ;;  %v13498_v30 = vsel %vm3386_vm4, %v3333_v25, -1e+30  ;;  %v15441_v25 = vld [vmem:[#allocation75_spill] sm:$0xff]  ;;  %6571 = vmatprep.subr.bf16.mxu1 %v3277_v1 }
 0x806   : >> { %3422 = vmax.xlane.f32.xlu0 %v13498_v30  ;;  %v3336_v6 = vpop.f32.mrb[7].mxu0  ;;  %vm3390_vm8 = vcmp.le.s32.totalorder %v13472_v43, %v15441_v25  ;;  %v13513_v55 = vsel %vm3389_vm7, %v6558_v26, -1e+30  ;;  %6572 = vmatpush3.bf16.msra.mxu1 %v3277_v1  ;;  %v15444_v25 = vld [vmem:[#allocation78_spill] sm:$0xff] }
 0x807   : >> { %v13503_v45 = vsel %vm3387_vm5, %v3336_v6, -1e+30  ;;  %vm3393_vm11 = vcmp.le.s32.totalorder %v13472_v43, %v15444_v25 }
 0x808   : >> { %3424 = vmax.xlane.f32.xlu1 %v13503_v45 }
 0x80a   : >> { %3426 = vmax.xlane.f32.xlu0 %v13508_v47 }
 0x80b   : >> { %v6561_v50 = vpop.f32.mrb[8].mxu0 }
 0x80c   : >> { %3428 = vmax.xlane.f32.xlu1 %v13513_v55  ;;  %v3349_v6 = vpop.f32.mrb[9].mxu0  ;;  %v13529_v51 = vsel %vm3392_vm10, %v6561_v50, -1e+30 }
 0x80d   : >> { %v6562_v49 = vpop.f32.mrb[10].mxu0  ;;  %v13518_v27 = vsel %vm3390_vm8, %v3349_v6, -1e+30  ;;  %v3278_v6 = vld [vmem:[%s13466_s26 + $0x38] sm:$0xff] }
 0x80e   : >> { %3430 = vmax.xlane.f32.xlu0 %v13518_v27  ;;  %v3352_v22 = vpop.f32.mrb[11].mxu0  ;;  %6573 = vmatprep.subr.bf16.mxu1 %v3278_v6  ;;  %v13535_v48 = vsel %vm3393_vm11, %v6562_v49, -1e+30 }
 0x80f   : >> { %v13524_v26 = vsel %vm3391_vm9, %v3352_v22, -1e+30  ;;  %6574 = vmatpush3.bf16.msra.mxu1 %v3278_v6  ;;  %v15446_v22 = vld [vmem:[#allocation80_spill] sm:$0xff]  ;;  %v15449_v6 = vld [vmem:[#allocation82_spill] sm:$0xff] }
 0x810   : >> { %3432 = vmax.xlane.f32.xlu1 %v13524_v26  ;;  %vm3395_vm13 = vcmp.le.s32.totalorder %v13472_v43, %v15446_v22  ;;  %6575 = vmatprep.subr.bf16.mxu1 %v3279_v21  ;;  %vm3397_vm15 = vcmp.le.s32.totalorder %v13472_v43, %v15449_v6  ;;  %v3280_v22 = vld [vmem:[%s13466_s26 + $0x58] sm:$0xff] }
 0x812   : >> { %3434 = vmax.xlane.f32.xlu0 %v13529_v51 }
 0x813   : >> { %v6565_v40 = vpop.f32.mrb[12].mxu0  ;;  %6576 = vmatpush3.bf16.msra.mxu1 %v3279_v21  ;;  %v3282_v21 = vld [vmem:[%s13466_s26 + $0x78] sm:$0xff] }
 0x814   : >> { %3436 = vmax.xlane.f32.xlu1 %v13535_v48  ;;  %v3365_v1 = vpop.f32.mrb[13].mxu0  ;;  %6577 = vmatprep.subr.bf16.mxu1 %v3280_v22 }
 0x815   : >> { %v6566_v50 = vpop.f32.mrb[14].mxu0  ;;  %v13540_v25 = vsel %vm3394_vm12, %v3365_v1, -1e+30  ;;  %v13551_v1 = vsel %vm3396_vm14, %v6565_v40, -1e+30 }
 0x816   : >> { %15447 = vst [vmem:[#allocation144_spill] sm:$0xff] %v13540_v25  ;;  %3438 = vmax.xlane.f32.xlu0 %v13540_v25  ;;  %v3368_v34 = vpop.f32.mrb[15].mxu0  ;;  %15450 = vst [vmem:[#allocation145_spill] sm:$0xff] %v13551_v1  ;;  %v13555_v61 = vsel %vm3397_vm15, %v6566_v50, -1e+30 }
 0x817   : >> { %v13546_v49 = vsel %vm3395_vm13, %v3368_v34, -1e+30  ;;  %6578 = vmatpush3.bf16.msra.mxu1 %v3280_v22 }
 0x818   : >> { %3440 = vmax.xlane.f32.xlu1 %v13546_v49  ;;  %6579 = vmatprep.subr.bf16.mxu1 %v3281_v41 }
 0x81a   : >> { %3442 = vmax.xlane.f32.xlu0 %v13551_v1 }
 0x81b   : >> { %6580 = vmatpush3.bf16.msra.mxu1 %v3281_v41 }
 0x81c   : >> { %3444 = vmax.xlane.f32.xlu1 %v13555_v61  ;;  %6581 = vmatprep.subr.bf16.mxu1 %v3282_v21 }
 0x81f   : >> { %6582 = vmatpush3.bf16.msra.mxu1 %v3282_v21 }
 0x88a   : >> { %v3419_v34 = vpop.xlane.xlu1 %3418 }
 0x88b   : >> { %v13561_v43 = vmax.f32 %v10234_v62, %v3419_v34   ;;  %v3415_v40 = vpop.xlane.xlu0 %3414 }
 0x88c   : >> { %v13564_v6 = vmax.f32 %v10242_v24, %v3415_v40  }
 0x88d   : >> { %15451 = vst [vmem:[#allocation146_spill] sm:$0xff] %v13561_v43  ;;  %v3512_v22 = vsub.f32 %v13478_v5, %v13561_v43 }
 0x88e   : >> { %15452 = vst [vmem:[#allocation147_spill] sm:$0xff] %v13564_v6  ;;  %v3510_v21 = vsub.f32 %v13481_v4, %v13564_v6  ;;  %v3421_v12 = vpop.xlane.xlu1 %3420 }
 0x88f   : >> { %v3530_v31 = vmul.f32 1.442695, %v3512_v22  ;;  %v13575_v34 = vmax.f32 %v10230_v14, %v3421_v12   ;;  %v3417_v15 = vpop.xlane.xlu0 %3416 }
 0x890   : >> { %v13578_v40 = vmax.f32 %v10238_v0, %v3417_v15   ;;  %v3526_v44 = vmul.f32 1.442695, %v3510_v21 }
 0x891   : >> { %15453 = vst [vmem:[#allocation148_spill] sm:$0xff] %v13575_v34  ;;  %v15454_v1 = vmov %v13575_v34  ;;  %8454 = vpow2.f32 %v3530_v31 }
 0x892   : >> { %15455 = vst [vmem:[#allocation149_spill] sm:$0xff] %v13578_v40  ;;  %v15456_v25 = vmov %v13578_v40  ;;  %v3513_v5 = vsub.f32 %v13488_v3, %v15454_v1  ;;  %8456 = vpow2.f32 %v3526_v44 }
 0x893   : >> { %v3511_v22 = vsub.f32 %v13491_v32, %v15456_v25  ;;  %v3423_v34 = vpop.xlane.xlu0 %3422 }
 0x894   : >> { %v3532_v12 = vmul.f32 1.442695, %v3513_v5  ;;  %v13589_v15 = vmax.f32 %v10226_v46, %v3423_v34  }
 0x895   : >> { %v3528_v41 = vmul.f32 1.442695, %v3511_v22  ;;  %v3425_v21 = vpop.xlane.xlu1 %3424 }
 0x896   : >> { %15457 = vst [vmem:[#allocation150_spill] sm:$0xff] %v13589_v15  ;;  %v15458_v6 = vmov %v13589_v15  ;;  %8458 = vpow2.f32 %v3532_v12  ;;  %v13596_v3 = vmax.f32 %v10222_v7, %v3425_v21  }
 0x897   : >> { %v3514_v31 = vsub.f32 %v13498_v30, %v15458_v6  ;;  %v3427_v4 = vpop.xlane.xlu0 %3426  ;;  %8460 = vpow2.f32 %v3528_v41 }
 0x898   : >> { %15459 = vst [vmem:[#allocation151_spill] sm:$0xff] %v13596_v3  ;;  %v3515_v5 = vsub.f32 %v13503_v45, %v13596_v3  ;;  %v13603_v44 = vmax.f32 %v10218_v18, %v3427_v4  }
 0x899   : >> { %v3429_v12 = vpop.xlane.xlu1 %3428  ;;  %v3534_v34 = vmul.f32 1.442695, %v3514_v31 }
 0x89a   : >> { %15460 = vst [vmem:[#allocation152_spill] sm:$0xff] %v13603_v44  ;;  %v15461_v22 = vmov %v13603_v44  ;;  %v13606_v15 = vmax.f32 %v10214_v56, %v3429_v12   ;;  %v3536_v30 = vmul.f32 1.442695, %v3515_v5 }
 0x89b   : >> { %v3516_v41 = vsub.f32 %v13508_v47, %v15461_v22  ;;  %v3431_v40 = vpop.xlane.xlu0 %3430  ;;  %v8455_v32 = vpop.eup %8454 }
 0x89c   : >> { %15462 = vst [vmem:[#allocation153_spill] sm:$0xff] %v13606_v15  ;;  %v15463_v50 = vmov %v13606_v15  ;;  %v13617_v31 = vmax.f32 %v10210_v17, %v3431_v40   ;;  %8462 = vpow2.f32 %v3536_v30  ;;  %3578 = vadd.xlane.f32.xlu0 %v8455_v32  ;;  %v8457_v21 = vpop.eup %8456 }
 0x89d   : >> { %v3517_v4 = vsub.f32 %v13513_v55, %v15463_v50  ;;  %v3538_v44 = vmul.f32 1.442695, %v3516_v41  ;;  %v3433_v5 = vpop.xlane.xlu1 %3432  ;;  %8464 = vpow2.f32 %v3534_v34 }
 0x89e   : >> { %15464 = vst [vmem:[#allocation154_spill] sm:$0xff] %v13617_v31  ;;  %v15465_v3 = vmov %v13617_v31  ;;  %v13624_v45 = vmax.f32 %v10206_v60, %v3433_v5  }
 0x89f   : >> { %v3540_v12 = vmul.f32 1.442695, %v3517_v4  ;;  %v3518_v15 = vsub.f32 %v13518_v27, %v15465_v3  ;;  %v3435_v55 = vpop.xlane.xlu0 %3434  ;;  %8466 = vpow2.f32 %v3538_v44 }
 0x8a0   : >> { %15466 = vst [vmem:[#allocation155_spill] sm:$0xff] %v13624_v45  ;;  %v8459_v16 = vpop.eup %8458  ;;  %v13627_v40 = vmax.f32 %v10202_v28, %v3435_v55   ;;  %v3519_v4 = vsub.f32 %v13524_v26, %v13624_v45  ;;  %3574 = vadd.xlane.f32.xlu0 %v8457_v21 }
 0x8a1   : >> { %v3542_v41 = vmul.f32 1.442695, %v3518_v15  ;;  %3580 = vadd.xlane.f32.xlu1 %v8459_v16  ;;  %v3437_v27 = vpop.xlane.xlu1 %3436  ;;  %v8461_v31 = vpop.eup %8460  ;;  %8468 = vpow2.f32 %v3540_v12  ;;  %v3639_v38 = vpack.c.bf16 %v8459_v16, %v8455_v32  ;;  %v15472_v32 = vld [vmem:[#allocation144_spill] sm:$0xff] }
 0x8a2   : >> { %15467 = vst [vmem:[#allocation156_spill] sm:$0xff] %v13627_v40  ;;  %v15468_v30 = vmov %v13627_v40  ;;  %v13638_v55 = vmax.f32 %v10198_v9, %v3437_v27   ;;  %v3544_v15 = vmul.f32 1.442695, %v3519_v4  ;;  %v3638_v34 = vpack.c.bf16 %v8461_v31, %v8457_v21 }
 0x8a3   : >> { %v3520_v44 = vsub.f32 %v13529_v51, %v15468_v30  ;;  %v3439_v40 = vpop.xlane.xlu0 %3438  ;;  %8470 = vpow2.f32 %v3542_v41 }
 0x8a4   : >> { %15469 = vst [vmem:[#allocation157_spill] sm:$0xff] %v13638_v55  ;;  %v3521_v12 = vsub.f32 %v13535_v48, %v13638_v55  ;;  %v13645_v5 = vmax.f32 %v10194_v20, %v3439_v40   ;;  %6583 = vmatprep.mubr.bf16.mxu1 %v3638_v34  ;;  %8472 = vpow2.f32 %v3544_v15 }
 0x8a5   : >> { %v3546_v47 = vmul.f32 1.442695, %v3520_v44  ;;  %3576 = vadd.xlane.f32.xlu1 %v8461_v31  ;;  %v3441_v51 = vpop.xlane.xlu1 %3440  ;;  %6584 = vmatmul.mubr.bf16.vlgmr.msra.gmra.mrb[0].mxu1 %v3639_v38 }
 0x8a6   : >> { %15470 = vst [vmem:[#allocation158_spill] sm:$0xff] %v13645_v5  ;;  %v13648_v4 = vmax.f32 %v10190_v37, %v3441_v51   ;;  %v8463_v21 = vpop.eup %8462  ;;  %v3548_v27 = vmul.f32 1.442695, %v3521_v12  ;;  %v3522_v41 = vsub.f32 %v15472_v32, %v13645_v5 }
 0x8a7   : >> { %v3443_v48 = vpop.xlane.xlu0 %3442  ;;  %v8465_v44 = vpop.eup %8464  ;;  %8474 = vpow2.f32 %v3546_v47  ;;  %v15475_v47 = vld [vmem:[#allocation145_spill] sm:$0xff] }
 0x8a8   : >> { %15471 = vst [vmem:[#allocation159_spill] sm:$0xff] %v13648_v4  ;;  %v3523_v38 = vsub.f32 %v13546_v49, %v13648_v4  ;;  %v13659_v31 = vmax.f32 %v10186_v42, %v3443_v48   ;;  %v3550_v15 = vmul.f32 1.442695, %v3522_v41  ;;  %v3640_v12 = vpack.c.bf16 %v8463_v21, %v8465_v44 }
 0x8a9   : >> { %v3445_v40 = vpop.xlane.xlu1 %3444  ;;  %v8467_v26 = vpop.eup %8466  ;;  %8476 = vpow2.f32 %v3548_v27 }
 0x8aa   : >> { %15473 = vst [vmem:[#allocation160_spill] sm:$0xff] %v13659_v31  ;;  %v15474_v51 = vmov %v13659_v31  ;;  %v3552_v16 = vmul.f32 1.442695, %v3523_v38  ;;  %v13666_v34 = vmax.f32 %v10182_v10, %v3445_v40   ;;  %6587 = vmatprep.mubr.bf16.mxu1 %v3640_v12  ;;  %3586 = vadd.xlane.f32.xlu0 %v8467_v26  ;;  %8478 = vpow2.f32 %v3550_v15 }
 0x8ab   : >> { %v3524_v53 = vsub.f32 %v15475_v47, %v15474_v51  ;;  %v8469_v49 = vpop.eup %8468 }
 0x8ac   : >> { %v15476_v37 = vmov %v13666_v34  ;;  %3588 = vadd.xlane.f32.xlu1 %v8469_v49  ;;  %8480 = vpow2.f32 %v3552_v16  ;;  %v3641_v38 = vpack.c.bf16 %v8469_v49, %v8467_v26 }
 0x8ad   : >> { %v3554_v48 = vmul.f32 1.442695, %v3524_v53  ;;  %v3525_v27 = vsub.f32 %v13555_v61, %v15476_v37  ;;  %v8471_v31 = vpop.eup %8470 }
 0x8ae   : >> { %3582 = vadd.xlane.f32.xlu0 %v8465_v44  ;;  %v8473_v47 = vpop.eup %8472  ;;  %6588 = vmatmul.mubr.bf16.gmra.mrb[4].mxu1 %v3641_v38 }
 0x8af   : >> { %v3556_v32 = vmul.f32 1.442695, %v3525_v27  ;;  %8482 = vpow2.f32 %v3554_v48  ;;  %v3642_v34 = vpack.c.bf16 %v8473_v47, %v8471_v31  ;;  %v15478_v48 = vld [vmem:[#allocation147_spill] sm:$0xff] }
 0x8b0   : >> { %3584 = vadd.xlane.f32.xlu1 %v8463_v21  ;;  %v15479_v27 = vsub.f32 %v10242_v24, %v15478_v48  ;;  %v15483_v24 = vsub.f32 %v10214_v56, %v15463_v50 }
 0x8b1   : >> { %v8475_v40 = vpop.eup %8474  ;;  %8484 = vpow2.f32 %v3556_v32  ;;  %6591 = vmatprep.mubr.bf16.mxu1 %v3642_v34  ;;  %v15477_v32 = vsub.f32 %v10234_v62, %v13561_v43  ;;  %v15481_v34 = vsub.f32 %v10238_v0, %v15456_v25  ;;  %v15482_v62 = vsub.f32 %v10218_v18, %v15461_v22  ;;  %v15486_v18 = vld [vmem:[#allocation151_spill] sm:$0xff] }
 0x8b2   : >> { %3594 = vadd.xlane.f32.xlu0 %v8475_v40  ;;  %v3478_v38 = vmul.f32 1.442695, %v15479_v27  ;;  %v15484_v0 = vsub.f32 %v10226_v46, %v15458_v6  ;;  %v15488_v46 = vsub.f32 %v10202_v28, %v15468_v30 }
 0x8b3   : >> { %v8477_v53 = vpop.eup %8476  ;;  %v3482_v49 = vmul.f32 1.442695, %v15477_v32 }
 0x8b4   : >> { %3596 = vadd.xlane.f32.xlu1 %v8477_v53  ;;  %v3643_v15 = vpack.c.bf16 %v8477_v53, %v8475_v40  ;;  %v8479_v12 = vpop.eup %8478  ;;  %v3480_v40 = vmul.f32 1.442695, %v15481_v34 }
 0x8b5   : >> { %8486 = vpow2.f32 %v3482_v49 }
 0x8b6   : >> { %3590 = vadd.xlane.f32.xlu0 %v8471_v31  ;;  %v8481_v61 = vpop.eup %8480  ;;  %6592 = vmatmul.mubr.bf16.gmra.mrb[8].mxu1 %v3643_v15  ;;  %v15480_v31 = vsub.f32 %v10230_v14, %v15454_v1  ;;  %8488 = vpow2.f32 %v3478_v38  ;;  %v3490_v15 = vmul.f32 1.442695, %v15482_v62  ;;  %v3498_v38 = vmul.f32 1.442695, %v15488_v46 }
 0x8b7   : >> { %v3644_v26 = vpack.c.bf16 %v8481_v61, %v8479_v12  ;;  %v15492_v62 = vsub.f32 %v10210_v17, %v15465_v3 }
 0x8b8   : >> { %3592 = vadd.xlane.f32.xlu1 %v8473_v47  ;;  %v3484_v47 = vmul.f32 1.442695, %v15480_v31 }
 0x8b9   : >> { %v8483_v16 = vpop.eup %8482  ;;  %6595 = vmatprep.mubr.bf16.mxu1 %v3644_v26 }
 0x8ba   : >> { %3598 = vadd.xlane.f32.xlu0 %v8479_v12  ;;  %8490 = vpow2.f32 %v3484_v47  ;;  %v3492_v12 = vmul.f32 1.442695, %v15483_v24 }
 0x8bb   : >> { %v8485_v44 = vpop.eup %8484  ;;  %8492 = vpow2.f32 %v3480_v40 }
 0x8bc   : >> { %3600 = vadd.xlane.f32.xlu1 %v8481_v61  ;;  %v3645_v21 = vpack.c.bf16 %v8485_v44, %v8483_v16  ;;  %8494 = vpow2.f32 %v3490_v15  ;;  %v3494_v15 = vmul.f32 1.442695, %v15492_v62 }
 0x8bd   : >> { %8496 = vpow2.f32 %v3492_v12  ;;  %v15495_v12 = vsub.f32 %v10194_v20, %v13645_v5  ;;  %v15499_v20 = vsub.f32 %v10186_v42, %v15474_v51 }
 0x8be   : >> { %3602 = vadd.xlane.f32.xlu0 %v8483_v16  ;;  %6596 = vmatmul.mubr.bf16.gmra.mrb[12].mxu1 %v3645_v21  ;;  %v3486_v16 = vmul.f32 1.442695, %v15484_v0  ;;  %v15487_v21 = vsub.f32 %v10222_v7, %v15486_v18  ;;  %v15491_v7 = vsub.f32 %v10198_v9, %v13638_v55 }
 0x8bf   : >> { %v13684_v53 = vpop.eup %8486 }
 0x8c0   : >> { %3604 = vadd.xlane.f32.xlu1 %v8485_v44  ;;  %v13692_v61 = vpop.eup %8488  ;;  %v3560_v14 = vmul.f32 %v10170_v59, %v13684_v53  ;;  %v3488_v56 = vmul.f32 1.442695, %v15487_v21  ;;  %8498 = vpow2.f32 %v3486_v16  ;;  %v3500_v34 = vmul.f32 1.442695, %v15491_v7 }
 0x8c1   : >> { %v3558_v49 = vmul.f32 %v10178_v13, %v13692_v61 }
 0x8c2   : >> { %8500 = vpow2.f32 %v3488_v56  ;;  %v3506_v56 = vmul.f32 1.442695, %v15499_v20  ;;  %v15512_v20 = vld [vmem:[#allocation142_spill] sm:$0xff] }
 0x8c3   : >> { %8502 = vpow2.f32 %v3498_v38 }
 0x8c4   : >> { %v13696_v26 = vpop.eup %8490  ;;  %8504 = vpow2.f32 %v3500_v34 }
 0x8c5   : >> { %v3561_v48 = vmul.f32 %v10166_v39, %v13696_v26  ;;  %v13710_v27 = vpop.eup %8492  ;;  %8506 = vpow2.f32 %v3494_v15 }
 0x8c6   : >> { %v3559_v40 = vmul.f32 %v10174_v33, %v13710_v27  ;;  %v13729_v24 = vpop.eup %8494 }
 0x8c7   : >> { %v13734_v9 = vpop.eup %8496  ;;  %v3564_v17 = vmul.f32 %v10154_v29, %v13729_v24 }
 0x8c8   : >> { %v3565_v18 = vmul.f32 %v10150_v8, %v13734_v9 }
 0x8ca   : >> { %v13741_v0 = vpop.eup %8498 }
 0x8cc   : >> { %v13750_v21 = vpop.eup %8500 }
 0x8cd   : >> { %v13759_v46 = vpop.eup %8502  ;;  %v3563_v42 = vmul.f32 %v10158_v11, %v13750_v21 }
 0x8ce   : >> { %v3568_v7 = vmul.f32 %v10138_v36, %v13759_v46 }
 0x929   : >> { %v3579_v44 = vpop.xlane.xlu0 %3578 }
 0x92a   : >> { %v13701_v59 = vadd.f32 %v3579_v44, %v3560_v14   ;;  %v3502_v14 = vmul.f32 1.442695, %v15495_v12 }
 0x92c   : >> { %15485 = vst [vmem:[#allocation161_spill] sm:$0xff] %v13701_v59 }
 0x92d   : >> { %v3575_v31 = vpop.xlane.xlu0 %3574 }
 0x92e   : >> { %v3581_v59 = vpop.xlane.xlu1 %3580  ;;  %v13715_v13 = vadd.f32 %v3575_v31, %v3558_v49  }
 0x92f   : >> { %v13717_v39 = vadd.f32 %v3581_v59, %v3561_v48   ;;  %v3562_v48 = vmul.f32 %v10162_v2, %v13741_v0  ;;  %v13768_v59 = vpop.eup %8504 }
 0x930   : >> { %15489 = vst [vmem:[#allocation162_spill] sm:$0xff] %v13715_v13  ;;  %v8507_v34 = vpop.eup %8506 }
 0x931   : >> { %15490 = vst [vmem:[#allocation163_spill] sm:$0xff] %v13717_v39  ;;  %v15494_v39 = vsub.f32 %v10206_v60, %v13624_v45  ;;  %v3566_v15 = vmul.f32 %v10146_v52, %v8507_v34 }
 0x932   : >> { %v3577_v28 = vpop.xlane.xlu1 %3576 }
 0x933   : >> { %v13727_v33 = vadd.f32 %v3577_v28, %v3559_v40   ;;  %v3496_v13 = vmul.f32 1.442695, %v15494_v39 }
 0x935   : >> { %15493 = vst [vmem:[#allocation164_spill] sm:$0xff] %v13727_v33  ;;  %8508 = vpow2.f32 %v3496_v13  ;;  %v15496_v33 = vld [vmem:[#allocation143_spill] sm:$0xff] }
 0x936   : >> { %v15497_v16 = vsub.f32 %v15496_v33, %v13648_v4  ;;  %8510 = vpow2.f32 %v3502_v14 }
 0x937   : >> { %v3587_v60 = vpop.xlane.xlu0 %3586 }
 0x938   : >> { %v3504_v44 = vmul.f32 1.442695, %v15497_v16  ;;  %v13746_v29 = vadd.f32 %v3587_v60, %v3564_v17  }
 0x939   : >> { %v3589_v49 = vpop.xlane.xlu1 %3588 }
 0x93a   : >> { %15498 = vst [vmem:[#allocation165_spill] sm:$0xff] %v13746_v29  ;;  %v13755_v8 = vadd.f32 %v3589_v49, %v3565_v18   ;;  %8512 = vpow2.f32 %v3504_v44  ;;  %v15501_v29 = vsub.f32 %v10182_v10, %v15476_v37  ;;  %v3624_v18 = vmul.f32 %v10106_v35, %v13684_v53  ;;  %v15514_v49 = vld [vmem:[#allocation140_spill] sm:$0xff] }
 0x93b   : >> { %v3583_v31 = vpop.xlane.xlu0 %3582  ;;  %8514 = vpow2.f32 %v3506_v56  ;;  %v3622_v56 = vmul.f32 %v15512_v20, %v13692_v61 }
 0x93c   : >> { %15500 = vst [vmem:[#allocation166_spill] sm:$0xff] %v13755_v8  ;;  %v3508_v38 = vmul.f32 1.442695, %v15501_v29  ;;  %v13764_v2 = vadd.f32 %v3583_v31, %v3562_v48   ;;  %v3625_v48 = vmul.f32 %v15514_v49, %v13696_v26  ;;  %v15516_v29 = vld [vmem:[#allocation141_spill] sm:$0xff]  ;;  %v15538_v49 = vld [vmem:[#allocation131_spill] sm:$0xff] }
 0x93d   : >> { %v3585_v8 = vpop.xlane.xlu1 %3584 }
 0x93e   : >> { %15502 = vst [vmem:[#allocation167_spill] sm:$0xff] %v13764_v2  ;;  %v13770_v11 = vadd.f32 %v3585_v8, %v3563_v42   ;;  %8516 = vpow2.f32 %v3508_v38  ;;  %v3569_v2 = vmul.f32 %v10134_v54, %v13768_v59  ;;  %v3623_v38 = vmul.f32 %v15516_v29, %v13710_v27  ;;  %v15519_v42 = vld [vmem:[#allocation137_spill] sm:$0xff] }
 0x93f   : >> { %v3595_v40 = vpop.xlane.xlu0 %3594  ;;  %v8509_v10 = vpop.eup %8508  ;;  %v3628_v61 = vmul.f32 %v15519_v42, %v13729_v24  ;;  %v15527_v24 = vld [vmem:[#allocation134_spill] sm:$0xff]  ;;  %v15573_v42 = vld [vmem:[#allocation160_spill] sm:$0xff] }
 0x940   : >> { %15503 = vst [vmem:[#allocation168_spill] sm:$0xff] %v13770_v11  ;;  %v13774_v36 = vadd.f32 %v3595_v40, %v3568_v7   ;;  %v8511_v28 = vpop.eup %8510  ;;  %v3567_v11 = vmul.f32 %v10142_v23, %v8509_v10 }
 0x941   : >> { %v3597_v62 = vpop.xlane.xlu1 %3596  ;;  %v15565_v29 = vld [vmem:[#allocation165_spill] sm:$0xff] }
 0x942   : >> { %15504 = vst [vmem:[#allocation169_spill] sm:$0xff] %v13774_v36  ;;  %v13778_v54 = vadd.f32 %v3597_v62, %v3569_v2   ;;  %v3570_v36 = vmul.f32 %v10130_v63, %v8511_v28  ;;  %v15524_v62 = vld [vmem:[#allocation138_spill] sm:$0xff] }
 0x943   : >> { %v3591_v39 = vpop.xlane.xlu0 %3590 }
 0x944   : >> { %15505 = vst [vmem:[#allocation170_spill] sm:$0xff] %v13778_v54  ;;  %v13781_v52 = vadd.f32 %v3591_v39, %v3566_v15   ;;  %v8513_v13 = vpop.eup %8512  ;;  %v3627_v39 = vmul.f32 %v15524_v62, %v13750_v21  ;;  %v15585_v62 = vld [vmem:[#allocation146_spill] sm:$0xff] }
 0x945   : >> { %v3593_v12 = vpop.xlane.xlu1 %3592  ;;  %v8515_v14 = vpop.eup %8514  ;;  %v3571_v54 = vmul.f32 %v10126_v57, %v8513_v13 }
 0x946   : >> { %15506 = vst [vmem:[#allocation171_spill] sm:$0xff] %v13781_v52  ;;  %v13784_v23 = vadd.f32 %v3593_v12, %v3567_v11   ;;  %v3572_v52 = vmul.f32 %v10122_v58, %v8515_v14 }
 0x947   : >> { %v3599_v17 = vpop.xlane.xlu0 %3598 }
 0x948   : >> { %15507 = vst [vmem:[#allocation172_spill] sm:$0xff] %v13784_v23  ;;  %v13787_v63 = vadd.f32 %v3599_v17, %v3570_v36   ;;  %v8517_v33 = vpop.eup %8516  ;;  %v15528_v17 = vld [vmem:[#allocation128_spill] sm:$0xff] }
 0x949   : >> { %v3601_v16 = vpop.xlane.xlu1 %3600  ;;  %v3573_v60 = vmul.f32 %v10118_v19, %v8517_v33  ;;  %v15610_v62 = vld [vmem:[#allocation169_spill] sm:$0xff] (%p13852_p9) }
 0x94a   : >> { %15508 = vst [vmem:[#allocation173_spill] sm:$0xff] %v13787_v63  ;;  %v13790_v57 = vadd.f32 %v3601_v16, %v3571_v54   ;;  %v3630_v54 = vmul.f32 %v15528_v17, %v8507_v34  ;;  %v15536_v34 = vld [vmem:[#allocation132_spill] sm:$0xff]  ;;  %v15579_v17 = vld [vmem:[#allocation154_spill] sm:$0xff] }
 0x94b   : >> { %v3603_v44 = vpop.xlane.xlu0 %3602 }
 0x94c   : >> { %15509 = vst [vmem:[#allocation174_spill] sm:$0xff] %v13790_v57  ;;  %v13793_v58 = vadd.f32 %v3603_v44, %v3572_v52  }
 0x94d   : >> { %v3605_v23 = vpop.xlane.xlu1 %3604 }
 0x94e   : >> { %15510 = vst [vmem:[#allocation175_spill] sm:$0xff] %v13793_v58  ;;  %v13796_v19 = vadd.f32 %v3605_v23, %v3573_v60  }
 0x950   : >> { %v15511_v51 = vmov %v13796_v19 }
 0x978   : >> { %v6585_v63 = vpop.f32.mrb[0].mxu1 }
 0x979   : >> { %v13802_v35 = vadd.f32 %v6585_v63, %v3624_v18   ;;  %v3680_v57 = vpop.f32.mrb[1].mxu1  ;;  %v3634_v63 = vmul.f32 %v15536_v34, %v8511_v28  ;;  %v15577_v28 = vld [vmem:[#allocation156_spill] sm:$0xff] }
 0x97a   : >> { %v13806_v53 = vadd.f32 %v3680_v57, %v3622_v56   ;;  %v6586_v58 = vpop.f32.mrb[2].mxu1  ;;  %v15537_v56 = vld [vmem:[#allocation129_spill] sm:$0xff] }
 0x97b   : >> { %v15513_v41 = vmov %v13802_v35  ;;  %v13810_v19 = vadd.f32 %v6586_v58, %v3625_v48   ;;  %v3683_v31 = vpop.f32.mrb[3].mxu1  ;;  %v15520_v35 = vld [vmem:[#allocation139_spill] sm:$0xff]  ;;  %v3637_v57 = vmul.f32 %v15537_v56, %v8517_v33  ;;  %v3635_v58 = vmul.f32 %v15538_v49, %v8513_v13  ;;  %v15570_v33 = vld [vmem:[#allocation164_spill] sm:$0xff]  ;;  %v15580_v56 = vld [vmem:[#allocation153_spill] sm:$0xff] }
 0x97c   : >> { %v15515_v1 = vmov %v13806_v53  ;;  %v13812_v16 = vadd.f32 %v3683_v31, %v3623_v38   ;;  %v3626_v7 = vmul.f32 %v15520_v35, %v13741_v0  ;;  %v15522_v53 = vld [vmem:[#allocation136_spill] sm:$0xff]  ;;  %v3632_v0 = vmul.f32 %v15527_v24, %v13759_v46  ;;  %v15535_v46 = vld [vmem:[#allocation130_spill] sm:$0xff]  ;;  %v15571_v13 = vld [vmem:[#allocation162_spill] sm:$0xff] }
 0x97d   : >> { %v15517_v32 = vmov %v13810_v19  ;;  %v3629_v2 = vmul.f32 %v15522_v53, %v13734_v9  ;;  %v3636_v23 = vmul.f32 %v15535_v46, %v8515_v14  ;;  %v15553_v35 = vmov %v15513_v41  ;;  %v15583_v46 = vld [vmem:[#allocation150_spill] sm:$0xff]  ;;  %v15584_v14 = vld [vmem:[#allocation148_spill] sm:$0xff]  ;;  %v15587_v24 = vld [vmem:[#allocation147_spill] sm:$0xff] }
 0x97e   : >> { %v15518_v25 = vmov %v13812_v16  ;;  %v15552_v38 = vmov %v15517_v32  ;;  %v15555_v53 = vmov %v15515_v1  ;;  %v15556_v19 = vmov %v15511_v51  ;;  %v15608_v46 = vld [vmem:[#allocation173_spill] sm:$0xff] (%p13852_p9)  ;;  %v15609_v14 = vld [vmem:[#allocation170_spill] sm:$0xff] (%p13852_p9)  ;;  %v15612_v24 = vld [vmem:[#allocation171_spill] sm:$0xff] (%p13852_p9) }
 0x97f   : > { %v15602_v28 = vmov (%p13852_p9), %v15513_v41  ;;  %v15604_v17 = vmov (%p13852_p9), %v15515_v1  ;;  %v15605_v56 = vmov (%p13852_p9), %v15511_v51  ;;  %v15616_v51 = vld [vmem:[#allocation167_spill] sm:$0xff] (%p13852_p9) }
 0x981   : >> { %v6589_v8 = vpop.f32.mrb[4].mxu1 }
 0x982   : >> { %v13818_v44 = vadd.f32 %v6589_v8, %v3628_v61   ;;  %v3696_v40 = vpop.f32.mrb[5].mxu1  ;;  %v15564_v8 = vld [vmem:[#allocation166_spill] sm:$0xff] }
 0x983   : >> { %v13822_v15 = vadd.f32 %v3696_v40, %v3626_v7   ;;  %v6590_v27 = vpop.f32.mrb[6].mxu1  ;;  %v15582_v7 = vld [vmem:[#allocation151_spill] sm:$0xff] }
 0x984   : >> { %v15521_v26 = vmov %v13818_v44  ;;  %v13826_v31 = vadd.f32 %v6590_v27, %v3629_v2   ;;  %v3699_v11 = vpop.f32.mrb[7].mxu1  ;;  %v15532_v44 = vld [vmem:[#allocation135_spill] sm:$0xff]  ;;  %v15567_v2 = vld [vmem:[#allocation167_spill] sm:$0xff] }
 0x985   : >> { %v15523_v47 = vmov %v13822_v15  ;;  %v13828_v12 = vadd.f32 %v3699_v11, %v3627_v39   ;;  %v15530_v15 = vld [vmem:[#allocation133_spill] sm:$0xff]  ;;  %v3631_v60 = vmul.f32 %v15532_v44, %v8509_v10  ;;  %v15549_v44 = vmov %v15521_v26  ;;  %v15568_v39 = vld [vmem:[#allocation163_spill] sm:$0xff]  ;;  %v15607_v7 = vld [vmem:[#allocation174_spill] sm:$0xff] (%p13852_p9) }
 0x986   : >> { %v15525_v22 = vmov %v13826_v31  ;;  %v3633_v16 = vmul.f32 %v15530_v15, %v13768_v59  ;;  %v15551_v15 = vmov %v15523_v47  ;;  %v15566_v11 = vld [vmem:[#allocation168_spill] sm:$0xff]  ;;  %v15598_v42 = vmov (%p13852_p9), %v15521_v26 }
 0x987   : >> { %v15526_v43 = vmov %v13828_v12  ;;  %v15548_v31 = vmov %v15525_v22 }
 0x989   : >> { %v6593_v36 = vpop.f32.mrb[8].mxu1 }
 0x98a   : >> { %v13833_v61 = vadd.f32 %v6593_v36, %v3632_v0   ;;  %v3712_v9 = vpop.f32.mrb[9].mxu1  ;;  %v15561_v36 = vld [vmem:[#allocation169_spill] sm:$0xff] }
 0x98b   : >> { %v13837_v52 = vadd.f32 %v3712_v9, %v3630_v54   ;;  %v6594_v21 = vpop.f32.mrb[10].mxu1  ;;  %v15560_v54 = vld [vmem:[#allocation170_spill] sm:$0xff]  ;;  %v15576_v9 = vld [vmem:[#allocation157_spill] sm:$0xff] }
 0x98c   : >> { %v15529_v6 = vmov %v13833_v61  ;;  %v13840_v21 = vadd.f32 %v6594_v21, %v3633_v16   ;;  %v3715_v12 = vpop.f32.mrb[11].mxu1  ;;  %v15554_v16 = vmov %v15518_v25  ;;  %v15586_v0 = vld [vmem:[#allocation149_spill] sm:$0xff]  ;;  %v15601_v9 = vmov (%p13852_p9), %v15517_v32  ;;  %v15619_v32 = vld [vmem:[#allocation164_spill] sm:$0xff] (%p13852_p9) }
 0x98d   : >> { %v15531_v45 = vmov %v13837_v52  ;;  %v13842_v48 = vadd.f32 %v3715_v12, %v3631_v60   ;;  %v15545_v61 = vmov %v15529_v6  ;;  %v15550_v12 = vmov %v15526_v43  ;;  %v15563_v52 = vld [vmem:[#allocation171_spill] sm:$0xff]  ;;  %v15611_v0 = vld [vmem:[#allocation172_spill] sm:$0xff] (%p13852_p9) }
 0x98e   : >> { %v15533_v30 = vmov %v13840_v21  ;;  %15547 = vst [vmem:[#allocation128_spill] sm:$0xff] %v15531_v45  ;;  %v15578_v60 = vld [vmem:[#allocation155_spill] sm:$0xff]  ;;  %v15596_v13 = vmov (%p13852_p9), %v15531_v45  ;;  %v15615_v45 = vld [vmem:[#allocation168_spill] sm:$0xff] (%p13852_p9) }
 0x98f   : >> { %v15534_v50 = vmov %v13842_v48  ;;  %v15544_v21 = vmov %v15533_v30  ;;  %v15593_v39 = vmov (%p13852_p9), %v15533_v30  ;;  %v15603_v60 = vmov (%p13852_p9), %v15518_v25 }
 0x990   : >> { %v15546_v48 = vmov %v15534_v50  ;;  %v15595_v33 = vmov (%p13852_p9), %v15534_v50  ;;  %v15614_v50 = vld [vmem:[#allocation165_spill] sm:$0xff] (%p13852_p9) }
 0x991   : >> { %v6597_v18 = vpop.f32.mrb[12].mxu1 }
 0x992   : >> { %v3757_v3 = vadd.f32 %v6597_v18, %v3636_v23   ;;  %v3728_v20 = vpop.f32.mrb[13].mxu1  ;;  %v15562_v23 = vld [vmem:[#allocation172_spill] sm:$0xff] }
 0x993   : >> { %v3755_v55 = vadd.f32 %v3728_v20, %v3634_v63   ;;  %v6598_v59 = vpop.f32.mrb[14].mxu1  ;;  %v15559_v63 = vld [vmem:[#allocation173_spill] sm:$0xff]  ;;  %v15575_v20 = vld [vmem:[#allocation158_spill] sm:$0xff]  ;;  %v15581_v18 = vld [vmem:[#allocation152_spill] sm:$0xff]  ;;  %3210 = sbr.rel (!%p13852_p9) target bundleno = 1765 (0x6e5), region = 152 }
 0x994   : >> { %v3758_v5 = vadd.f32 %v6598_v59, %v3637_v57   ;;  %v3731_v10 = vpop.f32.mrb[15].mxu1  ;;  %v15541_v34 = vmov %v3757_v3  ;;  %v15558_v57 = vld [vmem:[#allocation174_spill] sm:$0xff]  ;;  %v15569_v59 = vld [vmem:[#allocation161_spill] sm:$0xff]  ;;  %v15590_v29 = vmov (%p13852_p9), %v3757_v3  ;;  %v15600_v20 = vmov (%p13852_p9), %v15523_v47  ;;  %v15606_v18 = vld [vmem:[#allocation175_spill] sm:$0xff] (%p13852_p9) }
 0x995   : >> { %v3756_v4 = vadd.f32 %v3731_v10, %v3635_v58   ;;  %v15543_v40 = vmov %v3755_v55  ;;  %v15557_v58 = vld [vmem:[#allocation175_spill] sm:$0xff]  ;;  %v15572_v10 = vmov %v15476_v37  ;;  %v15592_v2 = vmov (%p13852_p9), %v3755_v55  ;;  %v15618_v3 = vld [vmem:[#allocation161_spill] sm:$0xff] (%p13852_p9) }
 0x996   : >> { %v15540_v27 = vmov %v3758_v5  ;;  %v15574_v37 = vld [vmem:[#allocation159_spill] sm:$0xff]  ;;  %v15589_v8 = vmov (%p13852_p9), %v3758_v5  ;;  %v15594_v59 = vmov (%p13852_p9), %v15529_v6  ;;  %v15597_v10 = vmov (%p13852_p9), %v15525_v22  ;;  %v15620_v22 = vld [vmem:[#allocation162_spill] sm:$0xff] (%p13852_p9) }
 0x997   : >> { %v15542_v49 = vmov %v3756_v4  ;;  %v15591_v11 = vmov (%p13852_p9), %v3756_v4  ;;  %v15599_v37 = vmov (%p13852_p9), %v15526_v43  ;;  %v15613_v4 = vld [vmem:[#allocation166_spill] sm:$0xff] (%p13852_p9)  ;;  %v15617_v43 = vld [vmem:[#allocation163_spill] sm:$0xff] (%p13852_p9) }
 0x99a PF: > { %8710 = vrcp.f32 %v10374_v22  ;;  %s3807_s2 = sshra.s32 %s10763_s18, 3  ;;  %v3844_v1 = vld [vmem:[#allocation5] sm:$0xff]  ;;  %v3846_v5 = vld [vmem:[#allocation5 + $0x10] sm:$0xff]  ;;  %s15672_s18 = sld [smem:[#allocation24_spill]]  ;;  %v10374_v22 = vphi %v13204_v22, %v15620_v22   ;;  %v10370_v32 = vphi %v13202_v32, %v15619_v32   ;;  %v10366_v3 = vphi %v13200_v3, %v15618_v3   ;;  %v10362_v43 = vphi %v13198_v43, %v15617_v43   ;;  %v10358_v51 = vphi %v13196_v51, %v15616_v51   ;;  %v10354_v45 = vphi %v13194_v45, %v15615_v45   ;;  %v10350_v50 = vphi %v13192_v50, %v15614_v50   ;;  %v10346_v4 = vphi %v13190_v4, %v15613_v4   ;;  %v10342_v24 = vphi %v13188_v24, %v15612_v24   ;;  %v10338_v0 = vphi %v13186_v0, %v15611_v0   ;;  %v10334_v62 = vphi %v13184_v62, %v15610_v62   ;;  %v10330_v14 = vphi %v13182_v14, %v15609_v14   ;;  %v10326_v46 = vphi %v13180_v46, %v15608_v46   ;;  %v10322_v7 = vphi %v13178_v7, %v15607_v7   ;;  %v10318_v18 = vphi %v13176_v18, %v15606_v18   ;;  %v10314_v56 = vphi %v13174_v56, %v15605_v56   ;;  %v10310_v17 = vphi %v13172_v17, %v15604_v17   ;;  %v10306_v60 = vphi %v13170_v60, %v15603_v60   ;;  %v10302_v28 = vphi %v13168_v28, %v15602_v28   ;;  %v10298_v9 = vphi %v13166_v9, %v15601_v9   ;;  %v10294_v20 = vphi %v13164_v20, %v15600_v20   ;;  %v10290_v37 = vphi %v13162_v37, %v15599_v37   ;;  %v10286_v42 = vphi %v13160_v42, %v15598_v42   ;;  %v10282_v10 = vphi %v13158_v10, %v15597_v10   ;;  %v10278_v13 = vphi %v13156_v13, %v15596_v13   ;;  %v10274_v33 = vphi %v13154_v33, %v15595_v33   ;;  %v10270_v59 = vphi %v13152_v59, %v15594_v59   ;;  %v10266_v39 = vphi %v13150_v39, %v15593_v39   ;;  %v10262_v2 = vphi %v13148_v2, %v15592_v2   ;;  %v10258_v11 = vphi %v13146_v11, %v15591_v11   ;;  %v10254_v29 = vphi %v13144_v29, %v15590_v29   ;;  %v10250_v8 = vphi %v13142_v8, %v15589_v8  }
 0x99b   : > { %8712 = vrcp.f32 %v10366_v3  ;;  %s6405_s20 = sshll.u32 %s3807_s2, 4  ;;  %v3848_v3 = vld [vmem:[#allocation5 + $0x20] sm:$0xff]  ;;  %v3850_v41 = vld [vmem:[#allocation5 + $0x30] sm:$0xff]  ;;  %s5687_s6 = sshll.u32 %s10782_s30, 4  ;;  %s14801_s6 = int_to_ptr.vmem [resolvable:$true] %s5687_s6 }
 0x99c   : > { %8714 = vrcp.f32 %v10370_v32  ;;  %s14154_s17 = scalar_lea.vmem %s10743_s8, %s6405_s20 [#allocation6]  ;;  %v3858_v49 = vld [vmem:[#allocation5 + $0x70] sm:$0xff]  ;;  %s15671_s8 = sld [smem:[#allocation23_spill]] }
 0x99d   : > { %8716 = vrcp.f32 %v10362_v43  ;;  %v3812_v25 = vld [vmem:[%s14154_s17] sm:$0xff]  ;;  %v3813_v22 = vld [vmem:[%s14154_s17 + $0x8] sm:$0xff]  ;;  %v3814_v30 = vld [vmem:[%s14154_s17 + $0x10] sm:$0xff]  ;;  %s15681_s2 = sld [smem:[#allocation185_spill]]  ;;  %p15682_p8 = scmp.ne.s32.totalorder %s15046_s11, 0 }
 0x99e   : > { %8718 = vrcp.f32 %v10358_v51  ;;  %v3816_v6 = vld [vmem:[%s14154_s17 + $0x20] sm:$0xff]  ;;  %v3815_v38 = vld [vmem:[%s14154_s17 + $0x18] sm:$0xff]  ;;  %v14169_v35 = vadd.f32 %v3846_v5, %v3814_v30  ;;  %v3822_v54 = vld [vmem:[%s14154_s17 + $0x50] sm:$0xff] }
 0x99f   : > { %8720 = vrcp.f32 %v10354_v45  ;;  %v14160_v45 = vadd.f32 %v3844_v1, %v3812_v25  ;;  %v14164_v48 = vadd.f32 %v3848_v3, %v3816_v6  ;;  %v3819_v26 = vld [vmem:[%s14154_s17 + $0x38] sm:$0xff]  ;;  %v3825_v12 = vld [vmem:[%s14154_s17 + $0x68] sm:$0xff]  ;;  %v3826_v57 = vld [vmem:[%s14154_s17 + $0x70] sm:$0xff] }
 0x9a0   : > { %8722 = vrcp.f32 %v10350_v50  ;;  %v3817_v50 = vld [vmem:[%s14154_s17 + $0x28] sm:$0xff]  ;;  %v3823_v15 = vld [vmem:[%s14154_s17 + $0x58] sm:$0xff]  ;;  %v3860_v5 = vld [vmem:[#allocation5 + $0x80] sm:$0xff]  ;;  %s6395_s7 = sshll.u32 %s15672_s18, 6  ;;  %s10386_s18 = smov [#allocation17]  }
 0x9a1   : > { %8724 = vrcp.f32 %v10346_v4  ;;  %v3818_v4 = vld [vmem:[%s14154_s17 + $0x30] sm:$0xff]  ;;  %v3829_v30 = vld [vmem:[%s14154_s17 + $0x88] sm:$0xff] }
 0x9a2   : > { %8726 = vrcp.f32 %v10342_v24  ;;  %v14174_v27 = vadd.f32 %v3850_v41, %v3818_v4  ;;  %v3852_v24 = vld [vmem:[#allocation5 + $0x40] sm:$0xff]  ;;  %s6406_s21 = sshll.u32 %s15671_s8, 5  ;;  %s8944_s8 = scalar_lea.vmem %s14801_s6, 4096 }
 0x9a3   : > { %8728 = vrcp.f32 %v10338_v0  ;;  %s5684_s1 = sadd.s32 %s6406_s21, %s6395_s7  ;;  %p8945_p11 = scmp.ne.s32.totalorder %s14801_s6, %s8944_s8 }
 0x9a4   : > { %v8711_v43 = vpop.eup %8710  ;;  %8730 = vrcp.f32 %v10334_v62  ;;  %15622 = vst [vmem:[#allocation58_spill] sm:$0xff] %v14174_v27  ;;  %v3821_v62 = vld [vmem:[%s14154_s17 + $0x48] sm:$0xff]  ;;  %s6396_s26 = sshll.u32 %s5684_s1, 7  ;;  %s8948_s21 = sshll.u32 %s10386_s18, 4  ;;  %s8949_s21 = int_to_ptr.vmem [resolvable:$false] %s8948_s21 }
 0x9a5   : > { %v8713_v55 = vpop.eup %8712  ;;  %v3775_v51 = vmul.f32 %v10310_v17, %v8711_v43  ;;  %8732 = vrcp.f32 %v10330_v14  ;;  %s14808_s20 = scalar_lea.hbm %s15681_s2, %s6396_s26  ;;  %p8946_p1 = pnand %p8945_p11, %p15682_p8 }
 0x9a6   : > { %v8715_v32 = vpop.eup %8714  ;;  %v3777_v47 = vmul.f32 %v10302_v28, %v8713_v55  ;;  %8734 = vrcp.f32 %v10326_v46  ;;  %v3820_v28 = vld [vmem:[%s14154_s17 + $0x40] sm:$0xff]  ;;  %s8950_s7 = scalar_lea.vmem %s8949_s21, 8192  ;;  %p8951_p7 = scmp.lt.s32.totalorder %s14801_s6, %s8949_s21 }
 0x9a7   : > { %v8717_v19 = vpop.eup %8716  ;;  %v14167_v31 = vadd.f32 %v3813_v22, %v3775_v51  ;;  %v3776_v61 = vmul.f32 %v10306_v60, %v8715_v32  ;;  %8736 = vrcp.f32 %v10322_v7  ;;  %v3824_v60 = vld [vmem:[%s14154_s17 + $0x60] sm:$0xff]  ;;  %v14195_v34 = vadd.f32 %v3852_v24, %v3820_v28  ;;  %v3831_v32 = vld [vmem:[%s14154_s17 + $0x98] sm:$0xff]  ;;  %v3833_v24 = vld [vmem:[%s14154_s17 + $0xa8] sm:$0xff]  ;;  %p8947_p13 = pneg %p8946_p1  ;;  %p8952_p0 = scmp.lt.s32.totalorder %s8950_s7, %s8944_s8 }
 0x9a8   : > { %v8719_v40 = vpop.eup %8718  ;;  %v14172_v14 = vadd.f32 %v3817_v50, %v3777_v47  ;;  %v3778_v53 = vmul.f32 %v10298_v9, %v8717_v19  ;;  %8738 = vrcp.f32 %v10318_v18  ;;  %v3854_v9 = vld [vmem:[#allocation5 + $0x50] sm:$0xff]  ;;  %v3856_v46 = vld [vmem:[#allocation5 + $0x60] sm:$0xff]  ;;  %v14224_v19 = vadd.f32 %v3858_v49, %v3826_v57 }
 0x9a9   : > { %v8721_v0 = vpop.eup %8720  ;;  %v3908_v36 = vadd.f32 %v14167_v31, %v14160_v45  ;;  %v14180_v17 = vadd.f32 %v3815_v38, %v3776_v61  ;;  %v3779_v7 = vmul.f32 %v10294_v20, %v8719_v40  ;;  %8740 = vrcp.f32 %v10314_v56  ;;  %15624 = vst [vmem:[#allocation61_spill] sm:$0xff] %v14195_v34  ;;  %v3828_v22 = vld [vmem:[%s14154_s17 + $0x80] sm:$0xff]  ;;  %v3838_v57 = vld [vmem:[%s14154_s17 + $0xd0] sm:$0xff]  ;;  %p8953_p4 = por %p8952_p0, %p8951_p7 }
 0x9aa   : > { %15621 = vst [vmem:[#allocation57_spill] sm:$0xff] %v14172_v14  ;;  %v8723_v16 = vpop.eup %8722  ;;  %v3914_v52 = vadd.f32 %v14172_v14, %v14164_v48  ;;  %v14187_v21 = vadd.f32 %v3819_v26, %v3778_v53  ;;  %v3780_v44 = vmul.f32 %v10290_v37, %v8721_v0  ;;  %v3827_v37 = vld [vmem:[%s14154_s17 + $0x78] sm:$0xff]  ;;  %v14204_v25 = vadd.f32 %v3854_v9, %v3822_v54  ;;  %v3870_v49 = vld [vmem:[#allocation5 + $0xd0] sm:$0xff] }
 0x9ab   : > { %v8725_v23 = vpop.eup %8724  ;;  %3909 = vadd.xlane.f32.xlu0 %v3908_v36  ;;  %v3911_v18 = vadd.f32 %v14180_v17, %v14169_v35  ;;  %v14197_v63 = vadd.f32 %v3821_v62, %v3779_v7  ;;  %v3781_v20 = vmul.f32 %v10286_v42, %v8723_v16  ;;  %v14215_v4 = vadd.f32 %v3856_v46, %v3824_v60  ;;  %v3832_v62 = vld [vmem:[%s14154_s17 + $0xa0] sm:$0xff]  ;;  %v3837_v46 = vld [vmem:[%s14154_s17 + $0xc8] sm:$0xff]  ;;  %p8954_p10 = pnand %p8953_p4, %p8947_p13 }
 0x9ac   : > { %15623 = vst [vmem:[#allocation59_spill] sm:$0xff] %v14187_v21  ;;  %v8727_v58 = vpop.eup %8726  ;;  %3915 = vadd.xlane.f32.xlu1 %v3914_v52  ;;  %v3917_v56 = vadd.f32 %v14187_v21, %v14174_v27  ;;  %15626 = vst [vmem:[#allocation63_spill] sm:$0xff] %v14204_v25  ;;  %v14206_v1 = vadd.f32 %v3823_v15, %v3780_v44  ;;  %v3782_v6 = vmul.f32 %v10282_v10, %v8725_v23  ;;  %v3830_v10 = vld [vmem:[%s14154_s17 + $0x90] sm:$0xff]  ;;  %v3835_v15 = vld [vmem:[%s14154_s17 + $0xb8] sm:$0xff] }
 0x9ad   : > { %15625 = vst [vmem:[#allocation62_spill] sm:$0xff] %v14197_v63  ;;  %v8729_v3 = vpop.eup %8728  ;;  %v3783_v43 = vmul.f32 %v10278_v13, %v8727_v58  ;;  %v3920_v50 = vadd.f32 %v14197_v63, %v14195_v34  ;;  %15628 = vst [vmem:[#allocation65_spill] sm:$0xff] %v14215_v4  ;;  %v14217_v41 = vadd.f32 %v3825_v12, %v3781_v20  ;;  %v3862_v13 = vld [vmem:[#allocation5 + $0x90] sm:$0xff]  ;;  %v3836_v12 = vld [vmem:[%s14154_s17 + $0xc0] sm:$0xff] }
 0x9ae   : > { %15627 = vst [vmem:[#allocation64_spill] sm:$0xff] %v14206_v1  ;;  %v8731_v42 = vpop.eup %8730  ;;  %v3784_v55 = vmul.f32 %v10274_v33, %v8729_v3  ;;  %v3923_v33 = vadd.f32 %v14206_v1, %v14204_v25  ;;  %15630 = vst [vmem:[#allocation67_spill] sm:$0xff] %v14224_v19  ;;  %v14226_v61 = vadd.f32 %v3827_v37, %v3782_v6  ;;  %v3868_v23 = vld [vmem:[#allocation5 + $0xc0] sm:$0xff]  ;;  %v3839_v37 = vld [vmem:[%s14154_s17 + $0xd8] sm:$0xff] }
 0x9af   : > { %v8733_v51 = vpop.eup %8732  ;;  %3912 = vadd.xlane.f32.xlu0 %v3911_v18  ;;  %15629 = vst [vmem:[#allocation66_spill] sm:$0xff] %v14217_v41  ;;  %v3785_v47 = vmul.f32 %v10270_v59, %v8731_v42  ;;  %v3864_v59 = vld [vmem:[#allocation5 + $0xa0] sm:$0xff]  ;;  %v3926_v36 = vadd.f32 %v14217_v41, %v14215_v4  ;;  %v14235_v7 = vadd.f32 %v3860_v5, %v3828_v22  ;;  %v3841_v3 = vld [vmem:[%s14154_s17 + $0xe8] sm:$0xff]  ;;  %v3842_v5 = vld [vmem:[%s14154_s17 + $0xf0] sm:$0xff] }
 0x9b0   : > { %v8735_v38 = vpop.eup %8734  ;;  %3918 = vadd.xlane.f32.xlu1 %v3917_v56  ;;  %15631 = vst [vmem:[#allocation68_spill] sm:$0xff] %v14226_v61  ;;  %v3786_v26 = vmul.f32 %v10266_v39, %v8733_v51  ;;  %v14237_v54 = vadd.f32 %v3829_v30, %v3783_v43  ;;  %v3834_v39 = vld [vmem:[%s14154_s17 + $0xb0] sm:$0xff]  ;;  %v14244_v52 = vadd.f32 %v3862_v13, %v3830_v10  ;;  %v3840_v6 = vld [vmem:[%s14154_s17 + $0xe0] sm:$0xff] }
 0x9b1   : > { %v8737_v40 = vpop.eup %8736  ;;  %v3787_v53 = vmul.f32 %v10262_v2, %v8735_v38  ;;  %15632 = vst [vmem:[#allocation69_spill] sm:$0xff] %v14235_v7  ;;  %v3866_v2 = vld [vmem:[#allocation5 + $0xb0] sm:$0xff]  ;;  %v14246_v44 = vadd.f32 %v3831_v32, %v3784_v55  ;;  %v14253_v18 = vadd.f32 %v3864_v59, %v3832_v62  ;;  %v14255_v20 = vadd.f32 %v3833_v24, %v3785_v47  ;;  %v3872_v43 = vld [vmem:[#allocation5 + $0xe0] sm:$0xff]  ;;  %v3843_v55 = vld [vmem:[%s14154_s17 + $0xf8] sm:$0xff]  ;;  %s14814_s17 = scalar_lea.sflag [#allocation8], %s408_s24 }
 0x9b2   : > { %v8739_v28 = vpop.eup %8738  ;;  %v3788_v0 = vmul.f32 %v10258_v11, %v8737_v40  ;;  %15633 = vst [vmem:[#allocation70_spill] sm:$0xff] %v14237_v54  ;;  %v3929_v11 = vadd.f32 %v14226_v61, %v14224_v19  ;;  %15634 = vst [vmem:[#allocation71_spill] sm:$0xff] %v14244_v52  ;;  %v14261_v58 = vadd.f32 %v3866_v2, %v3834_v39  ;;  %v3874_v51 = vld [vmem:[#allocation5 + $0xf0] sm:$0xff] }
 0x9b3   : > { %3921 = vadd.xlane.f32.xlu0 %v3920_v50  ;;  %v3789_v9 = vmul.f32 %v10254_v29, %v8739_v28  ;;  %v8741_v16 = vpop.eup %8740  ;;  %15635 = vst [vmem:[#allocation72_spill] sm:$0xff] %v14246_v44  ;;  %v3932_v29 = vadd.f32 %v14237_v54, %v14235_v7  ;;  %15636 = vst [vmem:[#allocation73_spill] sm:$0xff] %v14253_v18  ;;  %v14263_v56 = vadd.f32 %v3835_v15, %v3786_v26  ;;  %v8518_v62 = vld [vmem:[#allocation14 + $0x4] ss:$16 sps:$4 sm:$0xff]   ;;  %v8520_v24 = vld [vmem:[#allocation14] ss:$16 sps:$4 sm:$0xff]  }
 0x9b4   : > { %3924 = vadd.xlane.f32.xlu1 %v3923_v33  ;;  %v3790_v60 = vmul.f32 %v10250_v8, %v8741_v16  ;;  %15637 = vst [vmem:[#allocation74_spill] sm:$0xff] %v14255_v20  ;;  %v3935_v8 = vadd.f32 %v14246_v44, %v14244_v52  ;;  %15638 = vst [vmem:[#allocation75_spill] sm:$0xff] %v14261_v58  ;;  %v3938_v42 = vadd.f32 %v14255_v20, %v14253_v18  ;;  %v8521_v59 = vld [vmem:[#allocation14 + $0x24] ss:$16 sps:$4 sm:$0xff]   ;;  %v8526_v39 = vld [vmem:[#allocation14 + $0x40] ss:$16 sps:$4 sm:$0xff]  }
 0x9b5   : > { %15639 = vst [vmem:[#allocation76_spill] sm:$0xff] %v14263_v56  ;;  %v14269_v22 = vadd.f32 %v3868_v23, %v3836_v12  ;;  %v14271_v30 = vadd.f32 %v3837_v46, %v3787_v53  ;;  %v3941_v50 = vadd.f32 %v14263_v56, %v14261_v58  ;;  %v14277_v10 = vadd.f32 %v3870_v49, %v3838_v57  ;;  %v8527_v15 = vld [vmem:[#allocation14 + $0x64] ss:$16 sps:$4 sm:$0xff]   ;;  %v8529_v2 = vld [vmem:[#allocation14 + $0x60] ss:$16 sps:$4 sm:$0xff]  }
 0x9b6   : > { %v14279_v32 = vadd.f32 %v3839_v37, %v3788_v0  ;;  %v14283_v47 = vadd.f32 %v3872_v43, %v3840_v6  ;;  %v14285_v38 = vadd.f32 %v3841_v3, %v3789_v9  ;;  %v14289_v26 = vadd.f32 %v3874_v51, %v3842_v5  ;;  %4666 = vmatprep.subr.bf16.mxu1 %v8518_v62  ;;  %v8523_v0 = vld [vmem:[#allocation14 + $0x20] ss:$16 sps:$4 sm:$0xff]   ;;  %v8530_v9 = vld [vmem:[#allocation14 + $0x84] ss:$16 sps:$4 sm:$0xff]  }
 0x9b7   : > { %3927 = vadd.xlane.f32.xlu0 %v3926_v36  ;;  %15640 = vst [vmem:[#allocation77_spill] sm:$0xff] %v14269_v22  ;;  %15641 = vst [vmem:[#allocation78_spill] sm:$0xff] %v14271_v30  ;;  %v3944_v13 = vadd.f32 %v14271_v30, %v14269_v22  ;;  %v14291_v40 = vadd.f32 %v3843_v55, %v3790_v60  ;;  %4667 = vmatpush1.bf16.msra.mxu1 %v8520_v24  ;;  %v8524_v36 = vld [vmem:[#allocation14 + $0x44] ss:$16 sps:$4 sm:$0xff]   ;;  %v8532_v16 = vld [vmem:[#allocation14 + $0x80] ss:$16 sps:$4 sm:$0xff]  }
 0x9b8   : > { %3930 = vadd.xlane.f32.xlu1 %v3929_v11  ;;  %15642 = vst [vmem:[#allocation79_spill] sm:$0xff] %v14277_v10  ;;  %15643 = vst [vmem:[#allocation80_spill] sm:$0xff] %v14279_v32  ;;  %v3947_v33 = vadd.f32 %v14279_v32, %v14277_v10  ;;  %v3950_v53 = vadd.f32 %v14285_v38, %v14283_v47  ;;  %4668 = vmatprep.subr.bf16.mxu1 %v8521_v59  ;;  %v8533_v11 = vld [vmem:[#allocation14 + $0xa4] ss:$16 sps:$4 sm:$0xff]   ;;  %v8535_v60 = vld [vmem:[#allocation14 + $0xa0] ss:$16 sps:$4 sm:$0xff]  }
 0x9b9   : > { %15644 = vst [vmem:[#allocation81_spill] sm:$0xff] %v14283_v47  ;;  %15645 = vst [vmem:[#allocation82_spill] sm:$0xff] %v14285_v38  ;;  %v3953_v28 = vadd.f32 %v14291_v40, %v14289_v26  ;;  %v8536_v12 = vld [vmem:[#allocation14 + $0xc4] ss:$16 sps:$4 sm:$0xff]   ;;  %v8538_v46 = vld [vmem:[#allocation14 + $0xc0] ss:$16 sps:$4 sm:$0xff]  }
 0x9ba   : > { %15646 = vst [vmem:[#allocation176_spill] sm:$0xff] %v14289_v26  ;;  %15647 = vst [vmem:[#allocation177_spill] sm:$0xff] %v14291_v40  ;;  %v8539_v23 = vld [vmem:[#allocation14 + $0xe4] ss:$16 sps:$4 sm:$0xff]   ;;  %v8544_v37 = vld [vmem:[#allocation14 + $0x100] ss:$16 sps:$4 sm:$0xff]  }
 0x9bb   : > { %3933 = vadd.xlane.f32.xlu0 %v3932_v29  ;;  %4669 = vmatpush1.bf16.msra.mxu1 %v8523_v0  ;;  %v8541_v29 = vld [vmem:[#allocation14 + $0xe0] ss:$16 sps:$4 sm:$0xff]   ;;  %v8542_v57 = vld [vmem:[#allocation14 + $0x104] ss:$16 sps:$4 sm:$0xff]  }
 0x9bc   : > { %3936 = vadd.xlane.f32.xlu1 %v3935_v8  ;;  %4670 = vmatprep.subr.bf16.mxu1 %v8524_v36  ;;  %v8545_v49 = vld [vmem:[#allocation14 + $0x124] ss:$16 sps:$4 sm:$0xff]  }
 0x9bf   : > { %3939 = vadd.xlane.f32.xlu0 %v3938_v42  ;;  %4671 = vmatpush1.bf16.msra.mxu1 %v8526_v39 }
 0x9c0   : > { %3942 = vadd.xlane.f32.xlu1 %v3941_v50  ;;  %4672 = vmatprep.subr.bf16.mxu1 %v8527_v15 }
 0x9c3   : > { %3945 = vadd.xlane.f32.xlu0 %v3944_v13  ;;  %4673 = vmatpush1.bf16.msra.mxu1 %v8529_v2 }
 0x9c4   : > { %3948 = vadd.xlane.f32.xlu1 %v3947_v33  ;;  %4674 = vmatprep.subr.bf16.mxu1 %v8530_v9 }
 0x9c7   : > { %3951 = vadd.xlane.f32.xlu0 %v3950_v53  ;;  %4675 = vmatpush1.bf16.msra.mxu1 %v8532_v16 }
 0x9c8   : > { %3954 = vadd.xlane.f32.xlu1 %v3953_v28  ;;  %4676 = vmatprep.subr.bf16.mxu1 %v8533_v11 }
 0x9cb   : > { %4677 = vmatpush1.bf16.msra.mxu1 %v8535_v60 }
 0x9cc   : > { %4678 = vmatprep.subr.bf16.mxu1 %v8536_v12 }
 0x9cf   : > { %4679 = vmatpush1.bf16.msra.mxu1 %v8538_v46 }
 0x9d0   : > { %4680 = vmatprep.subr.bf16.mxu1 %v8539_v23 }
 0x9d3   : > { %4681 = vmatpush1.bf16.msra.mxu1 %v8541_v29 }
 0x9d4   : > { %4682 = vmatprep.subr.bf16.mxu1 %v8542_v57 }
 0x9d7   : > { %4683 = vmatpush1.bf16.msra.mxu1 %v8544_v37 }
 0x9d8   : > { %4684 = vmatprep.subr.bf16.mxu1 %v8545_v49 }
 0xa38   : > { %v3910_v8 = vpop.xlane.xlu0 %3909 }
 0xa39   : > { %v3957_v6 = vmul.f32 0.00390625, %v3910_v8  ;;  %v3916_v3 = vpop.xlane.xlu1 %3915 }
 0xa3a   : > { %v3959_v43 = vmul.f32 0.00390625, %v3916_v3 }
 0xa3b   : > { %v14298_v42 = vsub.f32 %v14160_v45, %v3957_v6  ;;  %v14301_v5 = vsub.f32 %v14167_v31, %v3957_v6 }
 0xa3c   : > { %v14304_v55 = vsub.f32 %v14164_v48, %v3959_v43  ;;  %v14307_v51 = vsub.f32 %v14172_v14, %v3959_v43  ;;  %v3913_v50 = vpop.xlane.xlu0 %3912 }
 0xa3d   : > { %v3958_v13 = vmul.f32 0.00390625, %v3913_v50  ;;  %v3919_v33 = vpop.xlane.xlu1 %3918  ;;  %v4005_v53 = vmul.f32 %v14298_v42, %v14298_v42  ;;  %v4006_v28 = vmul.f32 %v14301_v5, %v14301_v5 }
 0xa3e   : > { %v3960_v62 = vmul.f32 0.00390625, %v3919_v33  ;;  %v4009_v24 = vmul.f32 %v14304_v55, %v14304_v55  ;;  %v4010_v59 = vmul.f32 %v14307_v51, %v14307_v51 }
 0xa3f   : > { %v14318_v0 = vsub.f32 %v14169_v35, %v3958_v13  ;;  %v14321_v36 = vsub.f32 %v14180_v17, %v3958_v13  ;;  %v4037_v39 = vadd.f32 %v4006_v28, %v4005_v53 }
 0xa40   : > { %v14324_v15 = vsub.f32 %v14174_v27, %v3960_v62  ;;  %v14327_v2 = vsub.f32 %v14187_v21, %v3960_v62  ;;  %v3922_v9 = vpop.xlane.xlu0 %3921  ;;  %v4043_v60 = vadd.f32 %v4010_v59, %v4009_v24  ;;  %v8566_v27 = vld [vmem:[#allocation14 + $0x8] ss:$16 sps:$4 sm:$0xff]  }
 0xa41   : > { %v3961_v16 = vmul.f32 0.00390625, %v3922_v9  ;;  %4038 = vadd.xlane.f32.xlu0 %v4037_v39  ;;  %v3925_v11 = vpop.xlane.xlu1 %3924  ;;  %v4007_v12 = vmul.f32 %v14318_v0, %v14318_v0  ;;  %v4008_v46 = vmul.f32 %v14321_v36, %v14321_v36 }
 0xa42   : > { %v3962_v23 = vmul.f32 0.00390625, %v3925_v11  ;;  %v4011_v29 = vmul.f32 %v14324_v15, %v14324_v15  ;;  %v4012_v57 = vmul.f32 %v14327_v2, %v14327_v2 }
 0xa43   : > { %v14338_v37 = vsub.f32 %v14195_v34, %v3961_v16  ;;  %v14341_v49 = vsub.f32 %v14197_v63, %v3961_v16  ;;  %v4040_v8 = vadd.f32 %v4008_v46, %v4007_v12  ;;  %v8616_v63 = vld [vmem:[#allocation15] ss:$8 sps:$4 sm:$0xff]  }
 0xa44   : > { %v14344_v6 = vsub.f32 %v14204_v25, %v3962_v23  ;;  %v14347_v3 = vsub.f32 %v14206_v1, %v3962_v23  ;;  %v3928_v43 = vpop.xlane.xlu0 %3927  ;;  %v4046_v33 = vadd.f32 %v4012_v57, %v4011_v29 }
 0xa45   : > { %v3963_v50 = vmul.f32 0.00390625, %v3928_v43  ;;  %4044 = vadd.xlane.f32.xlu0 %v4043_v60  ;;  %4041 = vadd.xlane.f32.xlu1 %v4040_v8  ;;  %v3931_v13 = vpop.xlane.xlu1 %3930  ;;  %v4013_v53 = vmul.f32 %v14338_v37, %v14338_v37  ;;  %v4014_v28 = vmul.f32 %v14341_v49, %v14341_v49 }
 0xa46   : > { %v3964_v62 = vmul.f32 0.00390625, %v3931_v13  ;;  %v4015_v24 = vmul.f32 %v14344_v6, %v14344_v6  ;;  %v4016_v59 = vmul.f32 %v14347_v3, %v14347_v3 }
 0xa47   : > { %v14358_v39 = vsub.f32 %v14215_v4, %v3963_v50  ;;  %v14361_v9 = vsub.f32 %v14217_v41, %v3963_v50  ;;  %v4049_v16 = vadd.f32 %v4014_v28, %v4013_v53 }
 0xa48   : > { %v14364_v11 = vsub.f32 %v14224_v19, %v3964_v62  ;;  %v14367_v60 = vsub.f32 %v14226_v61, %v3964_v62  ;;  %v3934_v12 = vpop.xlane.xlu0 %3933  ;;  %v4052_v29 = vadd.f32 %v4016_v59, %v4015_v24 }
 0xa49   : > { %v3965_v46 = vmul.f32 0.00390625, %v3934_v12  ;;  %4047 = vadd.xlane.f32.xlu1 %v4046_v33  ;;  %4050 = vadd.xlane.f32.xlu0 %v4049_v16  ;;  %v3937_v23 = vpop.xlane.xlu1 %3936  ;;  %v4017_v57 = vmul.f32 %v14358_v39, %v14358_v39  ;;  %v4018_v8 = vmul.f32 %v14361_v9, %v14361_v9 }
 0xa4a   : > { %v3966_v43 = vmul.f32 0.00390625, %v3937_v23  ;;  %v4019_v50 = vmul.f32 %v14364_v11, %v14364_v11  ;;  %v4020_v13 = vmul.f32 %v14367_v60, %v14367_v60 }
 0xa4b   : > { %v14378_v53 = vsub.f32 %v14235_v7, %v3965_v46  ;;  %v14381_v33 = vsub.f32 %v14237_v54, %v3965_v46  ;;  %v4055_v28 = vadd.f32 %v4018_v8, %v4017_v57 }
 0xa4c   : > { %v14384_v62 = vsub.f32 %v14244_v52, %v3966_v43  ;;  %v14387_v24 = vsub.f32 %v14246_v44, %v3966_v43  ;;  %v3940_v59 = vpop.xlane.xlu0 %3939  ;;  %v4058_v23 = vadd.f32 %v4020_v13, %v4019_v50  ;;  %v8547_v43 = vld [vmem:[#allocation14 + $0x120] ss:$16 sps:$4 sm:$0xff]  }
 0xa4d   : > { %v3967_v16 = vmul.f32 0.00390625, %v3940_v59  ;;  %4053 = vadd.xlane.f32.xlu1 %v4052_v29  ;;  %4056 = vadd.xlane.f32.xlu0 %v4055_v28  ;;  %v3943_v12 = vpop.xlane.xlu1 %3942  ;;  %v4021_v7 = vmul.f32 %v14378_v53, %v14378_v53  ;;  %v4022_v46 = vmul.f32 %v14381_v33, %v14381_v33 }
 0xa4e   : > { %v3968_v54 = vmul.f32 0.00390625, %v3943_v12  ;;  %v4023_v57 = vmul.f32 %v14384_v62, %v14384_v62  ;;  %v4024_v8 = vmul.f32 %v14387_v24, %v14387_v24  ;;  %4685 = vmatpush1.bf16.msra.mxu1 %v8547_v43 }
 0xa4f   : > { %v14398_v59 = vsub.f32 %v14253_v18, %v3967_v16  ;;  %v14401_v29 = vsub.f32 %v14255_v20, %v3967_v16  ;;  %v4061_v50 = vadd.f32 %v4022_v46, %v4021_v7  ;;  %v8548_v7 = vld [vmem:[#allocation14 + $0x144] ss:$16 sps:$4 sm:$0xff]  }
 0xa50   : > { %v14404_v13 = vsub.f32 %v14261_v58, %v3968_v54  ;;  %v14407_v28 = vsub.f32 %v14263_v56, %v3968_v54  ;;  %v3946_v12 = vpop.xlane.xlu0 %3945  ;;  %v4064_v61 = vadd.f32 %v4024_v8, %v4023_v57  ;;  %4686 = vmatprep.subr.bf16.mxu1 %v8548_v7  ;;  %v8550_v8 = vld [vmem:[#allocation14 + $0x140] ss:$16 sps:$4 sm:$0xff]  }
 0xa51   : > { %v3969_v44 = vmul.f32 0.00390625, %v3946_v12  ;;  %4059 = vadd.xlane.f32.xlu1 %v4058_v23  ;;  %4062 = vadd.xlane.f32.xlu0 %v4061_v50  ;;  %v3949_v52 = vpop.xlane.xlu1 %3948  ;;  %v4025_v18 = vmul.f32 %v14398_v59, %v14398_v59  ;;  %v4026_v16 = vmul.f32 %v14401_v29, %v14401_v29 }
 0xa52   : > { %v3970_v46 = vmul.f32 0.00390625, %v3949_v52  ;;  %v4027_v58 = vmul.f32 %v14404_v13, %v14404_v13  ;;  %v4028_v54 = vmul.f32 %v14407_v28, %v14407_v28  ;;  %4687 = vmatpush1.bf16.msra.mxu1 %v8550_v8 }
 0xa53   : > { %v14418_v43 = vsub.f32 %v14269_v22, %v3969_v44  ;;  %v14421_v23 = vsub.f32 %v14271_v30, %v3969_v44  ;;  %v4067_v57 = vadd.f32 %v4026_v16, %v4025_v18 }
 0xa54   : > { %v14424_v50 = vsub.f32 %v14277_v10, %v3970_v46  ;;  %v14427_v52 = vsub.f32 %v14279_v32, %v3970_v46  ;;  %v3952_v12 = vpop.xlane.xlu0 %3951  ;;  %v4070_v19 = vadd.f32 %v4028_v54, %v4027_v58  ;;  %v8551_v46 = vld [vmem:[#allocation14 + $0x164] ss:$16 sps:$4 sm:$0xff]  }
 0xa55   : > { %v3971_v56 = vmul.f32 0.00390625, %v3952_v12  ;;  %4065 = vadd.xlane.f32.xlu1 %v4064_v61  ;;  %4068 = vadd.xlane.f32.xlu0 %v4067_v57  ;;  %v3955_v20 = vpop.xlane.xlu1 %3954  ;;  %v4029_v22 = vmul.f32 %v14418_v43, %v14418_v43  ;;  %v4030_v44 = vmul.f32 %v14421_v23, %v14421_v23  ;;  %v8553_v57 = vld [vmem:[#allocation14 + $0x160] ss:$16 sps:$4 sm:$0xff]  }
 0xa56   : > { %v3972_v18 = vmul.f32 0.00390625, %v3955_v20  ;;  %v4031_v16 = vmul.f32 %v14424_v50, %v14424_v50  ;;  %v4032_v7 = vmul.f32 %v14427_v52, %v14427_v52  ;;  %4688 = vmatprep.subr.bf16.mxu1 %v8551_v46  ;;  %v8560_v46 = vld [vmem:[#allocation14 + $0x1c4] ss:$16 sps:$4 sm:$0xff]  }
 0xa57   : > { %v14438_v61 = vsub.f32 %v14283_v47, %v3971_v56  ;;  %v14441_v58 = vsub.f32 %v14285_v38, %v3971_v56  ;;  %v4073_v54 = vadd.f32 %v4030_v44, %v4029_v22  ;;  %4689 = vmatpush1.bf16.msra.mxu1 %v8553_v57  ;;  %v8554_v44 = vld [vmem:[#allocation14 + $0x184] ss:$16 sps:$4 sm:$0xff]   ;;  %v8565_v38 = vld [vmem:[#allocation14 + $0x1e0] ss:$16 sps:$4 sm:$0xff]  }
 0xa58   : > { %v14444_v12 = vsub.f32 %v14289_v26, %v3972_v18  ;;  %v14447_v20 = vsub.f32 %v14291_v40, %v3972_v18  ;;  %v4076_v32 = vadd.f32 %v4032_v7, %v4031_v16  ;;  %v8556_v40 = vld [vmem:[#allocation14 + $0x180] ss:$16 sps:$4 sm:$0xff]   ;;  %4690 = vmatprep.subr.bf16.mxu1 %v8554_v44  ;;  %v8557_v16 = vld [vmem:[#allocation14 + $0x1a4] ss:$16 sps:$4 sm:$0xff]  }
 0xa59   : > { %4071 = vadd.xlane.f32.xlu1 %v4070_v19  ;;  %4074 = vadd.xlane.f32.xlu0 %v4073_v54  ;;  %v4033_v8 = vmul.f32 %v14438_v61, %v14438_v61  ;;  %v4034_v47 = vmul.f32 %v14441_v58, %v14441_v58  ;;  %v8559_v7 = vld [vmem:[#allocation14 + $0x1a0] ss:$16 sps:$4 sm:$0xff]   ;;  %v8563_v26 = vld [vmem:[#allocation14 + $0x1e4] ss:$16 sps:$4 sm:$0xff]  }
 0xa5a   : > { %v4035_v56 = vmul.f32 %v14444_v12, %v14444_v12  ;;  %v4036_v22 = vmul.f32 %v14447_v20, %v14447_v20  ;;  %v8562_v54 = vld [vmem:[#allocation14 + $0x1c0] ss:$16 sps:$4 sm:$0xff]  }
 0xa5b   : > { %v4079_v18 = vadd.f32 %v4034_v47, %v4033_v8  ;;  %4691 = vmatpush1.bf16.msra.mxu1 %v8556_v40  ;;  %v8568_v47 = vld [vmem:[#allocation14 + $0xc] ss:$16 sps:$4 sm:$0xff]   ;;  %v15648_v10 = vld [vmem:[#allocation60_spill] sm:$0xff] }
 0xa5c   : > { %v4082_v19 = vadd.f32 %v4036_v22, %v4035_v56  ;;  %4692 = vmatprep.subr.bf16.mxu1 %v8557_v16 }
 0xa5d   : > { %4077 = vadd.xlane.f32.xlu1 %v4076_v32  ;;  %4080 = vadd.xlane.f32.xlu0 %v4079_v18 }
 0xa5f   : > { %4693 = vmatpush1.bf16.msra.mxu1 %v8559_v7 }
 0xa60   : > { %4694 = vmatprep.subr.bf16.mxu1 %v8560_v46 }
 0xa61   : > { %4083 = vadd.xlane.f32.xlu1 %v4082_v19 }
 0xa63   : > { %4695 = vmatpush1.bf16.msra.mxu1 %v8562_v54 }
 0xa64   : > { %4696 = vmatprep.subr.bf16.mxu1 %v8563_v26 }
 0xa67   : > { %4697 = vmatpush1.bf16.msra.mxu1 %v8565_v38 }
 0xa68   : > { %4779 = vmatprep.subr.bf16.mxu1 %v8568_v47  ;;  %v4167_v47 = vsub.s32 5, %v15648_v10 }
 0xace   : > { %v4039_v57 = vpop.xlane.xlu0 %4038 }
 0xacf   : > { %v4085_v32 = vmul.f32 0.00390625, %v4039_v57 }
 0xad1   : > { %v4101_v8 = vadd.f32 1e-05, %v4085_v32 }
 0xad2   : > { %v4042_v56 = vpop.xlane.xlu1 %4041  ;;  %v4045_v40 = vpop.xlane.xlu0 %4044 }
 0xad3   : > { %8742 = vrsqrt.f32 %v4101_v8  ;;  %v4086_v22 = vmul.f32 0.00390625, %v4042_v56  ;;  %v4087_v44 = vmul.f32 0.00390625, %v4045_v40  ;;  %v4207_v8 = vsub.s32 6, %v15648_v10 }
 0xad5   : > { %v4102_v18 = vadd.f32 1e-05, %v4086_v22  ;;  %v4103_v19 = vadd.f32 1e-05, %v4087_v44  ;;  %v15649_v22 = vld [vmem:[#allocation28_spill] sm:$0xff] }
 0xad6   : > { %v4048_v16 = vpop.xlane.xlu1 %4047  ;;  %v4051_v7 = vpop.xlane.xlu0 %4050  ;;  %v14460_v44 = vrot.slane %v15649_v22, %v4167_v47 }
 0xad7   : > { %8744 = vrsqrt.f32 %v4102_v18  ;;  %v4088_v46 = vmul.f32 0.00390625, %v4048_v16  ;;  %v4089_v54 = vmul.f32 0.00390625, %v4051_v7  ;;  %v15650_v18 = vld [vmem:[#allocation27_spill] sm:$0xff] }
 0xad8   : > { %8746 = vrsqrt.f32 %v4103_v19  ;;  %v14463_v16 = vrot.slane %v15650_v18, %v4167_v47  ;;  %v14473_v47 = vrot.slane %v15650_v18, %v4207_v8 }
 0xad9   : > { %v4104_v26 = vadd.f32 1e-05, %v4088_v46  ;;  %v4105_v38 = vadd.f32 1e-05, %v4089_v54 }
 0xada   : > { %v4054_v30 = vpop.xlane.xlu1 %4053  ;;  %v4057_v57 = vpop.xlane.xlu0 %4056 }
 0xadb   : > { %8748 = vrsqrt.f32 %v4104_v26  ;;  %v4090_v32 = vmul.f32 0.00390625, %v4054_v30  ;;  %v4091_v41 = vmul.f32 0.00390625, %v4057_v57  ;;  %v14468_v57 = vrot.slane %v15649_v22, %v4207_v8  ;;  %v8617_v8 = vld [vmem:[#allocation15 + $0x14] ss:$8 sps:$4 sm:$0xff]  }
 0xadc   : > { %8750 = vrsqrt.f32 %v4105_v38 }
 0xadd   : > { %v8743_v56 = vpop.eup %8742  ;;  %v4106_v40 = vadd.f32 1e-05, %v4090_v32  ;;  %v4107_v19 = vadd.f32 1e-05, %v4091_v41 }
 0xade   : > { %v4060_v7 = vpop.xlane.xlu1 %4059  ;;  %v4134_v46 = vmul.f32 %v8743_v56, %v14301_v5  ;;  %v4133_v54 = vmul.f32 %v8743_v56, %v14298_v42  ;;  %v4063_v26 = vpop.xlane.xlu0 %4062 }
 0xadf   : > { %8752 = vrsqrt.f32 %v4106_v40  ;;  %v4092_v30 = vmul.f32 0.00390625, %v4060_v7  ;;  %v4093_v40 = vmul.f32 0.00390625, %v4063_v26 }
 0xae0   : > { %v4174_v4 = vmul.f32 %v14460_v44, %v4134_v46  ;;  %v4173_v1 = vmul.f32 %v14463_v16, %v4133_v54  ;;  %8754 = vrsqrt.f32 %v4107_v19 }
 0xae1   : > { %v8745_v38 = vpop.eup %8744  ;;  %v4108_v32 = vadd.f32 1e-05, %v4092_v30  ;;  %v8614_v30 = vld [vmem:[#allocation15 + $0x4] ss:$8 sps:$4 sm:$0xff]  }
 0xae2   : > { %v8747_v41 = vpop.eup %8746  ;;  %v4066_v5 = vpop.xlane.xlu1 %4065  ;;  %v4136_v42 = vmul.f32 %v8745_v38, %v14321_v36  ;;  %v4135_v56 = vmul.f32 %v8745_v38, %v14318_v0  ;;  %v4214_v19 = vadd.f32 %v14468_v57, %v4174_v4  ;;  %v4213_v36 = vadd.f32 %v14473_v47, %v4173_v1  ;;  %5380 = vmatprep.subr.bf16.mxu0 %v8614_v30  ;;  %v8619_v4 = vld [vmem:[#allocation15 + $0x10] ss:$8 sps:$4 sm:$0xff]  }
 0xae3   : > { %8756 = vrsqrt.f32 %v4108_v32  ;;  %v4094_v7 = vmul.f32 0.00390625, %v4066_v5  ;;  %v4138_v25 = vmul.f32 %v8747_v41, %v14307_v51  ;;  %5381 = vmatpush1.bf16.msra.mxu0 %v8616_v63  ;;  %v4069_v1 = vpop.xlane.xlu0 %4068 }
 0xae4   : > { %v4176_v46 = vmul.f32 %v14460_v44, %v4136_v42  ;;  %v4175_v54 = vmul.f32 %v14463_v16, %v4135_v56  ;;  %v4109_v56 = vadd.f32 1e-05, %v4093_v40  ;;  %5382 = vmatprep.subr.bf16.mxu0 %v8617_v8  ;;  %v4095_v8 = vmul.f32 0.00390625, %v4069_v1 }
 0xae5   : > { %v8749_v34 = vpop.eup %8748  ;;  %v4110_v21 = vadd.f32 1e-05, %v4094_v7  ;;  %v4178_v0 = vmul.f32 %v14460_v44, %v4138_v25  ;;  %v4137_v7 = vmul.f32 %v8747_v41, %v14304_v55 }
 0xae6   : > { %v4072_v26 = vpop.xlane.xlu1 %4071  ;;  %v4216_v38 = vadd.f32 %v14468_v57, %v4176_v46  ;;  %v4215_v51 = vadd.f32 %v14473_v47, %v4175_v54  ;;  %v4140_v32 = vmul.f32 %v8749_v34, %v14327_v2  ;;  %v4139_v5 = vmul.f32 %v8749_v34, %v14324_v15  ;;  %v8751_v42 = vpop.eup %8750  ;;  %v8620_v54 = vld [vmem:[#allocation15 + $0x24] ss:$8 sps:$4 sm:$0xff]  }
 0xae7   : > { %8758 = vrsqrt.f32 %v4110_v21  ;;  %v4096_v2 = vmul.f32 0.00390625, %v4072_v26  ;;  %v8571_v34 = vld [vmem:[#allocation14 + $0x2c] ss:$16 sps:$4 sm:$0xff]   ;;  %v4218_v55 = vadd.f32 %v14468_v57, %v4178_v0  ;;  %v4142_v41 = vmul.f32 %v8751_v42, %v14341_v49  ;;  %5383 = vmatpush1.bf16.msra.mxu0 %v8619_v4 }
 0xae8   : > { %v14488_v25 = vpack.c.bf16 %v4216_v38, %v4214_v19  ;;  %v14490_v30 = vpack.c.bf16 %v4215_v51, %v4213_v36  ;;  %v4180_v46 = vmul.f32 %v14460_v44, %v4140_v32  ;;  %v4179_v63 = vmul.f32 %v14463_v16, %v4139_v5  ;;  %v8622_v19 = vld [vmem:[#allocation15 + $0x20] ss:$8 sps:$4 sm:$0xff]   ;;  %5384 = vmatprep.subr.bf16.mxu0 %v8620_v54  ;;  %v8623_v51 = vld [vmem:[#allocation15 + $0x34] ss:$8 sps:$4 sm:$0xff]  }
 0xae9   : > { %v8753_v14 = vpop.eup %8752  ;;  %8760 = vrsqrt.f32 %v4109_v56  ;;  %v4177_v21 = vmul.f32 %v14463_v16, %v4137_v7  ;;  %v8569_v38 = vld [vmem:[#allocation14 + $0x28] ss:$16 sps:$4 sm:$0xff]   ;;  %v4182_v0 = vmul.f32 %v14460_v44, %v4142_v41  ;;  %v4112_v32 = vadd.f32 1e-05, %v4096_v2 }
 0xaea   : > { %4698 = vmatprep.mubr.bf16.mxu1 %v14488_v25  ;;  %v4220_v15 = vadd.f32 %v14468_v57, %v4180_v46  ;;  %v4144_v40 = vmul.f32 %v8753_v14, %v14347_v3  ;;  %v8755_v36 = vpop.eup %8754  ;;  %v8574_v3 = vld [vmem:[#allocation14 + $0x4c] ss:$16 sps:$4 sm:$0xff]   ;;  %v4219_v5 = vadd.f32 %v14473_v47, %v4179_v63  ;;  %v4143_v7 = vmul.f32 %v8753_v14, %v14344_v6  ;;  %v4078_v4 = vpop.xlane.xlu1 %4077  ;;  %v8625_v2 = vld [vmem:[#allocation15 + $0x30] ss:$8 sps:$4 sm:$0xff]  }
 0xaeb   : > { %4699 = vmatmul.mubr.bf16.vlgmr.msra.gmra.mrb[0].mxu1 %v14490_v30  ;;  %v4217_v1 = vadd.f32 %v14473_v47, %v4177_v21  ;;  %v4141_v54 = vmul.f32 %v8751_v42, %v14338_v37  ;;  %5385 = vmatpush1.bf16.msra.mxu0 %v8622_v19  ;;  %v4222_v63 = vadd.f32 %v14468_v57, %v4182_v0  ;;  %8762 = vrsqrt.f32 %v4112_v32  ;;  %v8626_v21 = vld [vmem:[#allocation15 + $0x44] ss:$8 sps:$4 sm:$0xff]   ;;  %v8575_v0 = vld [vmem:[#allocation14 + $0x68] ss:$16 sps:$4 sm:$0xff]  }
 0xaec   : > { %4780 = vmatpush1.bf16.msra.mxu1 %v8566_v27  ;;  %v14501_v26 = vpack.c.bf16 %v4220_v15, %v4218_v55  ;;  %v4184_v56 = vmul.f32 %v14460_v44, %v4144_v40  ;;  %v4111_v27 = vadd.f32 1e-05, %v4095_v8  ;;  %v8572_v55 = vld [vmem:[#allocation14 + $0x48] ss:$16 sps:$4 sm:$0xff]   ;;  %v4146_v15 = vmul.f32 %v8755_v36, %v14361_v9  ;;  %5386 = vmatprep.subr.bf16.mxu0 %v8623_v51  ;;  %v8577_v40 = vld [vmem:[#allocation14 + $0x6c] ss:$16 sps:$4 sm:$0xff]  }
 0xaed   : > { %v8757_v49 = vpop.eup %8756  ;;  %4781 = vmatprep.subr.bf16.mxu1 %v8571_v34  ;;  %v4075_v34 = vpop.xlane.xlu0 %4074  ;;  %v4098_v6 = vmul.f32 0.00390625, %v4078_v4  ;;  %v14514_v41 = vpack.c.bf16 %v4219_v5, %v4217_v1  ;;  %v4183_v37 = vmul.f32 %v14463_v16, %v4143_v7  ;;  %v4181_v9 = vmul.f32 %v14463_v16, %v4141_v54  ;;  %v8580_v5 = vld [vmem:[#allocation14 + $0x8c] ss:$16 sps:$4 sm:$0xff]  }
 0xaee   : > { %4708 = vmatprep.mubr.bf16.mxu1 %v14501_v26  ;;  %v4224_v46 = vadd.f32 %v14468_v57, %v4184_v56  ;;  %v4148_v14 = vmul.f32 %v8757_v49, %v14367_v60  ;;  %8764 = vrsqrt.f32 %v4111_v27  ;;  %v8628_v60 = vld [vmem:[#allocation15 + $0x40] ss:$8 sps:$4 sm:$0xff]   ;;  %v4186_v51 = vmul.f32 %v14460_v44, %v4146_v15  ;;  %v4084_v4 = vpop.xlane.xlu1 %4083 }
 0xaef   : > { %5387 = vmatpush1.bf16.msra.mxu0 %v8625_v2  ;;  %v4223_v56 = vadd.f32 %v14473_v47, %v4183_v37  ;;  %v4147_v7 = vmul.f32 %v8757_v49, %v14364_v11  ;;  %v4221_v2 = vadd.f32 %v14473_v47, %v4181_v9  ;;  %v4100_v49 = vmul.f32 0.00390625, %v4084_v4  ;;  %v8634_v4 = vld [vmem:[#allocation15 + $0x60] ss:$8 sps:$4 sm:$0xff]  }
 0xaf0   : > { %4782 = vmatpush1.bf16.msra.mxu1 %v8569_v38  ;;  %v14517_v42 = vpack.c.bf16 %v4224_v46, %v4222_v63  ;;  %v4188_v8 = vmul.f32 %v14460_v44, %v4148_v14  ;;  %v4097_v38 = vmul.f32 0.00390625, %v4075_v34  ;;  %5388 = vmatprep.subr.bf16.mxu0 %v8626_v21  ;;  %v8629_v46 = vld [vmem:[#allocation15 + $0x54] ss:$8 sps:$4 sm:$0xff]   ;;  %v4145_v34 = vmul.f32 %v8755_v36, %v14358_v39  ;;  %v8578_v63 = vld [vmem:[#allocation14 + $0x88] ss:$16 sps:$4 sm:$0xff]  }
 0xaf1   : > { %4783 = vmatprep.subr.bf16.mxu1 %v8574_v3  ;;  %v8759_v19 = vpop.eup %8758  ;;  %v4114_v3 = vadd.f32 1e-05, %v4098_v6  ;;  %v4226_v15 = vadd.f32 %v14468_v57, %v4186_v51  ;;  %v14532_v14 = vpack.c.bf16 %v4223_v56, %v4221_v2  ;;  %v4187_v6 = vmul.f32 %v14463_v16, %v4147_v7  ;;  %v8631_v36 = vld [vmem:[#allocation15 + $0x50] ss:$8 sps:$4 sm:$0xff]   ;;  %v8632_v21 = vld [vmem:[#allocation15 + $0x64] ss:$8 sps:$4 sm:$0xff]  }
 0xaf2   : > { %v4228_v27 = vadd.f32 %v14468_v57, %v4188_v8  ;;  %v4152_v1 = vmul.f32 %v8759_v19, %v14387_v24  ;;  %v4113_v54 = vadd.f32 1e-05, %v4097_v38  ;;  %v8583_v24 = vld [vmem:[#allocation14 + $0xac] ss:$16 sps:$4 sm:$0xff]   ;;  %v8581_v38 = vld [vmem:[#allocation14 + $0xa8] ss:$16 sps:$4 sm:$0xff]  }
 0xaf3   : > { %4709 = vmatmul.mubr.bf16.gmra.mrb[4].mxu1 %v14514_v41  ;;  %v8761_v32 = vpop.eup %8760  ;;  %5389 = vmatpush1.bf16.msra.mxu0 %v8628_v60  ;;  %8766 = vrsqrt.f32 %v4114_v3  ;;  %v8586_v51 = vld [vmem:[#allocation14 + $0xcc] ss:$16 sps:$4 sm:$0xff]   ;;  %v4227_v3 = vadd.f32 %v14473_v47, %v4187_v6  ;;  %v8584_v2 = vld [vmem:[#allocation14 + $0xc8] ss:$16 sps:$4 sm:$0xff]  }
 0xaf4   : > { %4784 = vmatpush1.bf16.msra.mxu1 %v8572_v55  ;;  %4718 = vmatprep.mubr.bf16.mxu1 %v14517_v42  ;;  %v4081_v55 = vpop.xlane.xlu0 %4080  ;;  %v4150_v11 = vmul.f32 %v8761_v32, %v14381_v33  ;;  %v4192_v39 = vmul.f32 %v14460_v44, %v4152_v1  ;;  %8768 = vrsqrt.f32 %v4113_v54  ;;  %v4185_v33 = vmul.f32 %v14463_v16, %v4145_v34  ;;  %v8635_v54 = vld [vmem:[#allocation15 + $0x74] ss:$8 sps:$4 sm:$0xff]  }
 0xaf5   : > { %4785 = vmatprep.subr.bf16.mxu1 %v8577_v40  ;;  %v14535_v40 = vpack.c.bf16 %v4228_v27, %v4226_v15  ;;  %5390 = vmatprep.subr.bf16.mxu0 %v8629_v46  ;;  %v8763_v37 = vpop.eup %8762  ;;  %v4099_v8 = vmul.f32 0.00390625, %v4081_v55  ;;  %v4149_v46 = vmul.f32 %v8761_v32, %v14378_v53  ;;  %v8637_v53 = vld [vmem:[#allocation15 + $0x70] ss:$8 sps:$4 sm:$0xff]  }
 0xaf6   : > { %v4190_v9 = vmul.f32 %v14460_v44, %v4150_v11  ;;  %v4232_v56 = vadd.f32 %v14468_v57, %v4192_v39  ;;  %v4156_v7 = vmul.f32 %v8763_v37, %v14407_v28  ;;  %v4225_v1 = vadd.f32 %v14473_v47, %v4185_v33  ;;  %v8589_v28 = vld [vmem:[#allocation14 + $0xec] ss:$16 sps:$4 sm:$0xff]  }
 0xaf7   : > { %5391 = vmatpush1.bf16.msra.mxu0 %v8631_v36  ;;  %v4115_v27 = vadd.f32 1e-05, %v4099_v8  ;;  %v4189_v11 = vmul.f32 %v14463_v16, %v4149_v46  ;;  %v8592_v39 = vld [vmem:[#allocation14 + $0x10c] ss:$16 sps:$4 sm:$0xff]   ;;  %v4155_v8 = vmul.f32 %v8763_v37, %v14404_v13 }
 0xaf8   : > { %4786 = vmatpush1.bf16.msra.mxu1 %v8575_v0  ;;  %v8765_v60 = vpop.eup %8764  ;;  %v4116_v0 = vadd.f32 1e-05, %v4100_v49  ;;  %5392 = vmatprep.subr.bf16.mxu0 %v8632_v21  ;;  %v4230_v34 = vadd.f32 %v14468_v57, %v4190_v9  ;;  %v4196_v15 = vmul.f32 %v14460_v44, %v4156_v7  ;;  %v8587_v49 = vld [vmem:[#allocation14 + $0xe8] ss:$16 sps:$4 sm:$0xff]   ;;  %v8595_v37 = vld [vmem:[#allocation14 + $0x12c] ss:$16 sps:$4 sm:$0xff]  }
 0xaf9   : > { %4787 = vmatprep.subr.bf16.mxu1 %v8580_v5  ;;  %v4151_v5 = vmul.f32 %v8759_v19, %v14384_v62  ;;  %v4154_v55 = vmul.f32 %v8765_v60, %v14401_v29  ;;  %v14550_v62 = vpack.c.bf16 %v4227_v3, %v4225_v1  ;;  %v8638_v29 = vld [vmem:[#allocation15 + $0x84] ss:$8 sps:$4 sm:$0xff]   ;;  %v4229_v9 = vadd.f32 %v14473_v47, %v4189_v11  ;;  %v8590_v3 = vld [vmem:[#allocation14 + $0x108] ss:$16 sps:$4 sm:$0xff]  }
 0xafa   : > { %8770 = vrsqrt.f32 %v4116_v0  ;;  %v4236_v33 = vadd.f32 %v14468_v57, %v4196_v15  ;;  %v4153_v0 = vmul.f32 %v8765_v60, %v14398_v59  ;;  %v8643_v59 = vld [vmem:[#allocation15 + $0x90] ss:$8 sps:$4 sm:$0xff]   ;;  %v8644_v1 = vld [vmem:[#allocation15 + $0xa4] ss:$8 sps:$4 sm:$0xff]   ;;  %v8646_v15 = vld [vmem:[#allocation15 + $0xa0] ss:$8 sps:$4 sm:$0xff]  }
 0xafb   : > { %4719 = vmatmul.mubr.bf16.gmra.mrb[8].mxu1 %v14532_v14  ;;  %v4191_v19 = vmul.f32 %v14463_v16, %v4151_v5  ;;  %5393 = vmatpush1.bf16.msra.mxu0 %v8634_v4  ;;  %8772 = vrsqrt.f32 %v4115_v27 }
 0xafc   : > { %4788 = vmatpush1.bf16.msra.mxu1 %v8578_v63  ;;  %4728 = vmatprep.mubr.bf16.mxu1 %v14535_v40  ;;  %v14553_v63 = vpack.c.bf16 %v4232_v56, %v4230_v34  ;;  %v4193_v27 = vmul.f32 %v14463_v16, %v4153_v0 }
 0xafd   : > { %4789 = vmatprep.subr.bf16.mxu1 %v8583_v24  ;;  %v8767_v32 = vpop.eup %8766  ;;  %5394 = vmatprep.subr.bf16.mxu0 %v8635_v54  ;;  %v4194_v24 = vmul.f32 %v14460_v44, %v4154_v55  ;;  %v4231_v36 = vadd.f32 %v14473_v47, %v4191_v19 }
 0xafe   : > { %v8769_v6 = vpop.eup %8768  ;;  %v4160_v21 = vmul.f32 %v8767_v32, %v14427_v52  ;;  %v4195_v52 = vmul.f32 %v14463_v16, %v4155_v8  ;;  %v4159_v55 = vmul.f32 %v8767_v32, %v14424_v50  ;;  %v8601_v32 = vld [vmem:[#allocation14 + $0x16c] ss:$16 sps:$4 sm:$0xff]  }
 0xaff   : > { %5395 = vmatpush1.bf16.msra.mxu0 %v8637_v53  ;;  %v4234_v5 = vadd.f32 %v14468_v57, %v4194_v24  ;;  %v4158_v56 = vmul.f32 %v8769_v6, %v14421_v23  ;;  %v14568_v13 = vpack.c.bf16 %v4231_v36, %v4229_v9  ;;  %v8593_v23 = vld [vmem:[#allocation14 + $0x128] ss:$16 sps:$4 sm:$0xff]   ;;  %v4233_v53 = vadd.f32 %v14473_v47, %v4193_v27 }
 0xb00   : > { %4790 = vmatpush1.bf16.msra.mxu1 %v8581_v38  ;;  %v8640_v38 = vld [vmem:[#allocation15 + $0x80] ss:$8 sps:$4 sm:$0xff]   ;;  %5396 = vmatprep.subr.bf16.mxu0 %v8638_v29  ;;  %v4200_v4 = vmul.f32 %v14460_v44, %v4160_v21  ;;  %v4235_v34 = vadd.f32 %v14473_v47, %v4195_v52  ;;  %v4157_v11 = vmul.f32 %v8769_v6, %v14418_v43  ;;  %v8647_v29 = vld [vmem:[#allocation15 + $0xb4] ss:$8 sps:$4 sm:$0xff]   ;;  %v8649_v43 = vld [vmem:[#allocation15 + $0xb0] ss:$8 sps:$4 sm:$0xff]  }
 0xb01   : > { %4791 = vmatprep.subr.bf16.mxu1 %v8586_v51  ;;  %v8641_v51 = vld [vmem:[#allocation15 + $0x94] ss:$8 sps:$4 sm:$0xff]   ;;  %v14571_v7 = vpack.c.bf16 %v4236_v33, %v4234_v5  ;;  %v4198_v46 = vmul.f32 %v14460_v44, %v4158_v56  ;;  %v8650_v33 = vld [vmem:[#allocation15 + $0xc4] ss:$8 sps:$4 sm:$0xff]   ;;  %v8602_v52 = vld [vmem:[#allocation14 + $0x188] ss:$16 sps:$4 sm:$0xff]  }
 0xb02   : > { %v14586_v50 = vpack.c.bf16 %v4235_v34, %v4233_v53  ;;  %v4197_v6 = vmul.f32 %v14463_v16, %v4157_v11  ;;  %v8613_v34 = vld [vmem:[#allocation14 + $0x1ec] ss:$16 sps:$4 sm:$0xff]  }
 0xb03   : > { %4729 = vmatmul.mubr.bf16.gmra.mrb[12].mxu1 %v14550_v62  ;;  %5397 = vmatpush1.bf16.msra.mxu0 %v8640_v38  ;;  %v4238_v24 = vadd.f32 %v14468_v57, %v4198_v46  ;;  %v8604_v38 = vld [vmem:[#allocation14 + $0x18c] ss:$16 sps:$4 sm:$0xff]  }
 0xb04   : > { %4792 = vmatpush1.bf16.msra.mxu1 %v8584_v2  ;;  %4738 = vmatprep.mubr.bf16.mxu1 %v14553_v63  ;;  %v8771_v60 = vpop.eup %8770  ;;  %v8598_v2 = vld [vmem:[#allocation14 + $0x14c] ss:$16 sps:$4 sm:$0xff]   ;;  %v4237_v5 = vadd.f32 %v14473_v47, %v4197_v6 }
 0xb05   : > { %4793 = vmatprep.subr.bf16.mxu1 %v8589_v28  ;;  %5398 = vmatprep.subr.bf16.mxu0 %v8641_v51  ;;  %v8773_v54 = vpop.eup %8772  ;;  %v4240_v28 = vadd.f32 %v14468_v57, %v4200_v4  ;;  %v4164_v19 = vmul.f32 %v8771_v60, %v14447_v20  ;;  %v4199_v20 = vmul.f32 %v14463_v16, %v4159_v55  ;;  %v8659_v55 = vld [vmem:[#allocation15 + $0xf4] ss:$8 sps:$4 sm:$0xff]  }
 0xb06   : > { %v4163_v0 = vmul.f32 %v8771_v60, %v14444_v12  ;;  %v4161_v56 = vmul.f32 %v8773_v54, %v14438_v61  ;;  %v8655_v60 = vld [vmem:[#allocation15 + $0xd0] ss:$8 sps:$4 sm:$0xff]   ;;  %v8667_v6 = vld [vmem:[#allocation15 + $0x114] ss:$8 sps:$4 sm:$0xff]  }
 0xb07   : > { %5399 = vmatpush1.bf16.msra.mxu0 %v8643_v59  ;;  %v14589_v36 = vpack.c.bf16 %v4240_v28, %v4238_v24  ;;  %v4204_v8 = vmul.f32 %v14460_v44, %v4164_v19  ;;  %v4239_v9 = vadd.f32 %v14473_v47, %v4199_v20  ;;  %v8607_v59 = vld [vmem:[#allocation14 + $0x1ac] ss:$16 sps:$4 sm:$0xff]   ;;  %v8605_v61 = vld [vmem:[#allocation14 + $0x1a8] ss:$16 sps:$4 sm:$0xff]  }
 0xb08   : > { %4794 = vmatpush1.bf16.msra.mxu1 %v8587_v49  ;;  %5400 = vmatprep.subr.bf16.mxu0 %v8644_v1  ;;  %v8596_v49 = vld [vmem:[#allocation14 + $0x148] ss:$16 sps:$4 sm:$0xff]   ;;  %v4203_v27 = vmul.f32 %v14463_v16, %v4163_v0  ;;  %v4201_v1 = vmul.f32 %v14463_v16, %v4161_v56 }
 0xb09   : > { %4795 = vmatprep.subr.bf16.mxu1 %v8592_v39  ;;  %v4162_v39 = vmul.f32 %v8773_v54, %v14441_v58  ;;  %v8599_v58 = vld [vmem:[#allocation14 + $0x168] ss:$16 sps:$4 sm:$0xff]   ;;  %v4244_v51 = vadd.f32 %v14468_v57, %v4204_v8  ;;  %v4257_v4 = vpack.c.bf16 %v4239_v9, %v4237_v5  ;;  %v8670_v5 = vld [vmem:[#allocation15 + $0x124] ss:$8 sps:$4 sm:$0xff]  }
 0xb0a   : > { %v4243_v46 = vadd.f32 %v14473_v47, %v4203_v27  ;;  %v8608_v54 = vld [vmem:[#allocation14 + $0x1c8] ss:$16 sps:$4 sm:$0xff]  }
 0xb0b   : > { %4739 = vmatmul.mubr.bf16.gmra.mrb[16].mxu1 %v14568_v13  ;;  %5401 = vmatpush1.bf16.msra.mxu0 %v8646_v15  ;;  %v4202_v21 = vmul.f32 %v14460_v44, %v4162_v39  ;;  %v8611_v16 = vld [vmem:[#allocation14 + $0x1e8] ss:$16 sps:$4 sm:$0xff]  }
 0xb0c   : > { %4796 = vmatpush1.bf16.msra.mxu1 %v8590_v3  ;;  %4748 = vmatprep.mubr.bf16.mxu1 %v14571_v7  ;;  %v8652_v3 = vld [vmem:[#allocation15 + $0xc0] ss:$8 sps:$4 sm:$0xff]   ;;  %v8665_v0 = vld [vmem:[#allocation15 + $0x110] ss:$8 sps:$4 sm:$0xff]  }
 0xb0d   : > { %4797 = vmatprep.subr.bf16.mxu1 %v8595_v37  ;;  %5402 = vmatprep.subr.bf16.mxu0 %v8647_v29  ;;  %v8653_v37 = vld [vmem:[#allocation15 + $0xd4] ss:$8 sps:$4 sm:$0xff]   ;;  %v4242_v44 = vadd.f32 %v14468_v57, %v4202_v21  ;;  %v4241_v57 = vadd.f32 %v14473_v47, %v4201_v1  ;;  %v8656_v47 = vld [vmem:[#allocation15 + $0xe4] ss:$8 sps:$4 sm:$0xff]  }
 0xb0f   : > { %5403 = vmatpush1.bf16.msra.mxu0 %v8649_v43  ;;  %v4260_v12 = vpack.c.bf16 %v4244_v51, %v4242_v44 }
 0xb10   : > { %4798 = vmatpush1.bf16.msra.mxu1 %v8593_v23  ;;  %5404 = vmatprep.subr.bf16.mxu0 %v8650_v33  ;;  %v8610_v23 = vld [vmem:[#allocation14 + $0x1cc] ss:$16 sps:$4 sm:$0xff]  }
 0xb11   : > { %4799 = vmatprep.subr.bf16.mxu1 %v8598_v2  ;;  %v4259_v2 = vpack.c.bf16 %v4243_v46, %v4241_v57 }
 0xb13   : > { %4749 = vmatmul.mubr.bf16.gmra.mrb[20].mxu1 %v14586_v50  ;;  %5405 = vmatpush1.bf16.msra.mxu0 %v8652_v3 }
 0xb14   : > { %4800 = vmatpush1.bf16.msra.mxu1 %v8596_v49  ;;  %4758 = vmatprep.mubr.bf16.mxu1 %v14589_v36 }
 0xb15   : > { %4801 = vmatprep.subr.bf16.mxu1 %v8601_v32  ;;  %5406 = vmatprep.subr.bf16.mxu0 %v8653_v37 }
 0xb17   : > { %5407 = vmatpush1.bf16.msra.mxu0 %v8655_v60  ;;  %v8673_v60 = vld [vmem:[#allocation15 + $0x134] ss:$8 sps:$4 sm:$0xff]  }
 0xb18   : > { %4802 = vmatpush1.bf16.msra.mxu1 %v8599_v58  ;;  %5408 = vmatprep.subr.bf16.mxu0 %v8656_v47 }
 0xb19   : > { %4803 = vmatprep.subr.bf16.mxu1 %v8604_v38 }
 0xb1b   : > { %4759 = vmatmul.mubr.bf16.gmra.mrb[24].mxu1 %v4257_v4 }
 0xb1c   : > { %4804 = vmatpush1.bf16.msra.mxu1 %v8602_v52  ;;  %4768 = vmatprep.mubr.bf16.mxu1 %v4260_v12 }
 0xb1d   : > { %4805 = vmatprep.subr.bf16.mxu1 %v8607_v59  ;;  %v8668_v59 = vld [vmem:[#allocation15 + $0x120] ss:$8 sps:$4 sm:$0xff]  }
 0xb20   : > { %4806 = vmatpush1.bf16.msra.mxu1 %v8605_v61 }
 0xb21   : > { %4807 = vmatprep.subr.bf16.mxu1 %v8610_v23 }
 0xb23   : > { %4769 = vmatmul.mubr.bf16.gmra.mrb[28].mxu1 %v4259_v2 }
 0xb24   : > { %4808 = vmatpush1.bf16.msra.mxu1 %v8608_v54  ;;  %4811 = vmatprep.mubr.bf16.mxu1 %v14488_v25  ;;  %v8658_v25 = vld [vmem:[#allocation15 + $0xe0] ss:$8 sps:$4 sm:$0xff]   ;;  %v8671_v54 = vld [vmem:[#allocation15 + $0x130] ss:$8 sps:$4 sm:$0xff]  }
 0xb25   : > { %4809 = vmatprep.subr.bf16.mxu1 %v8613_v34  ;;  %5409 = vmatpush1.bf16.msra.mxu0 %v8658_v25 }
 0xb26   : > { %5410 = vmatprep.subr.bf16.mxu0 %v8659_v55 }
 0xb28   : > { %4810 = vmatpush1.bf16.msra.mxu1 %v8611_v16  ;;  %v8676_v16 = vld [vmem:[#allocation15 + $0x144] ss:$8 sps:$4 sm:$0xff]  }
 0xb2b   : > { %4812 = vmatmul.mubr.bf16.vlgmr.msra.gmra.mrb[32].mxu1 %v14490_v30  ;;  %v8661_v30 = vld [vmem:[#allocation15 + $0xf0] ss:$8 sps:$4 sm:$0xff]  }
 0xb2c   : > { %4821 = vmatprep.mubr.bf16.mxu1 %v14501_v26  ;;  %5411 = vmatpush1.bf16.msra.mxu0 %v8661_v30  ;;  %v8664_v26 = vld [vmem:[#allocation15 + $0x104] ss:$8 sps:$4 sm:$0xff]  }
 0xb2d   : > { %5493 = vmatprep.subr.bf16.mxu0 %v8664_v26 }
 0xb33   : > { %4822 = vmatmul.mubr.bf16.gmra.mrb[36].mxu1 %v14514_v41  ;;  %v4328_v41 = vsub.s32 0, %v15648_v10 }
 0xb34   : > { %4831 = vmatprep.mubr.bf16.mxu1 %v14517_v42  ;;  %v4332_v42 = vsub.s32 1, %v15648_v10 }
 0xb3b   : > { %4832 = vmatmul.mubr.bf16.gmra.mrb[40].mxu1 %v14532_v14  ;;  %v15651_v14 = vld [vmem:[#allocation29_spill] sm:$0xff] }
 0xb3c   : > { %4841 = vmatprep.mubr.bf16.mxu1 %v14535_v40  ;;  %v14622_v40 = vrot.slane %v15651_v14, %v4328_v41  ;;  %v8674_v41 = vld [vmem:[#allocation15 + $0x140] ss:$8 sps:$4 sm:$0xff]  }
 0xb43   : > { %4842 = vmatmul.mubr.bf16.gmra.mrb[44].mxu1 %v14550_v62  ;;  %v14625_v62 = vrot.slane %v15651_v14, %v4332_v42 }
 0xb44   : > { %4851 = vmatprep.mubr.bf16.mxu1 %v14553_v63 }
 0xb4b   : > { %4852 = vmatmul.mubr.bf16.gmra.mrb[48].mxu1 %v14568_v13 }
 0xb4c   : > { %4861 = vmatprep.mubr.bf16.mxu1 %v14571_v7 }
 0xb53   : > { %4862 = vmatmul.mubr.bf16.gmra.mrb[52].mxu1 %v14586_v50 }
 0xb54   : > { %4871 = vmatprep.mubr.bf16.mxu1 %v14589_v36  ;;  %v8662_v36 = vld [vmem:[#allocation15 + $0x100] ss:$8 sps:$4 sm:$0xff]  }
 0xb5b   : > { %4872 = vmatmul.mubr.bf16.gmra.mrb[56].mxu1 %v4257_v4 }
 0xb5c   : > { %4881 = vmatprep.mubr.bf16.mxu1 %v4260_v12 }
 0xb63   : > { %4882 = vmatmul.mubr.bf16.gmra.mrb[60].mxu1 %v4259_v2 }
 0xbbe   : > { %v4700_v63 = vpop.f32.mrb[0].mxu1 }
 0xbbf   : > { %v4701_v13 = vadd.f32 %v4700_v63, %v14622_v40  ;;  %v4702_v7 = vpop.f32.mrb[1].mxu1 }
 0xbc0   : > { %v4703_v28 = vadd.f32 %v4702_v7, %v14625_v62  ;;  %v4704_v19 = vpop.f32.mrb[2].mxu1 }
 0xbc1   : > { %v4705_v15 = vadd.f32 %v4704_v19, %v14622_v40  ;;  %v4706_v53 = vpop.f32.mrb[3].mxu1  ;;  %v4892_v29 = vmax.f32 %v4701_v13, 0.0  ;;  %v8679_v13 = vld [vmem:[#allocation15 + $0x154] ss:$8 sps:$4 sm:$0xff]  }
 0xbc2   : > { %v4707_v11 = vadd.f32 %v4706_v53, %v14625_v62  ;;  %v4893_v24 = vmax.f32 %v4703_v28, 0.0 }
 0xbc3   : > { %v4896_v49 = vmax.f32 %v4705_v15, 0.0 }
 0xbc4   : > { %v4897_v39 = vmax.f32 %v4707_v11, 0.0  ;;  %v8677_v11 = vld [vmem:[#allocation15 + $0x150] ss:$8 sps:$4 sm:$0xff]  }
 0xbc5   : > { %v4956_v50 = vpack.c.bf16 %v4896_v49, %v4892_v29 }
 0xbc6   : > { %v4710_v32 = vpop.f32.mrb[4].mxu1  ;;  %v4957_v20 = vpack.c.bf16 %v4897_v39, %v4893_v24  ;;  %v8682_v24 = vld [vmem:[#allocation15 + $0x164] ss:$8 sps:$4 sm:$0xff]  }
 0xbc7   : > { %v4711_v8 = vadd.f32 %v4710_v32, %v14622_v40  ;;  %v4712_v43 = vpop.f32.mrb[5].mxu1 }
 0xbc8   : > { %v4713_v33 = vadd.f32 %v4712_v43, %v14625_v62  ;;  %v4714_v58 = vpop.f32.mrb[6].mxu1  ;;  %5412 = vmatprep.mubr.bf16.mxu0 %v4957_v20 }
 0xbc9   : > { %v4715_v21 = vadd.f32 %v4714_v58, %v14622_v40  ;;  %v4716_v38 = vpop.f32.mrb[7].mxu1  ;;  %5413 = vmatmul.mubr.bf16.vlgmr.msra.gmra.mrb[0].mxu0 %v4956_v50  ;;  %v4900_v51 = vmax.f32 %v4711_v8, 0.0  ;;  %v8680_v8 = vld [vmem:[#allocation15 + $0x160] ss:$8 sps:$4 sm:$0xff]  }
 0xbca   : > { %v4717_v9 = vadd.f32 %v4716_v38, %v14625_v62  ;;  %5494 = vmatpush1.bf16.msra.mxu0 %v8662_v36  ;;  %v4901_v56 = vmax.f32 %v4713_v33, 0.0  ;;  %v8685_v33 = vld [vmem:[#allocation15 + $0x174] ss:$8 sps:$4 sm:$0xff]  }
 0xbcb   : > { %v4904_v3 = vmax.f32 %v4715_v21, 0.0  ;;  %5495 = vmatprep.subr.bf16.mxu0 %v8667_v6 }
 0xbcc   : > { %v4905_v37 = vmax.f32 %v4717_v9, 0.0 }
 0xbcd   : > { %v4960_v52 = vpack.c.bf16 %v4904_v3, %v4900_v51  ;;  %v8683_v51 = vld [vmem:[#allocation15 + $0x170] ss:$8 sps:$4 sm:$0xff]  }
 0xbce   : > { %v4961_v44 = vpack.c.bf16 %v4905_v37, %v4901_v56  ;;  %5496 = vmatpush1.bf16.msra.mxu0 %v8665_v0  ;;  %v4720_v4 = vpop.f32.mrb[8].mxu1  ;;  %v8688_v56 = vld [vmem:[#allocation15 + $0x184] ss:$8 sps:$4 sm:$0xff]  }
 0xbcf   : > { %v4721_v27 = vadd.f32 %v4720_v4, %v14622_v40  ;;  %v4722_v12 = vpop.f32.mrb[9].mxu1  ;;  %5497 = vmatprep.subr.bf16.mxu0 %v8670_v5 }
 0xbd0   : > { %v4723_v1 = vadd.f32 %v4722_v12, %v14625_v62  ;;  %v4724_v61 = vpop.f32.mrb[10].mxu1  ;;  %5422 = vmatprep.mubr.bf16.mxu0 %v4961_v44 }
 0xbd1   : > { %v4725_v23 = vadd.f32 %v4724_v61, %v14622_v40  ;;  %v4726_v46 = vpop.f32.mrb[11].mxu1  ;;  %5423 = vmatmul.mubr.bf16.gmra.mrb[4].mxu0 %v4960_v52  ;;  %v4908_v2 = vmax.f32 %v4721_v27, 0.0  ;;  %v8686_v27 = vld [vmem:[#allocation15 + $0x180] ss:$8 sps:$4 sm:$0xff]  }
 0xbd2   : > { %v4727_v57 = vadd.f32 %v4726_v46, %v14625_v62  ;;  %5498 = vmatpush1.bf16.msra.mxu0 %v8668_v59  ;;  %v4909_v47 = vmax.f32 %v4723_v1, 0.0  ;;  %v8691_v1 = vld [vmem:[#allocation15 + $0x194] ss:$8 sps:$4 sm:$0xff]  }
 0xbd3   : > { %v4912_v34 = vmax.f32 %v4725_v23, 0.0  ;;  %5499 = vmatprep.subr.bf16.mxu0 %v8673_v60 }
 0xbd4   : > { %v4913_v25 = vmax.f32 %v4727_v57, 0.0 }
 0xbd5   : > { %v4964_v55 = vpack.c.bf16 %v4912_v34, %v4908_v2  ;;  %v8689_v2 = vld [vmem:[#allocation15 + $0x190] ss:$8 sps:$4 sm:$0xff]  }
 0xbd6   : > { %v4965_v30 = vpack.c.bf16 %v4913_v25, %v4909_v47  ;;  %5500 = vmatpush1.bf16.msra.mxu0 %v8671_v54  ;;  %v4730_v26 = vpop.f32.mrb[12].mxu1  ;;  %v8694_v47 = vld [vmem:[#allocation15 + $0x1a4] ss:$8 sps:$4 sm:$0xff]  }
 0xbd7   : > { %v4731_v42 = vadd.f32 %v4730_v26, %v14622_v40  ;;  %v4732_v63 = vpop.f32.mrb[13].mxu1  ;;  %5501 = vmatprep.subr.bf16.mxu0 %v8676_v16 }
 0xbd8   : > { %v4733_v7 = vadd.f32 %v4732_v63, %v14625_v62  ;;  %v4734_v28 = vpop.f32.mrb[14].mxu1  ;;  %5432 = vmatprep.mubr.bf16.mxu0 %v4965_v30 }
 0xbd9   : > { %v4735_v19 = vadd.f32 %v4734_v28, %v14622_v40  ;;  %v4736_v15 = vpop.f32.mrb[15].mxu1  ;;  %5433 = vmatmul.mubr.bf16.gmra.mrb[8].mxu0 %v4964_v55  ;;  %v4916_v29 = vmax.f32 %v4731_v42, 0.0  ;;  %v8692_v42 = vld [vmem:[#allocation15 + $0x1a0] ss:$8 sps:$4 sm:$0xff]  }
 0xbda   : > { %v4737_v53 = vadd.f32 %v4736_v15, %v14625_v62  ;;  %5502 = vmatpush1.bf16.msra.mxu0 %v8674_v41  ;;  %v4917_v39 = vmax.f32 %v4733_v7, 0.0  ;;  %v8697_v7 = vld [vmem:[#allocation15 + $0x1b4] ss:$8 sps:$4 sm:$0xff]  }
 0xbdb   : > { %v4920_v49 = vmax.f32 %v4735_v19, 0.0  ;;  %5503 = vmatprep.subr.bf16.mxu0 %v8679_v13 }
 0xbdc   : > { %v4921_v50 = vmax.f32 %v4737_v53, 0.0 }
 0xbdd   : > { %v4968_v32 = vpack.c.bf16 %v4920_v49, %v4916_v29  ;;  %v8695_v29 = vld [vmem:[#allocation15 + $0x1b0] ss:$8 sps:$4 sm:$0xff]  }
 0xbde   : > { %v4969_v20 = vpack.c.bf16 %v4921_v50, %v4917_v39  ;;  %5504 = vmatpush1.bf16.msra.mxu0 %v8677_v11  ;;  %v4740_v36 = vpop.f32.mrb[16].mxu1  ;;  %v8700_v39 = vld [vmem:[#allocation15 + $0x1c4] ss:$8 sps:$4 sm:$0xff]  }
 0xbdf   : > { %v4741_v43 = vadd.f32 %v4740_v36, %v14622_v40  ;;  %v4742_v6 = vpop.f32.mrb[17].mxu1  ;;  %5505 = vmatprep.subr.bf16.mxu0 %v8682_v24 }
 0xbe0   : > { %v4743_v58 = vadd.f32 %v4742_v6, %v14625_v62  ;;  %v4744_v21 = vpop.f32.mrb[18].mxu1  ;;  %5442 = vmatprep.mubr.bf16.mxu0 %v4969_v20 }
 0xbe1   : > { %v4745_v38 = vadd.f32 %v4744_v21, %v14622_v40  ;;  %v4746_v9 = vpop.f32.mrb[19].mxu1  ;;  %5443 = vmatmul.mubr.bf16.gmra.mrb[12].mxu0 %v4968_v32  ;;  %v4924_v3 = vmax.f32 %v4741_v43, 0.0  ;;  %v8698_v43 = vld [vmem:[#allocation15 + $0x1c0] ss:$8 sps:$4 sm:$0xff]   ;;  %v4336_v21 = vsub.s32 2, %v15648_v10 }
 0xbe2   : > { %v4747_v0 = vadd.f32 %v4746_v9, %v14625_v62  ;;  %5506 = vmatpush1.bf16.msra.mxu0 %v8680_v8  ;;  %v4925_v37 = vmax.f32 %v4743_v58, 0.0  ;;  %v8703_v58 = vld [vmem:[#allocation15 + $0x1d4] ss:$8 sps:$4 sm:$0xff]  }
 0xbe3   : > { %v4928_v5 = vmax.f32 %v4745_v38, 0.0  ;;  %5507 = vmatprep.subr.bf16.mxu0 %v8685_v33 }
 0xbe4   : > { %v4929_v52 = vmax.f32 %v4747_v0, 0.0  ;;  %v4340_v0 = vsub.s32 3, %v15648_v10 }
 0xbe5   : > { %v4972_v44 = vpack.c.bf16 %v4928_v5, %v4924_v3 }
 0xbe6   : > { %v4973_v4 = vpack.c.bf16 %v4929_v52, %v4925_v37  ;;  %5508 = vmatpush1.bf16.msra.mxu0 %v8683_v51  ;;  %v4750_v59 = vpop.f32.mrb[20].mxu1 }
 0xbe7   : > { %v4751_v12 = vadd.f32 %v4750_v59, %v14622_v40  ;;  %v4752_v60 = vpop.f32.mrb[21].mxu1  ;;  %5509 = vmatprep.subr.bf16.mxu0 %v8688_v56  ;;  %v8701_v56 = vld [vmem:[#allocation15 + $0x1d0] ss:$8 sps:$4 sm:$0xff]  }
 0xbe8   : > { %v4753_v61 = vadd.f32 %v4752_v60, %v14625_v62  ;;  %v4754_v23 = vpop.f32.mrb[22].mxu1  ;;  %5452 = vmatprep.mubr.bf16.mxu0 %v4973_v4  ;;  %v8706_v4 = vld [vmem:[#allocation15 + $0x1e4] ss:$8 sps:$4 sm:$0xff]  }
 0xbe9   : > { %v4755_v46 = vadd.f32 %v4754_v23, %v14622_v40  ;;  %v4756_v57 = vpop.f32.mrb[23].mxu1  ;;  %5453 = vmatmul.mubr.bf16.gmra.mrb[16].mxu0 %v4972_v44  ;;  %v4932_v34 = vmax.f32 %v4751_v12, 0.0  ;;  %v14662_v44 = vrot.slane %v15651_v14, %v4336_v21  ;;  %v14665_v12 = vrot.slane %v15651_v14, %v4340_v0 }
 0xbea   : > { %v4757_v54 = vadd.f32 %v4756_v57, %v14625_v62  ;;  %5510 = vmatpush1.bf16.msra.mxu0 %v8686_v27  ;;  %v4933_v25 = vmax.f32 %v4753_v61, 0.0  ;;  %v8704_v61 = vld [vmem:[#allocation15 + $0x1e0] ss:$8 sps:$4 sm:$0xff]  }
 0xbeb   : > { %v4936_v16 = vmax.f32 %v4755_v46, 0.0  ;;  %5511 = vmatprep.subr.bf16.mxu0 %v8691_v1  ;;  %v8709_v46 = vld [vmem:[#allocation15 + $0x1f4] ss:$8 sps:$4 sm:$0xff]  }
 0xbec   : > { %v4937_v55 = vmax.f32 %v4757_v54, 0.0 }
 0xbed   : > { %v4976_v30 = vpack.c.bf16 %v4936_v16, %v4932_v34  ;;  %v8707_v16 = vld [vmem:[#allocation15 + $0x1f0] ss:$8 sps:$4 sm:$0xff]  }
 0xbee   : > { %v4977_v26 = vpack.c.bf16 %v4937_v55, %v4933_v25  ;;  %5512 = vmatpush1.bf16.msra.mxu0 %v8689_v2  ;;  %v4760_v41 = vpop.f32.mrb[24].mxu1 }
 0xbef   : > { %v4761_v63 = vadd.f32 %v4760_v41, %v14622_v40  ;;  %v4762_v13 = vpop.f32.mrb[25].mxu1  ;;  %5513 = vmatprep.subr.bf16.mxu0 %v8694_v47 }
 0xbf0   : > { %v4763_v28 = vadd.f32 %v4762_v13, %v14625_v62  ;;  %v4764_v19 = vpop.f32.mrb[26].mxu1  ;;  %5462 = vmatprep.mubr.bf16.mxu0 %v4977_v26 }
 0xbf1   : > { %v4765_v15 = vadd.f32 %v4764_v19, %v14622_v40  ;;  %v4766_v53 = vpop.f32.mrb[27].mxu1  ;;  %5463 = vmatmul.mubr.bf16.gmra.mrb[20].mxu0 %v4976_v30  ;;  %v4940_v49 = vmax.f32 %v4761_v63, 0.0 }
 0xbf2   : > { %v4767_v11 = vadd.f32 %v4766_v53, %v14625_v62  ;;  %5514 = vmatpush1.bf16.msra.mxu0 %v8692_v42  ;;  %v4941_v50 = vmax.f32 %v4763_v28, 0.0 }
 0xbf3   : > { %v4944_v24 = vmax.f32 %v4765_v15, 0.0  ;;  %5515 = vmatprep.subr.bf16.mxu0 %v8697_v7 }
 0xbf4   : > { %v4945_v32 = vmax.f32 %v4767_v11, 0.0 }
 0xbf5   : > { %v4980_v20 = vpack.c.bf16 %v4944_v24, %v4940_v49 }
 0xbf6   : > { %v4981_v36 = vpack.c.bf16 %v4945_v32, %v4941_v50  ;;  %5516 = vmatpush1.bf16.msra.mxu0 %v8695_v29  ;;  %v4770_v8 = vpop.f32.mrb[28].mxu1 }
 0xbf7   : > { %v4771_v6 = vadd.f32 %v4770_v8, %v14622_v40  ;;  %v4772_v33 = vpop.f32.mrb[29].mxu1  ;;  %5517 = vmatprep.subr.bf16.mxu0 %v8700_v39 }
 0xbf8   : > { %v4773_v38 = vadd.f32 %v4772_v33, %v14625_v62  ;;  %v4774_v9 = vpop.f32.mrb[30].mxu1  ;;  %5472 = vmatprep.mubr.bf16.mxu0 %v4981_v36 }
 0xbf9   : > { %v4775_v51 = vadd.f32 %v4774_v9, %v14622_v40  ;;  %v4776_v3 = vpop.f32.mrb[31].mxu1  ;;  %5473 = vmatmul.mubr.bf16.gmra.mrb[24].mxu0 %v4980_v20  ;;  %v4948_v37 = vmax.f32 %v4771_v6, 0.0 }
 0xbfa   : > { %v4777_v5 = vadd.f32 %v4776_v3, %v14625_v62  ;;  %5518 = vmatpush1.bf16.msra.mxu0 %v8698_v43  ;;  %v4949_v59 = vmax.f32 %v4773_v38, 0.0 }
 0xbfb   : > { %v4952_v52 = vmax.f32 %v4775_v51, 0.0  ;;  %5519 = vmatprep.subr.bf16.mxu0 %v8703_v58 }
 0xbfc   : > { %v4953_v27 = vmax.f32 %v4777_v5, 0.0 }
 0xbfd   : > { %v4984_v60 = vpack.c.bf16 %v4952_v52, %v4948_v37 }
 0xbfe   : > { %v4985_v40 = vpack.c.bf16 %v4953_v27, %v4949_v59  ;;  %5520 = vmatpush1.bf16.msra.mxu0 %v8701_v56  ;;  %v4813_v1 = vpop.f32.mrb[32].mxu1 }
 0xbff   : > { %v4814_v62 = vadd.f32 %v4813_v1, %v14662_v44  ;;  %v4815_v23 = vpop.f32.mrb[33].mxu1  ;;  %5521 = vmatprep.subr.bf16.mxu0 %v8706_v4 }
 0xc00   : > { %v4816_v57 = vadd.f32 %v4815_v23, %v14665_v12  ;;  %v4817_v54 = vpop.f32.mrb[34].mxu1  ;;  %5482 = vmatprep.mubr.bf16.mxu0 %v4985_v40 }
 0xc01   : > { %v4818_v2 = vadd.f32 %v4817_v54, %v14662_v44  ;;  %v4819_v34 = vpop.f32.mrb[35].mxu1  ;;  %5483 = vmatmul.mubr.bf16.gmra.mrb[28].mxu0 %v4984_v60  ;;  %v4894_v47 = vmax.f32 %v4814_v62, 0.0 }
 0xc02   : > { %v4820_v14 = vadd.f32 %v4819_v34, %v14665_v12  ;;  %5522 = vmatpush1.bf16.msra.mxu0 %v8704_v61  ;;  %v4895_v55 = vmax.f32 %v4816_v57, 0.0 }
 0xc03   : > { %v4898_v25 = vmax.f32 %v4818_v2, 0.0  ;;  %5523 = vmatprep.subr.bf16.mxu0 %v8709_v46 }
 0xc04   : > { %v4899_v30 = vmax.f32 %v4820_v14, 0.0 }
 0xc05   : > { %v4958_v26 = vpack.c.bf16 %v4898_v25, %v4894_v47 }
 0xc06   : > { %v4959_v41 = vpack.c.bf16 %v4899_v30, %v4895_v55  ;;  %5524 = vmatpush1.bf16.msra.mxu0 %v8707_v16  ;;  %v4823_v42 = vpop.f32.mrb[36].mxu1 }
 0xc07   : > { %v4824_v63 = vadd.f32 %v4823_v42, %v14662_v44  ;;  %v4825_v13 = vpop.f32.mrb[37].mxu1 }
 0xc08   : > { %v4826_v7 = vadd.f32 %v4825_v13, %v14665_v12  ;;  %v4827_v28 = vpop.f32.mrb[38].mxu1  ;;  %5525 = vmatprep.mubr.bf16.mxu0 %v4959_v41 }
 0xc09   : > { %v4828_v19 = vadd.f32 %v4827_v28, %v14662_v44  ;;  %v4829_v15 = vpop.f32.mrb[39].mxu1  ;;  %5526 = vmatmul.mubr.bf16.vlgmr.msra.gmra.mrb[0].mxu0 %v4958_v26  ;;  %v4902_v11 = vmax.f32 %v4824_v63, 0.0 }
 0xc0a   : > { %v4830_v53 = vadd.f32 %v4829_v15, %v14665_v12  ;;  %v4903_v49 = vmax.f32 %v4826_v7, 0.0 }
 0xc0b   : > { %v4906_v29 = vmax.f32 %v4828_v19, 0.0 }
 0xc0c   : > { %v4907_v24 = vmax.f32 %v4830_v53, 0.0 }
 0xc0d   : > { %v4962_v39 = vpack.c.bf16 %v4906_v29, %v4902_v11 }
 0xc0e   : > { %v4963_v50 = vpack.c.bf16 %v4907_v24, %v4903_v49  ;;  %v4833_v32 = vpop.f32.mrb[40].mxu1 }
 0xc0f   : > { %v4834_v20 = vadd.f32 %v4833_v32, %v14662_v44  ;;  %v4835_v36 = vpop.f32.mrb[41].mxu1 }
 0xc10   : > { %v4836_v8 = vadd.f32 %v4835_v36, %v14665_v12  ;;  %v4837_v43 = vpop.f32.mrb[42].mxu1  ;;  %5535 = vmatprep.mubr.bf16.mxu0 %v4963_v50 }
 0xc11   : > { %v4838_v6 = vadd.f32 %v4837_v43, %v14662_v44  ;;  %v4839_v33 = vpop.f32.mrb[43].mxu1  ;;  %5536 = vmatmul.mubr.bf16.gmra.mrb[4].mxu0 %v4962_v39  ;;  %v4910_v21 = vmax.f32 %v4834_v20, 0.0 }
 0xc12   : > { %v4840_v58 = vadd.f32 %v4839_v33, %v14665_v12  ;;  %v4911_v9 = vmax.f32 %v4836_v8, 0.0 }
 0xc13   : > { %v4914_v38 = vmax.f32 %v4838_v6, 0.0 }
 0xc14   : > { %v4915_v0 = vmax.f32 %v4840_v58, 0.0 }
 0xc15   : > { %v4966_v51 = vpack.c.bf16 %v4914_v38, %v4910_v21 }
 0xc16   : > { %v4967_v3 = vpack.c.bf16 %v4915_v0, %v4911_v9  ;;  %v4843_v5 = vpop.f32.mrb[44].mxu1 }
 0xc17   : > { %v4844_v56 = vadd.f32 %v4843_v5, %v14662_v44  ;;  %v4845_v37 = vpop.f32.mrb[45].mxu1 }
 0xc18   : > { %v4846_v52 = vadd.f32 %v4845_v37, %v14665_v12  ;;  %v4847_v4 = vpop.f32.mrb[46].mxu1  ;;  %5545 = vmatprep.mubr.bf16.mxu0 %v4967_v3 }
 0xc19   : > { %v4848_v59 = vadd.f32 %v4847_v4, %v14662_v44  ;;  %v4849_v27 = vpop.f32.mrb[47].mxu1  ;;  %5546 = vmatmul.mubr.bf16.gmra.mrb[8].mxu0 %v4966_v51  ;;  %v4918_v40 = vmax.f32 %v4844_v56, 0.0 }
 0xc1a   : > { %v4850_v60 = vadd.f32 %v4849_v27, %v14665_v12  ;;  %v4919_v61 = vmax.f32 %v4846_v52, 0.0 }
 0xc1b   : > { %v4922_v1 = vmax.f32 %v4848_v59, 0.0 }
 0xc1c   : > { %v4923_v62 = vmax.f32 %v4850_v60, 0.0 }
 0xc1d   : > { %v4970_v23 = vpack.c.bf16 %v4922_v1, %v4918_v40 }
 0xc1e   : > { %v4971_v46 = vpack.c.bf16 %v4923_v62, %v4919_v61  ;;  %v4853_v57 = vpop.f32.mrb[48].mxu1 }
 0xc1f   : > { %v4854_v54 = vadd.f32 %v4853_v57, %v14662_v44  ;;  %v4855_v2 = vpop.f32.mrb[49].mxu1 }
 0xc20   : > { %v4856_v34 = vadd.f32 %v4855_v2, %v14665_v12  ;;  %v4857_v14 = vpop.f32.mrb[50].mxu1  ;;  %5555 = vmatprep.mubr.bf16.mxu0 %v4971_v46  ;;  %v5054_v2 = vsub.s32 7, %v15648_v10 }
 0xc21   : > { %v4858_v16 = vadd.f32 %v4857_v14, %v14662_v44  ;;  %v4859_v47 = vpop.f32.mrb[51].mxu1  ;;  %5556 = vmatmul.mubr.bf16.gmra.mrb[12].mxu0 %v4970_v23  ;;  %v4926_v55 = vmax.f32 %v4854_v54, 0.0 }
 0xc22   : > { %v4860_v25 = vadd.f32 %v4859_v47, %v14665_v12  ;;  %v4927_v26 = vmax.f32 %v4856_v34, 0.0  ;;  %v14701_v34 = vrot.slane %v15650_v18, %v5054_v2 }
 0xc23   : > { %v4930_v30 = vmax.f32 %v4858_v16, 0.0 }
 0xc24   : > { %v4931_v41 = vmax.f32 %v4860_v25, 0.0 }
 0xc25   : > { %v4974_v42 = vpack.c.bf16 %v4930_v30, %v4926_v55 }
 0xc26   : > { %v4975_v63 = vpack.c.bf16 %v4931_v41, %v4927_v26  ;;  %v4863_v13 = vpop.f32.mrb[52].mxu1 }
 0xc27   : > { %v4864_v7 = vadd.f32 %v4863_v13, %v14662_v44  ;;  %v4865_v28 = vpop.f32.mrb[53].mxu1 }
 0xc28   : > { %v4866_v19 = vadd.f32 %v4865_v28, %v14665_v12  ;;  %v4867_v15 = vpop.f32.mrb[54].mxu1  ;;  %5565 = vmatprep.mubr.bf16.mxu0 %v4975_v63 }
 0xc29   : > { %v4868_v53 = vadd.f32 %v4867_v15, %v14662_v44  ;;  %v4869_v11 = vpop.f32.mrb[55].mxu1  ;;  %5566 = vmatmul.mubr.bf16.gmra.mrb[16].mxu0 %v4974_v42  ;;  %v4934_v49 = vmax.f32 %v4864_v7, 0.0 }
 0xc2a   : > { %v4870_v29 = vadd.f32 %v4869_v11, %v14665_v12  ;;  %v4935_v39 = vmax.f32 %v4866_v19, 0.0  ;;  %v15652_v19 = vld [vmem:[#allocation57_spill] sm:$0xff] }
 0xc2b   : > { %v4938_v24 = vmax.f32 %v4868_v53, 0.0  ;;  %v15653_v53 = vld [vmem:[#allocation58_spill] sm:$0xff] }
 0xc2c   : > { %v4939_v50 = vmax.f32 %v4870_v29, 0.0  ;;  %v15654_v29 = vld [vmem:[#allocation59_spill] sm:$0xff] }
 0xc2d   : > { %v4978_v32 = vpack.c.bf16 %v4938_v24, %v4934_v49 }
 0xc2e   : > { %v4979_v20 = vpack.c.bf16 %v4939_v50, %v4935_v39  ;;  %v4873_v36 = vpop.f32.mrb[56].mxu1 }
 0xc2f   : > { %v4874_v8 = vadd.f32 %v4873_v36, %v14662_v44  ;;  %v4875_v43 = vpop.f32.mrb[57].mxu1 }
 0xc30   : > { %v4876_v6 = vadd.f32 %v4875_v43, %v14665_v12  ;;  %v4877_v33 = vpop.f32.mrb[58].mxu1  ;;  %5575 = vmatprep.mubr.bf16.mxu0 %v4979_v20  ;;  %v15655_v20 = vld [vmem:[#allocation61_spill] sm:$0xff] }
 0xc31   : > { %v4878_v58 = vadd.f32 %v4877_v33, %v14662_v44  ;;  %v4879_v21 = vpop.f32.mrb[59].mxu1  ;;  %5576 = vmatmul.mubr.bf16.gmra.mrb[20].mxu0 %v4978_v32  ;;  %v4942_v9 = vmax.f32 %v4874_v8, 0.0 }
 0xc32   : > { %v4880_v38 = vadd.f32 %v4879_v21, %v14665_v12  ;;  %v4943_v51 = vmax.f32 %v4876_v6, 0.0  ;;  %v15656_v6 = vld [vmem:[#allocation62_spill] sm:$0xff]  ;;  %v15657_v21 = vld [vmem:[#allocation63_spill] sm:$0xff] }
 0xc33   : > { %v4946_v0 = vmax.f32 %v4878_v58, 0.0 }
 0xc34   : > { %v4947_v3 = vmax.f32 %v4880_v38, 0.0 }
 0xc35   : > { %v4982_v5 = vpack.c.bf16 %v4946_v0, %v4942_v9  ;;  %v15658_v9 = vld [vmem:[#allocation64_spill] sm:$0xff] }
 0xc36   : > { %v4983_v56 = vpack.c.bf16 %v4947_v3, %v4943_v51  ;;  %v4883_v37 = vpop.f32.mrb[60].mxu1 }
 0xc37   : > { %v4884_v52 = vadd.f32 %v4883_v37, %v14662_v44  ;;  %v4885_v4 = vpop.f32.mrb[61].mxu1 }
 0xc38   : > { %v4886_v59 = vadd.f32 %v4885_v4, %v14665_v12  ;;  %v4887_v27 = vpop.f32.mrb[62].mxu1  ;;  %5585 = vmatprep.mubr.bf16.mxu0 %v4983_v56 }
 0xc39   : > { %v4888_v60 = vadd.f32 %v4887_v27, %v14662_v44  ;;  %v4889_v40 = vpop.f32.mrb[63].mxu1  ;;  %5586 = vmatmul.mubr.bf16.gmra.mrb[24].mxu0 %v4982_v5  ;;  %v4950_v61 = vmax.f32 %v4884_v52, 0.0  ;;  %v14704_v44 = vrot.slane %v15649_v22, %v5054_v2  ;;  %v15659_v52 = vld [vmem:[#allocation65_spill] sm:$0xff] }
 0xc3a   : > { %v4890_v1 = vadd.f32 %v4889_v40, %v14665_v12  ;;  %v4951_v23 = vmax.f32 %v4886_v59, 0.0 }
 0xc3b   : > { %v4954_v62 = vmax.f32 %v4888_v60, 0.0  ;;  %v15660_v60 = vld [vmem:[#allocation66_spill] sm:$0xff] }
 0xc3c   : > { %v4955_v46 = vmax.f32 %v4890_v1, 0.0 }
 0xc3d   : > { %v4986_v57 = vpack.c.bf16 %v4954_v62, %v4950_v61  ;;  %v15661_v61 = vld [vmem:[#allocation67_spill] sm:$0xff] }
 0xc3e   : > { %v4987_v54 = vpack.c.bf16 %v4955_v46, %v4951_v23  ;;  %v15662_v23 = vld [vmem:[#allocation68_spill] sm:$0xff] }
 0xc40   : > { %5595 = vmatprep.mubr.bf16.mxu0 %v4987_v54 }
 0xc41   : > { %5596 = vmatmul.mubr.bf16.gmra.mrb[28].mxu0 %v4986_v57 }
 0xcdc   : > { %v5527_v12 = vpop.f32.mrb[0].mxu0 }
 0xcdd   : > { %v6631_v14 = vadd.f32 %v5527_v12, %v14701_v34  ;;  %v5529_v16 = vpop.f32.mrb[1].mxu0 }
 0xcde   : > { %v6632_v47 = vadd.f32 %v5529_v16, %v14704_v44  ;;  %v5531_v25 = vpop.f32.mrb[2].mxu0  ;;  %v15663_v16 = vld [vmem:[#allocation69_spill] sm:$0xff] }
 0xcdf   : > { %v5606_v55 = vadd.f32 %v6631_v14, %v14160_v45  ;;  %v6633_v30 = vadd.f32 %v5531_v25, %v14701_v34  ;;  %v5533_v10 = vpop.f32.mrb[3].mxu0 }
 0xce0   : > { %v5607_v18 = vadd.f32 %v6632_v47, %v14167_v31  ;;  %v6634_v26 = vadd.f32 %v5533_v10, %v14704_v44 }
 0xce1   : > { %5638 = vst [vmem:[%s10782_s30] sm:$0xff] %v5606_v55  ;;  %v5608_v22 = vadd.f32 %v6633_v30, %v14169_v35  ;;  %v15664_v30 = vld [vmem:[#allocation70_spill] sm:$0xff] }
 0xce2   : > { %5639 = vst [vmem:[%s10782_s30 + $0x8] sm:$0xff] %v5607_v18  ;;  %v5609_v41 = vadd.f32 %v6634_v26, %v14180_v17  ;;  %v15665_v26 = vld [vmem:[#allocation71_spill] sm:$0xff] }
 0xce3   : > { %5640 = vst [vmem:[%s10782_s30 + $0x10] sm:$0xff] %v5608_v22 }
 0xce4   : > { %5641 = vst [vmem:[%s10782_s30 + $0x18] sm:$0xff] %v5609_v41  ;;  %v5537_v45 = vpop.f32.mrb[4].mxu0  ;;  %v15666_v41 = vld [vmem:[#allocation72_spill] sm:$0xff] }
 0xce5   : > { %v6635_v42 = vadd.f32 %v5537_v45, %v14701_v34  ;;  %v5539_v63 = vpop.f32.mrb[5].mxu0 }
 0xce6   : > { %v6636_v31 = vadd.f32 %v5539_v63, %v14704_v44  ;;  %v5541_v13 = vpop.f32.mrb[6].mxu0 }
 0xce7   : > { %v5610_v7 = vadd.f32 %v6635_v42, %v14164_v48  ;;  %v6637_v28 = vadd.f32 %v5541_v13, %v14701_v34  ;;  %v5543_v35 = vpop.f32.mrb[7].mxu0 }
 0xce8   : > { %v5611_v15 = vadd.f32 %v6636_v31, %v15652_v19  ;;  %v6638_v17 = vadd.f32 %v5543_v35, %v14704_v44 }
 0xce9   : > { %5642 = vst [vmem:[%s10782_s30 + $0x20] sm:$0xff] %v5610_v7  ;;  %v5612_v11 = vadd.f32 %v6637_v28, %v15653_v53  ;;  %v15667_v28 = vld [vmem:[#allocation73_spill] sm:$0xff] }
 0xcea   : > { %5643 = vst [vmem:[%s10782_s30 + $0x28] sm:$0xff] %v5611_v15  ;;  %v5613_v49 = vadd.f32 %v6638_v17, %v15654_v29  ;;  %v15668_v17 = vld [vmem:[#allocation74_spill] sm:$0xff]  ;;  %v15669_v29 = vld [vmem:[#allocation75_spill] sm:$0xff] }
 0xceb   : > { %5644 = vst [vmem:[%s10782_s30 + $0x30] sm:$0xff] %v5612_v11 }
 0xcec   : > { %5645 = vst [vmem:[%s10782_s30 + $0x38] sm:$0xff] %v5613_v49  ;;  %v5547_v48 = vpop.f32.mrb[8].mxu0 }
 0xced   : > { %v6639_v24 = vadd.f32 %v5547_v48, %v14701_v34  ;;  %v5549_v39 = vpop.f32.mrb[9].mxu0  ;;  %v15670_v48 = vld [vmem:[#allocation76_spill] sm:$0xff] }
 0xcee   : > { %v6640_v50 = vadd.f32 %v5549_v39, %v14704_v44  ;;  %v5551_v32 = vpop.f32.mrb[10].mxu0 }
 0xcef   : > { %v5614_v36 = vadd.f32 %v6639_v24, %v15655_v20  ;;  %v6641_v8 = vadd.f32 %v5551_v32, %v14701_v34  ;;  %v5553_v43 = vpop.f32.mrb[11].mxu0 }
 0xcf0   : > { %v5615_v33 = vadd.f32 %v6640_v50, %v15656_v6  ;;  %v6642_v58 = vadd.f32 %v5553_v43, %v14704_v44 }
 0xcf1   : > { %5646 = vst [vmem:[%s10782_s30 + $0x40] sm:$0xff] %v5614_v36  ;;  %v5616_v38 = vadd.f32 %v6641_v8, %v15657_v21  ;;  %v15673_v8 = vld [vmem:[#allocation77_spill] sm:$0xff] }
 0xcf2   : > { %5647 = vst [vmem:[%s10782_s30 + $0x48] sm:$0xff] %v5615_v33  ;;  %v5617_v0 = vadd.f32 %v6642_v58, %v15658_v9  ;;  %v15674_v58 = vld [vmem:[#allocation78_spill] sm:$0xff]  ;;  %v15675_v9 = vld [vmem:[#allocation79_spill] sm:$0xff] }
 0xcf3   : > { %5648 = vst [vmem:[%s10782_s30 + $0x50] sm:$0xff] %v5616_v38 }
 0xcf4   : > { %5649 = vst [vmem:[%s10782_s30 + $0x58] sm:$0xff] %v5617_v0  ;;  %v5557_v51 = vpop.f32.mrb[12].mxu0 }
 0xcf5   : > { %v6643_v3 = vadd.f32 %v5557_v51, %v14701_v34  ;;  %v5559_v5 = vpop.f32.mrb[13].mxu0  ;;  %v15676_v51 = vld [vmem:[#allocation80_spill] sm:$0xff] }
 0xcf6   : > { %v6644_v56 = vadd.f32 %v5559_v5, %v14704_v44  ;;  %v5561_v37 = vpop.f32.mrb[14].mxu0 }
 0xcf7   : > { %v5618_v4 = vadd.f32 %v6643_v3, %v15659_v52  ;;  %v6645_v59 = vadd.f32 %v5561_v37, %v14701_v34  ;;  %v5563_v27 = vpop.f32.mrb[15].mxu0 }
 0xcf8   : > { %v5619_v40 = vadd.f32 %v6644_v56, %v15660_v60  ;;  %v6646_v1 = vadd.f32 %v5563_v27, %v14704_v44 }
 0xcf9   : > { %5650 = vst [vmem:[%s10782_s30 + $0x60] sm:$0xff] %v5618_v4  ;;  %v5620_v62 = vadd.f32 %v6645_v59, %v15661_v61  ;;  %v15677_v59 = vld [vmem:[#allocation81_spill] sm:$0xff] }
 0xcfa   : > { %5651 = vst [vmem:[%s10782_s30 + $0x68] sm:$0xff] %v5619_v40  ;;  %v5621_v46 = vadd.f32 %v6646_v1, %v15662_v23  ;;  %v15678_v1 = vld [vmem:[#allocation82_spill] sm:$0xff]  ;;  %v15679_v23 = vld [vmem:[#allocation176_spill] sm:$0xff] }
 0xcfb   : > { %5652 = vst [vmem:[%s10782_s30 + $0x70] sm:$0xff] %v5620_v62 }
 0xcfc   : > { %5653 = vst [vmem:[%s10782_s30 + $0x78] sm:$0xff] %v5621_v46  ;;  %v5567_v57 = vpop.f32.mrb[16].mxu0 }
 0xcfd   : > { %v6647_v54 = vadd.f32 %v5567_v57, %v14701_v34  ;;  %v5569_v2 = vpop.f32.mrb[17].mxu0  ;;  %v15680_v57 = vld [vmem:[#allocation177_spill] sm:$0xff] }
 0xcfe   : > { %v6648_v12 = vadd.f32 %v5569_v2, %v14704_v44  ;;  %v5571_v14 = vpop.f32.mrb[18].mxu0 }
 0xcff   : > { %v5622_v47 = vadd.f32 %v6647_v54, %v15663_v16  ;;  %v6649_v25 = vadd.f32 %v5571_v14, %v14701_v34  ;;  %v5573_v55 = vpop.f32.mrb[19].mxu0 }
 0xd00   : > { %v5623_v10 = vadd.f32 %v6648_v12, %v15664_v30  ;;  %v6650_v18 = vadd.f32 %v5573_v55, %v14704_v44 }
 0xd01   : > { %5654 = vst [vmem:[%s10782_s30 + $0x80] sm:$0xff] %v5622_v47  ;;  %v5624_v22 = vadd.f32 %v6649_v25, %v15665_v26 }
 0xd02   : > { %5655 = vst [vmem:[%s10782_s30 + $0x88] sm:$0xff] %v5623_v10  ;;  %v5625_v45 = vadd.f32 %v6650_v18, %v15666_v41 }
 0xd03   : > { %5656 = vst [vmem:[%s10782_s30 + $0x90] sm:$0xff] %v5624_v22 }
 0xd04   : > { %5657 = vst [vmem:[%s10782_s30 + $0x98] sm:$0xff] %v5625_v45  ;;  %v5577_v42 = vpop.f32.mrb[20].mxu0 }
 0xd05   : > { %v6651_v63 = vadd.f32 %v5577_v42, %v14701_v34  ;;  %v5579_v31 = vpop.f32.mrb[21].mxu0 }
 0xd06   : > { %v6652_v13 = vadd.f32 %v5579_v31, %v14704_v44  ;;  %v5581_v7 = vpop.f32.mrb[22].mxu0 }
 0xd07   : > { %v5626_v35 = vadd.f32 %v6651_v63, %v15667_v28  ;;  %v6653_v19 = vadd.f32 %v5581_v7, %v14701_v34  ;;  %v5583_v15 = vpop.f32.mrb[23].mxu0 }
 0xd08   : > { %v5627_v53 = vadd.f32 %v6652_v13, %v15668_v17  ;;  %v6654_v11 = vadd.f32 %v5583_v15, %v14704_v44 }
 0xd09   : > { %5658 = vst [vmem:[%s10782_s30 + $0xa0] sm:$0xff] %v5626_v35  ;;  %v5628_v49 = vadd.f32 %v6653_v19, %v15669_v29 }
 0xd0a   : > { %5659 = vst [vmem:[%s10782_s30 + $0xa8] sm:$0xff] %v5627_v53  ;;  %v5629_v24 = vadd.f32 %v6654_v11, %v15670_v48 }
 0xd0b   : > { %5660 = vst [vmem:[%s10782_s30 + $0xb0] sm:$0xff] %v5628_v49 }
 0xd0c   : > { %5661 = vst [vmem:[%s10782_s30 + $0xb8] sm:$0xff] %v5629_v24  ;;  %v5587_v39 = vpop.f32.mrb[24].mxu0 }
 0xd0d   : > { %v6655_v50 = vadd.f32 %v5587_v39, %v14701_v34  ;;  %v5589_v32 = vpop.f32.mrb[25].mxu0 }
 0xd0e   : > { %v6656_v20 = vadd.f32 %v5589_v32, %v14704_v44  ;;  %v5591_v36 = vpop.f32.mrb[26].mxu0 }
 0xd0f   : > { %v5630_v43 = vadd.f32 %v6655_v50, %v15673_v8  ;;  %v6657_v6 = vadd.f32 %v5591_v36, %v14701_v34  ;;  %v5593_v33 = vpop.f32.mrb[27].mxu0 }
 0xd10   : > { %v5631_v21 = vadd.f32 %v6656_v20, %v15674_v58  ;;  %v6658_v38 = vadd.f32 %v5593_v33, %v14704_v44 }
 0xd11   : > { %5662 = vst [vmem:[%s10782_s30 + $0xc0] sm:$0xff] %v5630_v43  ;;  %v5632_v0 = vadd.f32 %v6657_v6, %v15675_v9 }
 0xd12   : > { %5663 = vst [vmem:[%s10782_s30 + $0xc8] sm:$0xff] %v5631_v21  ;;  %v5633_v3 = vadd.f32 %v6658_v38, %v15676_v51 }
 0xd13   : > { %5664 = vst [vmem:[%s10782_s30 + $0xd0] sm:$0xff] %v5632_v0 }
 0xd14   : > { %5665 = vst [vmem:[%s10782_s30 + $0xd8] sm:$0xff] %v5633_v3  ;;  %v5597_v5 = vpop.f32.mrb[28].mxu0 }
 0xd15   : > { %v6659_v56 = vadd.f32 %v5597_v5, %v14701_v34  ;;  %v5599_v37 = vpop.f32.mrb[29].mxu0 }
 0xd16   : > { %v6660_v52 = vadd.f32 %v5599_v37, %v14704_v44  ;;  %v5601_v4 = vpop.f32.mrb[30].mxu0 }
 0xd17   : > { %v5634_v27 = vadd.f32 %v6659_v56, %v15677_v59  ;;  %v6661_v60 = vadd.f32 %v5601_v4, %v14701_v34  ;;  %v5603_v40 = vpop.f32.mrb[31].mxu0 }
 0xd18   : > { %v5635_v61 = vadd.f32 %v6660_v52, %v15678_v1  ;;  %v6662_v62 = vadd.f32 %v5603_v40, %v14704_v44 }
 0xd19   : > { %5666 = vst [vmem:[%s10782_s30 + $0xe0] sm:$0xff] %v5634_v27  ;;  %v5636_v46 = vadd.f32 %v6661_v60, %v15679_v23 }
 0xd1a   : > { %5667 = vst [vmem:[%s10782_s30 + $0xe8] sm:$0xff] %v5635_v61  ;;  %v5637_v54 = vadd.f32 %v6662_v62, %v15680_v57 }
 0xd1b   : > { %5668 = vst [vmem:[%s10782_s30 + $0xf0] sm:$0xff] %v5636_v46 }
 0xd1c   : > { %5669 = vst [vmem:[%s10782_s30 + $0xf8] sm:$0xff] %v5637_v54 }
 0xd1d   : > { %8957 = shalt.err (!%p8954_p10)
}
 0xd1e   : > { %s8958_s24 = scalar_lea.hbm %s14808_s20, 4096  ;;  %s8962_s26 = scalar_lea.hbm %s15681_s2, 16384 }
 0xd1f   : > { %p8959_p3 = scmp.ne.s32.totalorder %s14808_s20, %s8958_s24  ;;  %p8963_p2 = scmp.lt.u32.totalorder %s14808_s20, %s15681_s2 }
 0xd20   : > { %p8964_p6 = scmp.lt.u32.totalorder %s8962_s26, %s8958_s24  ;;  %p8966_p11 = scmp.lt.u32.totalorder %s8958_s24, %s14808_s20 }
 0xd21   : > { %p8960_p12 = pnand %p8959_p3, %p15682_p8 }
 0xd22   : > { %p8965_p9 = por %p8964_p6, %p8963_p2 }
 0xd23   : > { %p8961_p5 = pneg %p8960_p12 }
 0xd24   : > { %p8967_p1 = por %p8966_p11, %p8965_p9 }
 0xd26   : > { %p8968_p13 = pnand %p8967_p1, %p8961_p5 }
 0xd28   : > { %8971 = shalt.err (!%p8968_p13)
}
 0xd29   : > { %s10387_s8 = smov 256   ;;  %s10388_s18 = smov 16  }
 0xd2a   : > { %6717 = dma.vmem_to_hbm [thread:$0]  (%p15682_p8), %s14801_s6, 4096, %s14808_s20, %s14814_s17, %s10387_s8, %s10387_s8, %s10388_s18  }
 0xd2b PF: > { %p6754_p7 = scmp.ge.s32.totalorder %s9726_s15, 2  ;;  %s5702_s21 = sand.u32 1, %s9686_s27  }
 0xd2c   : > { %p15683_p0 = scmp.ne.s32.totalorder %s15047_s0, 0  ;;  %s5703_s7 = scalar_lea.sflag [#allocation8], %s5702_s21 }
 0xd2e   : > { %p6740_p4 = pnand %p6754_p7, %p15683_p0 }
 0xd30   : > { %9681 = dma.done.wait (!%p6740_p4), %s5703_s7, 4096  }
 0xd31   : > { %9683 = vsyncadd (!%p6740_p4), %s5703_s7, 4294963200  ;;  %s27_s15 = sadd.s32 1, %s9726_s15   ;;  %s15684_s27 = smov %s9690_s28 }
 0xd32   : > { %p24_p10 = scmp.ge.s32.totalorder %s27_s15, 6   ;;  %s15685_s28 = smov %s9694_s29 }
 0xd33   : > { %s15686_s29 = smov %s10687_s12  ;;  %s15687_s30 = smov %s9702_s9 }
 0xd34   : > { %s15688_s9 = smov %s9706_s10  ;;  %s15689_s10 = smov %s10684_s19 }
 0xd35   : > { %s15690_s11 = smov %s9718_s13  ;;  %s15691_s12 = smov %s9722_s14 }
 0xd36   : > { %s15692_s13 = smov %s15695_s22  ;;  %s15693_s14 = smov %s15699_s16 }
 0xd37   :  { %26 = sbr.rel (!%p24_p10) target bundleno = 21 (0x15), region = 163 }
 0xd3e   :  { %5708 = vsyncpa [#allocation7], 1 }
 0xd3f   :  { %5710 = vsyncpa [#allocation7 + $0x1], 1 }
 0xd40   :  { %5711 = vsyncpa [#allocation10], 1 }
 0xd41   :  { %5712 = vsyncpa [#allocation13], 1 }
 0xd42   :  { %5713 = vsyncpa [#allocation16], 1 }
 0xd43   :  { %5714 = vsyncpa [#allocation8], 1 }
 0xd44   :  { %5716 = vsyncpa [#allocation8 + $0x1], 1 }

</bundles_post_ra>
